<compile_context>
chip_gen: v6e
topology: v6e:2x2x1
jax: 0.10.0
libtpu: 0.0.40
codegen_flags: <defaults>
</compile_context>

<pallas_src>
import functools
import math

import jax
import jax.numpy as jnp
from jax import lax
from jax.experimental import pallas as pl
from jax.experimental.pallas import tpu as pltpu

_BN_EPS = 1e-5

_CompilerParams = getattr(pltpu, "CompilerParams", None) or getattr(
    pltpu, "TPUCompilerParams")


def _round_up(x, m):
    return ((x + m - 1) // m) * m


def _vmem_limit_bytes():
    # v5e/v6e have 128 MiB physical VMEM, v7x only 64 MiB -> derive per chip.
    try:
        cap = int(pltpu.get_tpu_info().vmem_capacity_bytes)
    except Exception:
        cap = 64 * 1024 * 1024
    return int(min(cap * 3 // 4, 96 * 1024 * 1024))


_VMEM_LIMIT = _vmem_limit_bytes()
_TILE_BUDGET = _VMEM_LIMIT // 2   # per-kernel working-set target (pipeline headroom)


def _mosaic_params(dim_sem):
    return _CompilerParams(dimension_semantics=dim_sem,
                           vmem_limit_bytes=_VMEM_LIMIT)


def _cost(flops, transcendentals, bytes_accessed):
    try:
        return pl.CostEstimate(flops=int(flops),
                               transcendentals=int(transcendentals),
                               bytes_accessed=int(bytes_accessed))
    except Exception:
        return None


def _apply_act(y, act):
    if act == "relu":
        return jnp.maximum(y, 0.0)
    if act == "leaky":
        return jnp.where(y > 0.0, y, 0.01 * y)
    if act == "sigmoid":
        return 1.0 / (1.0 + jnp.exp(-y))
    return y


# ----------------------------------------------------------------------------
# Lowering-capability probe (dynamic sublane slice + sublane<->lane reshapes)
# ----------------------------------------------------------------------------
def _probe_kernel(x_ref, o_ref):
    d = pl.program_id(0)
    a = x_ref[1:5, pl.ds(d + 1, 4), :]          # static + dynamic window slice
    b = a.reshape(16, 32) + 1.0                 # merge leading dims into sublanes
    o_ref[...] = b.reshape(4, 128)              # sublane -> lane repack


def _probe_fancy_lowering():
    try:
        x = jnp.arange(6 * 10 * 32, dtype=jnp.float32).reshape(6, 10, 32)
        out = pl.pallas_call(
            _probe_kernel,
            out_shape=jax.ShapeDtypeStruct((4, 128), jnp.float32),
            grid=(1,),
            in_specs=[pl.BlockSpec((6, 10, 32), lambda i: (0, 0, 0))],
            out_specs=pl.BlockSpec((4, 128), lambda i: (0, 0)),
        )(x)
        ref = x[1:5, 1:5, :].reshape(16, 32) + 1.0
        return bool(jnp.allclose(out, ref.reshape(4, 128)))
    except Exception:
        return False


_FANCY = _probe_fancy_lowering()


# ----------------------------------------------------------------------------
# Tiled fused GEMM  (x @ (BN-folded weight) + bias -> activation)
# ----------------------------------------------------------------------------
def _mm_bias_act_kernel(x_ref, w_ref, b_ref, o_ref, *, act, pack):
    y = jnp.dot(x_ref[...], w_ref[...], preferred_element_type=jnp.float32)
    y = _apply_act(y + b_ref[...], act)
    if pack > 1:                                    # lane-dense packed store
        tm, n = y.shape
        y = y.reshape(tm // pack, n * pack)
    o_ref[...] = y.astype(o_ref.dtype)


def matmul_bias_act(x, w, bias, act, out_dtype=jnp.float32):
    """x: (M, K), w: (K, N) with BN scale folded in, bias: (N,).

    bf16 operands / f32 MXU accumulation, M-tiled + pipelined, megacore
    parallel, lane-dense packed stores when N < 128.  The M-tile is a divisor
    (or the full extent) of M whenever possible so no HBM pad copy is made.
    """
    M, K = x.shape
    N = w.shape[1]
    xb = x.astype(jnp.bfloat16)
    wb = w.astype(jnp.bfloat16)
    bias2 = bias.reshape(1, N).astype(jnp.float32)
    out_size = jnp.dtype(out_dtype).itemsize

    pack = 1
    if (_FANCY and N < 128 and 128 % N == 0
            and M % (128 // N) == 0 and M >= 8 * (128 // N)):
        pack = 128 // N

    row_bytes = 2 * (K * 2) + 2 * (N * out_size)    # double-buffered in + out rows
    target = max(16, min(4096,
                         (_TILE_BUDGET - 2 * K * N * 2) // max(row_bytes, 1)))

    if M <= target:
        tm, m_pad = M, M                  # single full-extent tile: no pad needed
    else:
        align = 16 * pack                 # bf16 sublane packing x row packing
        tm = None
        t = align
        while t <= min(M, target):
            if M % t == 0:
                tm = t
            t += align
        if tm is None:                    # no divisor tile: pad the tail (rare)
            tm = min(_round_up(target, align), _round_up(M, align))
            m_pad = _round_up(M, tm)
            xb = jnp.pad(xb, ((0, m_pad - M), (0, 0)))
        else:
            m_pad = M

    out = pl.pallas_call(
        functools.partial(_mm_bias_act_kernel, act=act, pack=pack),
        out_shape=jax.ShapeDtypeStruct((m_pad // pack, N * pack), out_dtype),
        grid=(m_pad // tm,),
        in_specs=[
            pl.BlockSpec((tm, K), lambda i: (i, 0)),
            pl.BlockSpec((K, N), lambda i: (0, 0)),
            pl.BlockSpec((1, N), lambda i: (0, 0)),
        ],
        out_specs=pl.BlockSpec((tm // pack, N * pack), lambda i: (i, 0)),
        compiler_params=_mosaic_params(("parallel",)),
        cost_estimate=_cost(2 * m_pad * K * N,
                            m_pad * N if act == "sigmoid" else 0,
                            m_pad * K * 2 + K * N * 2 + m_pad * N * out_size),
    )(xb, wb, bias2)
    out = out.reshape(m_pad, N)
    return out if m_pad == M else out[:M]


# ----------------------------------------------------------------------------
# Direct 3x3x3 stride-1 pad-1 conv: all 27 taps in one K=27*Cin MXU dot
# ----------------------------------------------------------------------------
def _conv3d_s1_kernel(x0_ref, x1_ref, x2_ref, w_ref, b_ref, o_ref, patch_ref,
                      *, TH, W, Cin, Cout, act):
    # Build the (TH*W, 27*Cin) im2col operand in VMEM from static window slices
    # of the three kd slabs, then contract all 27 taps in ONE dot — the MXU
    # contraction depth is filled and there is no f32 accumulator round-trip.
    for kd, x_ref in enumerate((x0_ref, x1_ref, x2_ref)):
        for kh in range(3):
            for kw in range(3):
                j = (kd * 3 + kh) * 3 + kw
                tap = x_ref[kh:kh + TH, kw:kw + W, :].reshape(TH * W, Cin)
                patch_ref[:, j * Cin:(j + 1) * Cin] = tap
    y = jnp.dot(patch_ref[...], w_ref[...], preferred_element_type=jnp.float32)
    y = _apply_act(y + b_ref[...], act)
    o_ref[...] = y.reshape(TH, W * Cout).astype(o_ref.dtype)   # lane-dense store


def _pick_conv_h_tile(H, W, Cin, Cout, out_size):
    for nH in range(1, H + 1):
        if H % nH:
            continue
        TH = H // nH
        in_b = 3 * 2 * _round_up(TH + 2, 16) * (W + 2) * _round_up(Cin, 128) * 2
        patch_b = _round_up(TH * W, 16) * _round_up(27 * Cin, 128) * 2
        out_b = 2 * _round_up(TH, 8) * _round_up(W * Cout, 128) * out_size
        if in_b + patch_b + out_b <= _TILE_BUDGET:
            return TH
    return None


def conv3d_s1_direct(x, w, scale, bias, act, out_dtype):
    B, D, H, W, Cin = x.shape
    Cout = w.shape[-1]
    out_size = jnp.dtype(out_dtype).itemsize
    TH = _pick_conv_h_tile(H, W, Cin, Cout, out_size)
    if TH is None:
        return None                         # absurdly wide rows: caller falls back
    nH = H // TH

    wf = (w.astype(jnp.float32) * scale.astype(jnp.float32)).astype(jnp.bfloat16)
    wf = wf.reshape(27 * Cin, Cout)         # rows ordered (kd, kh, kw, Cin)
    bias2 = bias.reshape(1, Cout).astype(jnp.float32)

    xp = jnp.pad(x.astype(jnp.bfloat16),
                 ((0, 0), (1, 1), (1, 1), (1, 1), (0, 0)))
    if nH == 1:
        xt = xp.reshape(B * (D + 2), 1, H + 2, W + 2, Cin)
    else:                                   # halo-duplicated H tiles (real shapes)
        xt = jnp.stack([xp[:, :, t * TH:t * TH + TH + 2] for t in range(nH)],
                       axis=2)
        xt = xt.reshape(B * (D + 2), nH, TH + 2, W + 2, Cin)

    Mslabs = B * D
    kd_maps = [
        (lambda m, t, _kd=kd, _D=D: (m + 2 * (m // _D) + _kd, t, 0, 0, 0))
        for kd in range(3)
    ]

    out = pl.pallas_call(
        functools.partial(_conv3d_s1_kernel, TH=TH, W=W, Cin=Cin, Cout=Cout,
                          act=act),
        out_shape=jax.ShapeDtypeStruct((Mslabs, nH, TH, W * Cout), out_dtype),
        grid=(Mslabs, nH),
        in_specs=[
            pl.BlockSpec((None, None, TH + 2, W + 2, Cin), kd_maps[0]),
            pl.BlockSpec((None, None, TH + 2, W + 2, Cin), kd_maps[1]),
            pl.BlockSpec((None, None, TH + 2, W + 2, Cin), kd_maps[2]),
            pl.BlockSpec((27 * Cin, Cout), lambda m, t: (0, 0)),   # resident weights
            pl.BlockSpec((1, Cout), lambda m, t: (0, 0)),
        ],
        out_specs=pl.BlockSpec((None, None, TH, W * Cout),
                               lambda m, t: (m, t, 0, 0)),
        scratch_shapes=[pltpu.VMEM((TH * W, 27 * Cin), jnp.bfloat16)],
        compiler_params=_mosaic_params(("parallel", "parallel")),
        cost_estimate=_cost(2 * B * D * H * W * 27 * Cin * Cout,
                            B * D * H * W * Cout if act == "sigmoid" else 0,
                            3 * xt.size * 2 + wf.size * 2
                            + Mslabs * H * W * Cout * out_size),
    )(xt, xt, xt, wf, bias2)
    return out.reshape(B, D, H, W, Cout)


# ----------------------------------------------------------------------------
# im2col fallback glue (stride-2 3D convs, tiny 2D feature convs) — bf16 cols
# ----------------------------------------------------------------------------
def _im2col_2d(x, k, stride, pad):
    B, H, W, C = x.shape
    xp = jnp.pad(x, ((0, 0), (pad, pad), (pad, pad), (0, 0)))
    Ho = (H + 2 * pad - k) // stride + 1
    Wo = (W + 2 * pad - k) // stride + 1
    cols = []
    for kh in range(k):
        for kw in range(k):
            cols.append(xp[:, kh:kh + Ho * stride:stride,
                           kw:kw + Wo * stride:stride, :])
    cols = jnp.concatenate(cols, axis=-1)
    return cols.reshape(B * Ho * Wo, k * k * C), (B, Ho, Wo)


def _im2col_3d(x, k, stride, pad):
    B, D, H, W, C = x.shape
    xp = jnp.pad(x, ((0, 0), (pad, pad), (pad, pad), (pad, pad), (0, 0)))
    Do = (D + 2 * pad - k) // stride + 1
    Ho = (H + 2 * pad - k) // stride + 1
    Wo = (W + 2 * pad - k) // stride + 1
    cols = []
    for kd in range(k):
        for kh in range(k):
            for kw in range(k):
                cols.append(xp[:, kd:kd + Do * stride:stride,
                               kh:kh + Ho * stride:stride,
                               kw:kw + Wo * stride:stride, :])
    cols = jnp.concatenate(cols, axis=-1)
    return cols.reshape(B * Do * Ho * Wo, k * k * k * C), (B, Do, Ho, Wo)


def conv2d_bn_act(x, w, scale, bias, k, stride, pad, act, out_dtype=jnp.bfloat16):
    Cout = w.shape[-1]
    wmat = w.reshape(-1, Cout).astype(jnp.float32) * scale.astype(jnp.float32)
    if k == 1 and stride == 1 and pad == 0:
        B, H, W, C = x.shape
        return matmul_bias_act(x.reshape(-1, C), wmat, bias, act,
                               out_dtype).reshape(B, H, W, Cout)
    cols, (B, Ho, Wo) = _im2col_2d(x.astype(jnp.bfloat16), k, stride, pad)
    return matmul_bias_act(cols, wmat, bias, act,
                           out_dtype).reshape(B, Ho, Wo, Cout)


def conv3d_bn_act(x, w, scale, bias, k, stride, pad, act, out_dtype=jnp.bfloat16):
    Cout = w.shape[-1]
    if k == 1 and stride == 1 and pad == 0:
        B, D, H, W, C = x.shape
        wmat = w.reshape(-1, Cout).astype(jnp.float32) * scale.astype(jnp.float32)
        return matmul_bias_act(x.reshape(-1, C), wmat, bias, act,
                               out_dtype).reshape(B, D, H, W, Cout)
    if _FANCY and k == 3 and stride == 1 and pad == 1:
        y = conv3d_s1_direct(x, w, scale, bias, act, out_dtype)
        if y is not None:
            return y
    # TODO(synk): stride-2 3x3x3 convs keep a (bf16) im2col fallback; a direct
    # strided-window kernel would avoid the 27x HBM patch expansion.
    wmat = w.reshape(-1, Cout).astype(jnp.float32) * scale.astype(jnp.float32)
    cols, (B, Do, Ho, Wo) = _im2col_3d(x.astype(jnp.bfloat16), k, stride, pad)
    return matmul_bias_act(cols, wmat, bias, act,
                           out_dtype).reshape(B, Do, Ho, Wo, Cout)


# ----------------------------------------------------------------------------
# ConvTranspose3d (k=3, s=2, p=1, output_padding=1) via sub-pixel decomposition
# ----------------------------------------------------------------------------
_CT_TAPS = {0: ((1, 0),), 1: ((0, 0), (2, 1))}   # parity -> ((kernel tap, +shift), ...)


def convtranspose3d_bn(x, w, scale, bias, out_dtype=jnp.bfloat16):
    # 8 exact parity sub-GEMMs (the 7/8-zero dilated volume is never built);
    # parity results are interleaved with minor-axis stacks + free reshapes,
    # so no full-volume transpose pass is needed.
    # TODO(synk): real PyTorch ConvTranspose3d weights would additionally need
    # a spatial flip + (in,out) channel swap before use.
    B, D, H, W, Cin = x.shape
    Cout = w.shape[-1]
    wf = w.astype(jnp.float32) * scale.astype(jnp.float32)
    xe = jnp.pad(x.astype(jnp.bfloat16), ((0, 0), (0, 1), (0, 1), (0, 1), (0, 0)))
    per_pd = []
    for pd in (0, 1):
        per_ph = []
        for ph in (0, 1):
            per_pw = []
            for pw in (0, 1):
                cols, wrows = [], []
                for kd, od in _CT_TAPS[pd]:
                    for kh, oh in _CT_TAPS[ph]:
                        for kw, ow in _CT_TAPS[pw]:
                            cols.append(xe[:, od:od + D, oh:oh + H, ow:ow + W, :])
                            wrows.append(wf[kd, kh, kw])
                cols = jnp.concatenate(cols, axis=-1).reshape(B * D * H * W, -1)
                wmat = jnp.concatenate(wrows, axis=0)
                y = matmul_bias_act(cols, wmat, bias, "none", out_dtype)
                per_pw.append(y.reshape(B, D, H, W, Cout))
            # interleave along W: (B,D,H,W,2,C) -> (B,D,H,2W,C)  (free reshape)
            per_ph.append(jnp.stack(per_pw, axis=4).reshape(B, D, H, 2 * W, Cout))
        # interleave along H: (B,D,H,2,2W,C) -> (B,D,2H,2W,C)
        per_pd.append(jnp.stack(per_ph, axis=3).reshape(B, D, 2 * H, 2 * W, Cout))
    # interleave along D: (B,D,2,2H,2W,C) -> (B,2D,2H,2W,C)
    return jnp.stack(per_pd, axis=2).reshape(B, 2 * D, 2 * H, 2 * W, Cout)


def apply_conv3d(L, x):
    odt = jnp.float32 if L["w"].shape[-1] == 1 else jnp.bfloat16
    return conv3d_bn_act(x, L["w"], L["scale"], L["bias"],
                         L["k"], L["s"], L["p"], L["act"], odt)


def apply_conv2d(L, x):
    odt = jnp.float32 if L["w"].shape[-1] == 1 else jnp.bfloat16
    return conv2d_bn_act(x, L["w"], L["scale"], L["bias"],
                         L["k"], L["s"], L["p"], L["act"], odt)


def apply_seq3d(layers, x):
    for L in layers:
        x = apply_conv3d(L, x)
    return x


# ----------------------------------------------------------------------------
# Disparity softmax on lane-dense (D, H*W-tile) blocks
# ----------------------------------------------------------------------------
def _softmax_axis1_kernel(x_ref, o_ref):
    x = x_ref[...].astype(jnp.float32)                 # (D, tn)
    m = jnp.max(x, axis=0, keepdims=True)
    e = jnp.exp(x - m)
    r = 1.0 / jnp.sum(e, axis=0, keepdims=True)        # one reciprocal row
    o_ref[...] = e * r                                 # D multiplies, not divides


def softmax_disparity(x):
    """Softmax over axis 1 of (B, D, H, W); W/H flattened into the lane dim."""
    B, D, H, W = x.shape
    N = H * W
    xf = x.reshape(B, D, N)
    per_col = D * (jnp.dtype(xf.dtype).itemsize + 4) * 2   # in + f32 out, double buf
    cap = max(128, _TILE_BUDGET // max(per_col, 1))
    tn = N
    if N > cap:
        tn = None
        t = 128
        while t <= min(N, cap):
            if N % t == 0:
                tn = t
            t += 128
        if tn is None:
            tn = N                                    # fallback: single full tile
    out = pl.pallas_call(
        _softmax_axis1_kernel,
        out_shape=jax.ShapeDtypeStruct((B, D, N), jnp.float32),
        grid=(B, N // tn),
        in_specs=[pl.BlockSpec((None, D, tn), lambda b, i: (b, 0, i))],
        out_specs=pl.BlockSpec((None, D, tn), lambda b, i: (b, 0, i)),
        compiler_params=_mosaic_params(("parallel", "parallel")),
        cost_estimate=_cost(4 * B * D * N, B * D * N,
                            B * D * N * (jnp.dtype(xf.dtype).itemsize + 4)),
    )(xf)
    return out.reshape(B, D, H, W)


# ----------------------------------------------------------------------------
# Group-wise difference cost volume (attention fused, no maxdisp/4 stacking)
# ----------------------------------------------------------------------------
def _gw_diff_kernel(fl_ref, frp_ref, avg_ref, att_ref, o_ref, *, Dq):
    d = pl.program_id(1)
    Hq, Wq, C = fl_ref.shape
    G = avg_ref.shape[1]
    fl = fl_ref[...]
    fr = frp_ref[:, pl.ds(Dq - d, Wq), :]        # right features shifted by d
    diff = fl - fr
    w_idx = lax.broadcasted_iota(jnp.int32, (Hq, Wq), 1)
    diff = jnp.where((w_idx >= d)[:, :, None], diff, jnp.zeros_like(diff))
    vol = jnp.dot(diff.reshape(Hq * Wq, C), avg_ref[...],
                  preferred_element_type=jnp.float32)   # group mean on the MXU
    vol = vol.reshape(Hq, Wq * G) * att_ref[...].astype(jnp.float32)
    o_ref[...] = vol.astype(o_ref.dtype)


def _gw_diff_volume_pallas(fl, fr, att, Dq, G, avg):
    B, Hq, Wq, C = fl.shape
    frp = jnp.pad(fr.astype(jnp.bfloat16), ((0, 0), (0, 0), (Dq, 0), (0, 0)))
    att_ld = att.reshape(B, Hq, Wq * G).astype(jnp.bfloat16)
    out = pl.pallas_call(
        functools.partial(_gw_diff_kernel, Dq=Dq),
        out_shape=jax.ShapeDtypeStruct((B, Dq, Hq, Wq * G), jnp.bfloat16),
        grid=(B, Dq),
        in_specs=[
            pl.BlockSpec((None, Hq, Wq, C), lambda b, d: (b, 0, 0, 0)),
            pl.BlockSpec((None, Hq, Wq + Dq, C), lambda b, d: (b, 0, 0, 0)),
            pl.BlockSpec((C, G), lambda b, d: (0, 0)),
            pl.BlockSpec((None, Hq, Wq * G), lambda b, d: (b, 0, 0)),
        ],
        out_specs=pl.BlockSpec((None, None, Hq, Wq * G),
                               lambda b, d: (b, d, 0, 0)),
        compiler_params=_mosaic_params(("parallel", "parallel")),
        cost_estimate=_cost(2 * B * Dq * Hq * Wq * C * G, 0,
                            B * Dq * (Hq * Wq * C * 2 * 2 + Hq * Wq * G * 2)),
    )(fl.astype(jnp.bfloat16), frp, avg.astype(jnp.bfloat16), att_ld)
    return out.reshape(B, Dq, Hq, Wq, G)


def build_gw_diff_volume(fl, fr, att, maxdisp_q, num_groups):
    # TODO(synk): exact build_gw_diff_volume formula not provided; using a
    # group-wise mean-difference volume (zeroed where the shift is invalid),
    # with the channel-attention multiply fused in.
    B, Hq, Wq, C = fl.shape
    gs = C // num_groups
    avg = jnp.repeat(jnp.eye(num_groups, dtype=jnp.float32), gs, axis=0) * (1.0 / gs)
    if _FANCY:
        return _gw_diff_volume_pallas(fl, fr, att, maxdisp_q, num_groups, avg)
    zeros_bias = jnp.zeros((num_groups,), jnp.float32)
    vols = []
    for d in range(maxdisp_q):
        frs = fr if d == 0 else jnp.pad(fr[:, :, :Wq - d, :],
                                        ((0, 0), (0, 0), (d, 0), (0, 0)))
        diff = (fl - frs) * (jnp.arange(Wq) >= d).astype(fl.dtype)[None, None, :, None]
        v = matmul_bias_act(diff.reshape(-1, C), avg, zeros_bias, "none",
                            jnp.bfloat16)
        vols.append(v.reshape(B, Hq, Wq, num_groups))
    vol = jnp.stack(vols, axis=1)
    return vol * att[:, None].astype(vol.dtype)


# ----------------------------------------------------------------------------
# Trilinear interpolation helpers (plain-JAX glue, bf16)
# ----------------------------------------------------------------------------
def _lerp_axis(x, axis, out_size):
    in_size = x.shape[axis]
    if in_size == 1:
        reps = [1] * x.ndim
        reps[axis] = out_size
        return jnp.tile(x, reps)
    pos = jnp.arange(out_size, dtype=jnp.float32) * (in_size - 1) / (out_size - 1)
    lo = jnp.floor(pos).astype(jnp.int32)
    hi = jnp.minimum(lo + 1, in_size - 1)
    w = (pos - lo.astype(jnp.float32)).astype(x.dtype)
    xlo = jnp.take(x, lo, axis=axis)
    xhi = jnp.take(x, hi, axis=axis)
    shp = [1] * x.ndim
    shp[axis] = out_size
    w = w.reshape(shp)
    return xlo * (1.0 - w) + xhi * w


def trilinear_align_corners(x, out_dhw):
    # x: (B, D, H, W)
    x = _lerp_axis(x, 1, out_dhw[0])
    x = _lerp_axis(x, 2, out_dhw[1])
    x = _lerp_axis(x, 3, out_dhw[2])
    return x


# ----------------------------------------------------------------------------
# Model components
# ----------------------------------------------------------------------------
def feature_extraction(p, x_nhwc, left=True):
    # TODO(synk): efficientnet() backbone definition not provided; deterministic
    # small conv stand-in producing the same output contracts (1/4-res features,
    # per-channel attention map, full-res normalized-depth map).
    h1 = apply_conv2d(p["c1"], x_nhwc)
    feats = apply_conv2d(p["c2"], h1)
    if not left:
        return feats
    atten = apply_conv2d(p["att"], feats)
    depth = apply_conv2d(p["depth"], x_nhwc)
    return feats, atten, depth


def hourglass_fwd(p, x):
    c1 = apply_conv3d(p["conv1"], x)
    c2 = apply_conv3d(p["conv2"], c1)
    c3 = apply_conv3d(p["conv3"], c2)
    c4 = apply_conv3d(p["conv4"], c3)
    # TODO(synk): attention_block(channels_3d=4c, num_heads=16, block=(4,4,4))
    # definition not provided; applied as identity here.
    c5 = jax.nn.relu(
        convtranspose3d_bn(c4, p["conv5"]["w"], p["conv5"]["scale"],
                           p["conv5"]["bias"])
        + apply_conv3d(p["redir2"], c2))
    c6 = jax.nn.relu(
        convtranspose3d_bn(c5, p["conv6"]["w"], p["conv6"]["scale"],
                           p["conv6"]["bias"])
        + apply_conv3d(p["redir1"], x))
    return c6


def dvanet_forward(params, left, right, *, maxdisp):
    # left/right: (B, 3, H, W) NCHW like the PyTorch module
    B, _, H, W = left.shape
    l_nhwc = jnp.transpose(left, (0, 2, 3, 1))
    r_nhwc = jnp.transpose(right, (0, 2, 3, 1))

    feat_l, chann_atten, depth_norm = feature_extraction(params["fe"], l_nhwc,
                                                         left=True)
    feat_r = feature_extraction(params["fe"], r_nhwc, left=False)

    # group-wise difference volume with the channel attention fused in
    vol = build_gw_diff_volume(feat_l, feat_r, chann_atten, maxdisp // 4, 32)

    va = params["volume_agg"]
    agg = apply_seq3d(va["pre"], vol)
    agg = hourglass_fwd(va["hg"], agg)
    agg = apply_seq3d(va["post"], agg)

    da = params["dres_att_dis"]
    dis = apply_conv3d(da["pre"], agg)
    dis = hourglass_fwd(da["hg"], dis)
    dis = apply_conv3d(da["post"], dis)

    ca = params["classif_att_dis"]
    dis_atten = apply_conv3d(ca["c2"], apply_conv3d(ca["c1"], dis))  # f32, C=1

    soft_att = softmax_disparity(dis_atten[..., 0])                  # (B,Dq,Hq,Wq)
    agg = agg * soft_att[..., None].astype(agg.dtype)

    agg = apply_seq3d(params["dres0"], agg)
    agg = hourglass_fwd(params["dres1"], agg)

    c0 = params["classif0"]
    agg = apply_seq3d(c0["layers"], agg)
    agg = apply_conv3d(c0["final"], agg)              # (B,Dq,Hq,Wq,1) f32

    vol_low = agg[..., 0]
    # TODO(synk): the trilinear upsample runs in bf16 at the XLA level; fusing
    # the D/H/W lerp into the softmax kernel would avoid materializing the
    # full-resolution pre-softmax volume entirely.
    vol_up = trilinear_align_corners(vol_low.astype(jnp.bfloat16), (maxdisp, H, W))
    volume_pred = softmax_disparity(vol_up)           # (B, maxdisp, H, W) f32

    return depth_norm[..., 0], volume_pred            # (B,H,W), (B,maxdisp,H,W)


# ----------------------------------------------------------------------------
# Deterministic parameter initialization
# ----------------------------------------------------------------------------
def _bn_scale(c):
    return jnp.full((c,), 1.0 / math.sqrt(1.0 + _BN_EPS), jnp.float32)


def _zeros(c):
    return jnp.zeros((c,), jnp.float32)


def _ones(c):
    return jnp.ones((c,), jnp.float32)


def init_dvanet(key):
    keys = iter(jax.random.split(key, 64))

    def nk():
        return next(keys)

    def init_w3d(k, cin, cout):
        std = math.sqrt(2.0 / (k * k * k * cout))
        return std * jax.random.normal(nk(), (k, k, k, cin, cout), jnp.float32)

    def init_w2d(k, cin, cout):
        std = math.sqrt(2.0 / (k * k * cout))
        return std * jax.random.normal(nk(), (k, k, cin, cout), jnp.float32)

    def convbn3d(k, cin, cout, s, p, act):
        return dict(w=init_w3d(k, cin, cout), scale=_bn_scale(cout),
                    bias=_zeros(cout), k=k, s=s, p=p, act=act)

    def conv3d_plain(k, cin, cout, act="none"):
        return dict(w=init_w3d(k, cin, cout), scale=_ones(cout),
                    bias=_zeros(cout), k=k, s=1, p=k // 2, act=act)

    def hourglass_p(c):
        return dict(
            conv1=convbn3d(3, c, 2 * c, 2, 1, "relu"),
            conv2=convbn3d(3, 2 * c, 2 * c, 1, 1, "relu"),
            conv3=convbn3d(3, 2 * c, 4 * c, 2, 1, "relu"),
            conv4=convbn3d(3, 4 * c, 4 * c, 1, 1, "relu"),
            conv5=dict(w=init_w3d(3, 4 * c, 2 * c), scale=_bn_scale(2 * c),
                       bias=_zeros(2 * c)),
            conv6=dict(w=init_w3d(3, 2 * c, c), scale=_bn_scale(c),
                       bias=_zeros(c)),
            redir1=convbn3d(1, c, c, 1, 0, "none"),
            redir2=convbn3d(1, 2 * c, 2 * c, 1, 0, "none"),
        )

    fe = dict(
        c1=dict(w=init_w2d(3, 3, 32), scale=_bn_scale(32), bias=_zeros(32),
                k=3, s=2, p=1, act="relu"),
        c2=dict(w=init_w2d(3, 32, 64), scale=_bn_scale(64), bias=_zeros(64),
                k=3, s=2, p=1, act="relu"),
        att=dict(w=init_w2d(1, 64, 32), scale=_ones(32), bias=_zeros(32),
                 k=1, s=1, p=0, act="sigmoid"),
        depth=dict(w=init_w2d(3, 3, 1), scale=_ones(1), bias=_zeros(1),
                   k=3, s=1, p=1, act="sigmoid"),
    )

    params = dict(
        fe=fe,
        volume_agg=dict(
            pre=[convbn3d(3, 32, 32, 1, 1, "relu"),
                 convbn3d(3, 32, 32, 1, 1, "relu")],
            hg=hourglass_p(32),
            post=[convbn3d(3, 32, 32, 1, 1, "relu"),
                  convbn3d(3, 32, 32, 1, 1, "relu"),
                  conv3d_plain(3, 32, 32, "none")],
        ),
        dres_att_dis=dict(
            pre=convbn3d(3, 32, 32, 1, 1, "leaky"),
            hg=hourglass_p(32),
            post=convbn3d(3, 32, 32, 1, 1, "leaky"),
        ),
        classif_att_dis=dict(
            c1=convbn3d(3, 32, 32, 1, 1, "relu"),
            c2=conv3d_plain(3, 32, 1, "none"),
        ),
        dres0=[convbn3d(3, 32, 32, 1, 1, "relu") for _ in range(3)],
        dres1=hourglass_p(32),
        classif0=dict(
            layers=[convbn3d(3, 32, 32, 1, 1, "relu") for _ in range(3)],
            final=conv3d_plain(3, 32, 1, "none"),
        ),
    )
    return params


# ----------------------------------------------------------------------------
# Main
# ----------------------------------------------------------------------------
if __name__ == "__main__":
    maxdisp = 16
    B, H, W = 1, 16, 16

    params = init_dvanet(jax.random.PRNGKey(42))

    kl, kr = jax.random.split(jax.random.PRNGKey(0))
    left = jax.random.normal(kl, (B, 3, H, W), jnp.float32)
    right = jax.random.normal(kr, (B, 3, H, W), jnp.float32)

    fwd = jax.jit(functools.partial(dvanet_forward, params, maxdisp=maxdisp))
    depth_norm, volume_pred = fwd(left, right)
    jax.block_until_ready((depth_norm, volume_pred))

    assert depth_norm.shape == (B, H, W)
    assert volume_pred.shape == (B, maxdisp, H, W)
    # disparity softmax must sum to 1 along axis 1
    assert jnp.allclose(jnp.sum(volume_pred, axis=1), 1.0, atol=1e-4)
    assert bool(jnp.all(jnp.isfinite(volume_pred)))

    print("KERNEL_OK")
</pallas_src>

<mosaic_0001>
module attributes {stable_mosaic.version = 11 : i64} {
  func.func @_probe_kernel(%arg0: i32, %arg1: memref<6x10x32xf32, #tpu.memory_space<vmem>>, %arg2: memref<4x128xf32, #tpu.memory_space<vmem>>) attributes {dimension_semantics = [#tpu.dimension_semantics<arbitrary>], iteration_bounds = array<i64: 1>, scalar_prefetch = 0 : i64, scratch_operands = 0 : i64, tpu.core_type = #tpu.core_type<tc>, window_params = [{pipeline_mode = #tpu.pipeline_mode<synchronous>, transform_indices = @transform_0, window_bounds = array<i64: 6, 10, 32>}, {pipeline_mode = #tpu.pipeline_mode<synchronous>, transform_indices = @transform_1, window_bounds = array<i64: 4, 128>}]} {
    %c1_i32 = arith.constant 1 : i32
    %0 = arith.addi %arg0, %c1_i32 : i32
    %c1 = arith.constant 1 : index
    %1 = arith.index_cast %0 : i32 to index
    %c0 = arith.constant 0 : index
    %2 = vector.load %arg1[%c1, %1, %c0] : memref<6x10x32xf32, #tpu.memory_space<vmem>>, vector<4x4x32xf32>
    %3 = vector.shape_cast %2 : vector<4x4x32xf32> to vector<16x32xf32>
    %cst = arith.constant 1.000000e+00 : f32
    %4 = vector.broadcast %cst : f32 to vector<16x32xf32>
    %5 = arith.addf %3, %4 : vector<16x32xf32>
    %6 = vector.shape_cast %5 : vector<16x32xf32> to vector<4x128xf32>
    %c0_0 = arith.constant 0 : index
    %c0_1 = arith.constant 0 : index
    %7 = vector.load %arg2[%c0_0, %c0_1] : memref<4x128xf32, #tpu.memory_space<vmem>>, vector<4x128xf32>
    tpu.vector_store %arg2[%c0_0, %c0_1], %6 {strides = array<i32>} : memref<4x128xf32, #tpu.memory_space<vmem>>, vector<4x128xf32>,
    return
  }
  func.func @transform_0(%arg0: i32) -> (i32, i32, i32) {
    %c0_i32 = arith.constant 0 : i32
    %c0_i32_0 = arith.constant 0 : i32
    %c0_i32_1 = arith.constant 0 : i32
    %c0_i32_2 = arith.constant 0 : i32
    return %c0_i32, %c0_i32_0, %c0_i32_1 : i32, i32, i32
  }
  func.func @transform_1(%arg0: i32) -> (i32, i32) {
    %c0_i32 = arith.constant 0 : i32
    %c0_i32_0 = arith.constant 0 : i32
    %c0_i32_1 = arith.constant 0 : i32
    return %c0_i32, %c0_i32_0 : i32, i32
  }
}

module attributes {stable_mosaic.version = 11 : i64} {
  func.func @_mm_bias_act_kernel(%arg0: i32, %arg1: memref<256x27xbf16, #tpu.memory_space<vmem>>, %arg2: memref<27x1xbf16, #tpu.memory_space<vmem>>, %arg3: memref<1x1xf32, #tpu.memory_space<vmem>>, %arg4: memref<256x1xf32, #tpu.memory_space<vmem>>) attributes {dimension_semantics = [#tpu.dimension_semantics<parallel>], iteration_bounds = array<i64: 1>, scalar_prefetch = 0 : i64, scratch_operands = 0 : i64, tpu.core_type = #tpu.core_type<tc>, window_params = [{transform_indices = @transform_0, window_bounds = array<i64: 256, 27>}, {pipeline_mode = #tpu.pipeline_mode<synchronous>, transform_indices = @transform_1, window_bounds = array<i64: 27, 1>}, {pipeline_mode = #tpu.pipeline_mode<synchronous>, transform_indices = @transform_2, window_bounds = array<i64: 1, 1>}, {transform_indices = @transform_3, window_bounds = array<i64: 256, 1>}]} {
    %c0 = arith.constant 0 : index
    %c0_0 = arith.constant 0 : index
    %0 = vector.load %arg1[%c0, %c0_0] : memref<256x27xbf16, #tpu.memory_space<vmem>>, vector<256x27xbf16>
    %c0_1 = arith.constant 0 : index
    %c0_2 = arith.constant 0 : index
    %1 = vector.load %arg2[%c0_1, %c0_2] : memref<27x1xbf16, #tpu.memory_space<vmem>>, vector<27x1xbf16>
    %cst = arith.constant dense<0.000000e+00> : vector<256x1xf32>
    %2 = tpu.matmul %0, %1, %cst {dimension_numbers = #tpu.dot_dimension_numbers<[1], [0], [0], [1], [0, 0, 1, 1], [], []>} : vector<256x27xbf16>, vector<27x1xbf16>, vector<256x1xf32> -> vector<256x1xf32>
    %c0_3 = arith.constant 0 : index
    %c0_4 = arith.constant 0 : index
    %3 = vector.load %arg3[%c0_3, %c0_4] : memref<1x1xf32, #tpu.memory_space<vmem>>, vector<1x1xf32>
    %4 = vector.broadcast %3 : vector<1x1xf32> to vector<256x1xf32>
    %5 = arith.addf %2, %4 : vector<256x1xf32>
    %cst_5 = arith.constant 0.000000e+00 : f32
    %6 = vector.broadcast %cst_5 : f32 to vector<256x1xf32>
    %7 = arith.subf %6, %5 : vector<256x1xf32>
    %8 = math.exp %7 : vector<256x1xf32>
    %cst_6 = arith.constant 1.000000e+00 : f32
    %9 = vector.broadcast %cst_6 : f32 to vector<256x1xf32>
    %10 = arith.addf %9, %8 : vector<256x1xf32>
    %cst_7 = arith.constant 1.000000e+00 : f32
    %11 = vector.broadcast %cst_7 : f32 to vector<256x1xf32>
    %12 = arith.divf %11, %10 : vector<256x1xf32>
    %c0_8 = arith.constant 0 : index
    %c0_9 = arith.constant 0 : index
    %13 = vector.load %arg4[%c0_8, %c0_9] : memref<256x1xf32, #tpu.memory_space<vmem>>, vector<256x1xf32>
    tpu.vector_store %arg4[%c0_8, %c0_9], %12 {strides = array<i32>} : memref<256x1xf32, #tpu.memory_space<vmem>>, vector<256x1xf32>,
    return
  }
  func.func @transform_0(%arg0: i32) -> (i32, i32) {
    %c0_i32 = arith.constant 0 : i32
    %c0_i32_0 = arith.constant 0 : i32
    return %arg0, %c0_i32 : i32, i32
  }
  func.func @transform_1(%arg0: i32) -> (i32, i32) {
    %c0_i32 = arith.constant 0 : i32
    %c0_i32_0 = arith.constant 0 : i32
    %c0_i32_1 = arith.constant 0 : i32
    return %c0_i32, %c0_i32_0 : i32, i32
  }
  func.func @transform_2(%arg0: i32) -> (i32, i32) {
    %c0_i32 = arith.constant 0 : i32
    %c0_i32_0 = arith.constant 0 : i32
    %c0_i32_1 = arith.constant 0 : i32
    return %c0_i32, %c0_i32_0 : i32, i32
  }
  func.func @transform_3(%arg0: i32) -> (i32, i32) {
    %c0_i32 = arith.constant 0 : i32
    %c0_i32_0 = arith.constant 0 : i32
    return %arg0, %c0_i32 : i32, i32
  }
}

module attributes {stable_mosaic.version = 11 : i64} {
  func.func @_mm_bias_act_kernel(%arg0: i32, %arg1: memref<64x27xbf16, #tpu.memory_space<vmem>>, %arg2: memref<27x32xbf16, #tpu.memory_space<vmem>>, %arg3: memref<1x32xf32, #tpu.memory_space<vmem>>, %arg4: memref<64x32xbf16, #tpu.memory_space<vmem>>) attributes {dimension_semantics = [#tpu.dimension_semantics<parallel>], iteration_bounds = array<i64: 1>, scalar_prefetch = 0 : i64, scratch_operands = 0 : i64, tpu.core_type = #tpu.core_type<tc>, window_params = [{transform_indices = @transform_0, window_bounds = array<i64: 64, 27>}, {pipeline_mode = #tpu.pipeline_mode<synchronous>, transform_indices = @transform_1, window_bounds = array<i64: 27, 32>}, {pipeline_mode = #tpu.pipeline_mode<synchronous>, transform_indices = @transform_2, window_bounds = array<i64: 1, 32>}, {transform_indices = @transform_3, window_bounds = array<i64: 64, 32>}]} {
    %c0 = arith.constant 0 : index
    %c0_0 = arith.constant 0 : index
    %0 = vector.load %arg1[%c0, %c0_0] : memref<64x27xbf16, #tpu.memory_space<vmem>>, vector<64x27xbf16>
    %c0_1 = arith.constant 0 : index
    %c0_2 = arith.constant 0 : index
    %1 = vector.load %arg2[%c0_1, %c0_2] : memref<27x32xbf16, #tpu.memory_space<vmem>>, vector<27x32xbf16>
    %cst = arith.constant dense<0.000000e+00> : vector<64x32xf32>
    %2 = tpu.matmul %0, %1, %cst {dimension_numbers = #tpu.dot_dimension_numbers<[1], [0], [0], [1], [0, 0, 1, 1], [], []>} : vector<64x27xbf16>, vector<27x32xbf16>, vector<64x32xf32> -> vector<64x32xf32>
    %c0_3 = arith.constant 0 : index
    %c0_4 = arith.constant 0 : index
    %3 = vector.load %arg3[%c0_3, %c0_4] : memref<1x32xf32, #tpu.memory_space<vmem>>, vector<1x32xf32>
    %4 = vector.broadcast %3 : vector<1x32xf32> to vector<64x32xf32>
    %5 = arith.addf %2, %4 : vector<64x32xf32>
    %cst_5 = arith.constant 0.000000e+00 : f32
    %6 = vector.broadcast %cst_5 : f32 to vector<64x32xf32>
    %7 = arith.maximumf %5, %6 : vector<64x32xf32>
    %8 = arith.truncf %7 : vector<64x32xf32> to vector<64x32xbf16>
    %c0_6 = arith.constant 0 : index
    %c0_7 = arith.constant 0 : index
    %9 = vector.load %arg4[%c0_6, %c0_7] : memref<64x32xbf16, #tpu.memory_space<vmem>>, vector<64x32xbf16>
    tpu.vector_store %arg4[%c0_6, %c0_7], %8 {strides = array<i32>} : memref<64x32xbf16, #tpu.memory_space<vmem>>, vector<64x32xbf16>,
    return
  }
  func.func @transform_0(%arg0: i32) -> (i32, i32) {
    %c0_i32 = arith.constant 0 : i32
    %c0_i32_0 = arith.constant 0 : i32
    return %arg0, %c0_i32 : i32, i32
  }
  func.func @transform_1(%arg0: i32) -> (i32, i32) {
    %c0_i32 = arith.constant 0 : i32
    %c0_i32_0 = arith.constant 0 : i32
    %c0_i32_1 = arith.constant 0 : i32
    return %c0_i32, %c0_i32_0 : i32, i32
  }
  func.func @transform_2(%arg0: i32) -> (i32, i32) {
    %c0_i32 = arith.constant 0 : i32
    %c0_i32_0 = arith.constant 0 : i32
    %c0_i32_1 = arith.constant 0 : i32
    return %c0_i32, %c0_i32_0 : i32, i32
  }
  func.func @transform_3(%arg0: i32) -> (i32, i32) {
    %c0_i32 = arith.constant 0 : i32
    %c0_i32_0 = arith.constant 0 : i32
    return %arg0, %c0_i32 : i32, i32
  }
}

module attributes {stable_mosaic.version = 11 : i64} {
  func.func @_mm_bias_act_kernel(%arg0: i32, %arg1: memref<16x288xbf16, #tpu.memory_space<vmem>>, %arg2: memref<288x64xbf16, #tpu.memory_space<vmem>>, %arg3: memref<1x64xf32, #tpu.memory_space<vmem>>, %arg4: memref<16x64xbf16, #tpu.memory_space<vmem>>) attributes {dimension_semantics = [#tpu.dimension_semantics<parallel>], iteration_bounds = array<i64: 1>, scalar_prefetch = 0 : i64, scratch_operands = 0 : i64, tpu.core_type = #tpu.core_type<tc>, window_params = [{transform_indices = @transform_0, window_bounds = array<i64: 16, 288>}, {pipeline_mode = #tpu.pipeline_mode<synchronous>, transform_indices = @transform_1, window_bounds = array<i64: 288, 64>}, {pipeline_mode = #tpu.pipeline_mode<synchronous>, transform_indices = @transform_2, window_bounds = array<i64: 1, 64>}, {transform_indices = @transform_3, window_bounds = array<i64: 16, 64>}]} {
    %c0 = arith.constant 0 : index
    %c0_0 = arith.constant 0 : index
    %0 = vector.load %arg1[%c0, %c0_0] : memref<16x288xbf16, #tpu.memory_space<vmem>>, vector<16x288xbf16>
    %c0_1 = arith.constant 0 : index
    %c0_2 = arith.constant 0 : index
    %1 = vector.load %arg2[%c0_1, %c0_2] : memref<288x64xbf16, #tpu.memory_space<vmem>>, vector<288x64xbf16>
    %cst = arith.constant dense<0.000000e+00> : vector<16x64xf32>
    %2 = tpu.matmul %0, %1, %cst {dimension_numbers = #tpu.dot_dimension_numbers<[1], [0], [0], [1], [0, 0, 1, 1], [], []>} : vector<16x288xbf16>, vector<288x64xbf16>, vector<16x64xf32> -> vector<16x64xf32>
    %c0_3 = arith.constant 0 : index
    %c0_4 = arith.constant 0 : index
    %3 = vector.load %arg3[%c0_3, %c0_4] : memref<1x64xf32, #tpu.memory_space<vmem>>, vector<1x64xf32>
    %4 = vector.broadcast %3 : vector<1x64xf32> to vector<16x64xf32>
    %5 = arith.addf %2, %4 : vector<16x64xf32>
    %cst_5 = arith.constant 0.000000e+00 : f32
    %6 = vector.broadcast %cst_5 : f32 to vector<16x64xf32>
    %7 = arith.maximumf %5, %6 : vector<16x64xf32>
    %8 = arith.truncf %7 : vector<16x64xf32> to vector<16x64xbf16>
    %c0_6 = arith.constant 0 : index
    %c0_7 = arith.constant 0 : index
    %9 = vector.load %arg4[%c0_6, %c0_7] : memref<16x64xbf16, #tpu.memory_space<vmem>>, vector<16x64xbf16>
    tpu.vector_store %arg4[%c0_6, %c0_7], %8 {strides = array<i32>} : memref<16x64xbf16, #tpu.memory_space<vmem>>, vector<16x64xbf16>,
    return
  }
  func.func @transform_0(%arg0: i32) -> (i32, i32) {
    %c0_i32 = arith.constant 0 : i32
    %c0_i32_0 = arith.constant 0 : i32
    return %arg0, %c0_i32 : i32, i32
  }
  func.func @transform_1(%arg0: i32) -> (i32, i32) {
    %c0_i32 = arith.constant 0 : i32
    %c0_i32_0 = arith.constant 0 : i32
    %c0_i32_1 = arith.constant 0 : i32
    return %c0_i32, %c0_i32_0 : i32, i32
  }
  func.func @transform_2(%arg0: i32) -> (i32, i32) {
    %c0_i32 = arith.constant 0 : i32
    %c0_i32_0 = arith.constant 0 : i32
    %c0_i32_1 = arith.constant 0 : i32
    return %c0_i32, %c0_i32_0 : i32, i32
  }
  func.func @transform_3(%arg0: i32) -> (i32, i32) {
    %c0_i32 = arith.constant 0 : i32
    %c0_i32_0 = arith.constant 0 : i32
    return %arg0, %c0_i32 : i32, i32
  }
}

module attributes {stable_mosaic.version = 11 : i64} {
  func.func @_mm_bias_act_kernel(%arg0: i32, %arg1: memref<16x64xbf16, #tpu.memory_space<vmem>>, %arg2: memref<64x32xbf16, #tpu.memory_space<vmem>>, %arg3: memref<1x32xf32, #tpu.memory_space<vmem>>, %arg4: memref<16x32xbf16, #tpu.memory_space<vmem>>) attributes {dimension_semantics = [#tpu.dimension_semantics<parallel>], iteration_bounds = array<i64: 1>, scalar_prefetch = 0 : i64, scratch_operands = 0 : i64, tpu.core_type = #tpu.core_type<tc>, window_params = [{transform_indices = @transform_0, window_bounds = array<i64: 16, 64>}, {pipeline_mode = #tpu.pipeline_mode<synchronous>, transform_indices = @transform_1, window_bounds = array<i64: 64, 32>}, {pipeline_mode = #tpu.pipeline_mode<synchronous>, transform_indices = @transform_2, window_bounds = array<i64: 1, 32>}, {transform_indices = @transform_3, window_bounds = array<i64: 16, 32>}]} {
    %c0 = arith.constant 0 : index
    %c0_0 = arith.constant 0 : index
    %0 = vector.load %arg1[%c0, %c0_0] : memref<16x64xbf16, #tpu.memory_space<vmem>>, vector<16x64xbf16>
    %c0_1 = arith.constant 0 : index
    %c0_2 = arith.constant 0 : index
    %1 = vector.load %arg2[%c0_1, %c0_2] : memref<64x32xbf16, #tpu.memory_space<vmem>>, vector<64x32xbf16>
    %cst = arith.constant dense<0.000000e+00> : vector<16x32xf32>
    %2 = tpu.matmul %0, %1, %cst {dimension_numbers = #tpu.dot_dimension_numbers<[1], [0], [0], [1], [0, 0, 1, 1], [], []>} : vector<16x64xbf16>, vector<64x32xbf16>, vector<16x32xf32> -> vector<16x32xf32>
    %c0_3 = arith.constant 0 : index
    %c0_4 = arith.constant 0 : index
    %3 = vector.load %arg3[%c0_3, %c0_4] : memref<1x32xf32, #tpu.memory_space<vmem>>, vector<1x32xf32>
    %4 = vector.broadcast %3 : vector<1x32xf32> to vector<16x32xf32>
    %5 = arith.addf %2, %4 : vector<16x32xf32>
    %6 = arith.truncf %5 : vector<16x32xf32> to vector<16x32xbf16>
    %c0_5 = arith.constant 0 : index
    %c0_6 = arith.constant 0 : index
    %7 = vector.load %arg4[%c0_5, %c0_6] : memref<16x32xbf16, #tpu.memory_space<vmem>>, vector<16x32xbf16>
    tpu.vector_store %arg4[%c0_5, %c0_6], %6 {strides = array<i32>} : memref<16x32xbf16, #tpu.memory_space<vmem>>, vector<16x32xbf16>,
    return
  }
  func.func @transform_0(%arg0: i32) -> (i32, i32) {
    %c0_i32 = arith.constant 0 : i32
    %c0_i32_0 = arith.constant 0 : i32
    return %arg0, %c0_i32 : i32, i32
  }
  func.func @transform_1(%arg0: i32) -> (i32, i32) {
    %c0_i32 = arith.constant 0 : i32
    %c0_i32_0 = arith.constant 0 : i32
    %c0_i32_1 = arith.constant 0 : i32
    return %c0_i32, %c0_i32_0 : i32, i32
  }
  func.func @transform_2(%arg0: i32) -> (i32, i32) {
    %c0_i32 = arith.constant 0 : i32
    %c0_i32_0 = arith.constant 0 : i32
    %c0_i32_1 = arith.constant 0 : i32
    return %c0_i32, %c0_i32_0 : i32, i32
  }
  func.func @transform_3(%arg0: i32) -> (i32, i32) {
    %c0_i32 = arith.constant 0 : i32
    %c0_i32_0 = arith.constant 0 : i32
    return %arg0, %c0_i32 : i32, i32
  }
}

module attributes {stable_mosaic.version = 11 : i64} {
  func.func @_mm_bias_act_kernel(%arg0: i32, %arg1: memref<16x64xbf16, #tpu.memory_space<vmem>>, %arg2: memref<64x32xbf16, #tpu.memory_space<vmem>>, %arg3: memref<1x32xf32, #tpu.memory_space<vmem>>, %arg4: memref<16x32xbf16, #tpu.memory_space<vmem>>) attributes {dimension_semantics = [#tpu.dimension_semantics<parallel>], iteration_bounds = array<i64: 1>, scalar_prefetch = 0 : i64, scratch_operands = 0 : i64, tpu.core_type = #tpu.core_type<tc>, window_params = [{transform_indices = @transform_0, window_bounds = array<i64: 16, 64>}, {pipeline_mode = #tpu.pipeline_mode<synchronous>, transform_indices = @transform_1, window_bounds = array<i64: 64, 32>}, {pipeline_mode = #tpu.pipeline_mode<synchronous>, transform_indices = @transform_2, window_bounds = array<i64: 1, 32>}, {transform_indices = @transform_3, window_bounds = array<i64: 16, 32>}]} {
    %c0 = arith.constant 0 : index
    %c0_0 = arith.constant 0 : index
    %0 = vector.load %arg1[%c0, %c0_0] : memref<16x64xbf16, #tpu.memory_space<vmem>>, vector<16x64xbf16>
    %c0_1 = arith.constant 0 : index
    %c0_2 = arith.constant 0 : index
    %1 = vector.load %arg2[%c0_1, %c0_2] : memref<64x32xbf16, #tpu.memory_space<vmem>>, vector<64x32xbf16>
    %cst = arith.constant dense<0.000000e+00> : vector<16x32xf32>
    %2 = tpu.matmul %0, %1, %cst {dimension_numbers = #tpu.dot_dimension_numbers<[1], [0], [0], [1], [0, 0, 1, 1], [], []>} : vector<16x64xbf16>, vector<64x32xbf16>, vector<16x32xf32> -> vector<16x32xf32>
    %c0_3 = arith.constant 0 : index
    %c0_4 = arith.constant 0 : index
    %3 = vector.load %arg3[%c0_3, %c0_4] : memref<1x32xf32, #tpu.memory_space<vmem>>, vector<1x32xf32>
    %4 = vector.broadcast %3 : vector<1x32xf32> to vector<16x32xf32>
    %5 = arith.addf %2, %4 : vector<16x32xf32>
    %cst_5 = arith.constant 0.000000e+00 : f32
    %6 = vector.broadcast %cst_5 : f32 to vector<16x32xf32>
    %7 = arith.subf %6, %5 : vector<16x32xf32>
    %8 = math.exp %7 : vector<16x32xf32>
    %cst_6 = arith.constant 1.000000e+00 : f32
    %9 = vector.broadcast %cst_6 : f32 to vector<16x32xf32>
    %10 = arith.addf %9, %8 : vector<16x32xf32>
    %cst_7 = arith.constant 1.000000e+00 : f32
    %11 = vector.broadcast %cst_7 : f32 to vector<16x32xf32>
    %12 = arith.divf %11, %10 : vector<16x32xf32>
    %13 = arith.truncf %12 : vector<16x32xf32> to vector<16x32xbf16>
    %c0_8 = arith.constant 0 : index
    %c0_9 = arith.constant 0 : index
    %14 = vector.load %arg4[%c0_8, %c0_9] : memref<16x32xbf16, #tpu.memory_space<vmem>>, vector<16x32xbf16>
    tpu.vector_store %arg4[%c0_8, %c0_9], %13 {strides = array<i32>} : memref<16x32xbf16, #tpu.memory_space<vmem>>, vector<16x32xbf16>,
    return
  }
  func.func @transform_0(%arg0: i32) -> (i32, i32) {
    %c0_i32 = arith.constant 0 : i32
    %c0_i32_0 = arith.constant 0 : i32
    return %arg0, %c0_i32 : i32, i32
  }
  func.func @transform_1(%arg0: i32) -> (i32, i32) {
    %c0_i32 = arith.constant 0 : i32
    %c0_i32_0 = arith.constant 0 : i32
    %c0_i32_1 = arith.constant 0 : i32
    return %c0_i32, %c0_i32_0 : i32, i32
  }
  func.func @transform_2(%arg0: i32) -> (i32, i32) {
    %c0_i32 = arith.constant 0 : i32
    %c0_i32_0 = arith.constant 0 : i32
    %c0_i32_1 = arith.constant 0 : i32
    return %c0_i32, %c0_i32_0 : i32, i32
  }
  func.func @transform_3(%arg0: i32) -> (i32, i32) {
    %c0_i32 = arith.constant 0 : i32
    %c0_i32_0 = arith.constant 0 : i32
    return %arg0, %c0_i32 : i32, i32
  }
}

module attributes {stable_mosaic.version = 11 : i64} {
  func.func @_mm_bias_act_kernel(%arg0: i32, %arg1: memref<64x864xbf16, #tpu.memory_space<vmem>>, %arg2: memref<864x32xbf16, #tpu.memory_space<vmem>>, %arg3: memref<1x32xf32, #tpu.memory_space<vmem>>, %arg4: memref<64x32xbf16, #tpu.memory_space<vmem>>) attributes {dimension_semantics = [#tpu.dimension_semantics<parallel>], iteration_bounds = array<i64: 1>, scalar_prefetch = 0 : i64, scratch_operands = 0 : i64, tpu.core_type = #tpu.core_type<tc>, window_params = [{transform_indices = @transform_0, window_bounds = array<i64: 64, 864>}, {pipeline_mode = #tpu.pipeline_mode<synchronous>, transform_indices = @transform_1, window_bounds = array<i64: 864, 32>}, {pipeline_mode = #tpu.pipeline_mode<synchronous>, transform_indices = @transform_2, window_bounds = array<i64: 1, 32>}, {transform_indices = @transform_3, window_bounds = array<i64: 64, 32>}]} {
    %c0 = arith.constant 0 : index
    %c0_0 = arith.constant 0 : index
    %0 = vector.load %arg1[%c0, %c0_0] : memref<64x864xbf16, #tpu.memory_space<vmem>>, vector<64x864xbf16>
    %c0_1 = arith.constant 0 : index
    %c0_2 = arith.constant 0 : index
    %1 = vector.load %arg2[%c0_1, %c0_2] : memref<864x32xbf16, #tpu.memory_space<vmem>>, vector<864x32xbf16>
    %cst = arith.constant dense<0.000000e+00> : vector<64x32xf32>
    %2 = tpu.matmul %0, %1, %cst {dimension_numbers = #tpu.dot_dimension_numbers<[1], [0], [0], [1], [0, 0, 1, 1], [], []>} : vector<64x864xbf16>, vector<864x32xbf16>, vector<64x32xf32> -> vector<64x32xf32>
    %c0_3 = arith.constant 0 : index
    %c0_4 = arith.constant 0 : index
    %3 = vector.load %arg3[%c0_3, %c0_4] : memref<1x32xf32, #tpu.memory_space<vmem>>, vector<1x32xf32>
    %4 = vector.broadcast %3 : vector<1x32xf32> to vector<64x32xf32>
    %5 = arith.addf %2, %4 : vector<64x32xf32>
    %cst_5 = arith.constant 0.000000e+00 : f32
    %6 = vector.broadcast %cst_5 : f32 to vector<64x32xf32>
    %7 = arith.maximumf %5, %6 : vector<64x32xf32>
    %8 = arith.truncf %7 : vector<64x32xf32> to vector<64x32xbf16>
    %c0_6 = arith.constant 0 : index
    %c0_7 = arith.constant 0 : index
    %9 = vector.load %arg4[%c0_6, %c0_7] : memref<64x32xbf16, #tpu.memory_space<vmem>>, vector<64x32xbf16>
    tpu.vector_store %arg4[%c0_6, %c0_7], %8 {strides = array<i32>} : memref<64x32xbf16, #tpu.memory_space<vmem>>, vector<64x32xbf16>,
    return
  }
  func.func @transform_0(%arg0: i32) -> (i32, i32) {
    %c0_i32 = arith.constant 0 : i32
    %c0_i32_0 = arith.constant 0 : i32
    return %arg0, %c0_i32 : i32, i32
  }
  func.func @transform_1(%arg0: i32) -> (i32, i32) {
    %c0_i32 = arith.constant 0 : i32
    %c0_i32_0 = arith.constant 0 : i32
    %c0_i32_1 = arith.constant 0 : i32
    return %c0_i32, %c0_i32_0 : i32, i32
  }
  func.func @transform_2(%arg0: i32) -> (i32, i32) {
    %c0_i32 = arith.constant 0 : i32
    %c0_i32_0 = arith.constant 0 : i32
    %c0_i32_1 = arith.constant 0 : i32
    return %c0_i32, %c0_i32_0 : i32, i32
  }
  func.func @transform_3(%arg0: i32) -> (i32, i32) {
    %c0_i32 = arith.constant 0 : i32
    %c0_i32_0 = arith.constant 0 : i32
    return %arg0, %c0_i32 : i32, i32
  }
}

module attributes {stable_mosaic.version = 11 : i64} {
  func.func @_mm_bias_act_kernel(%arg0: i32, %arg1: memref<8x864xbf16, #tpu.memory_space<vmem>>, %arg2: memref<864x64xbf16, #tpu.memory_space<vmem>>, %arg3: memref<1x64xf32, #tpu.memory_space<vmem>>, %arg4: memref<8x64xbf16, #tpu.memory_space<vmem>>) attributes {dimension_semantics = [#tpu.dimension_semantics<parallel>], iteration_bounds = array<i64: 1>, scalar_prefetch = 0 : i64, scratch_operands = 0 : i64, tpu.core_type = #tpu.core_type<tc>, window_params = [{transform_indices = @transform_0, window_bounds = array<i64: 8, 864>}, {pipeline_mode = #tpu.pipeline_mode<synchronous>, transform_indices = @transform_1, window_bounds = array<i64: 864, 64>}, {pipeline_mode = #tpu.pipeline_mode<synchronous>, transform_indices = @transform_2, window_bounds = array<i64: 1, 64>}, {transform_indices = @transform_3, window_bounds = array<i64: 8, 64>}]} {
    %c0 = arith.constant 0 : index
    %c0_0 = arith.constant 0 : index
    %0 = vector.load %arg1[%c0, %c0_0] : memref<8x864xbf16, #tpu.memory_space<vmem>>, vector<8x864xbf16>
    %c0_1 = arith.constant 0 : index
    %c0_2 = arith.constant 0 : index
    %1 = vector.load %arg2[%c0_1, %c0_2] : memref<864x64xbf16, #tpu.memory_space<vmem>>, vector<864x64xbf16>
    %cst = arith.constant dense<0.000000e+00> : vector<8x64xf32>
    %2 = tpu.matmul %0, %1, %cst {dimension_numbers = #tpu.dot_dimension_numbers<[1], [0], [0], [1], [0, 0, 1, 1], [], []>} : vector<8x864xbf16>, vector<864x64xbf16>, vector<8x64xf32> -> vector<8x64xf32>
    %c0_3 = arith.constant 0 : index
    %c0_4 = arith.constant 0 : index
    %3 = vector.load %arg3[%c0_3, %c0_4] : memref<1x64xf32, #tpu.memory_space<vmem>>, vector<1x64xf32>
    %4 = vector.broadcast %3 : vector<1x64xf32> to vector<8x64xf32>
    %5 = arith.addf %2, %4 : vector<8x64xf32>
    %cst_5 = arith.constant 0.000000e+00 : f32
    %6 = vector.broadcast %cst_5 : f32 to vector<8x64xf32>
    %7 = arith.maximumf %5, %6 : vector<8x64xf32>
    %8 = arith.truncf %7 : vector<8x64xf32> to vector<8x64xbf16>
    %c0_6 = arith.constant 0 : index
    %c0_7 = arith.constant 0 : index
    %9 = vector.load %arg4[%c0_6, %c0_7] : memref<8x64xbf16, #tpu.memory_space<vmem>>, vector<8x64xbf16>
    tpu.vector_store %arg4[%c0_6, %c0_7], %8 {strides = array<i32>} : memref<8x64xbf16, #tpu.memory_space<vmem>>, vector<8x64xbf16>,
    return
  }
  func.func @transform_0(%arg0: i32) -> (i32, i32) {
    %c0_i32 = arith.constant 0 : i32
    %c0_i32_0 = arith.constant 0 : i32
    return %arg0, %c0_i32 : i32, i32
  }
  func.func @transform_1(%arg0: i32) -> (i32, i32) {
    %c0_i32 = arith.constant 0 : i32
    %c0_i32_0 = arith.constant 0 : i32
    %c0_i32_1 = arith.constant 0 : i32
    return %c0_i32, %c0_i32_0 : i32, i32
  }
  func.func @transform_2(%arg0: i32) -> (i32, i32) {
    %c0_i32 = arith.constant 0 : i32
    %c0_i32_0 = arith.constant 0 : i32
    %c0_i32_1 = arith.constant 0 : i32
    return %c0_i32, %c0_i32_0 : i32, i32
  }
  func.func @transform_3(%arg0: i32) -> (i32, i32) {
    %c0_i32 = arith.constant 0 : i32
    %c0_i32_0 = arith.constant 0 : i32
    return %arg0, %c0_i32 : i32, i32
  }
}

module attributes {stable_mosaic.version = 11 : i64} {
  func.func @_mm_bias_act_kernel(%arg0: i32, %arg1: memref<8x64xbf16, #tpu.memory_space<vmem>>, %arg2: memref<64x64xbf16, #tpu.memory_space<vmem>>, %arg3: memref<1x64xf32, #tpu.memory_space<vmem>>, %arg4: memref<8x64xbf16, #tpu.memory_space<vmem>>) attributes {dimension_semantics = [#tpu.dimension_semantics<parallel>], iteration_bounds = array<i64: 1>, scalar_prefetch = 0 : i64, scratch_operands = 0 : i64, tpu.core_type = #tpu.core_type<tc>, window_params = [{transform_indices = @transform_0, window_bounds = array<i64: 8, 64>}, {pipeline_mode = #tpu.pipeline_mode<synchronous>, transform_indices = @transform_1, window_bounds = array<i64: 64, 64>}, {pipeline_mode = #tpu.pipeline_mode<synchronous>, transform_indices = @transform_2, window_bounds = array<i64: 1, 64>}, {transform_indices = @transform_3, window_bounds = array<i64: 8, 64>}]} {
    %c0 = arith.constant 0 : index
    %c0_0 = arith.constant 0 : index
    %0 = vector.load %arg1[%c0, %c0_0] : memref<8x64xbf16, #tpu.memory_space<vmem>>, vector<8x64xbf16>
    %c0_1 = arith.constant 0 : index
    %c0_2 = arith.constant 0 : index
    %1 = vector.load %arg2[%c0_1, %c0_2] : memref<64x64xbf16, #tpu.memory_space<vmem>>, vector<64x64xbf16>
    %cst = arith.constant dense<0.000000e+00> : vector<8x64xf32>
    %2 = tpu.matmul %0, %1, %cst {dimension_numbers = #tpu.dot_dimension_numbers<[1], [0], [0], [1], [0, 0, 1, 1], [], []>} : vector<8x64xbf16>, vector<64x64xbf16>, vector<8x64xf32> -> vector<8x64xf32>
    %c0_3 = arith.constant 0 : index
    %c0_4 = arith.constant 0 : index
    %3 = vector.load %arg3[%c0_3, %c0_4] : memref<1x64xf32, #tpu.memory_space<vmem>>, vector<1x64xf32>
    %4 = vector.broadcast %3 : vector<1x64xf32> to vector<8x64xf32>
    %5 = arith.addf %2, %4 : vector<8x64xf32>
    %6 = arith.truncf %5 : vector<8x64xf32> to vector<8x64xbf16>
    %c0_5 = arith.constant 0 : index
    %c0_6 = arith.constant 0 : index
    %7 = vector.load %arg4[%c0_5, %c0_6] : memref<8x64xbf16, #tpu.memory_space<vmem>>, vector<8x64xbf16>
    tpu.vector_store %arg4[%c0_5, %c0_6], %6 {strides = array<i32>} : memref<8x64xbf16, #tpu.memory_space<vmem>>, vector<8x64xbf16>,
    return
  }
  func.func @transform_0(%arg0: i32) -> (i32, i32) {
    %c0_i32 = arith.constant 0 : i32
    %c0_i32_0 = arith.constant 0 : i32
    return %arg0, %c0_i32 : i32, i32
  }
  func.func @transform_1(%arg0: i32) -> (i32, i32) {
    %c0_i32 = arith.constant 0 : i32
    %c0_i32_0 = arith.constant 0 : i32
    %c0_i32_1 = arith.constant 0 : i32
    return %c0_i32, %c0_i32_0 : i32, i32
  }
  func.func @transform_2(%arg0: i32) -> (i32, i32) {
    %c0_i32 = arith.constant 0 : i32
    %c0_i32_0 = arith.constant 0 : i32
    %c0_i32_1 = arith.constant 0 : i32
    return %c0_i32, %c0_i32_0 : i32, i32
  }
  func.func @transform_3(%arg0: i32) -> (i32, i32) {
    %c0_i32 = arith.constant 0 : i32
    %c0_i32_0 = arith.constant 0 : i32
    return %arg0, %c0_i32 : i32, i32
  }
}

module attributes {stable_mosaic.version = 11 : i64} {
  func.func @_mm_bias_act_kernel(%arg0: i32, %arg1: memref<8x1728xbf16, #tpu.memory_space<vmem>>, %arg2: memref<1728x64xbf16, #tpu.memory_space<vmem>>, %arg3: memref<1x64xf32, #tpu.memory_space<vmem>>, %arg4: memref<8x64xbf16, #tpu.memory_space<vmem>>) attributes {dimension_semantics = [#tpu.dimension_semantics<parallel>], iteration_bounds = array<i64: 1>, scalar_prefetch = 0 : i64, scratch_operands = 0 : i64, tpu.core_type = #tpu.core_type<tc>, window_params = [{transform_indices = @transform_0, window_bounds = array<i64: 8, 1728>}, {pipeline_mode = #tpu.pipeline_mode<synchronous>, transform_indices = @transform_1, window_bounds = array<i64: 1728, 64>}, {pipeline_mode = #tpu.pipeline_mode<synchronous>, transform_indices = @transform_2, window_bounds = array<i64: 1, 64>}, {transform_indices = @transform_3, window_bounds = array<i64: 8, 64>}]} {
    %c0 = arith.constant 0 : index
    %c0_0 = arith.constant 0 : index
    %0 = vector.load %arg1[%c0, %c0_0] : memref<8x1728xbf16, #tpu.memory_space<vmem>>, vector<8x1728xbf16>
    %c0_1 = arith.constant 0 : index
    %c0_2 = arith.constant 0 : index
    %1 = vector.load %arg2[%c0_1, %c0_2] : memref<1728x64xbf16, #tpu.memory_space<vmem>>, vector<1728x64xbf16>
    %cst = arith.constant dense<0.000000e+00> : vector<8x64xf32>
    %2 = tpu.matmul %0, %1, %cst {dimension_numbers = #tpu.dot_dimension_numbers<[1], [0], [0], [1], [0, 0, 1, 1], [], []>} : vector<8x1728xbf16>, vector<1728x64xbf16>, vector<8x64xf32> -> vector<8x64xf32>
    %c0_3 = arith.constant 0 : index
    %c0_4 = arith.constant 0 : index
    %3 = vector.load %arg3[%c0_3, %c0_4] : memref<1x64xf32, #tpu.memory_space<vmem>>, vector<1x64xf32>
    %4 = vector.broadcast %3 : vector<1x64xf32> to vector<8x64xf32>
    %5 = arith.addf %2, %4 : vector<8x64xf32>
    %cst_5 = arith.constant 0.000000e+00 : f32
    %6 = vector.broadcast %cst_5 : f32 to vector<8x64xf32>
    %7 = arith.maximumf %5, %6 : vector<8x64xf32>
    %8 = arith.truncf %7 : vector<8x64xf32> to vector<8x64xbf16>
    %c0_6 = arith.constant 0 : index
    %c0_7 = arith.constant 0 : index
    %9 = vector.load %arg4[%c0_6, %c0_7] : memref<8x64xbf16, #tpu.memory_space<vmem>>, vector<8x64xbf16>
    tpu.vector_store %arg4[%c0_6, %c0_7], %8 {strides = array<i32>} : memref<8x64xbf16, #tpu.memory_space<vmem>>, vector<8x64xbf16>,
    return
  }
  func.func @transform_0(%arg0: i32) -> (i32, i32) {
    %c0_i32 = arith.constant 0 : i32
    %c0_i32_0 = arith.constant 0 : i32
    return %arg0, %c0_i32 : i32, i32
  }
  func.func @transform_1(%arg0: i32) -> (i32, i32) {
    %c0_i32 = arith.constant 0 : i32
    %c0_i32_0 = arith.constant 0 : i32
    %c0_i32_1 = arith.constant 0 : i32
    return %c0_i32, %c0_i32_0 : i32, i32
  }
  func.func @transform_2(%arg0: i32) -> (i32, i32) {
    %c0_i32 = arith.constant 0 : i32
    %c0_i32_0 = arith.constant 0 : i32
    %c0_i32_1 = arith.constant 0 : i32
    return %c0_i32, %c0_i32_0 : i32, i32
  }
  func.func @transform_3(%arg0: i32) -> (i32, i32) {
    %c0_i32 = arith.constant 0 : i32
    %c0_i32_0 = arith.constant 0 : i32
    return %arg0, %c0_i32 : i32, i32
  }
}

module attributes {stable_mosaic.version = 11 : i64} {
  func.func @_mm_bias_act_kernel(%arg0: i32, %arg1: memref<1x1728xbf16, #tpu.memory_space<vmem>>, %arg2: memref<1728x128xbf16, #tpu.memory_space<vmem>>, %arg3: memref<1x128xf32, #tpu.memory_space<vmem>>, %arg4: memref<1x128xbf16, #tpu.memory_space<vmem>>) attributes {dimension_semantics = [#tpu.dimension_semantics<parallel>], iteration_bounds = array<i64: 1>, scalar_prefetch = 0 : i64, scratch_operands = 0 : i64, tpu.core_type = #tpu.core_type<tc>, window_params = [{transform_indices = @transform_0, window_bounds = array<i64: 1, 1728>}, {pipeline_mode = #tpu.pipeline_mode<synchronous>, transform_indices = @transform_1, window_bounds = array<i64: 1728, 128>}, {pipeline_mode = #tpu.pipeline_mode<synchronous>, transform_indices = @transform_2, window_bounds = array<i64: 1, 128>}, {transform_indices = @transform_3, window_bounds = array<i64: 1, 128>}]} {
    %c0 = arith.constant 0 : index
    %c0_0 = arith.constant 0 : index
    %0 = vector.load %arg1[%c0, %c0_0] : memref<1x1728xbf16, #tpu.memory_space<vmem>>, vector<1x1728xbf16>
    %c0_1 = arith.constant 0 : index
    %c0_2 = arith.constant 0 : index
    %1 = vector.load %arg2[%c0_1, %c0_2] : memref<1728x128xbf16, #tpu.memory_space<vmem>>, vector<1728x128xbf16>
    %cst = arith.constant dense<0.000000e+00> : vector<1x128xf32>
    %2 = tpu.matmul %0, %1, %cst {dimension_numbers = #tpu.dot_dimension_numbers<[1], [0], [0], [1], [0, 0, 1, 1], [], []>} : vector<1x1728xbf16>, vector<1728x128xbf16>, vector<1x128xf32> -> vector<1x128xf32>
    %c0_3 = arith.constant 0 : index
    %c0_4 = arith.constant 0 : index
    %3 = vector.load %arg3[%c0_3, %c0_4] : memref<1x128xf32, #tpu.memory_space<vmem>>, vector<1x128xf32>
    %4 = arith.addf %2, %3 : vector<1x128xf32>
    %cst_5 = arith.constant 0.000000e+00 : f32
    %5 = vector.broadcast %cst_5 : f32 to vector<1x128xf32>
    %6 = arith.maximumf %4, %5 : vector<1x128xf32>
    %7 = arith.truncf %6 : vector<1x128xf32> to vector<1x128xbf16>
    %c0_6 = arith.constant 0 : index
    %c0_7 = arith.constant 0 : index
    %8 = vector.load %arg4[%c0_6, %c0_7] : memref<1x128xbf16, #tpu.memory_space<vmem>>, vector<1x128xbf16>
    tpu.vector_store %arg4[%c0_6, %c0_7], %7 {strides = array<i32>} : memref<1x128xbf16, #tpu.memory_space<vmem>>, vector<1x128xbf16>,
    return
  }
  func.func @transform_0(%arg0: i32) -> (i32, i32) {
    %c0_i32 = arith.constant 0 : i32
    %c0_i32_0 = arith.constant 0 : i32
    return %arg0, %c0_i32 : i32, i32
  }
  func.func @transform_1(%arg0: i32) -> (i32, i32) {
    %c0_i32 = arith.constant 0 : i32
    %c0_i32_0 = arith.constant 0 : i32
    %c0_i32_1 = arith.constant 0 : i32
    return %c0_i32, %c0_i32_0 : i32, i32
  }
  func.func @transform_2(%arg0: i32) -> (i32, i32) {
    %c0_i32 = arith.constant 0 : i32
    %c0_i32_0 = arith.constant 0 : i32
    %c0_i32_1 = arith.constant 0 : i32
    return %c0_i32, %c0_i32_0 : i32, i32
  }
  func.func @transform_3(%arg0: i32) -> (i32, i32) {
    %c0_i32 = arith.constant 0 : i32
    %c0_i32_0 = arith.constant 0 : i32
    return %arg0, %c0_i32 : i32, i32
  }
}

module attributes {stable_mosaic.version = 11 : i64} {
  func.func @_mm_bias_act_kernel(%arg0: i32, %arg1: memref<1x3456xbf16, #tpu.memory_space<vmem>>, %arg2: memref<3456x128xbf16, #tpu.memory_space<vmem>>, %arg3: memref<1x128xf32, #tpu.memory_space<vmem>>, %arg4: memref<1x128xbf16, #tpu.memory_space<vmem>>) attributes {dimension_semantics = [#tpu.dimension_semantics<parallel>], iteration_bounds = array<i64: 1>, scalar_prefetch = 0 : i64, scratch_operands = 0 : i64, tpu.core_type = #tpu.core_type<tc>, window_params = [{transform_indices = @transform_0, window_bounds = array<i64: 1, 3456>}, {pipeline_mode = #tpu.pipeline_mode<synchronous>, transform_indices = @transform_1, window_bounds = array<i64: 3456, 128>}, {pipeline_mode = #tpu.pipeline_mode<synchronous>, transform_indices = @transform_2, window_bounds = array<i64: 1, 128>}, {transform_indices = @transform_3, window_bounds = array<i64: 1, 128>}]} {
    %c0 = arith.constant 0 : index
    %c0_0 = arith.constant 0 : index
    %0 = vector.load %arg1[%c0, %c0_0] : memref<1x3456xbf16, #tpu.memory_space<vmem>>, vector<1x3456xbf16>
    %c0_1 = arith.constant 0 : index
    %c0_2 = arith.constant 0 : index
    %1 = vector.load %arg2[%c0_1, %c0_2] : memref<3456x128xbf16, #tpu.memory_space<vmem>>, vector<3456x128xbf16>
    %cst = arith.constant dense<0.000000e+00> : vector<1x128xf32>
    %2 = tpu.matmul %0, %1, %cst {dimension_numbers = #tpu.dot_dimension_numbers<[1], [0], [0], [1], [0, 0, 1, 1], [], []>} : vector<1x3456xbf16>, vector<3456x128xbf16>, vector<1x128xf32> -> vector<1x128xf32>
    %c0_3 = arith.constant 0 : index
    %c0_4 = arith.constant 0 : index
    %3 = vector.load %arg3[%c0_3, %c0_4] : memref<1x128xf32, #tpu.memory_space<vmem>>, vector<1x128xf32>
    %4 = arith.addf %2, %3 : vector<1x128xf32>
    %cst_5 = arith.constant 0.000000e+00 : f32
    %5 = vector.broadcast %cst_5 : f32 to vector<1x128xf32>
    %6 = arith.maximumf %4, %5 : vector<1x128xf32>
    %7 = arith.truncf %6 : vector<1x128xf32> to vector<1x128xbf16>
    %c0_6 = arith.constant 0 : index
    %c0_7 = arith.constant 0 : index
    %8 = vector.load %arg4[%c0_6, %c0_7] : memref<1x128xbf16, #tpu.memory_space<vmem>>, vector<1x128xbf16>
    tpu.vector_store %arg4[%c0_6, %c0_7], %7 {strides = array<i32>} : memref<1x128xbf16, #tpu.memory_space<vmem>>, vector<1x128xbf16>,
    return
  }
  func.func @transform_0(%arg0: i32) -> (i32, i32) {
    %c0_i32 = arith.constant 0 : i32
    %c0_i32_0 = arith.constant 0 : i32
    return %arg0, %c0_i32 : i32, i32
  }
  func.func @transform_1(%arg0: i32) -> (i32, i32) {
    %c0_i32 = arith.constant 0 : i32
    %c0_i32_0 = arith.constant 0 : i32
    %c0_i32_1 = arith.constant 0 : i32
    return %c0_i32, %c0_i32_0 : i32, i32
  }
  func.func @transform_2(%arg0: i32) -> (i32, i32) {
    %c0_i32 = arith.constant 0 : i32
    %c0_i32_0 = arith.constant 0 : i32
    %c0_i32_1 = arith.constant 0 : i32
    return %c0_i32, %c0_i32_0 : i32, i32
  }
  func.func @transform_3(%arg0: i32) -> (i32, i32) {
    %c0_i32 = arith.constant 0 : i32
    %c0_i32_0 = arith.constant 0 : i32
    return %arg0, %c0_i32 : i32, i32
  }
}

module attributes {stable_mosaic.version = 11 : i64} {
  func.func @_mm_bias_act_kernel(%arg0: i32, %arg1: memref<1x1024xbf16, #tpu.memory_space<vmem>>, %arg2: memref<1024x64xbf16, #tpu.memory_space<vmem>>, %arg3: memref<1x64xf32, #tpu.memory_space<vmem>>, %arg4: memref<1x64xbf16, #tpu.memory_space<vmem>>) attributes {dimension_semantics = [#tpu.dimension_semantics<parallel>], iteration_bounds = array<i64: 1>, scalar_prefetch = 0 : i64, scratch_operands = 0 : i64, tpu.core_type = #tpu.core_type<tc>, window_params = [{transform_indices = @transform_0, window_bounds = array<i64: 1, 1024>}, {pipeline_mode = #tpu.pipeline_mode<synchronous>, transform_indices = @transform_1, window_bounds = array<i64: 1024, 64>}, {pipeline_mode = #tpu.pipeline_mode<synchronous>, transform_indices = @transform_2, window_bounds = array<i64: 1, 64>}, {transform_indices = @transform_3, window_bounds = array<i64: 1, 64>}]} {
    %c0 = arith.constant 0 : index
    %c0_0 = arith.constant 0 : index
    %0 = vector.load %arg1[%c0, %c0_0] : memref<1x1024xbf16, #tpu.memory_space<vmem>>, vector<1x1024xbf16>
    %c0_1 = arith.constant 0 : index
    %c0_2 = arith.constant 0 : index
    %1 = vector.load %arg2[%c0_1, %c0_2] : memref<1024x64xbf16, #tpu.memory_space<vmem>>, vector<1024x64xbf16>
    %cst = arith.constant dense<0.000000e+00> : vector<1x64xf32>
    %2 = tpu.matmul %0, %1, %cst {dimension_numbers = #tpu.dot_dimension_numbers<[1], [0], [0], [1], [0, 0, 1, 1], [], []>} : vector<1x1024xbf16>, vector<1024x64xbf16>, vector<1x64xf32> -> vector<1x64xf32>
    %c0_3 = arith.constant 0 : index
    %c0_4 = arith.constant 0 : index
    %3 = vector.load %arg3[%c0_3, %c0_4] : memref<1x64xf32, #tpu.memory_space<vmem>>, vector<1x64xf32>
    %4 = arith.addf %2, %3 : vector<1x64xf32>
    %5 = arith.truncf %4 : vector<1x64xf32> to vector<1x64xbf16>
    %c0_5 = arith.constant 0 : index
    %c0_6 = arith.constant 0 : index
    %6 = vector.load %arg4[%c0_5, %c0_6] : memref<1x64xbf16, #tpu.memory_space<vmem>>, vector<1x64xbf16>
    tpu.vector_store %arg4[%c0_5, %c0_6], %5 {strides = array<i32>} : memref<1x64xbf16, #tpu.memory_space<vmem>>, vector<1x64xbf16>,
    return
  }
  func.func @transform_0(%arg0: i32) -> (i32, i32) {
    %c0_i32 = arith.constant 0 : i32
    %c0_i32_0 = arith.constant 0 : i32
    return %arg0, %c0_i32 : i32, i32
  }
  func.func @transform_1(%arg0: i32) -> (i32, i32) {
    %c0_i32 = arith.constant 0 : i32
    %c0_i32_0 = arith.constant 0 : i32
    %c0_i32_1 = arith.constant 0 : i32
    return %c0_i32, %c0_i32_0 : i32, i32
  }
  func.func @transform_2(%arg0: i32) -> (i32, i32) {
    %c0_i32 = arith.constant 0 : i32
    %c0_i32_0 = arith.constant 0 : i32
    %c0_i32_1 = arith.constant 0 : i32
    return %c0_i32, %c0_i32_0 : i32, i32
  }
  func.func @transform_3(%arg0: i32) -> (i32, i32) {
    %c0_i32 = arith.constant 0 : i32
    %c0_i32_0 = arith.constant 0 : i32
    return %arg0, %c0_i32 : i32, i32
  }
}

module attributes {stable_mosaic.version = 11 : i64} {
  func.func @_mm_bias_act_kernel(%arg0: i32, %arg1: memref<1x512xbf16, #tpu.memory_space<vmem>>, %arg2: memref<512x64xbf16, #tpu.memory_space<vmem>>, %arg3: memref<1x64xf32, #tpu.memory_space<vmem>>, %arg4: memref<1x64xbf16, #tpu.memory_space<vmem>>) attributes {dimension_semantics = [#tpu.dimension_semantics<parallel>], iteration_bounds = array<i64: 1>, scalar_prefetch = 0 : i64, scratch_operands = 0 : i64, tpu.core_type = #tpu.core_type<tc>, window_params = [{transform_indices = @transform_0, window_bounds = array<i64: 1, 512>}, {pipeline_mode = #tpu.pipeline_mode<synchronous>, transform_indices = @transform_1, window_bounds = array<i64: 512, 64>}, {pipeline_mode = #tpu.pipeline_mode<synchronous>, transform_indices = @transform_2, window_bounds = array<i64: 1, 64>}, {transform_indices = @transform_3, window_bounds = array<i64: 1, 64>}]} {
    %c0 = arith.constant 0 : index
    %c0_0 = arith.constant 0 : index
    %0 = vector.load %arg1[%c0, %c0_0] : memref<1x512xbf16, #tpu.memory_space<vmem>>, vector<1x512xbf16>
    %c0_1 = arith.constant 0 : index
    %c0_2 = arith.constant 0 : index
    %1 = vector.load %arg2[%c0_1, %c0_2] : memref<512x64xbf16, #tpu.memory_space<vmem>>, vector<512x64xbf16>
    %cst = arith.constant dense<0.000000e+00> : vector<1x64xf32>
    %2 = tpu.matmul %0, %1, %cst {dimension_numbers = #tpu.dot_dimension_numbers<[1], [0], [0], [1], [0, 0, 1, 1], [], []>} : vector<1x512xbf16>, vector<512x64xbf16>, vector<1x64xf32> -> vector<1x64xf32>
    %c0_3 = arith.constant 0 : index
    %c0_4 = arith.constant 0 : index
    %3 = vector.load %arg3[%c0_3, %c0_4] : memref<1x64xf32, #tpu.memory_space<vmem>>, vector<1x64xf32>
    %4 = arith.addf %2, %3 : vector<1x64xf32>
    %5 = arith.truncf %4 : vector<1x64xf32> to vector<1x64xbf16>
    %c0_5 = arith.constant 0 : index
    %c0_6 = arith.constant 0 : index
    %6 = vector.load %arg4[%c0_5, %c0_6] : memref<1x64xbf16, #tpu.memory_space<vmem>>, vector<1x64xbf16>
    tpu.vector_store %arg4[%c0_5, %c0_6], %5 {strides = array<i32>} : memref<1x64xbf16, #tpu.memory_space<vmem>>, vector<1x64xbf16>,
    return
  }
  func.func @transform_0(%arg0: i32) -> (i32, i32) {
    %c0_i32 = arith.constant 0 : i32
    %c0_i32_0 = arith.constant 0 : i32
    return %arg0, %c0_i32 : i32, i32
  }
  func.func @transform_1(%arg0: i32) -> (i32, i32) {
    %c0_i32 = arith.constant 0 : i32
    %c0_i32_0 = arith.constant 0 : i32
    %c0_i32_1 = arith.constant 0 : i32
    return %c0_i32, %c0_i32_0 : i32, i32
  }
  func.func @transform_2(%arg0: i32) -> (i32, i32) {
    %c0_i32 = arith.constant 0 : i32
    %c0_i32_0 = arith.constant 0 : i32
    %c0_i32_1 = arith.constant 0 : i32
    return %c0_i32, %c0_i32_0 : i32, i32
  }
  func.func @transform_3(%arg0: i32) -> (i32, i32) {
    %c0_i32 = arith.constant 0 : i32
    %c0_i32_0 = arith.constant 0 : i32
    return %arg0, %c0_i32 : i32, i32
  }
}

module attributes {stable_mosaic.version = 11 : i64} {
  func.func @_mm_bias_act_kernel(%arg0: i32, %arg1: memref<1x256xbf16, #tpu.memory_space<vmem>>, %arg2: memref<256x64xbf16, #tpu.memory_space<vmem>>, %arg3: memref<1x64xf32, #tpu.memory_space<vmem>>, %arg4: memref<1x64xbf16, #tpu.memory_space<vmem>>) attributes {dimension_semantics = [#tpu.dimension_semantics<parallel>], iteration_bounds = array<i64: 1>, scalar_prefetch = 0 : i64, scratch_operands = 0 : i64, tpu.core_type = #tpu.core_type<tc>, window_params = [{transform_indices = @transform_0, window_bounds = array<i64: 1, 256>}, {pipeline_mode = #tpu.pipeline_mode<synchronous>, transform_indices = @transform_1, window_bounds = array<i64: 256, 64>}, {pipeline_mode = #tpu.pipeline_mode<synchronous>, transform_indices = @transform_2, window_bounds = array<i64: 1, 64>}, {transform_indices = @transform_3, window_bounds = array<i64: 1, 64>}]} {
    %c0 = arith.constant 0 : index
    %c0_0 = arith.constant 0 : index
    %0 = vector.load %arg1[%c0, %c0_0] : memref<1x256xbf16, #tpu.memory_space<vmem>>, vector<1x256xbf16>
    %c0_1 = arith.constant 0 : index
    %c0_2 = arith.constant 0 : index
    %1 = vector.load %arg2[%c0_1, %c0_2] : memref<256x64xbf16, #tpu.memory_space<vmem>>, vector<256x64xbf16>
    %cst = arith.constant dense<0.000000e+00> : vector<1x64xf32>
    %2 = tpu.matmul %0, %1, %cst {dimension_numbers = #tpu.dot_dimension_numbers<[1], [0], [0], [1], [0, 0, 1, 1], [], []>} : vector<1x256xbf16>, vector<256x64xbf16>, vector<1x64xf32> -> vector<1x64xf32>
    %c0_3 = arith.constant 0 : index
    %c0_4 = arith.constant 0 : index
    %3 = vector.load %arg3[%c0_3, %c0_4] : memref<1x64xf32, #tpu.memory_space<vmem>>, vector<1x64xf32>
    %4 = arith.addf %2, %3 : vector<1x64xf32>
    %5 = arith.truncf %4 : vector<1x64xf32> to vector<1x64xbf16>
    %c0_5 = arith.constant 0 : index
    %c0_6 = arith.constant 0 : index
    %6 = vector.load %arg4[%c0_5, %c0_6] : memref<1x64xbf16, #tpu.memory_space<vmem>>, vector<1x64xbf16>
    tpu.vector_store %arg4[%c0_5, %c0_6], %5 {strides = array<i32>} : memref<1x64xbf16, #tpu.memory_space<vmem>>, vector<1x64xbf16>,
    return
  }
  func.func @transform_0(%arg0: i32) -> (i32, i32) {
    %c0_i32 = arith.constant 0 : i32
    %c0_i32_0 = arith.constant 0 : i32
    return %arg0, %c0_i32 : i32, i32
  }
  func.func @transform_1(%arg0: i32) -> (i32, i32) {
    %c0_i32 = arith.constant 0 : i32
    %c0_i32_0 = arith.constant 0 : i32
    %c0_i32_1 = arith.constant 0 : i32
    return %c0_i32, %c0_i32_0 : i32, i32
  }
  func.func @transform_2(%arg0: i32) -> (i32, i32) {
    %c0_i32 = arith.constant 0 : i32
    %c0_i32_0 = arith.constant 0 : i32
    %c0_i32_1 = arith.constant 0 : i32
    return %c0_i32, %c0_i32_0 : i32, i32
  }
  func.func @transform_3(%arg0: i32) -> (i32, i32) {
    %c0_i32 = arith.constant 0 : i32
    %c0_i32_0 = arith.constant 0 : i32
    return %arg0, %c0_i32 : i32, i32
  }
}

module attributes {stable_mosaic.version = 11 : i64} {
  func.func @_mm_bias_act_kernel(%arg0: i32, %arg1: memref<1x128xbf16, #tpu.memory_space<vmem>>, %arg2: memref<128x64xbf16, #tpu.memory_space<vmem>>, %arg3: memref<1x64xf32, #tpu.memory_space<vmem>>, %arg4: memref<1x64xbf16, #tpu.memory_space<vmem>>) attributes {dimension_semantics = [#tpu.dimension_semantics<parallel>], iteration_bounds = array<i64: 1>, scalar_prefetch = 0 : i64, scratch_operands = 0 : i64, tpu.core_type = #tpu.core_type<tc>, window_params = [{transform_indices = @transform_0, window_bounds = array<i64: 1, 128>}, {pipeline_mode = #tpu.pipeline_mode<synchronous>, transform_indices = @transform_1, window_bounds = array<i64: 128, 64>}, {pipeline_mode = #tpu.pipeline_mode<synchronous>, transform_indices = @transform_2, window_bounds = array<i64: 1, 64>}, {transform_indices = @transform_3, window_bounds = array<i64: 1, 64>}]} {
    %c0 = arith.constant 0 : index
    %c0_0 = arith.constant 0 : index
    %0 = vector.load %arg1[%c0, %c0_0] : memref<1x128xbf16, #tpu.memory_space<vmem>>, vector<1x128xbf16>
    %c0_1 = arith.constant 0 : index
    %c0_2 = arith.constant 0 : index
    %1 = vector.load %arg2[%c0_1, %c0_2] : memref<128x64xbf16, #tpu.memory_space<vmem>>, vector<128x64xbf16>
    %cst = arith.constant dense<0.000000e+00> : vector<1x64xf32>
    %2 = tpu.matmul %0, %1, %cst {dimension_numbers = #tpu.dot_dimension_numbers<[1], [0], [0], [1], [0, 0, 1, 1], [], []>} : vector<1x128xbf16>, vector<128x64xbf16>, vector<1x64xf32> -> vector<1x64xf32>
    %c0_3 = arith.constant 0 : index
    %c0_4 = arith.constant 0 : index
    %3 = vector.load %arg3[%c0_3, %c0_4] : memref<1x64xf32, #tpu.memory_space<vmem>>, vector<1x64xf32>
    %4 = arith.addf %2, %3 : vector<1x64xf32>
    %5 = arith.truncf %4 : vector<1x64xf32> to vector<1x64xbf16>
    %c0_5 = arith.constant 0 : index
    %c0_6 = arith.constant 0 : index
    %6 = vector.load %arg4[%c0_5, %c0_6] : memref<1x64xbf16, #tpu.memory_space<vmem>>, vector<1x64xbf16>
    tpu.vector_store %arg4[%c0_5, %c0_6], %5 {strides = array<i32>} : memref<1x64xbf16, #tpu.memory_space<vmem>>, vector<1x64xbf16>,
    return
  }
  func.func @transform_0(%arg0: i32) -> (i32, i32) {
    %c0_i32 = arith.constant 0 : i32
    %c0_i32_0 = arith.constant 0 : i32
    return %arg0, %c0_i32 : i32, i32
  }
  func.func @transform_1(%arg0: i32) -> (i32, i32) {
    %c0_i32 = arith.constant 0 : i32
    %c0_i32_0 = arith.constant 0 : i32
    %c0_i32_1 = arith.constant 0 : i32
    return %c0_i32, %c0_i32_0 : i32, i32
  }
  func.func @transform_2(%arg0: i32) -> (i32, i32) {
    %c0_i32 = arith.constant 0 : i32
    %c0_i32_0 = arith.constant 0 : i32
    %c0_i32_1 = arith.constant 0 : i32
    return %c0_i32, %c0_i32_0 : i32, i32
  }
  func.func @transform_3(%arg0: i32) -> (i32, i32) {
    %c0_i32 = arith.constant 0 : i32
    %c0_i32_0 = arith.constant 0 : i32
    return %arg0, %c0_i32 : i32, i32
  }
}

module attributes {stable_mosaic.version = 11 : i64} {
  func.func @_mm_bias_act_kernel(%arg0: i32, %arg1: memref<8x256xbf16, #tpu.memory_space<vmem>>, %arg2: memref<256x32xbf16, #tpu.memory_space<vmem>>, %arg3: memref<1x32xf32, #tpu.memory_space<vmem>>, %arg4: memref<8x32xbf16, #tpu.memory_space<vmem>>) attributes {dimension_semantics = [#tpu.dimension_semantics<parallel>], iteration_bounds = array<i64: 1>, scalar_prefetch = 0 : i64, scratch_operands = 0 : i64, tpu.core_type = #tpu.core_type<tc>, window_params = [{transform_indices = @transform_0, window_bounds = array<i64: 8, 256>}, {pipeline_mode = #tpu.pipeline_mode<synchronous>, transform_indices = @transform_1, window_bounds = array<i64: 256, 32>}, {pipeline_mode = #tpu.pipeline_mode<synchronous>, transform_indices = @transform_2, window_bounds = array<i64: 1, 32>}, {transform_indices = @transform_3, window_bounds = array<i64: 8, 32>}]} {
    %c0 = arith.constant 0 : index
    %c0_0 = arith.constant 0 : index
    %0 = vector.load %arg1[%c0, %c0_0] : memref<8x256xbf16, #tpu.memory_space<vmem>>, vector<8x256xbf16>
    %c0_1 = arith.constant 0 : index
    %c0_2 = arith.constant 0 : index
    %1 = vector.load %arg2[%c0_1, %c0_2] : memref<256x32xbf16, #tpu.memory_space<vmem>>, vector<256x32xbf16>
    %cst = arith.constant dense<0.000000e+00> : vector<8x32xf32>
    %2 = tpu.matmul %0, %1, %cst {dimension_numbers = #tpu.dot_dimension_numbers<[1], [0], [0], [1], [0, 0, 1, 1], [], []>} : vector<8x256xbf16>, vector<256x32xbf16>, vector<8x32xf32> -> vector<8x32xf32>
    %c0_3 = arith.constant 0 : index
    %c0_4 = arith.constant 0 : index
    %3 = vector.load %arg3[%c0_3, %c0_4] : memref<1x32xf32, #tpu.memory_space<vmem>>, vector<1x32xf32>
    %4 = vector.broadcast %3 : vector<1x32xf32> to vector<8x32xf32>
    %5 = arith.addf %2, %4 : vector<8x32xf32>
    %6 = arith.truncf %5 : vector<8x32xf32> to vector<8x32xbf16>
    %c0_5 = arith.constant 0 : index
    %c0_6 = arith.constant 0 : index
    %7 = vector.load %arg4[%c0_5, %c0_6] : memref<8x32xbf16, #tpu.memory_space<vmem>>, vector<8x32xbf16>
    tpu.vector_store %arg4[%c0_5, %c0_6], %6 {strides = array<i32>} : memref<8x32xbf16, #tpu.memory_space<vmem>>, vector<8x32xbf16>,
    return
  }
  func.func @transform_0(%arg0: i32) -> (i32, i32) {
    %c0_i32 = arith.constant 0 : i32
    %c0_i32_0 = arith.constant 0 : i32
    return %arg0, %c0_i32 : i32, i32
  }
  func.func @transform_1(%arg0: i32) -> (i32, i32) {
    %c0_i32 = arith.constant 0 : i32
    %c0_i32_0 = arith.constant 0 : i32
    %c0_i32_1 = arith.constant 0 : i32
    return %c0_i32, %c0_i32_0 : i32, i32
  }
  func.func @transform_2(%arg0: i32) -> (i32, i32) {
    %c0_i32 = arith.constant 0 : i32
    %c0_i32_0 = arith.constant 0 : i32
    %c0_i32_1 = arith.constant 0 : i32
    return %c0_i32, %c0_i32_0 : i32, i32
  }
  func.func @transform_3(%arg0: i32) -> (i32, i32) {
    %c0_i32 = arith.constant 0 : i32
    %c0_i32_0 = arith.constant 0 : i32
    return %arg0, %c0_i32 : i32, i32
  }
}

module attributes {stable_mosaic.version = 11 : i64} {
  func.func @_mm_bias_act_kernel(%arg0: i32, %arg1: memref<8x512xbf16, #tpu.memory_space<vmem>>, %arg2: memref<512x32xbf16, #tpu.memory_space<vmem>>, %arg3: memref<1x32xf32, #tpu.memory_space<vmem>>, %arg4: memref<8x32xbf16, #tpu.memory_space<vmem>>) attributes {dimension_semantics = [#tpu.dimension_semantics<parallel>], iteration_bounds = array<i64: 1>, scalar_prefetch = 0 : i64, scratch_operands = 0 : i64, tpu.core_type = #tpu.core_type<tc>, window_params = [{transform_indices = @transform_0, window_bounds = array<i64: 8, 512>}, {pipeline_mode = #tpu.pipeline_mode<synchronous>, transform_indices = @transform_1, window_bounds = array<i64: 512, 32>}, {pipeline_mode = #tpu.pipeline_mode<synchronous>, transform_indices = @transform_2, window_bounds = array<i64: 1, 32>}, {transform_indices = @transform_3, window_bounds = array<i64: 8, 32>}]} {
    %c0 = arith.constant 0 : index
    %c0_0 = arith.constant 0 : index
    %0 = vector.load %arg1[%c0, %c0_0] : memref<8x512xbf16, #tpu.memory_space<vmem>>, vector<8x512xbf16>
    %c0_1 = arith.constant 0 : index
    %c0_2 = arith.constant 0 : index
    %1 = vector.load %arg2[%c0_1, %c0_2] : memref<512x32xbf16, #tpu.memory_space<vmem>>, vector<512x32xbf16>
    %cst = arith.constant dense<0.000000e+00> : vector<8x32xf32>
    %2 = tpu.matmul %0, %1, %cst {dimension_numbers = #tpu.dot_dimension_numbers<[1], [0], [0], [1], [0, 0, 1, 1], [], []>} : vector<8x512xbf16>, vector<512x32xbf16>, vector<8x32xf32> -> vector<8x32xf32>
    %c0_3 = arith.constant 0 : index
    %c0_4 = arith.constant 0 : index
    %3 = vector.load %arg3[%c0_3, %c0_4] : memref<1x32xf32, #tpu.memory_space<vmem>>, vector<1x32xf32>
    %4 = vector.broadcast %3 : vector<1x32xf32> to vector<8x32xf32>
    %5 = arith.addf %2, %4 : vector<8x32xf32>
    %6 = arith.truncf %5 : vector<8x32xf32> to vector<8x32xbf16>
    %c0_5 = arith.constant 0 : index
    %c0_6 = arith.constant 0 : index
    %7 = vector.load %arg4[%c0_5, %c0_6] : memref<8x32xbf16, #tpu.memory_space<vmem>>, vector<8x32xbf16>
    tpu.vector_store %arg4[%c0_5, %c0_6], %6 {strides = array<i32>} : memref<8x32xbf16, #tpu.memory_space<vmem>>, vector<8x32xbf16>,
    return
  }
  func.func @transform_0(%arg0: i32) -> (i32, i32) {
    %c0_i32 = arith.constant 0 : i32
    %c0_i32_0 = arith.constant 0 : i32
    return %arg0, %c0_i32 : i32, i32
  }
  func.func @transform_1(%arg0: i32) -> (i32, i32) {
    %c0_i32 = arith.constant 0 : i32
    %c0_i32_0 = arith.constant 0 : i32
    %c0_i32_1 = arith.constant 0 : i32
    return %c0_i32, %c0_i32_0 : i32, i32
  }
  func.func @transform_2(%arg0: i32) -> (i32, i32) {
    %c0_i32 = arith.constant 0 : i32
    %c0_i32_0 = arith.constant 0 : i32
    %c0_i32_1 = arith.constant 0 : i32
    return %c0_i32, %c0_i32_0 : i32, i32
  }
  func.func @transform_3(%arg0: i32) -> (i32, i32) {
    %c0_i32 = arith.constant 0 : i32
    %c0_i32_0 = arith.constant 0 : i32
    return %arg0, %c0_i32 : i32, i32
  }
}

module attributes {stable_mosaic.version = 11 : i64} {
  func.func @_mm_bias_act_kernel(%arg0: i32, %arg1: memref<8x128xbf16, #tpu.memory_space<vmem>>, %arg2: memref<128x32xbf16, #tpu.memory_space<vmem>>, %arg3: memref<1x32xf32, #tpu.memory_space<vmem>>, %arg4: memref<8x32xbf16, #tpu.memory_space<vmem>>) attributes {dimension_semantics = [#tpu.dimension_semantics<parallel>], iteration_bounds = array<i64: 1>, scalar_prefetch = 0 : i64, scratch_operands = 0 : i64, tpu.core_type = #tpu.core_type<tc>, window_params = [{transform_indices = @transform_0, window_bounds = array<i64: 8, 128>}, {pipeline_mode = #tpu.pipeline_mode<synchronous>, transform_indices = @transform_1, window_bounds = array<i64: 128, 32>}, {pipeline_mode = #tpu.pipeline_mode<synchronous>, transform_indices = @transform_2, window_bounds = array<i64: 1, 32>}, {transform_indices = @transform_3, window_bounds = array<i64: 8, 32>}]} {
    %c0 = arith.constant 0 : index
    %c0_0 = arith.constant 0 : index
    %0 = vector.load %arg1[%c0, %c0_0] : memref<8x128xbf16, #tpu.memory_space<vmem>>, vector<8x128xbf16>
    %c0_1 = arith.constant 0 : index
    %c0_2 = arith.constant 0 : index
    %1 = vector.load %arg2[%c0_1, %c0_2] : memref<128x32xbf16, #tpu.memory_space<vmem>>, vector<128x32xbf16>
    %cst = arith.constant dense<0.000000e+00> : vector<8x32xf32>
    %2 = tpu.matmul %0, %1, %cst {dimension_numbers = #tpu.dot_dimension_numbers<[1], [0], [0], [1], [0, 0, 1, 1], [], []>} : vector<8x128xbf16>, vector<128x32xbf16>, vector<8x32xf32> -> vector<8x32xf32>
    %c0_3 = arith.constant 0 : index
    %c0_4 = arith.constant 0 : index
    %3 = vector.load %arg3[%c0_3, %c0_4] : memref<1x32xf32, #tpu.memory_space<vmem>>, vector<1x32xf32>
    %4 = vector.broadcast %3 : vector<1x32xf32> to vector<8x32xf32>
    %5 = arith.addf %2, %4 : vector<8x32xf32>
    %6 = arith.truncf %5 : vector<8x32xf32> to vector<8x32xbf16>
    %c0_5 = arith.constant 0 : index
    %c0_6 = arith.constant 0 : index
    %7 = vector.load %arg4[%c0_5, %c0_6] : memref<8x32xbf16, #tpu.memory_space<vmem>>, vector<8x32xbf16>
    tpu.vector_store %arg4[%c0_5, %c0_6], %6 {strides = array<i32>} : memref<8x32xbf16, #tpu.memory_space<vmem>>, vector<8x32xbf16>,
    return
  }
  func.func @transform_0(%arg0: i32) -> (i32, i32) {
    %c0_i32 = arith.constant 0 : i32
    %c0_i32_0 = arith.constant 0 : i32
    return %arg0, %c0_i32 : i32, i32
  }
  func.func @transform_1(%arg0: i32) -> (i32, i32) {
    %c0_i32 = arith.constant 0 : i32
    %c0_i32_0 = arith.constant 0 : i32
    %c0_i32_1 = arith.constant 0 : i32
    return %c0_i32, %c0_i32_0 : i32, i32
  }
  func.func @transform_2(%arg0: i32) -> (i32, i32) {
    %c0_i32 = arith.constant 0 : i32
    %c0_i32_0 = arith.constant 0 : i32
    %c0_i32_1 = arith.constant 0 : i32
    return %c0_i32, %c0_i32_0 : i32, i32
  }
  func.func @transform_3(%arg0: i32) -> (i32, i32) {
    %c0_i32 = arith.constant 0 : i32
    %c0_i32_0 = arith.constant 0 : i32
    return %arg0, %c0_i32 : i32, i32
  }
}

module attributes {stable_mosaic.version = 11 : i64} {
  func.func @_mm_bias_act_kernel(%arg0: i32, %arg1: memref<8x64xbf16, #tpu.memory_space<vmem>>, %arg2: memref<64x32xbf16, #tpu.memory_space<vmem>>, %arg3: memref<1x32xf32, #tpu.memory_space<vmem>>, %arg4: memref<8x32xbf16, #tpu.memory_space<vmem>>) attributes {dimension_semantics = [#tpu.dimension_semantics<parallel>], iteration_bounds = array<i64: 1>, scalar_prefetch = 0 : i64, scratch_operands = 0 : i64, tpu.core_type = #tpu.core_type<tc>, window_params = [{transform_indices = @transform_0, window_bounds = array<i64: 8, 64>}, {pipeline_mode = #tpu.pipeline_mode<synchronous>, transform_indices = @transform_1, window_bounds = array<i64: 64, 32>}, {pipeline_mode = #tpu.pipeline_mode<synchronous>, transform_indices = @transform_2, window_bounds = array<i64: 1, 32>}, {transform_indices = @transform_3, window_bounds = array<i64: 8, 32>}]} {
    %c0 = arith.constant 0 : index
    %c0_0 = arith.constant 0 : index
    %0 = vector.load %arg1[%c0, %c0_0] : memref<8x64xbf16, #tpu.memory_space<vmem>>, vector<8x64xbf16>
    %c0_1 = arith.constant 0 : index
    %c0_2 = arith.constant 0 : index
    %1 = vector.load %arg2[%c0_1, %c0_2] : memref<64x32xbf16, #tpu.memory_space<vmem>>, vector<64x32xbf16>
    %cst = arith.constant dense<0.000000e+00> : vector<8x32xf32>
    %2 = tpu.matmul %0, %1, %cst {dimension_numbers = #tpu.dot_dimension_numbers<[1], [0], [0], [1], [0, 0, 1, 1], [], []>} : vector<8x64xbf16>, vector<64x32xbf16>, vector<8x32xf32> -> vector<8x32xf32>
    %c0_3 = arith.constant 0 : index
    %c0_4 = arith.constant 0 : index
    %3 = vector.load %arg3[%c0_3, %c0_4] : memref<1x32xf32, #tpu.memory_space<vmem>>, vector<1x32xf32>
    %4 = vector.broadcast %3 : vector<1x32xf32> to vector<8x32xf32>
    %5 = arith.addf %2, %4 : vector<8x32xf32>
    %6 = arith.truncf %5 : vector<8x32xf32> to vector<8x32xbf16>
    %c0_5 = arith.constant 0 : index
    %c0_6 = arith.constant 0 : index
    %7 = vector.load %arg4[%c0_5, %c0_6] : memref<8x32xbf16, #tpu.memory_space<vmem>>, vector<8x32xbf16>
    tpu.vector_store %arg4[%c0_5, %c0_6], %6 {strides = array<i32>} : memref<8x32xbf16, #tpu.memory_space<vmem>>, vector<8x32xbf16>,
    return
  }
  func.func @transform_0(%arg0: i32) -> (i32, i32) {
    %c0_i32 = arith.constant 0 : i32
    %c0_i32_0 = arith.constant 0 : i32
    return %arg0, %c0_i32 : i32, i32
  }
  func.func @transform_1(%arg0: i32) -> (i32, i32) {
    %c0_i32 = arith.constant 0 : i32
    %c0_i32_0 = arith.constant 0 : i32
    %c0_i32_1 = arith.constant 0 : i32
    return %c0_i32, %c0_i32_0 : i32, i32
  }
  func.func @transform_2(%arg0: i32) -> (i32, i32) {
    %c0_i32 = arith.constant 0 : i32
    %c0_i32_0 = arith.constant 0 : i32
    %c0_i32_1 = arith.constant 0 : i32
    return %c0_i32, %c0_i32_0 : i32, i32
  }
  func.func @transform_3(%arg0: i32) -> (i32, i32) {
    %c0_i32 = arith.constant 0 : i32
    %c0_i32_0 = arith.constant 0 : i32
    return %arg0, %c0_i32 : i32, i32
  }
}

module attributes {stable_mosaic.version = 11 : i64} {
  func.func @_mm_bias_act_kernel(%arg0: i32, %arg1: memref<64x32xbf16, #tpu.memory_space<vmem>>, %arg2: memref<32x32xbf16, #tpu.memory_space<vmem>>, %arg3: memref<1x32xf32, #tpu.memory_space<vmem>>, %arg4: memref<64x32xbf16, #tpu.memory_space<vmem>>) attributes {dimension_semantics = [#tpu.dimension_semantics<parallel>], iteration_bounds = array<i64: 1>, scalar_prefetch = 0 : i64, scratch_operands = 0 : i64, tpu.core_type = #tpu.core_type<tc>, window_params = [{transform_indices = @transform_0, window_bounds = array<i64: 64, 32>}, {pipeline_mode = #tpu.pipeline_mode<synchronous>, transform_indices = @transform_1, window_bounds = array<i64: 32, 32>}, {pipeline_mode = #tpu.pipeline_mode<synchronous>, transform_indices = @transform_2, window_bounds = array<i64: 1, 32>}, {transform_indices = @transform_3, window_bounds = array<i64: 64, 32>}]} {
    %c0 = arith.constant 0 : index
    %c0_0 = arith.constant 0 : index
    %0 = vector.load %arg1[%c0, %c0_0] : memref<64x32xbf16, #tpu.memory_space<vmem>>, vector<64x32xbf16>
    %c0_1 = arith.constant 0 : index
    %c0_2 = arith.constant 0 : index
    %1 = vector.load %arg2[%c0_1, %c0_2] : memref<32x32xbf16, #tpu.memory_space<vmem>>, vector<32x32xbf16>
    %cst = arith.constant dense<0.000000e+00> : vector<64x32xf32>
    %2 = tpu.matmul %0, %1, %cst {dimension_numbers = #tpu.dot_dimension_numbers<[1], [0], [0], [1], [0, 0, 1, 1], [], []>} : vector<64x32xbf16>, vector<32x32xbf16>, vector<64x32xf32> -> vector<64x32xf32>
    %c0_3 = arith.constant 0 : index
    %c0_4 = arith.constant 0 : index
    %3 = vector.load %arg3[%c0_3, %c0_4] : memref<1x32xf32, #tpu.memory_space<vmem>>, vector<1x32xf32>
    %4 = vector.broadcast %3 : vector<1x32xf32> to vector<64x32xf32>
    %5 = arith.addf %2, %4 : vector<64x32xf32>
    %6 = arith.truncf %5 : vector<64x32xf32> to vector<64x32xbf16>
    %c0_5 = arith.constant 0 : index
    %c0_6 = arith.constant 0 : index
    %7 = vector.load %arg4[%c0_5, %c0_6] : memref<64x32xbf16, #tpu.memory_space<vmem>>, vector<64x32xbf16>
    tpu.vector_store %arg4[%c0_5, %c0_6], %6 {strides = array<i32>} : memref<64x32xbf16, #tpu.memory_space<vmem>>, vector<64x32xbf16>,
    return
  }
  func.func @transform_0(%arg0: i32) -> (i32, i32) {
    %c0_i32 = arith.constant 0 : i32
    %c0_i32_0 = arith.constant 0 : i32
    return %arg0, %c0_i32 : i32, i32
  }
  func.func @transform_1(%arg0: i32) -> (i32, i32) {
    %c0_i32 = arith.constant 0 : i32
    %c0_i32_0 = arith.constant 0 : i32
    %c0_i32_1 = arith.constant 0 : i32
    return %c0_i32, %c0_i32_0 : i32, i32
  }
  func.func @transform_2(%arg0: i32) -> (i32, i32) {
    %c0_i32 = arith.constant 0 : i32
    %c0_i32_0 = arith.constant 0 : i32
    %c0_i32_1 = arith.constant 0 : i32
    return %c0_i32, %c0_i32_0 : i32, i32
  }
  func.func @transform_3(%arg0: i32) -> (i32, i32) {
    %c0_i32 = arith.constant 0 : i32
    %c0_i32_0 = arith.constant 0 : i32
    return %arg0, %c0_i32 : i32, i32
  }
}

module attributes {stable_mosaic.version = 11 : i64} {
  func.func @_mm_bias_act_kernel(%arg0: i32, %arg1: memref<64x864xbf16, #tpu.memory_space<vmem>>, %arg2: memref<864x32xbf16, #tpu.memory_space<vmem>>, %arg3: memref<1x32xf32, #tpu.memory_space<vmem>>, %arg4: memref<64x32xbf16, #tpu.memory_space<vmem>>) attributes {dimension_semantics = [#tpu.dimension_semantics<parallel>], iteration_bounds = array<i64: 1>, scalar_prefetch = 0 : i64, scratch_operands = 0 : i64, tpu.core_type = #tpu.core_type<tc>, window_params = [{transform_indices = @transform_0, window_bounds = array<i64: 64, 864>}, {pipeline_mode = #tpu.pipeline_mode<synchronous>, transform_indices = @transform_1, window_bounds = array<i64: 864, 32>}, {pipeline_mode = #tpu.pipeline_mode<synchronous>, transform_indices = @transform_2, window_bounds = array<i64: 1, 32>}, {transform_indices = @transform_3, window_bounds = array<i64: 64, 32>}]} {
    %c0 = arith.constant 0 : index
    %c0_0 = arith.constant 0 : index
    %0 = vector.load %arg1[%c0, %c0_0] : memref<64x864xbf16, #tpu.memory_space<vmem>>, vector<64x864xbf16>
    %c0_1 = arith.constant 0 : index
    %c0_2 = arith.constant 0 : index
    %1 = vector.load %arg2[%c0_1, %c0_2] : memref<864x32xbf16, #tpu.memory_space<vmem>>, vector<864x32xbf16>
    %cst = arith.constant dense<0.000000e+00> : vector<64x32xf32>
    %2 = tpu.matmul %0, %1, %cst {dimension_numbers = #tpu.dot_dimension_numbers<[1], [0], [0], [1], [0, 0, 1, 1], [], []>} : vector<64x864xbf16>, vector<864x32xbf16>, vector<64x32xf32> -> vector<64x32xf32>
    %c0_3 = arith.constant 0 : index
    %c0_4 = arith.constant 0 : index
    %3 = vector.load %arg3[%c0_3, %c0_4] : memref<1x32xf32, #tpu.memory_space<vmem>>, vector<1x32xf32>
    %4 = vector.broadcast %3 : vector<1x32xf32> to vector<64x32xf32>
    %5 = arith.addf %2, %4 : vector<64x32xf32>
    %cst_5 = arith.constant 0.000000e+00 : f32
    %6 = vector.broadcast %cst_5 : f32 to vector<64x32xf32>
    %7 = arith.cmpf ogt, %5, %6 : vector<64x32xf32>
    %cst_6 = arith.constant 0.00999999977 : f32
    %8 = vector.broadcast %cst_6 : f32 to vector<64x32xf32>
    %9 = arith.mulf %8, %5 : vector<64x32xf32>
    %10 = arith.select %7, %5, %9 : vector<64x32xi1>, vector<64x32xf32>
    %11 = arith.truncf %10 : vector<64x32xf32> to vector<64x32xbf16>
    %c0_7 = arith.constant 0 : index
    %c0_8 = arith.constant 0 : index
    %12 = vector.load %arg4[%c0_7, %c0_8] : memref<64x32xbf16, #tpu.memory_space<vmem>>, vector<64x32xbf16>
    tpu.vector_store %arg4[%c0_7, %c0_8], %11 {strides = array<i32>} : memref<64x32xbf16, #tpu.memory_space<vmem>>, vector<64x32xbf16>,
    return
  }
  func.func @transform_0(%arg0: i32) -> (i32, i32) {
    %c0_i32 = arith.constant 0 : i32
    %c0_i32_0 = arith.constant 0 : i32
    return %arg0, %c0_i32 : i32, i32
  }
  func.func @transform_1(%arg0: i32) -> (i32, i32) {
    %c0_i32 = arith.constant 0 : i32
    %c0_i32_0 = arith.constant 0 : i32
    %c0_i32_1 = arith.constant 0 : i32
    return %c0_i32, %c0_i32_0 : i32, i32
  }
  func.func @transform_2(%arg0: i32) -> (i32, i32) {
    %c0_i32 = arith.constant 0 : i32
    %c0_i32_0 = arith.constant 0 : i32
    %c0_i32_1 = arith.constant 0 : i32
    return %c0_i32, %c0_i32_0 : i32, i32
  }
  func.func @transform_3(%arg0: i32) -> (i32, i32) {
    %c0_i32 = arith.constant 0 : i32
    %c0_i32_0 = arith.constant 0 : i32
    return %arg0, %c0_i32 : i32, i32
  }
}

module attributes {stable_mosaic.version = 11 : i64} {
  func.func @_mm_bias_act_kernel(%arg0: i32, %arg1: memref<64x864xbf16, #tpu.memory_space<vmem>>, %arg2: memref<864x1xbf16, #tpu.memory_space<vmem>>, %arg3: memref<1x1xf32, #tpu.memory_space<vmem>>, %arg4: memref<64x1xf32, #tpu.memory_space<vmem>>) attributes {dimension_semantics = [#tpu.dimension_semantics<parallel>], iteration_bounds = array<i64: 1>, scalar_prefetch = 0 : i64, scratch_operands = 0 : i64, tpu.core_type = #tpu.core_type<tc>, window_params = [{transform_indices = @transform_0, window_bounds = array<i64: 64, 864>}, {pipeline_mode = #tpu.pipeline_mode<synchronous>, transform_indices = @transform_1, window_bounds = array<i64: 864, 1>}, {pipeline_mode = #tpu.pipeline_mode<synchronous>, transform_indices = @transform_2, window_bounds = array<i64: 1, 1>}, {transform_indices = @transform_3, window_bounds = array<i64: 64, 1>}]} {
    %c0 = arith.constant 0 : index
    %c0_0 = arith.constant 0 : index
    %0 = vector.load %arg1[%c0, %c0_0] : memref<64x864xbf16, #tpu.memory_space<vmem>>, vector<64x864xbf16>
    %c0_1 = arith.constant 0 : index
    %c0_2 = arith.constant 0 : index
    %1 = vector.load %arg2[%c0_1, %c0_2] : memref<864x1xbf16, #tpu.memory_space<vmem>>, vector<864x1xbf16>
    %cst = arith.constant dense<0.000000e+00> : vector<64x1xf32>
    %2 = tpu.matmul %0, %1, %cst {dimension_numbers = #tpu.dot_dimension_numbers<[1], [0], [0], [1], [0, 0, 1, 1], [], []>} : vector<64x864xbf16>, vector<864x1xbf16>, vector<64x1xf32> -> vector<64x1xf32>
    %c0_3 = arith.constant 0 : index
    %c0_4 = arith.constant 0 : index
    %3 = vector.load %arg3[%c0_3, %c0_4] : memref<1x1xf32, #tpu.memory_space<vmem>>, vector<1x1xf32>
    %4 = vector.broadcast %3 : vector<1x1xf32> to vector<64x1xf32>
    %5 = arith.addf %2, %4 : vector<64x1xf32>
    %c0_5 = arith.constant 0 : index
    %c0_6 = arith.constant 0 : index
    %6 = vector.load %arg4[%c0_5, %c0_6] : memref<64x1xf32, #tpu.memory_space<vmem>>, vector<64x1xf32>
    tpu.vector_store %arg4[%c0_5, %c0_6], %5 {strides = array<i32>} : memref<64x1xf32, #tpu.memory_space<vmem>>, vector<64x1xf32>,
    return
  }
  func.func @transform_0(%arg0: i32) -> (i32, i32) {
    %c0_i32 = arith.constant 0 : i32
    %c0_i32_0 = arith.constant 0 : i32
    return %arg0, %c0_i32 : i32, i32
  }
  func.func @transform_1(%arg0: i32) -> (i32, i32) {
    %c0_i32 = arith.constant 0 : i32
    %c0_i32_0 = arith.constant 0 : i32
    %c0_i32_1 = arith.constant 0 : i32
    return %c0_i32, %c0_i32_0 : i32, i32
  }
  func.func @transform_2(%arg0: i32) -> (i32, i32) {
    %c0_i32 = arith.constant 0 : i32
    %c0_i32_0 = arith.constant 0 : i32
    %c0_i32_1 = arith.constant 0 : i32
    return %c0_i32, %c0_i32_0 : i32, i32
  }
  func.func @transform_3(%arg0: i32) -> (i32, i32) {
    %c0_i32 = arith.constant 0 : i32
    %c0_i32_0 = arith.constant 0 : i32
    return %arg0, %c0_i32 : i32, i32
  }
}

module attributes {stable_mosaic.version = 11 : i64} {
  func.func @_mm_bias_act_kernel(%arg0: i32, %arg1: memref<64x864xbf16, #tpu.memory_space<vmem>>, %arg2: memref<864x32xbf16, #tpu.memory_space<vmem>>, %arg3: memref<1x32xf32, #tpu.memory_space<vmem>>, %arg4: memref<64x32xbf16, #tpu.memory_space<vmem>>) attributes {dimension_semantics = [#tpu.dimension_semantics<parallel>], iteration_bounds = array<i64: 1>, scalar_prefetch = 0 : i64, scratch_operands = 0 : i64, tpu.core_type = #tpu.core_type<tc>, window_params = [{transform_indices = @transform_0, window_bounds = array<i64: 64, 864>}, {pipeline_mode = #tpu.pipeline_mode<synchronous>, transform_indices = @transform_1, window_bounds = array<i64: 864, 32>}, {pipeline_mode = #tpu.pipeline_mode<synchronous>, transform_indices = @transform_2, window_bounds = array<i64: 1, 32>}, {transform_indices = @transform_3, window_bounds = array<i64: 64, 32>}]} {
    %c0 = arith.constant 0 : index
    %c0_0 = arith.constant 0 : index
    %0 = vector.load %arg1[%c0, %c0_0] : memref<64x864xbf16, #tpu.memory_space<vmem>>, vector<64x864xbf16>
    %c0_1 = arith.constant 0 : index
    %c0_2 = arith.constant 0 : index
    %1 = vector.load %arg2[%c0_1, %c0_2] : memref<864x32xbf16, #tpu.memory_space<vmem>>, vector<864x32xbf16>
    %cst = arith.constant dense<0.000000e+00> : vector<64x32xf32>
    %2 = tpu.matmul %0, %1, %cst {dimension_numbers = #tpu.dot_dimension_numbers<[1], [0], [0], [1], [0, 0, 1, 1], [], []>} : vector<64x864xbf16>, vector<864x32xbf16>, vector<64x32xf32> -> vector<64x32xf32>
    %c0_3 = arith.constant 0 : index
    %c0_4 = arith.constant 0 : index
    %3 = vector.load %arg3[%c0_3, %c0_4] : memref<1x32xf32, #tpu.memory_space<vmem>>, vector<1x32xf32>
    %4 = vector.broadcast %3 : vector<1x32xf32> to vector<64x32xf32>
    %5 = arith.addf %2, %4 : vector<64x32xf32>
    %6 = arith.truncf %5 : vector<64x32xf32> to vector<64x32xbf16>
    %c0_5 = arith.constant 0 : index
    %c0_6 = arith.constant 0 : index
    %7 = vector.load %arg4[%c0_5, %c0_6] : memref<64x32xbf16, #tpu.memory_space<vmem>>, vector<64x32xbf16>
    tpu.vector_store %arg4[%c0_5, %c0_6], %6 {strides = array<i32>} : memref<64x32xbf16, #tpu.memory_space<vmem>>, vector<64x32xbf16>,
    return
  }
  func.func @transform_0(%arg0: i32) -> (i32, i32) {
    %c0_i32 = arith.constant 0 : i32
    %c0_i32_0 = arith.constant 0 : i32
    return %arg0, %c0_i32 : i32, i32
  }
  func.func @transform_1(%arg0: i32) -> (i32, i32) {
    %c0_i32 = arith.constant 0 : i32
    %c0_i32_0 = arith.constant 0 : i32
    %c0_i32_1 = arith.constant 0 : i32
    return %c0_i32, %c0_i32_0 : i32, i32
  }
  func.func @transform_2(%arg0: i32) -> (i32, i32) {
    %c0_i32 = arith.constant 0 : i32
    %c0_i32_0 = arith.constant 0 : i32
    %c0_i32_1 = arith.constant 0 : i32
    return %c0_i32, %c0_i32_0 : i32, i32
  }
  func.func @transform_3(%arg0: i32) -> (i32, i32) {
    %c0_i32 = arith.constant 0 : i32
    %c0_i32_0 = arith.constant 0 : i32
    return %arg0, %c0_i32 : i32, i32
  }
}

module attributes {stable_mosaic.version = 11 : i64} {
  func.func @_softmax_axis1_kernel(%arg0: i32, %arg1: i32, %arg2: memref<1x4x16xf32, #tpu.memory_space<vmem>>, %arg3: memref<1x4x16xf32, #tpu.memory_space<vmem>>) attributes {dimension_semantics = [#tpu.dimension_semantics<parallel>, #tpu.dimension_semantics<parallel>], iteration_bounds = array<i64: 1, 1>, scalar_prefetch = 0 : i64, scratch_operands = 0 : i64, tpu.core_type = #tpu.core_type<tc>, window_params = [{transform_indices = @transform_0, window_bounds = array<i64: 1, 4, 16>}, {transform_indices = @transform_1, window_bounds = array<i64: 1, 4, 16>}]} {
    %c0 = arith.constant 0 : index
    %c0_0 = arith.constant 0 : index
    %c0_1 = arith.constant 0 : index
    %0 = vector.load %arg2[%c0, %c0_0, %c0_1] : memref<1x4x16xf32, #tpu.memory_space<vmem>>, vector<1x4x16xf32>
    %1 = vector.shape_cast %0 : vector<1x4x16xf32> to vector<4x16xf32>
    %cst = arith.constant dense<0xFF800000> : vector<16xf32>
    %2 = vector.multi_reduction <maximumf>, %1, %cst [0] : vector<4x16xf32> to vector<16xf32>
    %3 = vector.shape_cast %2 : vector<16xf32> to vector<1x16xf32>
    %4 = vector.broadcast %3 : vector<1x16xf32> to vector<4x16xf32>
    %5 = arith.subf %1, %4 : vector<4x16xf32>
    %6 = math.exp %5 : vector<4x16xf32>
    %cst_2 = arith.constant dense<0.000000e+00> : vector<16xf32>
    %7 = vector.multi_reduction <add>, %6, %cst_2 [0] : vector<4x16xf32> to vector<16xf32>
    %8 = vector.shape_cast %7 : vector<16xf32> to vector<1x16xf32>
    %cst_3 = arith.constant 1.000000e+00 : f32
    %9 = vector.broadcast %cst_3 : f32 to vector<1x16xf32>
    %10 = arith.divf %9, %8 : vector<1x16xf32>
    %11 = vector.broadcast %10 : vector<1x16xf32> to vector<4x16xf32>
    %12 = arith.mulf %6, %11 : vector<4x16xf32>
    %c0_4 = arith.constant 0 : index
    %c0_5 = arith.constant 0 : index
    %c0_6 = arith.constant 0 : index
    %13 = vector.load %arg3[%c0_4, %c0_5, %c0_6] : memref<1x4x16xf32, #tpu.memory_space<vmem>>, vector<1x4x16xf32>
    %14 = vector.shape_cast %13 : vector<1x4x16xf32> to vector<4x16xf32>
    %15 = vector.shape_cast %12 : vector<4x16xf32> to vector<1x4x16xf32>
    tpu.vector_store %arg3[%c0_4, %c0_5, %c0_6], %15 {strides = array<i32>} : memref<1x4x16xf32, #tpu.memory_space<vmem>>, vector<1x4x16xf32>,
    return
  }
  func.func @transform_0(%arg0: i32, %arg1: i32) -> (i32, i32, i32) {
    %c0_i32 = arith.constant 0 : i32
    %c0_i32_0 = arith.constant 0 : i32
    return %arg0, %c0_i32, %arg1 : i32, i32, i32
  }
  func.func @transform_1(%arg0: i32, %arg1: i32) -> (i32, i32, i32) {
    %c0_i32 = arith.constant 0 : i32
    %c0_i32_0 = arith.constant 0 : i32
    return %arg0, %c0_i32, %arg1 : i32, i32, i32
  }
}

module attributes {stable_mosaic.version = 11 : i64} {
  func.func @_softmax_axis1_kernel(%arg0: i32, %arg1: i32, %arg2: memref<1x16x256xbf16, #tpu.memory_space<vmem>>, %arg3: memref<1x16x256xf32, #tpu.memory_space<vmem>>) attributes {dimension_semantics = [#tpu.dimension_semantics<parallel>, #tpu.dimension_semantics<parallel>], iteration_bounds = array<i64: 1, 1>, scalar_prefetch = 0 : i64, scratch_operands = 0 : i64, tpu.core_type = #tpu.core_type<tc>, window_params = [{transform_indices = @transform_0, window_bounds = array<i64: 1, 16, 256>}, {transform_indices = @transform_1, window_bounds = array<i64: 1, 16, 256>}]} {
    %c0 = arith.constant 0 : index
    %c0_0 = arith.constant 0 : index
    %c0_1 = arith.constant 0 : index
    %0 = vector.load %arg2[%c0, %c0_0, %c0_1] : memref<1x16x256xbf16, #tpu.memory_space<vmem>>, vector<1x16x256xbf16>
    %1 = vector.shape_cast %0 : vector<1x16x256xbf16> to vector<16x256xbf16>
    %2 = arith.extf %1 : vector<16x256xbf16> to vector<16x256xf32>
    %cst = arith.constant dense<0xFF800000> : vector<256xf32>
    %3 = vector.multi_reduction <maximumf>, %2, %cst [0] : vector<16x256xf32> to vector<256xf32>
    %4 = vector.shape_cast %3 : vector<256xf32> to vector<1x256xf32>
    %5 = vector.broadcast %4 : vector<1x256xf32> to vector<16x256xf32>
    %6 = arith.subf %2, %5 : vector<16x256xf32>
    %7 = math.exp %6 : vector<16x256xf32>
    %cst_2 = arith.constant dense<0.000000e+00> : vector<256xf32>
    %8 = vector.multi_reduction <add>, %7, %cst_2 [0] : vector<16x256xf32> to vector<256xf32>
    %9 = vector.shape_cast %8 : vector<256xf32> to vector<1x256xf32>
    %cst_3 = arith.constant 1.000000e+00 : f32
    %10 = vector.broadcast %cst_3 : f32 to vector<1x256xf32>
    %11 = arith.divf %10, %9 : vector<1x256xf32>
    %12 = vector.broadcast %11 : vector<1x256xf32> to vector<16x256xf32>
    %13 = arith.mulf %7, %12 : vector<16x256xf32>
    %c0_4 = arith.constant 0 : index
    %c0_5 = arith.constant 0 : index
    %c0_6 = arith.constant 0 : index
    %14 = vector.load %arg3[%c0_4, %c0_5, %c0_6] : memref<1x16x256xf32, #tpu.memory_space<vmem>>, vector<1x16x256xf32>
    %15 = vector.shape_cast %14 : vector<1x16x256xf32> to vector<16x256xf32>
    %16 = vector.shape_cast %13 : vector<16x256xf32> to vector<1x16x256xf32>
    tpu.vector_store %arg3[%c0_4, %c0_5, %c0_6], %16 {strides = array<i32>} : memref<1x16x256xf32, #tpu.memory_space<vmem>>, vector<1x16x256xf32>,
    return
  }
  func.func @transform_0(%arg0: i32, %arg1: i32) -> (i32, i32, i32) {
    %c0_i32 = arith.constant 0 : i32
    %c0_i32_0 = arith.constant 0 : i32
    return %arg0, %c0_i32, %arg1 : i32, i32, i32
  }
  func.func @transform_1(%arg0: i32, %arg1: i32) -> (i32, i32, i32) {
    %c0_i32 = arith.constant 0 : i32
    %c0_i32_0 = arith.constant 0 : i32
    return %arg0, %c0_i32, %arg1 : i32, i32, i32
  }
}

</mosaic_0001>

<bundles_post_ra>
// kernel: dvanet_forward.97
= control target key start
LH: loop header
LB: loop body
LE: loop exit
PB: predicated region body
PF: predicated region fallthrough
CT: control target
= control target key end

     0   :  { %vm200_vm0 = vcmask 1044480   ;;  %vm201_vm1 = vcmask 1045504   ;;  %v837_v2 = vmov 65535   ;;  %vm151_vm2 = vcmask 220160   ;;  %s1093_s1 = inlined_call_operand.vmem [shape: bf16[27,1], index: 1, kind: input, shape index: {}]   ;;  %s1094_s0 = inlined_call_operand.vmem [shape: bf16[256,27], index: 0, kind: input, shape index: {}]   ;;  %s1095_s2 = inlined_call_operand.<no memory space> [shape: f32[1,1], index: 2, kind: input, shape index: {}]   ;;  %s1096_s3 = inlined_call_operand.vmem [shape: f32[256,1], index: 3, kind: output, shape index: {}]  }
   0x1   :  { %v691_v0 = vld [vmem:[%s1093_s1 + $0x8] sm:$0x3f]   ;;  %v8_v1 = vstv %s1095_s2  ;;  %v202_v3 = vsel %vm200_vm0, 4294967295, %v837_v2  ;;  %v693_v5 = vld [vmem:[%s1094_s0] sm:$0xff]   ;;  %v697_v11 = vld [vmem:[%s1094_s0 + $0x10] sm:$0xff]   ;;  %vm560_vm3 = vcmask 7168  }
   0x2   :  { %9 = vst [vmem:[#allocation2] sm:$0x1] %v8_v1  ;;  %v203_v4 = vsel %vm201_vm1, %v202_v3, 0  ;;  %v692_v7 = vld [vmem:[%s1093_s1] sm:$0xff]   ;;  %654 = vmatprep.mubr.msk.bf16.mxu0 %vm151_vm2, %v693_v5  ;;  %v695_v9 = vld [vmem:[%s1094_s0 + $0x8] sm:$0xff]   ;;  %v698_v12 = vld [vmem:[%s1094_s0 + $0x50] sm:$0xff]  }
   0x3   :  { %v205_v6 = vand.u32 %v691_v0, %v203_v4  ;;  %v694_v8 = vld [vmem:[%s1094_s0 + $0x40] sm:$0xff]   ;;  %v696_v10 = vld [vmem:[%s1094_s0 + $0x48] sm:$0xff]   ;;  %v699_v13 = vld [vmem:[%s1094_s0 + $0x18] sm:$0xff]  }
   0x4   :  { %670 = vmatprep.mubr.msk.bf16.mxu1 %vm151_vm2, %v694_v8  ;;  %v700_v14 = vld [vmem:[%s1094_s0 + $0x58] sm:$0xff]   ;;  %v701_v15 = vld [vmem:[%s1094_s0 + $0x20] sm:$0xff]   ;;  %v703_v17 = vld [vmem:[%s1094_s0 + $0x28] sm:$0xff]  }
   0x5   :  { %650 = vmatprep.subr.bf16.mxu0 %v205_v6  ;;  %686 = vmatprep.subr.bf16.mxu1 %v205_v6  ;;  %v702_v16 = vld [vmem:[%s1094_s0 + $0x60] sm:$0xff]   ;;  %v704_v18 = vld [vmem:[%s1094_s0 + $0x68] sm:$0xff]   ;;  %v705_v19 = vld [vmem:[%s1094_s0 + $0x30] sm:$0xff]  }
   0x6   :  { %651 = vmatpush3.bf16.msra.mxu0 %v205_v6  ;;  %688 = vmatpush3.bf16.msra.mxu1 %v205_v6  ;;  %v706_v20 = vld [vmem:[%s1094_s0 + $0x70] sm:$0xff]   ;;  %v707_v21 = vld [vmem:[%s1094_s0 + $0x38] sm:$0xff]  }
   0x7   :  { %652 = vmatprep.subr.bf16.mxu0 %v692_v7  ;;  %687 = vmatprep.subr.bf16.mxu1 %v692_v7  ;;  %v708_v22 = vld [vmem:[%s1094_s0 + $0x78] sm:$0xff]  }
   0x9   :  { %v931_v23 = vld [vmem:[#allocation2] ss:$0 sm:$0xff] }
   0xa   :  { %653 = vmatpush3.bf16.msra.mxu0 %v692_v7  ;;  %689 = vmatpush3.bf16.msra.mxu1 %v692_v7 }
   0xd   :  { %655 = vmatmul.mubr.msk.bf16.vlgmr.msra.gmra.mxu0 %vm151_vm2, %v695_v9  ;;  %671 = vmatmul.mubr.msk.bf16.vlgmr.msra.gmra.mxu1 %vm151_vm2, %v696_v10 }
   0xe   :  { %658 = vmatprep.mubr.msk.bf16.mxu0 %vm151_vm2, %v697_v11  ;;  %674 = vmatprep.mubr.msk.bf16.mxu1 %vm151_vm2, %v698_v12 }
  0x15   :  { %659 = vmatmul.mubr.msk.bf16.gmra.mxu0 %vm151_vm2, %v699_v13  ;;  %675 = vmatmul.mubr.msk.bf16.gmra.mxu1 %vm151_vm2, %v700_v14 }
  0x16   :  { %662 = vmatprep.mubr.msk.bf16.mxu0 %vm151_vm2, %v701_v15  ;;  %678 = vmatprep.mubr.msk.bf16.mxu1 %vm151_vm2, %v702_v16 }
  0x1d   :  { %663 = vmatmul.mubr.msk.bf16.gmra.mxu0 %vm151_vm2, %v703_v17  ;;  %679 = vmatmul.mubr.msk.bf16.gmra.mxu1 %vm151_vm2, %v704_v18 }
  0x1e   :  { %666 = vmatprep.mubr.msk.bf16.mxu0 %vm151_vm2, %v705_v19  ;;  %682 = vmatprep.mubr.msk.bf16.mxu1 %vm151_vm2, %v706_v20 }
  0x25   :  { %667 = vmatmul.mubr.msk.bf16.gmra.mxu0 %vm151_vm2, %v707_v21  ;;  %683 = vmatmul.mubr.msk.bf16.gmra.mxu1 %vm151_vm2, %v708_v22 }
  0xcd   :  { %v656_v24 = vpop.f32.mrf.mxu0  ;;  %v672_v25 = vpop.f32.mrf.mxu1 }
  0xce   :  { %v250_v26 = vadd.f32 %v656_v24, %v931_v23  ;;  %v314_v27 = vadd.f32 %v672_v25, %v931_v23 }
  0xcf   :  { %v241_v28 = vpop.f32.mrf.mxu0  ;;  %v305_v29 = vpop.f32.mrf.mxu1 }
  0xd0   :  { %v370_v30 = vsub.f32 0.0, %v250_v26  ;;  %v386_v31 = vsub.f32 0.0, %v314_v27  ;;  %v242_v32 = vadd.f32 %v931_v23, %v241_v28  ;;  %v306_v33 = vadd.f32 %v931_v23, %v305_v29 }
  0xd1   :  { %v657_v34 = vpop.f32.mrf.mxu0  ;;  %v673_v35 = vpop.f32.mrf.mxu1 }
  0xd2   :  { %v404_v36 = vmul.f32 1.442695, %v370_v30  ;;  %v436_v37 = vmul.f32 1.442695, %v386_v31  ;;  %v368_v38 = vsub.f32 0.0, %v242_v32  ;;  %v384_v39 = vsub.f32 0.0, %v306_v33 }
  0xd3   :  { %v253_v40 = vadd.f32 %v657_v34, %v931_v23  ;;  %v317_v41 = vadd.f32 %v673_v35, %v931_v23  ;;  %v244_v42 = vpop.f32.mrf.mxu0  ;;  %v308_v43 = vpop.f32.mrf.mxu1 }
  0xd4   :  { %709 = vpow2.f32 %v404_v36  ;;  %v400_v44 = vmul.f32 1.442695, %v368_v38  ;;  %v432_v45 = vmul.f32 1.442695, %v384_v39  ;;  %v245_v46 = vadd.f32 %v931_v23, %v244_v42 }
  0xd5   :  { %711 = vpow2.f32 %v436_v37  ;;  %v371_v47 = vsub.f32 0.0, %v253_v40  ;;  %v387_v48 = vsub.f32 0.0, %v317_v41  ;;  %v309_v49 = vadd.f32 %v931_v23, %v308_v43  ;;  %v660_v50 = vpop.f32.mrf.mxu0  ;;  %v676_v51 = vpop.f32.mrf.mxu1 }
  0xd6   :  { %713 = vpow2.f32 %v400_v44  ;;  %v369_v52 = vsub.f32 0.0, %v245_v46  ;;  %v266_v53 = vadd.f32 %v660_v50, %v931_v23  ;;  %v330_v54 = vadd.f32 %v676_v51, %v931_v23 }
  0xd7   :  { %715 = vpow2.f32 %v432_v45  ;;  %v406_v55 = vmul.f32 1.442695, %v371_v47  ;;  %v438_v56 = vmul.f32 1.442695, %v387_v48  ;;  %v385_v57 = vsub.f32 0.0, %v309_v49  ;;  %v257_v58 = vpop.f32.mrf.mxu0  ;;  %v321_v59 = vpop.f32.mrf.mxu1 }
  0xd8   :  { %v402_v60 = vmul.f32 1.442695, %v369_v52  ;;  %v374_v61 = vsub.f32 0.0, %v266_v53  ;;  %v390_v62 = vsub.f32 0.0, %v330_v54  ;;  %v258_v63 = vadd.f32 %v931_v23, %v257_v58 }
  0xd9   :  { %717 = vpow2.f32 %v406_v55  ;;  %v434_v0 = vmul.f32 1.442695, %v385_v57  ;;  %v322_v1 = vadd.f32 %v931_v23, %v321_v59  ;;  %v661_v2 = vpop.f32.mrf.mxu0  ;;  %v677_v3 = vpop.f32.mrf.mxu1 }
  0xda   :  { %719 = vpow2.f32 %v438_v56  ;;  %v412_v4 = vmul.f32 1.442695, %v374_v61  ;;  %v444_v5 = vmul.f32 1.442695, %v390_v62  ;;  %v372_v6 = vsub.f32 0.0, %v258_v63 }
  0xdb   :  { %721 = vpow2.f32 %v402_v60  ;;  %v388_v7 = vsub.f32 0.0, %v322_v1  ;;  %v269_v8 = vadd.f32 %v661_v2, %v931_v23  ;;  %v333_v9 = vadd.f32 %v677_v3, %v931_v23  ;;  %v260_v10 = vpop.f32.mrf.mxu0  ;;  %v324_v11 = vpop.f32.mrf.mxu1 }
  0xdc   :  { %723 = vpow2.f32 %v434_v0  ;;  %v408_v12 = vmul.f32 1.442695, %v372_v6  ;;  %v261_v13 = vadd.f32 %v931_v23, %v260_v10  ;;  %v325_v14 = vadd.f32 %v931_v23, %v324_v11 }
  0xdd   :  { %725 = vpow2.f32 %v412_v4  ;;  %v440_v15 = vmul.f32 1.442695, %v388_v7  ;;  %v375_v16 = vsub.f32 0.0, %v269_v8  ;;  %v391_v17 = vsub.f32 0.0, %v333_v9  ;;  %v664_v18 = vpop.f32.mrf.mxu0  ;;  %v680_v19 = vpop.f32.mrf.mxu1 }
  0xde   :  { %727 = vpow2.f32 %v444_v5  ;;  %v373_v20 = vsub.f32 0.0, %v261_v13  ;;  %v389_v27 = vsub.f32 0.0, %v325_v14  ;;  %v282_v40 = vadd.f32 %v664_v18, %v931_v23 }
  0xdf   :  { %729 = vpow2.f32 %v408_v12  ;;  %v414_v21 = vmul.f32 1.442695, %v375_v16  ;;  %v446_v22 = vmul.f32 1.442695, %v391_v17  ;;  %v273_v24 = vpop.f32.mrf.mxu0  ;;  %v337_v25 = vpop.f32.mrf.mxu1  ;;  %v346_v42 = vadd.f32 %v680_v19, %v931_v23 }
  0xe0   :  { %731 = vpow2.f32 %v440_v15  ;;  %v410_v26 = vmul.f32 1.442695, %v373_v20  ;;  %v442_v37 = vmul.f32 1.442695, %v389_v27  ;;  %v378_v51 = vsub.f32 0.0, %v282_v40 }
  0xe1   :  { %v710_v28 = vpop.eup %709  ;;  %733 = vpow2.f32 %v414_v21  ;;  %v665_v29 = vpop.f32.mrf.mxu0  ;;  %v394_v54 = vsub.f32 0.0, %v346_v42  ;;  %v274_v55 = vadd.f32 %v931_v23, %v273_v24  ;;  %v338_v58 = vadd.f32 %v931_v23, %v337_v25 }
  0xe2   :  { %v712_v30 = vpop.eup %711  ;;  %v466_v31 = vadd.f32 1.0, %v710_v28  ;;  %735 = vpow2.f32 %v446_v22  ;;  %v681_v34 = vpop.f32.mrf.mxu1  ;;  %v285_v62 = vadd.f32 %v665_v29, %v931_v23  ;;  %v420_v2 = vmul.f32 1.442695, %v378_v51 }
  0xe3   :  { %v714_v32 = vpop.eup %713  ;;  %v482_v33 = vadd.f32 1.0, %v712_v30  ;;  %737 = vpow2.f32 %v410_v26  ;;  %v276_v38 = vpop.f32.mrf.mxu0  ;;  %v349_v3 = vadd.f32 %v681_v34, %v931_v23  ;;  %v452_v6 = vmul.f32 1.442695, %v394_v54 }
  0xe4   :  { %v716_v35 = vpop.eup %715  ;;  %739 = vrcp.f32 %v466_v31  ;;  %v464_v36 = vadd.f32 1.0, %v714_v32  ;;  %v340_v45 = vpop.f32.mrf.mxu1  ;;  %v376_v7 = vsub.f32 0.0, %v274_v55  ;;  %v392_v10 = vsub.f32 0.0, %v338_v58 }
  0xe5   :  { %741 = vrcp.f32 %v482_v33  ;;  %v480_v39 = vadd.f32 1.0, %v716_v35  ;;  %v668_v48 = vpop.f32.mrf.mxu0  ;;  %v277_v11 = vadd.f32 %v931_v23, %v276_v38  ;;  %v379_v15 = vsub.f32 0.0, %v285_v62 }
  0xe6   :  { %v718_v41 = vpop.eup %717  ;;  %743 = vrcp.f32 %v464_v36  ;;  %v684_v59 = vpop.f32.mrf.mxu1  ;;  %v341_v16 = vadd.f32 %v931_v23, %v340_v45  ;;  %v395_v20 = vsub.f32 0.0, %v349_v3  ;;  %v298_v21 = vadd.f32 %v668_v48, %v931_v23 }
  0xe7   :  { %v720_v43 = vpop.eup %719  ;;  %745 = vrcp.f32 %v480_v39  ;;  %v467_v44 = vadd.f32 1.0, %v718_v41  ;;  %v289_v63 = vpop.f32.mrf.mxu0  ;;  %v416_v24 = vmul.f32 1.442695, %v376_v7  ;;  %v362_v25 = vadd.f32 %v684_v59, %v931_v23 }
  0xe8   :  { %v722_v46 = vpop.eup %721  ;;  %v483_v47 = vadd.f32 1.0, %v720_v43  ;;  %747 = vpow2.f32 %v442_v37  ;;  %v353_v12 = vpop.f32.mrf.mxu1  ;;  %v448_v27 = vmul.f32 1.442695, %v392_v10  ;;  %v377_v28 = vsub.f32 0.0, %v277_v11 }
  0xe9   :  { %v724_v49 = vpop.eup %723  ;;  %749 = vrcp.f32 %v467_v44  ;;  %v465_v50 = vadd.f32 1.0, %v722_v46  ;;  %v669_v17 = vpop.f32.mrf.mxu0  ;;  %v290_v29 = vadd.f32 %v931_v23, %v289_v63  ;;  %v422_v32 = vmul.f32 1.442695, %v379_v15 }
  0xea   :  { %v726_v52 = vpop.eup %725  ;;  %751 = vrcp.f32 %v483_v47  ;;  %v481_v53 = vadd.f32 1.0, %v724_v49  ;;  %v685_v30 = vpop.f32.mrf.mxu1  ;;  %v393_v33 = vsub.f32 0.0, %v341_v16  ;;  %v354_v34 = vadd.f32 %v931_v23, %v353_v12 }
  0xeb   :  { %v728_v56 = vpop.eup %727  ;;  %753 = vrcp.f32 %v465_v50  ;;  %v470_v57 = vadd.f32 1.0, %v726_v52  ;;  %v292_v35 = vpop.f32.mrf.mxu0  ;;  %v454_v37 = vmul.f32 1.442695, %v395_v20  ;;  %v382_v38 = vsub.f32 0.0, %v298_v21 }
  0xec   :  { %v730_v60 = vpop.eup %729  ;;  %755 = vrcp.f32 %v481_v53  ;;  %v486_v61 = vadd.f32 1.0, %v728_v56  ;;  %v301_v39 = vadd.f32 %v669_v17, %v931_v23  ;;  %v398_v42 = vsub.f32 0.0, %v362_v25  ;;  %v356_v54 = vpop.f32.mrf.mxu1 }
  0xed   :  { %v732_v0 = vpop.eup %731  ;;  %757 = vrcp.f32 %v470_v57  ;;  %v468_v1 = vadd.f32 1.0, %v730_v60  ;;  %v365_v43 = vadd.f32 %v685_v30, %v931_v23  ;;  %v418_v45 = vmul.f32 1.442695, %v377_v28 }
  0xee   :  { %v734_v4 = vpop.eup %733  ;;  %759 = vrcp.f32 %v486_v61  ;;  %v484_v5 = vadd.f32 1.0, %v732_v0  ;;  %v380_v46 = vsub.f32 0.0, %v290_v29  ;;  %v293_v47 = vadd.f32 %v931_v23, %v292_v35 }
  0xef   :  { %v736_v8 = vpop.eup %735  ;;  %761 = vrcp.f32 %v468_v1  ;;  %v471_v9 = vadd.f32 1.0, %v734_v4  ;;  %v450_v49 = vmul.f32 1.442695, %v393_v33  ;;  %v396_v50 = vsub.f32 0.0, %v354_v34 }
  0xf0   :  { %v738_v13 = vpop.eup %737  ;;  %763 = vrcp.f32 %v484_v5  ;;  %v487_v14 = vadd.f32 1.0, %v736_v8  ;;  %v428_v52 = vmul.f32 1.442695, %v382_v38  ;;  %v383_v53 = vsub.f32 0.0, %v301_v39 }
  0xf1   :  { %v740_v18 = vpop.eup %739  ;;  %765 = vrcp.f32 %v471_v9  ;;  %v469_v19 = vadd.f32 1.0, %v738_v13  ;;  %v460_v56 = vmul.f32 1.442695, %v398_v42  ;;  %v399_v57 = vsub.f32 0.0, %v365_v43 }
  0xf2   :  { %v742_v22 = vpop.eup %741  ;;  %563 = vst.msk [vmem:[%s1096_s3 + $0x10] sm:$0xff] %vm560_vm3, %v740_v18  ;;  %767 = vrcp.f32 %v487_v14  ;;  %v424_v59 = vmul.f32 1.442695, %v380_v46  ;;  %v381_v60 = vsub.f32 0.0, %v293_v47  ;;  %v456_v62 = vmul.f32 1.442695, %v396_v50 }
  0xf3   :  { %v744_v26 = vpop.eup %743  ;;  %579 = vst.msk [vmem:[%s1096_s3 + $0x90] sm:$0xff] %vm560_vm3, %v742_v22  ;;  %769 = vrcp.f32 %v469_v19  ;;  %v357_v63 = vadd.f32 %v931_v23, %v356_v54  ;;  %v430_v1 = vmul.f32 1.442695, %v383_v53  ;;  %v462_v3 = vmul.f32 1.442695, %v399_v57 }
  0xf4   :  { %v746_v31 = vpop.eup %745  ;;  %561 = vst.msk [vmem:[%s1096_s3] sm:$0xff] %vm560_vm3, %v744_v26  ;;  %771 = vpow2.f32 %v420_v2  ;;  %v426_v23 = vmul.f32 1.442695, %v381_v60 }
  0xf5   :  { %v748_v36 = vpop.eup %747  ;;  %577 = vst.msk [vmem:[%s1096_s3 + $0x80] sm:$0xff] %vm560_vm3, %v746_v31  ;;  %773 = vpow2.f32 %v452_v6  ;;  %v397_v6 = vsub.f32 0.0, %v357_v63 }
  0xf6   :  { %v750_v40 = vpop.eup %749  ;;  %v485_v41 = vadd.f32 1.0, %v748_v36  ;;  %775 = vpow2.f32 %v416_v24 }
  0xf7   :  { %v752_v44 = vpop.eup %751  ;;  %564 = vst.msk [vmem:[%s1096_s3 + $0x18] sm:$0xff] %vm560_vm3, %v750_v40  ;;  %777 = vpow2.f32 %v448_v27  ;;  %v458_v14 = vmul.f32 1.442695, %v397_v6 }
  0xf8   :  { %v754_v48 = vpop.eup %753  ;;  %580 = vst.msk [vmem:[%s1096_s3 + $0x98] sm:$0xff] %vm560_vm3, %v752_v44  ;;  %779 = vrcp.f32 %v485_v41 }
  0xf9   :  { %v756_v51 = vpop.eup %755  ;;  %562 = vst.msk [vmem:[%s1096_s3 + $0x8] sm:$0xff] %vm560_vm3, %v754_v48  ;;  %781 = vpow2.f32 %v422_v32 }
  0xfa   :  { %v758_v55 = vpop.eup %757  ;;  %578 = vst.msk [vmem:[%s1096_s3 + $0x88] sm:$0xff] %vm560_vm3, %v756_v51  ;;  %783 = vpow2.f32 %v454_v37 }
  0xfb   :  { %v760_v58 = vpop.eup %759  ;;  %567 = vst.msk [vmem:[%s1096_s3 + $0x30] sm:$0xff] %vm560_vm3, %v758_v55  ;;  %785 = vpow2.f32 %v418_v45 }
  0xfc   :  { %v762_v61 = vpop.eup %761  ;;  %583 = vst.msk [vmem:[%s1096_s3 + $0xb0] sm:$0xff] %vm560_vm3, %v760_v58  ;;  %787 = vpow2.f32 %v450_v49 }
  0xfd   :  { %v764_v0 = vpop.eup %763  ;;  %565 = vst.msk [vmem:[%s1096_s3 + $0x20] sm:$0xff] %vm560_vm3, %v762_v61  ;;  %789 = vpow2.f32 %v428_v52 }
  0xfe   :  { %v766_v2 = vpop.eup %765  ;;  %581 = vst.msk [vmem:[%s1096_s3 + $0xa0] sm:$0xff] %vm560_vm3, %v764_v0  ;;  %791 = vpow2.f32 %v460_v56 }
  0xff   :  { %v768_v4 = vpop.eup %767  ;;  %568 = vst.msk [vmem:[%s1096_s3 + $0x38] sm:$0xff] %vm560_vm3, %v766_v2  ;;  %793 = vpow2.f32 %v424_v59 }
 0x100   :  { %v770_v5 = vpop.eup %769  ;;  %584 = vst.msk [vmem:[%s1096_s3 + $0xb8] sm:$0xff] %vm560_vm3, %v768_v4  ;;  %795 = vpow2.f32 %v456_v62 }
 0x101   :  { %v772_v7 = vpop.eup %771  ;;  %566 = vst.msk [vmem:[%s1096_s3 + $0x28] sm:$0xff] %vm560_vm3, %v770_v5  ;;  %797 = vpow2.f32 %v430_v1 }
 0x102   :  { %v774_v8 = vpop.eup %773  ;;  %v474_v9 = vadd.f32 1.0, %v772_v7  ;;  %799 = vpow2.f32 %v462_v3 }
 0x103   :  { %v776_v10 = vpop.eup %775  ;;  %v490_v11 = vadd.f32 1.0, %v774_v8  ;;  %801 = vpow2.f32 %v426_v23 }
 0x104   :  { %v778_v12 = vpop.eup %777  ;;  %803 = vrcp.f32 %v474_v9  ;;  %v472_v13 = vadd.f32 1.0, %v776_v10 }
 0x105   :  { %v780_v15 = vpop.eup %779  ;;  %805 = vrcp.f32 %v490_v11  ;;  %v488_v16 = vadd.f32 1.0, %v778_v12 }
 0x106   :  { %v782_v17 = vpop.eup %781  ;;  %582 = vst.msk [vmem:[%s1096_s3 + $0xa8] sm:$0xff] %vm560_vm3, %v780_v15  ;;  %807 = vrcp.f32 %v472_v13 }
 0x107   :  { %v784_v18 = vpop.eup %783  ;;  %809 = vrcp.f32 %v488_v16  ;;  %v475_v19 = vadd.f32 1.0, %v782_v17 }
 0x108   :  { %v786_v20 = vpop.eup %785  ;;  %v491_v21 = vadd.f32 1.0, %v784_v18  ;;  %811 = vpow2.f32 %v458_v14 }
 0x109   :  { %v788_v22 = vpop.eup %787  ;;  %813 = vrcp.f32 %v475_v19  ;;  %v473_v24 = vadd.f32 1.0, %v786_v20 }
 0x10a   :  { %v790_v25 = vpop.eup %789  ;;  %815 = vrcp.f32 %v491_v21  ;;  %v489_v26 = vadd.f32 1.0, %v788_v22 }
 0x10b   :  { %v792_v27 = vpop.eup %791  ;;  %817 = vrcp.f32 %v473_v24  ;;  %v478_v28 = vadd.f32 1.0, %v790_v25 }
 0x10c   :  { %v794_v29 = vpop.eup %793  ;;  %819 = vrcp.f32 %v489_v26  ;;  %v494_v30 = vadd.f32 1.0, %v792_v27 }
 0x10d   :  { %v796_v31 = vpop.eup %795  ;;  %821 = vrcp.f32 %v478_v28  ;;  %v476_v32 = vadd.f32 1.0, %v794_v29 }
 0x10e   :  { %v798_v33 = vpop.eup %797  ;;  %823 = vrcp.f32 %v494_v30  ;;  %v492_v34 = vadd.f32 1.0, %v796_v31 }
 0x10f   :  { %v800_v35 = vpop.eup %799  ;;  %825 = vrcp.f32 %v476_v32  ;;  %v479_v36 = vadd.f32 1.0, %v798_v33 }
 0x110   :  { %v802_v37 = vpop.eup %801  ;;  %827 = vrcp.f32 %v492_v34  ;;  %v495_v38 = vadd.f32 1.0, %v800_v35 }
 0x111   :  { %v804_v39 = vpop.eup %803  ;;  %829 = vrcp.f32 %v479_v36  ;;  %v477_v40 = vadd.f32 1.0, %v802_v37 }
 0x112   :  { %v806_v41 = vpop.eup %805  ;;  %571 = vst.msk [vmem:[%s1096_s3 + $0x50] sm:$0xff] %vm560_vm3, %v804_v39  ;;  %831 = vrcp.f32 %v495_v38 }
 0x113   :  { %v808_v42 = vpop.eup %807  ;;  %587 = vst.msk [vmem:[%s1096_s3 + $0xd0] sm:$0xff] %vm560_vm3, %v806_v41  ;;  %833 = vrcp.f32 %v477_v40 }
 0x114   :  { %v810_v43 = vpop.eup %809  ;;  %569 = vst.msk [vmem:[%s1096_s3 + $0x40] sm:$0xff] %vm560_vm3, %v808_v42 }
 0x115   :  { %v812_v44 = vpop.eup %811  ;;  %585 = vst.msk [vmem:[%s1096_s3 + $0xc0] sm:$0xff] %vm560_vm3, %v810_v43 }
 0x116   :  { %v814_v45 = vpop.eup %813  ;;  %v493_v46 = vadd.f32 1.0, %v812_v44 }
 0x117   :  { %v816_v47 = vpop.eup %815  ;;  %572 = vst.msk [vmem:[%s1096_s3 + $0x58] sm:$0xff] %vm560_vm3, %v814_v45 }
 0x118   :  { %v818_v48 = vpop.eup %817  ;;  %588 = vst.msk [vmem:[%s1096_s3 + $0xd8] sm:$0xff] %vm560_vm3, %v816_v47  ;;  %835 = vrcp.f32 %v493_v46 }
 0x119   :  { %v820_v49 = vpop.eup %819  ;;  %570 = vst.msk [vmem:[%s1096_s3 + $0x48] sm:$0xff] %vm560_vm3, %v818_v48 }
 0x11a   :  { %v822_v50 = vpop.eup %821  ;;  %586 = vst.msk [vmem:[%s1096_s3 + $0xc8] sm:$0xff] %vm560_vm3, %v820_v49 }
 0x11b   :  { %v824_v51 = vpop.eup %823  ;;  %575 = vst.msk [vmem:[%s1096_s3 + $0x70] sm:$0xff] %vm560_vm3, %v822_v50 }
 0x11c   :  { %v826_v52 = vpop.eup %825  ;;  %591 = vst.msk [vmem:[%s1096_s3 + $0xf0] sm:$0xff] %vm560_vm3, %v824_v51 }
 0x11d   :  { %v828_v53 = vpop.eup %827  ;;  %573 = vst.msk [vmem:[%s1096_s3 + $0x60] sm:$0xff] %vm560_vm3, %v826_v52 }
 0x11e   :  { %v830_v54 = vpop.eup %829  ;;  %589 = vst.msk [vmem:[%s1096_s3 + $0xe0] sm:$0xff] %vm560_vm3, %v828_v53 }
 0x11f   :  { %v832_v55 = vpop.eup %831  ;;  %576 = vst.msk [vmem:[%s1096_s3 + $0x78] sm:$0xff] %vm560_vm3, %v830_v54 }
 0x120   :  { %v834_v56 = vpop.eup %833  ;;  %592 = vst.msk [vmem:[%s1096_s3 + $0xf8] sm:$0xff] %vm560_vm3, %v832_v55 }
 0x121   :  { %574 = vst.msk [vmem:[%s1096_s3 + $0x68] sm:$0xff] %vm560_vm3, %v834_v56 }
 0x125   :  { %v836_v57 = vpop.eup %835 }
 0x126   :  { %590 = vst.msk [vmem:[%s1096_s3 + $0xe8] sm:$0xff] %vm560_vm3, %v836_v57 }

// kernel: dvanet_forward.94
= control target key start
LH: loop header
LB: loop body
LE: loop exit
PB: predicated region body
PF: predicated region fallthrough
CT: control target
= control target key end

     0   :  { %vm78_vm0 = vcmask 1044480   ;;  %vm79_vm1 = vcmask 1045504   ;;  %v259_v1 = vmov 65535   ;;  %vm65_vm2 = vcmask 220160   ;;  %s337_s1 = inlined_call_operand.vmem [shape: bf16[27,32], index: 1, kind: input, shape index: {}]   ;;  %s338_s0 = inlined_call_operand.vmem [shape: bf16[64,27], index: 0, kind: input, shape index: {}]   ;;  %s339_s2 = inlined_call_operand.vmem [shape: f32[1,32], index: 2, kind: input, shape index: {}]   ;;  %s340_s3 = inlined_call_operand.vmem [shape: bf16[64,32], index: 3, kind: output, shape index: {}]  }
   0x1   :  { %v253_v0 = vld [vmem:[%s337_s1 + $0x8] sm:$0x3f]   ;;  %v80_v2 = vsel %vm78_vm0, 4294967295, %v259_v1  ;;  %v255_v4 = vld [vmem:[%s338_s0] sm:$0xff]   ;;  %v256_v7 = vld [vmem:[%s338_s0 + $0x10] sm:$0xff]   ;;  %vm190_vm3 = vcmask 257024  }
   0x2   :  { %v81_v3 = vsel %vm79_vm1, %v80_v2, 0  ;;  %v254_v6 = vld [vmem:[%s337_s1] sm:$0xff]   ;;  %240 = vmatprep.mubr.msk.bf16.mxu0 %vm65_vm2, %v255_v4  ;;  %244 = vmatprep.mubr.msk.bf16.mxu1 %vm65_vm2, %v256_v7  ;;  %v257_v8 = vld [vmem:[%s338_s0 + $0x8] sm:$0xff]   ;;  %v258_v9 = vld [vmem:[%s338_s0 + $0x18] sm:$0xff]  }
   0x3   :  { %v83_v5 = vand.u32 %v253_v0, %v81_v3  ;;  %v203_v10 = vld [vmem:[%s339_s2] ss:$0 sm:$0xff] }
   0x5   :  { %236 = vmatprep.subr.bf16.mxu0 %v83_v5  ;;  %248 = vmatprep.subr.bf16.mxu1 %v83_v5 }
   0x6   :  { %237 = vmatpush3.bf16.msra.mxu0 %v83_v5  ;;  %250 = vmatpush3.bf16.msra.mxu1 %v83_v5 }
   0x7   :  { %238 = vmatprep.subr.bf16.mxu0 %v254_v6  ;;  %249 = vmatprep.subr.bf16.mxu1 %v254_v6 }
   0xa   :  { %239 = vmatpush3.bf16.msra.mxu0 %v254_v6  ;;  %251 = vmatpush3.bf16.msra.mxu1 %v254_v6 }
   0xd   :  { %241 = vmatmul.mubr.msk.bf16.vlgmr.msra.gmra.mxu0 %vm65_vm2, %v257_v8  ;;  %245 = vmatmul.mubr.msk.bf16.vlgmr.msra.gmra.mxu1 %vm65_vm2, %v258_v9 }
  0xcd   :  { %v242_v11 = vpop.f32.mrf.mxu0  ;;  %v246_v12 = vpop.f32.mrf.mxu1 }
  0xce   :  { %v128_v13 = vadd.f32 %v242_v11, %v203_v10  ;;  %v144_v14 = vadd.f32 %v246_v12, %v203_v10 }
  0xcf   :  { %v119_v15 = vpop.f32.mrf.mxu0  ;;  %v135_v16 = vpop.f32.mrf.mxu1 }
  0xd0   :  { %v152_v17 = vmax.f32 %v128_v13, 0.0  ;;  %v156_v18 = vmax.f32 %v144_v14, 0.0  ;;  %v120_v19 = vadd.f32 %v203_v10, %v119_v15  ;;  %v136_v20 = vadd.f32 %v203_v10, %v135_v16 }
  0xd1   :  { %v243_v21 = vpop.f32.mrf.mxu0  ;;  %v247_v22 = vpop.f32.mrf.mxu1 }
  0xd2   :  { %v224_v23 = vpack.c.bf16 %v152_v17, %v152_v17  ;;  %v228_v24 = vpack.c.bf16 %v156_v18, %v156_v18  ;;  %v150_v25 = vmax.f32 %v120_v19, 0.0  ;;  %v154_v26 = vmax.f32 %v136_v20, 0.0 }
  0xd3   :  { %v131_v27 = vadd.f32 %v243_v21, %v203_v10  ;;  %v147_v28 = vadd.f32 %v247_v22, %v203_v10  ;;  %v122_v29 = vpop.f32.mrf.mxu0  ;;  %v138_v30 = vpop.f32.mrf.mxu1 }
  0xd4   :  { %193 = vst.msk [vmem:[%s340_s3 + $0x8] sm:$0xf] %vm190_vm3, %v224_v23  ;;  %197 = vst.msk [vmem:[%s340_s3 + $0x18] sm:$0xf] %vm190_vm3, %v228_v24  ;;  %v222_v31 = vpack.c.bf16 %v150_v25, %v150_v25  ;;  %v226_v32 = vpack.c.bf16 %v154_v26, %v154_v26  ;;  %v123_v33 = vadd.f32 %v203_v10, %v122_v29 }
  0xd5   :  { %v139_v34 = vadd.f32 %v203_v10, %v138_v30  ;;  %v153_v35 = vmax.f32 %v131_v27, 0.0  ;;  %v157_v36 = vmax.f32 %v147_v28, 0.0 }
  0xd6   :  { %191 = vst.msk [vmem:[%s340_s3] sm:$0xf] %vm190_vm3, %v222_v31  ;;  %195 = vst.msk [vmem:[%s340_s3 + $0x10] sm:$0xf] %vm190_vm3, %v226_v32  ;;  %v151_v37 = vmax.f32 %v123_v33, 0.0 }
  0xd7   :  { %v155_v38 = vmax.f32 %v139_v34, 0.0  ;;  %v225_v39 = vpack.c.bf16 %v153_v35, %v153_v35  ;;  %v229_v40 = vpack.c.bf16 %v157_v36, %v157_v36 }
  0xd8   :  { %v223_v41 = vpack.c.bf16 %v151_v37, %v151_v37 }
  0xd9   :  { %v227_v42 = vpack.c.bf16 %v155_v38, %v155_v38  ;;  %194 = vst.msk [vmem:[%s340_s3 + $0xc] sm:$0xf] %vm190_vm3, %v225_v39  ;;  %198 = vst.msk [vmem:[%s340_s3 + $0x1c] sm:$0xf] %vm190_vm3, %v229_v40 }
  0xda   :  { %192 = vst.msk [vmem:[%s340_s3 + $0x4] sm:$0xf] %vm190_vm3, %v223_v41 }
  0xdb   :  { %196 = vst.msk [vmem:[%s340_s3 + $0x14] sm:$0xf] %vm190_vm3, %v227_v42 }

// kernel: sub.5
= control target key start
LH: loop header
LB: loop body
LE: loop exit
PB: predicated region body
PF: predicated region fallthrough
CT: control target
= control target key end

     0   :  { %v34_v8 = vmov 0.0   ;;  %s62_s0 = inlined_call_operand.vmem [shape: bf16[16,64], index: 0, kind: input, shape index: {}]   ;;  %s63_s1 = inlined_call_operand.vmem [shape: bf16[16,64], index: 1, kind: input, shape index: {}]   ;;  %s64_s2 = inlined_call_operand.vmem [shape: bf16[16,64], index: 2, kind: output, shape index: {}]  }
   0x1   :  { %v3_v0 = vld [vmem:[%s62_s0] sm:$0xff]  }
   0x2   :  { %v6_v1 = vld [vmem:[%s63_s1] sm:$0xff]   ;;  %v4_v2 = vunpack.c.l.bf16 %v3_v0  ;;  %v17_v4 = vunpack.c.h.bf16 %v3_v0 }
   0x3   :  { %v7_v3 = vunpack.c.l.bf16 %v6_v1  ;;  %v21_v5 = vunpack.c.h.bf16 %v6_v1 }
   0x5   :  { %v11_v6 = vsub.f32 %v4_v2, %v7_v3  ;;  %v25_v7 = vsub.f32 %v17_v4, %v21_v5 }
   0x7   :  { %v13_v9 = vpack.c.bf16 %v34_v8, %v11_v6  ;;  %v28_v10 = vpack.c.bf16 %v34_v8, %v25_v7 }
   0x9   :  { %14 = vst [vmem:[%s64_s2] sm:$0xf] %v13_v9  ;;  %32 = vst [vmem:[%s64_s2 + $0x4] sm:$0xf] %v28_v10 }

// kernel: dvanet_forward.95
= control target key start
LH: loop header
LB: loop body
LE: loop exit
PB: predicated region body
PF: predicated region fallthrough
CT: control target
= control target key end

     0   :  { %v372_v1 = vmov 0.0   ;;  %vm373_vm0 = vmmov 0   ;;  %vm185_vm1 = vcmask 261120   ;;  %vm281_vm2 = vcmask 519168   ;;  %s466_s1 = inlined_call_operand.vmem [shape: bf16[288,64], index: 1, kind: input, shape index: {}]   ;;  %s467_s0 = inlined_call_operand.vmem [shape: bf16[16,288], index: 0, kind: input, shape index: {}]   ;;  %s468_s2 = inlined_call_operand.vmem [shape: f32[1,64], index: 2, kind: input, shape index: {}]   ;;  %s469_s3 = inlined_call_operand.vmem [shape: bf16[16,64], index: 3, kind: output, shape index: {}]  }
   0x1   :  { %v350_v0 = vld [vmem:[%s466_s1 + $0x78] sm:$0xff]   ;;  %340 = vmatprep.subr.bf16.mxu1 %v372_v1  ;;  %344 = vmatprep.mubr.msk.bf16.mxu1 %vm373_vm0, %v372_v1  ;;  %v352_v3 = vld [vmem:[%s466_s1 + $0x70] sm:$0xff]   ;;  %v354_v5 = vld [vmem:[%s466_s1 + $0x68] sm:$0xff]  }
   0x2   :  { %v351_v2 = vld [vmem:[%s466_s1 + $0x38] sm:$0xff]   ;;  %315 = vmatprep.subr.bf16.mxu0 %v350_v0  ;;  %v353_v4 = vld [vmem:[%s466_s1 + $0x30] sm:$0xff]   ;;  %v355_v6 = vld [vmem:[%s466_s1 + $0x28] sm:$0xff]  }
   0x3   :  { %316 = vmatpush3.bf16.msra.mxu0 %v351_v2  ;;  %v356_v7 = vld [vmem:[%s466_s1 + $0x60] sm:$0xff]   ;;  %v358_v9 = vld [vmem:[%s466_s1 + $0x58] sm:$0xff]   ;;  %v364_v10 = vld [vmem:[%s466_s1 + $0x88] sm:$0xff]  }
   0x4   :  { %317 = vmatprep.subr.bf16.mxu0 %v352_v3  ;;  %v357_v8 = vld [vmem:[%s466_s1 + $0x20] sm:$0xff]   ;;  %v359_v11 = vld [vmem:[%s466_s1 + $0x18] sm:$0xff]   ;;  %v360_v12 = vld [vmem:[%s466_s1 + $0x50] sm:$0xff]   ;;  %341 = vmatpush3.bf16.msra.mxu1 %v364_v10 }
   0x5   :  { %342 = vmatprep.subr.bf16.mxu1 %v372_v1  ;;  %v367_v13 = vld [vmem:[%s466_s1 + $0x80] sm:$0xff]   ;;  %v361_v14 = vld [vmem:[%s466_s1 + $0x10] sm:$0xff]   ;;  %v362_v16 = vld [vmem:[%s466_s1 + $0x48] sm:$0xff]  }
   0x6   :  { %v370_v15 = vld [vmem:[%s467_s0 + $0x4] ss:$12 sps:$4 sm:$0xff]   ;;  %v371_v17 = vld [vmem:[%s467_s0 + $0x8] ss:$12 sps:$4 sm:$0xff]   ;;  %v368_v21 = vld [vmem:[%s467_s0] ss:$12 sps:$4 sm:$0xff]  }
   0x7   :  { %318 = vmatpush3.bf16.msra.mxu0 %v353_v4  ;;  %221 = vmatprep.mubr.bf16.mxu0 %v370_v15  ;;  %v363_v18 = vld [vmem:[%s466_s1 + $0x8] sm:$0xff]   ;;  %v365_v19 = vld [vmem:[%s466_s1 + $0x40] sm:$0xff]  }
   0x8   :  { %319 = vmatprep.subr.bf16.mxu0 %v354_v5  ;;  %343 = vmatpush3.bf16.msra.mxu1 %v367_v13  ;;  %v366_v20 = vld [vmem:[%s466_s1] sm:$0xff]  }
   0x9   :  { %v288_v27 = vld [vmem:[%s468_s2] ss:$0 sm:$0xff] }
   0xb   :  { %320 = vmatpush3.bf16.msra.mxu0 %v355_v6  ;;  %345 = vmatmul.mubr.msk.bf16.vlgmr.msra.gmra.mxu1 %vm185_vm1, %v371_v17 }
   0xc   :  { %321 = vmatprep.subr.bf16.mxu0 %v356_v7 }
   0xf   :  { %322 = vmatpush3.bf16.msra.mxu0 %v357_v8 }
  0x10   :  { %323 = vmatprep.subr.bf16.mxu0 %v358_v9 }
  0x13   :  { %324 = vmatpush3.bf16.msra.mxu0 %v359_v11 }
  0x14   :  { %325 = vmatprep.subr.bf16.mxu0 %v360_v12 }
  0x17   :  { %326 = vmatpush3.bf16.msra.mxu0 %v361_v14 }
  0x18   :  { %327 = vmatprep.subr.bf16.mxu0 %v362_v16 }
  0x1b   :  { %328 = vmatpush3.bf16.msra.mxu0 %v363_v18 }
  0x1c   :  { %329 = vmatprep.subr.bf16.mxu0 %v365_v19 }
  0x1f   :  { %330 = vmatpush3.bf16.msra.mxu0 %v366_v20 }
  0x22   :  { %222 = vmatmul.mubr.bf16.vlgmr.msra.gmra.mxu0 %v368_v21 }
  0xcb   :  { %v264_v22 = vpop.f32.mrf.mxu1 }
  0xcd   :  { %v346_v23 = vpop.f32.mrf.mxu1 }
  0xcf   :  { %v267_v24 = vpop.f32.mrf.mxu1 }
  0xd1   :  { %v347_v25 = vpop.f32.mrf.mxu1 }
  0xe2   :  { %v331_v26 = vpop.f32.mrf.mxu0 }
  0xe4   :  { %v332_v28 = vpop.f32.mrf.mxu0 }
  0xe5   :  { %v333_v29 = vadd.f32 %v332_v28, %v331_v26 }
  0xe6   :  { %v334_v30 = vpop.f32.mrf.mxu0 }
  0xe7   :  { %v224_v31 = vadd.f32 %v333_v29, %v288_v27 }
  0xe8   :  { %v335_v32 = vpop.f32.mrf.mxu0 }
  0xe9   :  { %v265_v33 = vadd.f32 %v264_v22, %v224_v31  ;;  %v336_v34 = vadd.f32 %v335_v32, %v334_v30 }
  0xeb   :  { %v271_v35 = vmax.f32 %v265_v33, 0.0  ;;  %v227_v36 = vadd.f32 %v336_v34, %v288_v27 }
  0xed   :  { %v313_v37 = vpack.c.bf16 %v271_v35, %v271_v35  ;;  %v268_v38 = vadd.f32 %v267_v24, %v227_v36 }
  0xef   :  { %282 = vst.msk [vmem:[%s469_s3] sm:$0xf] %vm281_vm2, %v313_v37  ;;  %v272_v39 = vmax.f32 %v268_v38, 0.0 }
  0xf1   :  { %v314_v40 = vpack.c.bf16 %v272_v39, %v272_v39 }
  0xf3   :  { %283 = vst.msk [vmem:[%s469_s3 + $0x4] sm:$0xf] %vm281_vm2, %v314_v40 }

// kernel: dvanet_forward.103
= control target key start
LH: loop header
LB: loop body
LE: loop exit
PB: predicated region body
PF: predicated region fallthrough
CT: control target
= control target key end

     0   :  { %v156_v0 = vmov 0.0   ;;  %vm157_vm0 = vmmov 0   ;;  %vm61_vm1 = vcmask 523264   ;;  %vm114_vm2 = vcmask 257024   ;;  %s202_s1 = inlined_call_operand.vmem [shape: bf16[64,32], index: 1, kind: input, shape index: {}]   ;;  %s203_s0 = inlined_call_operand.vmem [shape: bf16[16,64], index: 0, kind: input, shape index: {}]   ;;  %s204_s2 = inlined_call_operand.vmem [shape: f32[1,32], index: 2, kind: input, shape index: {}]   ;;  %s205_s3 = inlined_call_operand.vmem [shape: bf16[16,32], index: 3, kind: output, shape index: {}]  }
   0x1   :  { %137 = vmatprep.subr.bf16.mxu0 %v156_v0  ;;  %v151_v1 = vld [vmem:[%s202_s1 + $0x18] sm:$0xff]   ;;  %145 = vmatprep.mubr.msk.bf16.mxu0 %vm157_vm0, %v156_v0  ;;  %v152_v2 = vld [vmem:[%s202_s1 + $0x10] sm:$0xff]   ;;  %v153_v3 = vld [vmem:[%s202_s1 + $0x8] sm:$0xff]  }
   0x2   :  { %138 = vmatpush3.bf16.msra.mxu0 %v151_v1  ;;  %v154_v4 = vld [vmem:[%s202_s1] sm:$0xff]  }
   0x3   :  { %139 = vmatprep.subr.bf16.mxu0 %v156_v0  ;;  %v155_v5 = vld [vmem:[%s203_s0] sm:$0xff]  }
   0x4   :  { %v121_v6 = vld [vmem:[%s204_s2] ss:$0 sm:$0xff] }
   0x6   :  { %140 = vmatpush3.bf16.msra.mxu0 %v152_v2 }
   0x7   :  { %141 = vmatprep.subr.bf16.mxu0 %v156_v0 }
   0xa   :  { %142 = vmatpush3.bf16.msra.mxu0 %v153_v3 }
   0xb   :  { %143 = vmatprep.subr.bf16.mxu0 %v156_v0 }
   0xe   :  { %144 = vmatpush3.bf16.msra.mxu0 %v154_v4 }
  0x11   :  { %146 = vmatmul.mubr.msk.bf16.vlgmr.msra.gmra.mxu0 %vm61_vm1, %v155_v5 }
  0xd1   :  { %v99_v7 = vpop.f32.mrf.mxu0 }
  0xd2   :  { %v100_v8 = vadd.f32 %v121_v6, %v99_v7 }
  0xd3   :  { %v147_v9 = vpop.f32.mrf.mxu0 }
  0xd4   :  { %v130_v10 = vpack.c.bf16 %v100_v8, %v100_v8 }
  0xd5   :  { %v102_v11 = vpop.f32.mrf.mxu0 }
  0xd6   :  { %115 = vst.msk [vmem:[%s205_s3] sm:$0xf] %vm114_vm2, %v130_v10  ;;  %v103_v12 = vadd.f32 %v121_v6, %v102_v11 }
  0xd7   :  { %v148_v13 = vpop.f32.mrf.mxu0 }
  0xd8   :  { %v131_v14 = vpack.c.bf16 %v103_v12, %v103_v12 }
  0xda   :  { %116 = vst.msk [vmem:[%s205_s3 + $0x4] sm:$0xf] %vm114_vm2, %v131_v14 }

// kernel: mul.6
= control target key start
LH: loop header
LB: loop body
LE: loop exit
PB: predicated region body
PF: predicated region fallthrough
CT: control target
= control target key end

     0   :  { %v142_v24 = vmov 0.0   ;;  %s206_s0 = inlined_call_operand.vmem [shape: bf16[64,32], index: 0, kind: input, shape index: {}]   ;;  %s207_s1 = inlined_call_operand.vmem [shape: bf16[64,32], index: 1, kind: input, shape index: {}]   ;;  %s208_s2 = inlined_call_operand.vmem [shape: bf16[64,32], index: 2, kind: output, shape index: {}]  }
   0x1   :  { %v3_v0 = vld [vmem:[%s206_s0] sm:$0xff]   ;;  %v123_v2 = vld [vmem:[%s206_s0 + $0x8] sm:$0xff]   ;;  %v129_v8 = vld [vmem:[%s206_s0 + $0x10] sm:$0xff]  }
   0x2   :  { %v6_v1 = vld [vmem:[%s207_s1] sm:$0xff]   ;;  %v4_v3 = vunpack.c.l.bf16 %v3_v0  ;;  %v17_v5 = vunpack.c.h.bf16 %v3_v0  ;;  %v124_v7 = vld [vmem:[%s207_s1 + $0x8] sm:$0xff]   ;;  %v130_v9 = vld [vmem:[%s207_s1 + $0x10] sm:$0xff]   ;;  %v32_v10 = vunpack.c.l.bf16 %v123_v2  ;;  %v47_v12 = vunpack.c.h.bf16 %v123_v2 }
   0x3   :  { %v7_v4 = vunpack.c.l.bf16 %v6_v1  ;;  %v21_v6 = vunpack.c.h.bf16 %v6_v1  ;;  %v36_v11 = vunpack.c.l.bf16 %v124_v7  ;;  %v51_v13 = vunpack.c.h.bf16 %v124_v7  ;;  %v135_v14 = vld [vmem:[%s206_s0 + $0x18] sm:$0xff]  }
   0x4   :  { %v62_v17 = vunpack.c.l.bf16 %v129_v8  ;;  %v66_v18 = vunpack.c.l.bf16 %v130_v9  ;;  %v136_v19 = vld [vmem:[%s207_s1 + $0x18] sm:$0xff]   ;;  %v77_v22 = vunpack.c.h.bf16 %v129_v8  ;;  %v81_v23 = vunpack.c.h.bf16 %v130_v9 }
   0x5   :  { %v11_v15 = vmul.f32 %v7_v4, %v4_v3  ;;  %v25_v16 = vmul.f32 %v21_v6, %v17_v5  ;;  %v40_v20 = vmul.f32 %v36_v11, %v32_v10  ;;  %v55_v21 = vmul.f32 %v51_v13, %v47_v12 }
   0x6   :  { %v70_v27 = vmul.f32 %v66_v18, %v62_v17  ;;  %v92_v28 = vunpack.c.l.bf16 %v135_v14  ;;  %v85_v31 = vmul.f32 %v81_v23, %v77_v22  ;;  %v96_v32 = vunpack.c.l.bf16 %v136_v19 }
   0x7   :  { %v13_v25 = vpack.c.bf16 %v142_v24, %v11_v15  ;;  %v28_v26 = vpack.c.bf16 %v142_v24, %v25_v16  ;;  %v43_v29 = vpack.c.bf16 %v142_v24, %v40_v20  ;;  %v58_v30 = vpack.c.bf16 %v142_v24, %v55_v21 }
   0x8   :  { %v73_v33 = vpack.c.bf16 %v142_v24, %v70_v27  ;;  %v107_v34 = vunpack.c.h.bf16 %v135_v14  ;;  %v111_v35 = vunpack.c.h.bf16 %v136_v19  ;;  %v88_v36 = vpack.c.bf16 %v142_v24, %v85_v31 }
   0x9   :  { %14 = vst [vmem:[%s208_s2] sm:$0xf] %v13_v25  ;;  %122 = vst [vmem:[%s208_s2 + $0x4] sm:$0xf] %v28_v26  ;;  %v100_v37 = vmul.f32 %v96_v32, %v92_v28 }
   0xa   :  { %125 = vst [vmem:[%s208_s2 + $0x8] sm:$0xf] %v43_v29  ;;  %128 = vst [vmem:[%s208_s2 + $0xc] sm:$0xf] %v58_v30  ;;  %v115_v38 = vmul.f32 %v111_v35, %v107_v34 }
   0xb   :  { %131 = vst [vmem:[%s208_s2 + $0x10] sm:$0xf] %v73_v33  ;;  %134 = vst [vmem:[%s208_s2 + $0x14] sm:$0xf] %v88_v36  ;;  %v103_v39 = vpack.c.bf16 %v142_v24, %v100_v37 }
   0xc   :  { %v118_v40 = vpack.c.bf16 %v142_v24, %v115_v38 }
   0xd   :  { %137 = vst [vmem:[%s208_s2 + $0x18] sm:$0xf] %v103_v39 }
   0xe   :  { %140 = vst [vmem:[%s208_s2 + $0x1c] sm:$0xf] %v118_v40 }

// kernel: dvanet_forward.96
= control target key start
LH: loop header
LB: loop body
LE: loop exit
PB: predicated region body
PF: predicated region fallthrough
CT: control target
= control target key end

     0   :  { %v176_v0 = vmov 0.0   ;;  %vm177_vm0 = vmmov 0   ;;  %vm61_vm1 = vcmask 523264   ;;  %vm126_vm2 = vcmask 257024   ;;  %s222_s1 = inlined_call_operand.vmem [shape: bf16[64,32], index: 1, kind: input, shape index: {}]   ;;  %s223_s0 = inlined_call_operand.vmem [shape: bf16[16,64], index: 0, kind: input, shape index: {}]   ;;  %s224_s2 = inlined_call_operand.vmem [shape: f32[1,32], index: 2, kind: input, shape index: {}]   ;;  %s225_s3 = inlined_call_operand.vmem [shape: bf16[16,32], index: 3, kind: output, shape index: {}]  }
   0x1   :  { %149 = vmatprep.subr.bf16.mxu0 %v176_v0  ;;  %v163_v1 = vld [vmem:[%s222_s1 + $0x18] sm:$0xff]   ;;  %157 = vmatprep.mubr.msk.bf16.mxu0 %vm177_vm0, %v176_v0  ;;  %v164_v2 = vld [vmem:[%s222_s1 + $0x10] sm:$0xff]   ;;  %v165_v3 = vld [vmem:[%s222_s1 + $0x8] sm:$0xff]  }
   0x2   :  { %150 = vmatpush3.bf16.msra.mxu0 %v163_v1  ;;  %v166_v4 = vld [vmem:[%s222_s1] sm:$0xff]  }
   0x3   :  { %151 = vmatprep.subr.bf16.mxu0 %v176_v0  ;;  %v167_v5 = vld [vmem:[%s223_s0] sm:$0xff]  }
   0x4   :  { %v133_v6 = vld [vmem:[%s224_s2] ss:$0 sm:$0xff] }
   0x6   :  { %152 = vmatpush3.bf16.msra.mxu0 %v164_v2 }
   0x7   :  { %153 = vmatprep.subr.bf16.mxu0 %v176_v0 }
   0xa   :  { %154 = vmatpush3.bf16.msra.mxu0 %v165_v3 }
   0xb   :  { %155 = vmatprep.subr.bf16.mxu0 %v176_v0 }
   0xe   :  { %156 = vmatpush3.bf16.msra.mxu0 %v166_v4 }
  0x11   :  { %158 = vmatmul.mubr.msk.bf16.vlgmr.msra.gmra.mxu0 %vm61_vm1, %v167_v5 }
  0xd1   :  { %v99_v7 = vpop.f32.mrf.mxu0 }
  0xd2   :  { %v100_v8 = vadd.f32 %v133_v6, %v99_v7 }
  0xd3   :  { %v159_v9 = vpop.f32.mrf.mxu0 }
  0xd4   :  { %v106_v10 = vsub.f32 0.0, %v100_v8 }
  0xd5   :  { %v102_v11 = vpop.f32.mrf.mxu0 }
  0xd6   :  { %v108_v12 = vmul.f32 1.442695, %v106_v10  ;;  %v103_v13 = vadd.f32 %v133_v6, %v102_v11 }
  0xd7   :  { %v160_v14 = vpop.f32.mrf.mxu0 }
  0xd8   :  { %168 = vpow2.f32 %v108_v12  ;;  %v107_v15 = vsub.f32 0.0, %v103_v13 }
  0xda   :  { %v110_v16 = vmul.f32 1.442695, %v107_v15 }
  0xdc   :  { %170 = vpow2.f32 %v110_v16 }
  0xe5   :  { %v169_v17 = vpop.eup %168 }
  0xe6   :  { %v112_v18 = vadd.f32 1.0, %v169_v17 }
  0xe8   :  { %172 = vrcp.f32 %v112_v18 }
  0xe9   :  { %v171_v19 = vpop.eup %170 }
  0xea   :  { %v113_v20 = vadd.f32 1.0, %v171_v19 }
  0xec   :  { %174 = vrcp.f32 %v113_v20 }
  0xf5   :  { %v173_v21 = vpop.eup %172 }
  0xf6   :  { %v142_v22 = vpack.c.bf16 %v173_v21, %v173_v21 }
  0xf8   :  { %127 = vst.msk [vmem:[%s225_s3] sm:$0xf] %vm126_vm2, %v142_v22 }
  0xf9   :  { %v175_v23 = vpop.eup %174 }
  0xfa   :  { %v143_v24 = vpack.c.bf16 %v175_v23, %v175_v23 }
  0xfc   :  { %128 = vst.msk [vmem:[%s225_s3 + $0x4] sm:$0xf] %vm126_vm2, %v143_v24 }

// kernel: dvanet_forward.104
= control target key start
LH: loop header
LB: loop body
LE: loop exit
PB: predicated region body
PF: predicated region fallthrough
CT: control target
= control target key end

     0   :  { %vm626_vm0 = vcmask 785408   ;;  %vm939_vm1 = vcmask 257024   ;;  %s1644_s1 = inlined_call_operand.vmem [shape: bf16[864,32], index: 1, kind: input, shape index: {}]   ;;  %s1645_s0 = inlined_call_operand.vmem [shape: bf16[64,864], index: 0, kind: input, shape index: {}]   ;;  %s1646_s2 = inlined_call_operand.vmem [shape: f32[1,32], index: 2, kind: input, shape index: {}]   ;;  %s1647_s3 = inlined_call_operand.vmem [shape: bf16[64,32], index: 3, kind: output, shape index: {}]  }
   0x1   :  { %v1205_v0 = vld [vmem:[%s1644_s1 + $0x78] sm:$0xff]   ;;  %v1209_v4 = vld [vmem:[%s1644_s1 + $0x70] sm:$0xff]   ;;  %v1213_v8 = vld [vmem:[%s1644_s1 + $0x68] sm:$0xff]  }
   0x2   :  { %v1206_v1 = vld [vmem:[%s1644_s1 + $0x38] sm:$0xff]   ;;  %1055 = vmatprep.subr.bf16.mxu0 %v1205_v0  ;;  %v1210_v5 = vld [vmem:[%s1644_s1 + $0x30] sm:$0xff]   ;;  %v1214_v9 = vld [vmem:[%s1644_s1 + $0x28] sm:$0xff]  }
   0x3   :  { %v1207_v2 = vld [vmem:[%s1644_s1 + $0xf8] sm:$0xff]   ;;  %1056 = vmatpush3.bf16.msra.mxu0 %v1206_v1  ;;  %v1211_v6 = vld [vmem:[%s1644_s1 + $0xf0] sm:$0xff]   ;;  %v1215_v10 = vld [vmem:[%s1644_s1 + $0xe8] sm:$0xff]  }
   0x4   :  { %v1208_v3 = vld [vmem:[%s1644_s1 + $0xb8] sm:$0xff]   ;;  %1095 = vmatprep.subr.bf16.mxu1 %v1207_v2  ;;  %1057 = vmatprep.subr.bf16.mxu0 %v1209_v4  ;;  %v1212_v7 = vld [vmem:[%s1644_s1 + $0xb0] sm:$0xff]   ;;  %v1216_v11 = vld [vmem:[%s1644_s1 + $0xa8] sm:$0xff]  }
   0x5   :  { %1096 = vmatpush3.bf16.msra.mxu1 %v1208_v3  ;;  %v1217_v12 = vld [vmem:[%s1644_s1 + $0x60] sm:$0xff]   ;;  %v1221_v16 = vld [vmem:[%s1644_s1 + $0x58] sm:$0xff]   ;;  %v1225_v20 = vld [vmem:[%s1644_s1 + $0x50] sm:$0xff]  }
   0x6   :  { %1097 = vmatprep.subr.bf16.mxu1 %v1211_v6  ;;  %v1218_v13 = vld [vmem:[%s1644_s1 + $0x20] sm:$0xff]   ;;  %v1222_v17 = vld [vmem:[%s1644_s1 + $0x18] sm:$0xff]   ;;  %v1226_v21 = vld [vmem:[%s1644_s1 + $0x10] sm:$0xff]  }
   0x7   :  { %1058 = vmatpush3.bf16.msra.mxu0 %v1210_v5  ;;  %v1219_v14 = vld [vmem:[%s1644_s1 + $0xe0] sm:$0xff]   ;;  %v1223_v18 = vld [vmem:[%s1644_s1 + $0xd8] sm:$0xff]   ;;  %v1227_v22 = vld [vmem:[%s1644_s1 + $0xd0] sm:$0xff]  }
   0x8   :  { %1059 = vmatprep.subr.bf16.mxu0 %v1213_v8  ;;  %v1220_v15 = vld [vmem:[%s1644_s1 + $0xa0] sm:$0xff]   ;;  %v1224_v19 = vld [vmem:[%s1644_s1 + $0x98] sm:$0xff]   ;;  %v1228_v23 = vld [vmem:[%s1644_s1 + $0x90] sm:$0xff]  }
   0x9   :  { %1098 = vmatpush3.bf16.msra.mxu1 %v1212_v7  ;;  %v1229_v24 = vld [vmem:[%s1644_s1 + $0x48] sm:$0xff]   ;;  %v1233_v28 = vld [vmem:[%s1644_s1 + $0x40] sm:$0xff]   ;;  %v1240_v34 = vld [vmem:[%s1644_s1 + $0x178] sm:$0xff]  }
   0xa   :  { %1099 = vmatprep.subr.bf16.mxu1 %v1215_v10  ;;  %v1230_v25 = vld [vmem:[%s1644_s1 + $0x8] sm:$0xff]   ;;  %v1234_v29 = vld [vmem:[%s1644_s1] sm:$0xff]   ;;  %v1244_v37 = vld [vmem:[%s1644_s1 + $0x138] sm:$0xff]  }
   0xb   :  { %1060 = vmatpush3.bf16.msra.mxu0 %v1214_v9  ;;  %v1231_v26 = vld [vmem:[%s1644_s1 + $0xc8] sm:$0xff]   ;;  %v1235_v30 = vld [vmem:[%s1644_s1 + $0xc0] sm:$0xff]   ;;  %v1245_v38 = vld [vmem:[%s1644_s1 + $0x170] sm:$0xff]  }
   0xc   :  { %1061 = vmatprep.subr.bf16.mxu0 %v1217_v12  ;;  %v1232_v27 = vld [vmem:[%s1644_s1 + $0x88] sm:$0xff]   ;;  %v1236_v31 = vld [vmem:[%s1645_s0] ss:$28 sps:$4 sm:$0xff]   ;;  %v1246_v39 = vld [vmem:[%s1644_s1 + $0x130] sm:$0xff]  }
   0xd   :  { %1100 = vmatpush3.bf16.msra.mxu1 %v1216_v11  ;;  %v1238_v32 = vld [vmem:[%s1645_s0 + $0x4] ss:$28 sps:$4 sm:$0xff]   ;;  %v1243_v36 = vld [vmem:[%s1645_s0 + $0xc] ss:$28 sps:$4 sm:$0xff]   ;;  %v1247_v40 = vld [vmem:[%s1645_s0 + $0x3c] ss:$28 sps:$4 sm:$0xff]  }
   0xe   :  { %1101 = vmatprep.subr.bf16.mxu1 %v1219_v14  ;;  %v1239_v33 = vld [vmem:[%s1644_s1 + $0x80] sm:$0xff]   ;;  %671 = vmatprep.mubr.bf16.mxu0 %v1238_v32  ;;  %v1249_v41 = vld [vmem:[%s1645_s0 + $0x38] ss:$28 sps:$4 sm:$0xff]   ;;  %v1250_v42 = vld [vmem:[%s1644_s1 + $0x168] sm:$0xff]  }
   0xf   :  { %1062 = vmatpush3.bf16.msra.mxu0 %v1218_v13  ;;  %v1241_v35 = vld [vmem:[%s1645_s0 + $0x8] ss:$28 sps:$4 sm:$0xff]   ;;  %736 = vmatprep.mubr.bf16.mxu1 %v1243_v36  ;;  %v1254_v45 = vld [vmem:[%s1645_s0 + $0x40] ss:$28 sps:$4 sm:$0xff]   ;;  %v1258_v49 = vld [vmem:[%s1645_s0 + $0x74] ss:$28 sps:$4 sm:$0xff]  }
  0x10   :  { %1063 = vmatprep.subr.bf16.mxu0 %v1221_v16  ;;  %v1251_v43 = vld [vmem:[%s1645_s0 + $0x44] ss:$28 sps:$4 sm:$0xff]   ;;  %v1253_v44 = vld [vmem:[%s1644_s1 + $0x128] sm:$0xff]   ;;  %v1261_v51 = vld [vmem:[%s1644_s1 + $0x158] sm:$0xff]  }
  0x11   :  { %1102 = vmatpush3.bf16.msra.mxu1 %v1220_v15  ;;  %v1255_v46 = vld [vmem:[%s1644_s1 + $0x160] sm:$0xff]   ;;  %v1256_v47 = vld [vmem:[%s1644_s1 + $0x1a8] sm:$0xff]   ;;  %v1263_v53 = vld [vmem:[%s1645_s0 + $0x7c] ss:$28 sps:$4 sm:$0xff]  }
  0x12   :  { %1103 = vmatprep.subr.bf16.mxu1 %v1223_v18  ;;  %v1257_v48 = vld [vmem:[%s1644_s1 + $0x120] sm:$0xff]   ;;  %v1260_v50 = vld [vmem:[%s1645_s0 + $0x70] ss:$28 sps:$4 sm:$0xff]   ;;  %v1265_v54 = vld [vmem:[%s1644_s1 + $0x118] sm:$0xff]  }
  0x13   :  { %1064 = vmatpush3.bf16.msra.mxu0 %v1222_v17  ;;  %v1262_v52 = vld [vmem:[%s1644_s1 + $0x1a0] sm:$0xff]   ;;  %v1266_v55 = vld [vmem:[%s1645_s0 + $0x78] ss:$28 sps:$4 sm:$0xff]   ;;  %v1270_v59 = vld [vmem:[%s1645_s0 + $0xac] ss:$28 sps:$4 sm:$0xff]  }
  0x14   :  { %1065 = vmatprep.subr.bf16.mxu0 %v1225_v20  ;;  %v1267_v56 = vld [vmem:[%s1644_s1 + $0x150] sm:$0xff]   ;;  %v1268_v57 = vld [vmem:[%s1644_s1 + $0x198] sm:$0xff]   ;;  %v1272_v60 = vld [vmem:[%s1645_s0 + $0xa8] ss:$28 sps:$4 sm:$0xff]  }
  0x15   :  { %1104 = vmatpush3.bf16.msra.mxu1 %v1224_v19  ;;  %v1269_v58 = vld [vmem:[%s1644_s1 + $0x110] sm:$0xff]   ;;  %v1273_v61 = vld [vmem:[%s1644_s1 + $0x148] sm:$0xff]   ;;  %v1279_v2 = vld [vmem:[%s1644_s1 + $0x140] sm:$0xff]  }
  0x16   :  { %1105 = vmatprep.subr.bf16.mxu1 %v1227_v22  ;;  %v1274_v62 = vld [vmem:[%s1644_s1 + $0x190] sm:$0xff]   ;;  %v1277_v0 = vld [vmem:[%s1644_s1 + $0x108] sm:$0xff]   ;;  %v1281_v4 = vld [vmem:[%s1644_s1 + $0x100] sm:$0xff]  }
  0x17   :  { %1066 = vmatpush3.bf16.msra.mxu0 %v1226_v21  ;;  %v1275_v63 = vld [vmem:[%s1645_s0 + $0xb4] ss:$28 sps:$4 sm:$0xff]   ;;  %v1280_v3 = vld [vmem:[%s1644_s1 + $0x188] sm:$0xff]   ;;  %v1285_v7 = vld [vmem:[%s1644_s1 + $0x180] sm:$0xff]  }
  0x18   :  { %1067 = vmatprep.subr.bf16.mxu0 %v1229_v24  ;;  %v1278_v1 = vld [vmem:[%s1645_s0 + $0xb0] ss:$28 sps:$4 sm:$0xff]   ;;  %v1286_v8 = vld [vmem:[%s1645_s0 + $0x18] ss:$28 sps:$4 sm:$0xff]   ;;  %v1294_v11 = vld [vmem:[%s1645_s0 + $0x88] ss:$28 sps:$4 sm:$0xff]  }
  0x19   :  { %1106 = vmatpush3.bf16.msra.mxu1 %v1228_v23  ;;  %v1282_v5 = vld [vmem:[%s1645_s0 + $0x10] ss:$28 sps:$4 sm:$0xff]   ;;  %v1290_v12 = vld [vmem:[%s1645_s0 + $0x48] ss:$28 sps:$4 sm:$0xff]   ;;  %v1295_v14 = vld [vmem:[%s1645_s0 + $0xc0] ss:$28 sps:$4 sm:$0xff]  }
  0x1a   :  { %1107 = vmatprep.subr.bf16.mxu1 %v1231_v26  ;;  %v1284_v6 = vld [vmem:[%s1645_s0 + $0x14] ss:$28 sps:$4 sm:$0xff]   ;;  %v1288_v10 = vld [vmem:[%s1645_s0 + $0x4c] ss:$28 sps:$4 sm:$0xff]   ;;  %v1291_v13 = vld [vmem:[%s1645_s0 + $0x84] ss:$28 sps:$4 sm:$0xff]  }
  0x1b   :  { %1068 = vmatpush3.bf16.msra.mxu0 %v1230_v25  ;;  %v1287_v9 = vld [vmem:[%s1645_s0 + $0x50] ss:$28 sps:$4 sm:$0xff]   ;;  %v1293_v15 = vld [vmem:[%s1645_s0 + $0x80] ss:$28 sps:$4 sm:$0xff]   ;;  %v1298_v17 = vld [vmem:[%s1645_s0 + $0xb8] ss:$28 sps:$4 sm:$0xff]  }
  0x1c   :  { %1069 = vmatprep.subr.bf16.mxu0 %v1233_v28  ;;  %v1296_v16 = vld [vmem:[%s1645_s0 + $0xbc] ss:$28 sps:$4 sm:$0xff]  }
  0x1d   :  { %1108 = vmatpush3.bf16.msra.mxu1 %v1232_v27 }
  0x1e   :  { %1109 = vmatprep.subr.bf16.mxu1 %v1235_v30 }
  0x1f   :  { %1070 = vmatpush3.bf16.msra.mxu0 %v1234_v29 }
  0x20   :  { %1135 = vmatprep.subr.bf16.mxu0 %v1240_v34 }
  0x21   :  { %1110 = vmatpush3.bf16.msra.mxu1 %v1239_v33 }
  0x22   :  { %672 = vmatmul.mubr.bf16.vlgmr.msra.gmra.mxu0 %v1236_v31  ;;  %1185 = vmatprep.subr.bf16.mxu1 %v1256_v47 }
  0x23   :  { %1136 = vmatpush3.bf16.msra.mxu0 %v1244_v37  ;;  %679 = vmatprep.mubr.bf16.mxu0 %v1247_v40 }
  0x24   :  { %737 = vmatmul.mubr.bf16.vlgmr.msra.gmra.mxu1 %v1241_v35  ;;  %1137 = vmatprep.subr.bf16.mxu0 %v1245_v38 }
  0x25   :  { %744 = vmatprep.mubr.bf16.mxu1 %v1251_v43  ;;  %1186 = vmatpush3.bf16.msra.mxu1 %v1256_v47 }
  0x26   :  { %1187 = vmatprep.subr.bf16.mxu1 %v1262_v52 }
  0x27   :  { %1138 = vmatpush3.bf16.msra.mxu0 %v1246_v39 }
  0x28   :  { %1139 = vmatprep.subr.bf16.mxu0 %v1250_v42 }
  0x29   :  { %1188 = vmatpush3.bf16.msra.mxu1 %v1262_v52 }
  0x2a   :  { %680 = vmatmul.mubr.bf16.gmra.mxu0 %v1249_v41  ;;  %1189 = vmatprep.subr.bf16.mxu1 %v1268_v57 }
  0x2b   :  { %1140 = vmatpush3.bf16.msra.mxu0 %v1253_v44  ;;  %687 = vmatprep.mubr.bf16.mxu0 %v1258_v49 }
  0x2c   :  { %745 = vmatmul.mubr.bf16.gmra.mxu1 %v1254_v45  ;;  %1141 = vmatprep.subr.bf16.mxu0 %v1255_v46 }
  0x2d   :  { %752 = vmatprep.mubr.bf16.mxu1 %v1263_v53  ;;  %1190 = vmatpush3.bf16.msra.mxu1 %v1268_v57 }
  0x2e   :  { %1191 = vmatprep.subr.bf16.mxu1 %v1274_v62 }
  0x2f   :  { %1142 = vmatpush3.bf16.msra.mxu0 %v1257_v48  ;;  %v1586_v48 = vld [vmem:[%s1646_s2] ss:$0 sm:$0xff] }
  0x30   :  { %1143 = vmatprep.subr.bf16.mxu0 %v1261_v51 }
  0x31   :  { %1192 = vmatpush3.bf16.msra.mxu1 %v1274_v62 }
  0x32   :  { %688 = vmatmul.mubr.bf16.gmra.mxu0 %v1260_v50  ;;  %1193 = vmatprep.subr.bf16.mxu1 %v1280_v3 }
  0x33   :  { %1144 = vmatpush3.bf16.msra.mxu0 %v1265_v54  ;;  %695 = vmatprep.mubr.bf16.mxu0 %v1270_v59 }
  0x34   :  { %753 = vmatmul.mubr.bf16.gmra.mxu1 %v1266_v55  ;;  %1145 = vmatprep.subr.bf16.mxu0 %v1267_v56 }
  0x35   :  { %760 = vmatprep.mubr.bf16.mxu1 %v1275_v63  ;;  %1194 = vmatpush3.bf16.msra.mxu1 %v1280_v3 }
  0x36   :  { %1195 = vmatprep.subr.bf16.mxu1 %v1285_v7 }
  0x37   :  { %1146 = vmatpush3.bf16.msra.mxu0 %v1269_v58 }
  0x38   :  { %1147 = vmatprep.subr.bf16.mxu0 %v1273_v61 }
  0x39   :  { %1196 = vmatpush3.bf16.msra.mxu1 %v1285_v7 }
  0x3a   :  { %696 = vmatmul.mubr.bf16.gmra.mxu0 %v1272_v60 }
  0x3b   :  { %1148 = vmatpush3.bf16.msra.mxu0 %v1277_v0  ;;  %801 = vmatprep.mubr.bf16.mxu0 %v1284_v6 }
  0x3c   :  { %761 = vmatmul.mubr.bf16.gmra.mxu1 %v1278_v1  ;;  %1149 = vmatprep.subr.bf16.mxu0 %v1279_v2 }
  0x3d   :  { %1197 = vmatprep.mubr.msk.bf16.mxu1 %vm626_vm0, %v1286_v8 }
  0x3f   :  { %1150 = vmatpush3.bf16.msra.mxu0 %v1281_v4 }
  0x42   :  { %802 = vmatmul.mubr.bf16.vlgmr.msra.gmra.mxu0 %v1282_v5 }
  0x43   :  { %809 = vmatprep.mubr.bf16.mxu0 %v1288_v10 }
  0x44   :  { %1198 = vmatmul.mubr.msk.bf16.vlgmr.msra.gmra.mxu1 %vm626_vm0, %v1287_v9 }
  0x45   :  { %1201 = vmatprep.mubr.msk.bf16.mxu1 %vm626_vm0, %v1294_v11 }
  0x4a   :  { %810 = vmatmul.mubr.bf16.gmra.mxu0 %v1290_v12 }
  0x4b   :  { %817 = vmatprep.mubr.bf16.mxu0 %v1291_v13 }
  0x4c   :  { %1202 = vmatmul.mubr.msk.bf16.gmra.mxu1 %vm626_vm0, %v1295_v14 }
  0x52   :  { %818 = vmatmul.mubr.bf16.gmra.mxu0 %v1293_v15 }
  0x53   :  { %825 = vmatprep.mubr.bf16.mxu0 %v1296_v16 }
  0x5a   :  { %826 = vmatmul.mubr.bf16.gmra.mxu0 %v1298_v17 }
  0xe2   :  { %v1071_v18 = vpop.f32.mrf.mxu0 }
  0xe4   :  { %v1072_v19 = vpop.f32.mrf.mxu0  ;;  %v1111_v20 = vpop.f32.mrf.mxu1 }
  0xe5   :  { %v1073_v46 = vadd.f32 %v1072_v19, %v1071_v18 }
  0xe6   :  { %v1074_v21 = vpop.f32.mrf.mxu0  ;;  %v1112_v22 = vpop.f32.mrf.mxu1 }
  0xe7   :  { %v674_v51 = vadd.f32 %v1073_v46, %v1586_v48  ;;  %v1113_v52 = vadd.f32 %v1112_v22, %v1111_v20 }
  0xe8   :  { %v1075_v23 = vpop.f32.mrf.mxu0  ;;  %v1114_v24 = vpop.f32.mrf.mxu1 }
  0xe9   :  { %v1076_v53 = vadd.f32 %v1075_v23, %v1074_v21  ;;  %v739_v58 = vadd.f32 %v1113_v52, %v674_v51 }
  0xea   :  { %v1077_v25 = vpop.f32.mrf.mxu0  ;;  %v1115_v26 = vpop.f32.mrf.mxu1 }
  0xeb   :  { %v677_v59 = vadd.f32 %v1076_v53, %v1586_v48  ;;  %v1116_v60 = vadd.f32 %v1115_v26, %v1114_v24 }
  0xec   :  { %v1078_v27 = vpop.f32.mrf.mxu0  ;;  %v1117_v28 = vpop.f32.mrf.mxu1 }
  0xed   :  { %v1079_v56 = vadd.f32 %v1078_v27, %v1077_v25  ;;  %v742_v6 = vadd.f32 %v1116_v60, %v677_v59 }
  0xee   :  { %v1080_v29 = vpop.f32.mrf.mxu0  ;;  %v1118_v30 = vpop.f32.mrf.mxu1 }
  0xef   :  { %v682_v2 = vadd.f32 %v1079_v56, %v1586_v48  ;;  %v1119_v3 = vadd.f32 %v1118_v30, %v1117_v28 }
  0xf0   :  { %v1081_v31 = vpop.f32.mrf.mxu0  ;;  %v1120_v32 = vpop.f32.mrf.mxu1 }
  0xf1   :  { %v1082_v4 = vadd.f32 %v1081_v31, %v1080_v29  ;;  %v747_v14 = vadd.f32 %v1119_v3, %v682_v2 }
  0xf2   :  { %v1083_v33 = vpop.f32.mrf.mxu0  ;;  %v1121_v34 = vpop.f32.mrf.mxu1 }
  0xf3   :  { %v685_v15 = vadd.f32 %v1082_v4, %v1586_v48  ;;  %v1122_v18 = vadd.f32 %v1121_v34, %v1120_v32 }
  0xf4   :  { %v1084_v35 = vpop.f32.mrf.mxu0  ;;  %v1123_v36 = vpop.f32.mrf.mxu1 }
  0xf5   :  { %v1085_v16 = vadd.f32 %v1084_v35, %v1083_v33  ;;  %v750_v30 = vadd.f32 %v1122_v18, %v685_v15 }
  0xf6   :  { %v1086_v37 = vpop.f32.mrf.mxu0  ;;  %v1124_v38 = vpop.f32.mrf.mxu1 }
  0xf7   :  { %v690_v26 = vadd.f32 %v1085_v16, %v1586_v48  ;;  %v1125_v27 = vadd.f32 %v1124_v38, %v1123_v36 }
  0xf8   :  { %v1087_v39 = vpop.f32.mrf.mxu0  ;;  %v1569_v40 = vpop.f32.mrf.mxu1 }
  0xf9   :  { %v1088_v28 = vadd.f32 %v1087_v39, %v1086_v37  ;;  %v755_v52 = vadd.f32 %v1125_v27, %v690_v26 }
  0xfa   :  { %v1571_v41 = vpop.f32.mrf.mxu0  ;;  %v1573_v42 = vpop.f32.mrf.mxu1 }
  0xfb   :  { %v693_v53 = vadd.f32 %v1088_v28, %v1586_v48  ;;  %v1128_v38 = vadd.f32 %v1573_v42, %v1569_v40 }
  0xfc   :  { %v1575_v43 = vpop.f32.mrf.mxu0  ;;  %v1577_v44 = vpop.f32.mrf.mxu1 }
  0xfd   :  { %v1091_v36 = vadd.f32 %v1575_v43, %v1571_v41  ;;  %v758_v43 = vadd.f32 %v1128_v38, %v693_v53 }
  0xfe   :  { %v1579_v45 = vpop.f32.mrf.mxu0  ;;  %v1581_v47 = vpop.f32.mrf.mxu1 }
  0xff   :  { %v1131_v41 = vadd.f32 %v1581_v47, %v1577_v44 }
 0x100   :  { %v1588_v49 = vpop.f32.mrf.mxu0  ;;  %v1590_v50 = vpop.f32.mrf.mxu1 }
 0x101   :  { %v1094_v40 = vadd.f32 %v1588_v49, %v1579_v45 }
 0x102   :  { %v1151_v54 = vpop.f32.mrf.mxu0  ;;  %v1593_v55 = vpop.f32.mrf.mxu1 }
 0x103   :  { %v701_v44 = vadd.f32 %v1094_v40, %v1586_v48  ;;  %v1134_v45 = vadd.f32 %v1593_v55, %v1590_v50 }
 0x104   :  { %v1152_v57 = vpop.f32.mrf.mxu0  ;;  %v1199_v62 = vpop.f32.mrf.mxu1 }
 0x105   :  { %v1153_v61 = vadd.f32 %v1152_v57, %v1151_v54 }
 0x106   :  { %v1154_v63 = vpop.f32.mrf.mxu0  ;;  %v868_v1 = vpop.f32.mrf.mxu1 }
 0x107   :  { %v804_v0 = vadd.f32 %v1153_v61, %v739_v58  ;;  %v698_v61 = vadd.f32 %v1091_v36, %v1586_v48 }
 0x108   :  { %v1155_v5 = vpop.f32.mrf.mxu0  ;;  %v1200_v9 = vpop.f32.mrf.mxu1 }
 0x109   :  { %v1156_v7 = vadd.f32 %v1155_v5, %v1154_v63  ;;  %v869_v8 = vadd.f32 %v868_v1, %v804_v0  ;;  %v763_v5 = vadd.f32 %v1131_v41, %v698_v61 }
 0x10a   :  { %v1157_v10 = vpop.f32.mrf.mxu0  ;;  %v871_v13 = vpop.f32.mrf.mxu1 }
 0x10b   :  { %v899_v11 = vmax.f32 %v869_v8, 0.0  ;;  %v807_v12 = vadd.f32 %v1156_v7, %v742_v6 }
 0x10c   :  { %v1158_v17 = vpop.f32.mrf.mxu0  ;;  %v1203_v23 = vpop.f32.mrf.mxu1 }
 0x10d   :  { %v1047_v19 = vpack.c.bf16 %v899_v11, %v899_v11  ;;  %v1159_v20 = vadd.f32 %v1158_v17, %v1157_v10  ;;  %v872_v21 = vadd.f32 %v871_v13, %v807_v12  ;;  %v766_v12 = vadd.f32 %v1134_v45, %v701_v44 }
 0x10e   :  { %v1160_v22 = vpop.f32.mrf.mxu0  ;;  %v884_v35 = vpop.f32.mrf.mxu1 }
 0x10f   :  { %940 = vst.msk [vmem:[%s1647_s3] sm:$0xf] %vm939_vm1, %v1047_v19  ;;  %v812_v24 = vadd.f32 %v1159_v20, %v747_v14  ;;  %v900_v25 = vmax.f32 %v872_v21, 0.0 }
 0x110   :  { %v1161_v29 = vpop.f32.mrf.mxu0  ;;  %v1204_v58 = vpop.f32.mrf.mxu1 }
 0x111   :  { %v877_v31 = vadd.f32 %v1199_v62, %v812_v24  ;;  %v1048_v32 = vpack.c.bf16 %v900_v25, %v900_v25  ;;  %v1162_v33 = vadd.f32 %v1161_v29, %v1160_v22 }
 0x112   :  { %v1163_v34 = vpop.f32.mrf.mxu0  ;;  %v887_v2 = vpop.f32.mrf.mxu1 }
 0x113   :  { %v901_v46 = vmax.f32 %v877_v31, 0.0  ;;  %941 = vst.msk [vmem:[%s1647_s3 + $0x4] sm:$0xf] %vm939_vm1, %v1048_v32  ;;  %v815_v51 = vadd.f32 %v1162_v33, %v750_v30 }
 0x114   :  { %v1164_v37 = vpop.f32.mrf.mxu0 }
 0x115   :  { %v1049_v39 = vpack.c.bf16 %v901_v46, %v901_v46  ;;  %v880_v54 = vadd.f32 %v1200_v9, %v815_v51  ;;  %v1165_v56 = vadd.f32 %v1164_v37, %v1163_v34 }
 0x116   :  { %v1166_v57 = vpop.f32.mrf.mxu0 }
 0x117   :  { %942 = vst.msk [vmem:[%s1647_s3 + $0x8] sm:$0xf] %vm939_vm1, %v1049_v39  ;;  %v902_v59 = vmax.f32 %v880_v54, 0.0  ;;  %v820_v60 = vadd.f32 %v1165_v56, %v755_v52 }
 0x118   :  { %v1167_v42 = vpop.f32.mrf.mxu0 }
 0x119   :  { %v1050_v62 = vpack.c.bf16 %v902_v59, %v902_v59  ;;  %v1168_v63 = vadd.f32 %v1167_v42, %v1166_v57  ;;  %v885_v0 = vadd.f32 %v884_v35, %v820_v60 }
 0x11a   :  { %v1169_v1 = vpop.f32.mrf.mxu0 }
 0x11b   :  { %943 = vst.msk [vmem:[%s1647_s3 + $0xc] sm:$0xf] %vm939_vm1, %v1050_v62  ;;  %v903_v3 = vmax.f32 %v885_v0, 0.0  ;;  %v823_v4 = vadd.f32 %v1168_v63, %v758_v43 }
 0x11c   :  { %v1170_v47 = vpop.f32.mrf.mxu0 }
 0x11d   :  { %v1051_v49 = vpack.c.bf16 %v903_v3, %v903_v3  ;;  %v1171_v6 = vadd.f32 %v1170_v47, %v1169_v1  ;;  %v888_v7 = vadd.f32 %v887_v2, %v823_v4 }
 0x11e   :  { %v1172_v8 = vpop.f32.mrf.mxu0 }
 0x11f   :  { %944 = vst.msk [vmem:[%s1647_s3 + $0x10] sm:$0xf] %vm939_vm1, %v1051_v49  ;;  %v828_v9 = vadd.f32 %v1171_v6, %v763_v5  ;;  %v904_v10 = vmax.f32 %v888_v7, 0.0 }
 0x120   :  { %v1173_v11 = vpop.f32.mrf.mxu0 }
 0x121   :  { %v893_v13 = vadd.f32 %v1203_v23, %v828_v9  ;;  %v1052_v14 = vpack.c.bf16 %v904_v10, %v904_v10  ;;  %v1174_v48 = vadd.f32 %v1173_v11, %v1172_v8 }
 0x123   :  { %v905_v15 = vmax.f32 %v893_v13, 0.0  ;;  %945 = vst.msk [vmem:[%s1647_s3 + $0x14] sm:$0xf] %vm939_vm1, %v1052_v14  ;;  %v831_v50 = vadd.f32 %v1174_v48, %v766_v12 }
 0x125   :  { %v1053_v55 = vpack.c.bf16 %v905_v15, %v905_v15  ;;  %v896_v16 = vadd.f32 %v1204_v58, %v831_v50 }
 0x127   :  { %946 = vst.msk [vmem:[%s1647_s3 + $0x18] sm:$0xf] %vm939_vm1, %v1053_v55  ;;  %v906_v17 = vmax.f32 %v896_v16, 0.0 }
 0x129   :  { %v1054_v18 = vpack.c.bf16 %v906_v17, %v906_v17 }
 0x12b   :  { %947 = vst.msk [vmem:[%s1647_s3 + $0x1c] sm:$0xf] %vm939_vm1, %v1054_v18 }

// kernel: dvanet_forward.106
= control target key start
LH: loop header
LB: loop body
LE: loop exit
PB: predicated region body
PF: predicated region fallthrough
CT: control target
= control target key end

     0   :  { %v869_v41 = vmov 0.0   ;;  %vm870_vm0 = vmmov 0   ;;  %vm482_vm1 = vcmask 785408   ;;  %vm648_vm2 = vcmask 519168   ;;  %s1071_s1 = inlined_call_operand.vmem [shape: bf16[864,64], index: 1, kind: input, shape index: {}]   ;;  %s1072_s0 = inlined_call_operand.vmem [shape: bf16[8,864], index: 0, kind: input, shape index: {}]   ;;  %s1073_s2 = inlined_call_operand.vmem [shape: f32[1,64], index: 2, kind: input, shape index: {}]   ;;  %s1074_s3 = inlined_call_operand.vmem [shape: bf16[8,64], index: 3, kind: output, shape index: {}]  }
   0x1   :  { %v808_v0 = vld [vmem:[%s1071_s1 + $0x78] sm:$0xff]   ;;  %v812_v4 = vld [vmem:[%s1071_s1 + $0x70] sm:$0xff]   ;;  %v816_v8 = vld [vmem:[%s1071_s1 + $0x68] sm:$0xff]  }
   0x2   :  { %v809_v1 = vld [vmem:[%s1071_s1 + $0x38] sm:$0xff]   ;;  %717 = vmatprep.subr.bf16.mxu0 %v808_v0  ;;  %v813_v5 = vld [vmem:[%s1071_s1 + $0x30] sm:$0xff]   ;;  %v817_v9 = vld [vmem:[%s1071_s1 + $0x28] sm:$0xff]  }
   0x3   :  { %v810_v2 = vld [vmem:[%s1071_s1 + $0xf8] sm:$0xff]   ;;  %718 = vmatpush3.bf16.msra.mxu0 %v809_v1  ;;  %v814_v6 = vld [vmem:[%s1071_s1 + $0xf0] sm:$0xff]   ;;  %v818_v10 = vld [vmem:[%s1071_s1 + $0xe8] sm:$0xff]  }
   0x4   :  { %v811_v3 = vld [vmem:[%s1071_s1 + $0xb8] sm:$0xff]   ;;  %739 = vmatprep.subr.bf16.mxu1 %v810_v2  ;;  %719 = vmatprep.subr.bf16.mxu0 %v812_v4  ;;  %v815_v7 = vld [vmem:[%s1071_s1 + $0xb0] sm:$0xff]   ;;  %v819_v11 = vld [vmem:[%s1071_s1 + $0xa8] sm:$0xff]  }
   0x5   :  { %740 = vmatpush3.bf16.msra.mxu1 %v811_v3  ;;  %v820_v12 = vld [vmem:[%s1071_s1 + $0x60] sm:$0xff]   ;;  %v824_v16 = vld [vmem:[%s1071_s1 + $0x58] sm:$0xff]   ;;  %v828_v20 = vld [vmem:[%s1071_s1 + $0x50] sm:$0xff]  }
   0x6   :  { %741 = vmatprep.subr.bf16.mxu1 %v814_v6  ;;  %v821_v13 = vld [vmem:[%s1071_s1 + $0x20] sm:$0xff]   ;;  %v825_v17 = vld [vmem:[%s1071_s1 + $0x18] sm:$0xff]   ;;  %v829_v21 = vld [vmem:[%s1071_s1 + $0x10] sm:$0xff]  }
   0x7   :  { %720 = vmatpush3.bf16.msra.mxu0 %v813_v5  ;;  %v822_v14 = vld [vmem:[%s1071_s1 + $0xe0] sm:$0xff]   ;;  %v826_v18 = vld [vmem:[%s1071_s1 + $0xd8] sm:$0xff]   ;;  %v830_v22 = vld [vmem:[%s1071_s1 + $0xd0] sm:$0xff]  }
   0x8   :  { %721 = vmatprep.subr.bf16.mxu0 %v816_v8  ;;  %v823_v15 = vld [vmem:[%s1071_s1 + $0xa0] sm:$0xff]   ;;  %v827_v19 = vld [vmem:[%s1071_s1 + $0x98] sm:$0xff]   ;;  %v831_v23 = vld [vmem:[%s1071_s1 + $0x90] sm:$0xff]  }
   0x9   :  { %742 = vmatpush3.bf16.msra.mxu1 %v815_v7  ;;  %v832_v24 = vld [vmem:[%s1071_s1 + $0x48] sm:$0xff]   ;;  %v836_v28 = vld [vmem:[%s1071_s1 + $0x40] sm:$0xff]   ;;  %v843_v35 = vld [vmem:[%s1071_s1 + $0x178] sm:$0xff]  }
   0xa   :  { %743 = vmatprep.subr.bf16.mxu1 %v818_v10  ;;  %v833_v25 = vld [vmem:[%s1071_s1 + $0x8] sm:$0xff]   ;;  %v837_v29 = vld [vmem:[%s1071_s1] sm:$0xff]   ;;  %v846_v39 = vld [vmem:[%s1071_s1 + $0x138] sm:$0xff]  }
   0xb   :  { %722 = vmatpush3.bf16.msra.mxu0 %v817_v9  ;;  %v834_v26 = vld [vmem:[%s1071_s1 + $0xc8] sm:$0xff]   ;;  %v838_v30 = vld [vmem:[%s1071_s1 + $0xc0] sm:$0xff]   ;;  %v847_v40 = vld [vmem:[%s1071_s1 + $0x170] sm:$0xff]  }
   0xc   :  { %723 = vmatprep.subr.bf16.mxu0 %v820_v12  ;;  %v835_v27 = vld [vmem:[%s1071_s1 + $0x88] sm:$0xff]   ;;  %v15_v31 = vld [vmem:[%s1072_s0] sm:$0xff]  ;;  %v848_v42 = vld [vmem:[%s1071_s1 + $0x130] sm:$0xff]  }
   0xd   :  { %744 = vmatpush3.bf16.msra.mxu1 %v819_v11  ;;  %v655_v32 = vcombine.low %v15_v31, %v15_v31  ;;  %v656_v33 = vcombine.high %v15_v31, %v15_v31  ;;  %v842_v34 = vld [vmem:[%s1071_s1 + $0x80] sm:$0xff]   ;;  %v16_v36 = vld [vmem:[%s1072_s0 + $0x8] sm:$0xff]  ;;  %v855_v49 = vld [vmem:[%s1071_s1 + $0x158] sm:$0xff]  }
   0xe   :  { %745 = vmatprep.subr.bf16.mxu1 %v822_v14  ;;  %v657_v37 = vcombine.low %v16_v36, %v16_v36  ;;  %v658_v38 = vcombine.high %v16_v36, %v16_v36  ;;  %v849_v43 = vld [vmem:[%s1071_s1 + $0x168] sm:$0xff]   ;;  %v852_v46 = vld [vmem:[%s1071_s1 + $0x160] sm:$0xff]   ;;  %v857_v50 = vld [vmem:[%s1071_s1 + $0x198] sm:$0xff]  }
   0xf   :  { %724 = vmatpush3.bf16.msra.mxu0 %v821_v13  ;;  %518 = vmatprep.mubr.bf16.mxu0 %v656_v33  ;;  %v851_v44 = vld [vmem:[%s1071_s1 + $0x1a8] sm:$0xff]   ;;  %v854_v47 = vld [vmem:[%s1071_s1 + $0x1a0] sm:$0xff]   ;;  %v856_v51 = vld [vmem:[%s1071_s1 + $0x118] sm:$0xff]  }
  0x10   :  { %725 = vmatprep.subr.bf16.mxu0 %v824_v16  ;;  %558 = vmatprep.mubr.bf16.mxu1 %v658_v38  ;;  %v850_v45 = vld [vmem:[%s1071_s1 + $0x128] sm:$0xff]   ;;  %v853_v48 = vld [vmem:[%s1071_s1 + $0x120] sm:$0xff]   ;;  %v858_v52 = vld [vmem:[%s1071_s1 + $0x150] sm:$0xff]  }
  0x11   :  { %746 = vmatpush3.bf16.msra.mxu1 %v823_v15  ;;  %v860_v53 = vld [vmem:[%s1071_s1 + $0x190] sm:$0xff]   ;;  %v861_v55 = vld [vmem:[%s1071_s1 + $0x148] sm:$0xff]   ;;  %v864_v60 = vld [vmem:[%s1071_s1 + $0x140] sm:$0xff]  }
  0x12   :  { %747 = vmatprep.subr.bf16.mxu1 %v826_v18  ;;  %v859_v54 = vld [vmem:[%s1071_s1 + $0x110] sm:$0xff]   ;;  %v863_v56 = vld [vmem:[%s1071_s1 + $0x188] sm:$0xff]   ;;  %v866_v61 = vld [vmem:[%s1071_s1 + $0x180] sm:$0xff]  }
  0x13   :  { %726 = vmatpush3.bf16.msra.mxu0 %v825_v17  ;;  %v17_v57 = vld [vmem:[%s1072_s0 + $0x10] sm:$0xff]  ;;  %v862_v59 = vld [vmem:[%s1071_s1 + $0x108] sm:$0xff]   ;;  %v841_v62 = vld [vmem:[%s1072_s0 + $0x18] ss:$0 sps:$4 sm:$0xff]  }
  0x14   :  { %727 = vmatprep.subr.bf16.mxu0 %v828_v20  ;;  %v660_v58 = vcombine.high %v17_v57, %v17_v57  ;;  %v865_v63 = vld [vmem:[%s1071_s1 + $0x100] sm:$0xff]   ;;  %v659_v0 = vcombine.low %v17_v57, %v17_v57 }
  0x15   :  { %748 = vmatpush3.bf16.msra.mxu1 %v827_v19  ;;  %v654_v10 = vld [vmem:[%s1073_s2] ss:$0 sm:$0xff] }
  0x16   :  { %749 = vmatprep.subr.bf16.mxu1 %v830_v22 }
  0x17   :  { %728 = vmatpush3.bf16.msra.mxu0 %v829_v21 }
  0x18   :  { %729 = vmatprep.subr.bf16.mxu0 %v832_v24 }
  0x19   :  { %750 = vmatpush3.bf16.msra.mxu1 %v831_v23 }
  0x1a   :  { %751 = vmatprep.subr.bf16.mxu1 %v834_v26 }
  0x1b   :  { %730 = vmatpush3.bf16.msra.mxu0 %v833_v25 }
  0x1c   :  { %731 = vmatprep.subr.bf16.mxu0 %v836_v28 }
  0x1d   :  { %752 = vmatpush3.bf16.msra.mxu1 %v835_v27 }
  0x1e   :  { %753 = vmatprep.subr.bf16.mxu1 %v838_v30 }
  0x1f   :  { %732 = vmatpush3.bf16.msra.mxu0 %v837_v29 }
  0x20   :  { %761 = vmatprep.subr.bf16.mxu0 %v843_v35 }
  0x21   :  { %754 = vmatpush3.bf16.msra.mxu1 %v842_v34 }
  0x22   :  { %519 = vmatmul.mubr.bf16.vlgmr.msra.gmra.mxu0 %v655_v32  ;;  %790 = vmatprep.subr.bf16.mxu1 %v869_v41 }
  0x23   :  { %762 = vmatpush3.bf16.msra.mxu0 %v846_v39  ;;  %598 = vmatprep.mubr.bf16.mxu0 %v660_v58 }
  0x24   :  { %559 = vmatmul.mubr.bf16.vlgmr.msra.gmra.mxu1 %v657_v37  ;;  %763 = vmatprep.subr.bf16.mxu0 %v847_v40 }
  0x25   :  { %802 = vmatprep.mubr.msk.bf16.mxu1 %vm870_vm0, %v869_v41  ;;  %791 = vmatpush3.bf16.msra.mxu1 %v851_v44 }
  0x26   :  { %792 = vmatprep.subr.bf16.mxu1 %v869_v41 }
  0x27   :  { %764 = vmatpush3.bf16.msra.mxu0 %v848_v42 }
  0x28   :  { %765 = vmatprep.subr.bf16.mxu0 %v849_v43 }
  0x29   :  { %793 = vmatpush3.bf16.msra.mxu1 %v854_v47 }
  0x2a   :  { %794 = vmatprep.subr.bf16.mxu1 %v869_v41 }
  0x2b   :  { %766 = vmatpush3.bf16.msra.mxu0 %v850_v45 }
  0x2c   :  { %767 = vmatprep.subr.bf16.mxu0 %v852_v46 }
  0x2d   :  { %795 = vmatpush3.bf16.msra.mxu1 %v857_v50 }
  0x2e   :  { %796 = vmatprep.subr.bf16.mxu1 %v869_v41 }
  0x2f   :  { %768 = vmatpush3.bf16.msra.mxu0 %v853_v48 }
  0x30   :  { %769 = vmatprep.subr.bf16.mxu0 %v855_v49 }
  0x31   :  { %797 = vmatpush3.bf16.msra.mxu1 %v860_v53 }
  0x32   :  { %798 = vmatprep.subr.bf16.mxu1 %v869_v41 }
  0x33   :  { %770 = vmatpush3.bf16.msra.mxu0 %v856_v51 }
  0x34   :  { %771 = vmatprep.subr.bf16.mxu0 %v858_v52 }
  0x35   :  { %799 = vmatpush3.bf16.msra.mxu1 %v863_v56 }
  0x36   :  { %800 = vmatprep.subr.bf16.mxu1 %v869_v41 }
  0x37   :  { %772 = vmatpush3.bf16.msra.mxu0 %v859_v54 }
  0x38   :  { %773 = vmatprep.subr.bf16.mxu0 %v861_v55 }
  0x39   :  { %801 = vmatpush3.bf16.msra.mxu1 %v866_v61 }
  0x3b   :  { %774 = vmatpush3.bf16.msra.mxu0 %v862_v59 }
  0x3c   :  { %775 = vmatprep.subr.bf16.mxu0 %v864_v60  ;;  %803 = vmatmul.mubr.msk.bf16.vlgmr.msra.gmra.mxu1 %vm482_vm1, %v841_v62 }
  0x3f   :  { %776 = vmatpush3.bf16.msra.mxu0 %v865_v63 }
  0x42   :  { %599 = vmatmul.mubr.bf16.vlgmr.msra.gmra.mxu0 %v659_v0 }
  0xe2   :  { %v733_v1 = vpop.f32.mrf.mxu0 }
  0xe4   :  { %v734_v2 = vpop.f32.mrf.mxu0  ;;  %v755_v3 = vpop.f32.mrf.mxu1 }
  0xe5   :  { %v735_v9 = vadd.f32 %v734_v2, %v733_v1 }
  0xe6   :  { %v736_v4 = vpop.f32.mrf.mxu0  ;;  %v756_v5 = vpop.f32.mrf.mxu1 }
  0xe7   :  { %v521_v12 = vadd.f32 %v735_v9, %v654_v10  ;;  %v757_v13 = vadd.f32 %v756_v5, %v755_v3 }
  0xe8   :  { %v737_v6 = vpop.f32.mrf.mxu0  ;;  %v758_v7 = vpop.f32.mrf.mxu1 }
  0xe9   :  { %v561_v18 = vadd.f32 %v757_v13, %v521_v12 }
  0xea   :  { %v759_v8 = vpop.f32.mrf.mxu1 }
  0xfc   :  { %v640_v11 = vpop.f32.mrf.mxu1 }
  0xfe   :  { %v804_v14 = vpop.f32.mrf.mxu1 }
 0x100   :  { %v643_v16 = vpop.f32.mrf.mxu1 }
 0x102   :  { %v777_v15 = vpop.f32.mrf.mxu0  ;;  %v805_v20 = vpop.f32.mrf.mxu1 }
 0x104   :  { %v778_v17 = vpop.f32.mrf.mxu0 }
 0x105   :  { %v779_v19 = vadd.f32 %v778_v17, %v777_v15 }
 0x106   :  { %v780_v21 = vpop.f32.mrf.mxu0 }
 0x107   :  { %v601_v22 = vadd.f32 %v779_v19, %v561_v18 }
 0x108   :  { %v781_v23 = vpop.f32.mrf.mxu0 }
 0x109   :  { %v641_v24 = vadd.f32 %v640_v11, %v601_v22 }
 0x10b   :  { %v646_v25 = vmax.f32 %v641_v24, 0.0 }
 0x10d   :  { %v647_v26 = vpack.c.bf16 %v646_v25, %v646_v25 }
 0x10f   :  { %649 = vst.msk [vmem:[%s1074_s3] sm:$0xf] %vm648_vm2, %v647_v26 }

// kernel: dvanet_forward.118
= control target key start
LH: loop header
LB: loop body
LE: loop exit
PB: predicated region body
PF: predicated region fallthrough
CT: control target
= control target key end

     0   :  { %v135_v0 = vmov 0.0   ;;  %vm136_vm0 = vmmov 0   ;;  %vm55_vm1 = vcmask 523264   ;;  %vm100_vm2 = vcmask 519168   ;;  %s178_s1 = inlined_call_operand.vmem [shape: bf16[64,64], index: 1, kind: input, shape index: {}]   ;;  %s179_s0 = inlined_call_operand.vmem [shape: bf16[8,64], index: 0, kind: input, shape index: {}]   ;;  %s180_s2 = inlined_call_operand.vmem [shape: f32[1,64], index: 2, kind: input, shape index: {}]   ;;  %s181_s3 = inlined_call_operand.vmem [shape: bf16[8,64], index: 3, kind: output, shape index: {}]  }
   0x1   :  { %117 = vmatprep.subr.bf16.mxu0 %v135_v0  ;;  %v131_v1 = vld [vmem:[%s178_s1 + $0x18] sm:$0xff]   ;;  %125 = vmatprep.mubr.msk.bf16.mxu0 %vm136_vm0, %v135_v0  ;;  %v132_v2 = vld [vmem:[%s178_s1 + $0x10] sm:$0xff]   ;;  %v133_v3 = vld [vmem:[%s178_s1 + $0x8] sm:$0xff]  }
   0x2   :  { %118 = vmatpush3.bf16.msra.mxu0 %v131_v1  ;;  %v134_v4 = vld [vmem:[%s178_s1] sm:$0xff]  }
   0x3   :  { %119 = vmatprep.subr.bf16.mxu0 %v135_v0  ;;  %v15_v5 = vld [vmem:[%s179_s0] sm:$0xf] }
   0x4   :  { %v106_v6 = vld [vmem:[%s180_s2] ss:$0 sm:$0xff] }
   0x6   :  { %120 = vmatpush3.bf16.msra.mxu0 %v132_v2 }
   0x7   :  { %121 = vmatprep.subr.bf16.mxu0 %v135_v0 }
   0xa   :  { %122 = vmatpush3.bf16.msra.mxu0 %v133_v3 }
   0xb   :  { %123 = vmatprep.subr.bf16.mxu0 %v135_v0 }
   0xe   :  { %124 = vmatpush3.bf16.msra.mxu0 %v134_v4 }
  0x11   :  { %126 = vmatmul.mubr.msk.bf16.vlgmr.msra.gmra.mxu0 %vm55_vm1, %v15_v5 }
  0xd1   :  { %v93_v7 = vpop.f32.mrf.mxu0 }
  0xd2   :  { %v94_v8 = vadd.f32 %v106_v6, %v93_v7 }
  0xd3   :  { %v127_v9 = vpop.f32.mrf.mxu0 }
  0xd4   :  { %v99_v10 = vpack.c.bf16 %v94_v8, %v94_v8 }
  0xd5   :  { %v96_v11 = vpop.f32.mrf.mxu0 }
  0xd6   :  { %101 = vst.msk [vmem:[%s181_s3] sm:$0xf] %vm100_vm2, %v99_v10 }
  0xd7   :  { %v128_v12 = vpop.f32.mrf.mxu0 }

// kernel: dvanet_forward.107
= control target key start
LH: loop header
LB: loop body
LE: loop exit
PB: predicated region body
PF: predicated region fallthrough
CT: control target
= control target key end

     0   :  { %vm941_vm0 = vcmask 523264   ;;  %vm1227_vm1 = vcmask 519168   ;;  %s1996_s1 = inlined_call_operand.vmem [shape: bf16[1728,64], index: 1, kind: input, shape index: {}]   ;;  %s1997_s0 = inlined_call_operand.vmem [shape: bf16[8,1728], index: 0, kind: input, shape index: {}]   ;;  %s1998_s2 = inlined_call_operand.vmem [shape: f32[1,64], index: 2, kind: input, shape index: {}]   ;;  %s1999_s3 = inlined_call_operand.vmem [shape: bf16[8,64], index: 3, kind: output, shape index: {}]  }
   0x1   :  { %v1490_v0 = vld [vmem:[%s1996_s1 + $0x78] sm:$0xff]   ;;  %v1492_v2 = vld [vmem:[%s1996_s1 + $0x70] sm:$0xff]   ;;  %v1494_v4 = vld [vmem:[%s1996_s1 + $0x68] sm:$0xff]  }
   0x2   :  { %v1491_v1 = vld [vmem:[%s1996_s1 + $0x38] sm:$0xff]   ;;  %1357 = vmatprep.subr.bf16.mxu1 %v1490_v0  ;;  %v1493_v3 = vld [vmem:[%s1996_s1 + $0x30] sm:$0xff]   ;;  %v1495_v5 = vld [vmem:[%s1996_s1 + $0x28] sm:$0xff]  }
   0x3   :  { %1358 = vmatpush3.bf16.msra.mxu1 %v1491_v1  ;;  %v1496_v6 = vld [vmem:[%s1996_s1 + $0x60] sm:$0xff]   ;;  %v1499_v7 = vld [vmem:[%s1996_s1 + $0x178] sm:$0xff]   ;;  %v1503_v11 = vld [vmem:[%s1996_s1 + $0x170] sm:$0xff]  }
   0x4   :  { %1359 = vmatprep.subr.bf16.mxu1 %v1492_v2  ;;  %v1497_v8 = vld [vmem:[%s1996_s1 + $0x20] sm:$0xff]   ;;  %1401 = vmatprep.subr.bf16.mxu0 %v1499_v7  ;;  %v1501_v9 = vld [vmem:[%s1996_s1 + $0x138] sm:$0xff]   ;;  %v1505_v13 = vld [vmem:[%s1996_s1 + $0x130] sm:$0xff]  }
   0x5   :  { %v1498_v10 = vld [vmem:[%s1996_s1 + $0x58] sm:$0xff]   ;;  %1402 = vmatpush3.bf16.msra.mxu0 %v1501_v9  ;;  %v1502_v14 = vld [vmem:[%s1996_s1 + $0x50] sm:$0xff]   ;;  %v1507_v15 = vld [vmem:[%s1996_s1 + $0x168] sm:$0xff]  }
   0x6   :  { %v1500_v12 = vld [vmem:[%s1996_s1 + $0x18] sm:$0xff]   ;;  %1403 = vmatprep.subr.bf16.mxu0 %v1503_v11  ;;  %v1504_v16 = vld [vmem:[%s1996_s1 + $0x10] sm:$0xff]   ;;  %v1509_v17 = vld [vmem:[%s1996_s1 + $0x128] sm:$0xff]  }
   0x7   :  { %1360 = vmatpush3.bf16.msra.mxu1 %v1493_v3  ;;  %v1506_v18 = vld [vmem:[%s1996_s1 + $0x48] sm:$0xff]   ;;  %v1511_v20 = vld [vmem:[%s1996_s1 + $0x160] sm:$0xff]   ;;  %v1517_v26 = vld [vmem:[%s1996_s1 + $0x158] sm:$0xff]  }
   0x8   :  { %1361 = vmatprep.subr.bf16.mxu1 %v1494_v4  ;;  %v1508_v19 = vld [vmem:[%s1996_s1 + $0x8] sm:$0xff]   ;;  %v1510_v21 = vld [vmem:[%s1996_s1 + $0x40] sm:$0xff]   ;;  %v1516_v27 = vld [vmem:[%s1996_s1 + $0xf8] sm:$0xff]  }
   0x9   :  { %1404 = vmatpush3.bf16.msra.mxu0 %v1505_v13  ;;  %v1513_v22 = vld [vmem:[%s1996_s1 + $0x120] sm:$0xff]   ;;  %v1519_v28 = vld [vmem:[%s1996_s1 + $0x118] sm:$0xff]   ;;  %v1521_v31 = vld [vmem:[%s1996_s1 + $0x150] sm:$0xff]  }
   0xa   :  { %1405 = vmatprep.subr.bf16.mxu0 %v1507_v15  ;;  %v15_v23 = vld [vmem:[%s1997_s0] sm:$0xff]  ;;  %v1518_v29 = vld [vmem:[%s1996_s1 + $0xb8] sm:$0xff]   ;;  %v1520_v32 = vld [vmem:[%s1996_s1 + $0xf0] sm:$0xff]  }
   0xb   :  { %1362 = vmatpush3.bf16.msra.mxu1 %v1495_v5  ;;  %v1512_v24 = vld [vmem:[%s1996_s1] sm:$0xff]   ;;  %v1235_v25 = vcombine.high %v15_v23, %v15_v23  ;;  %v1234_v30 = vcombine.low %v15_v23, %v15_v23  ;;  %v1523_v33 = vld [vmem:[%s1996_s1 + $0x110] sm:$0xff]   ;;  %v1525_v35 = vld [vmem:[%s1996_s1 + $0x148] sm:$0xff]  }
   0xc   :  { %1363 = vmatprep.subr.bf16.mxu1 %v1496_v6  ;;  %v1522_v34 = vld [vmem:[%s1996_s1 + $0xb0] sm:$0xff]   ;;  %v1524_v36 = vld [vmem:[%s1996_s1 + $0xe8] sm:$0xff]   ;;  %v1529_v39 = vld [vmem:[%s1996_s1 + $0x140] sm:$0xff]  }
   0xd   :  { %1406 = vmatpush3.bf16.msra.mxu0 %v1509_v17  ;;  %977 = vmatprep.mubr.bf16.mxu1 %v1235_v25  ;;  %v1527_v37 = vld [vmem:[%s1996_s1 + $0x108] sm:$0xff]   ;;  %v1528_v40 = vld [vmem:[%s1996_s1 + $0xe0] sm:$0xff]   ;;  %v17_v43 = vld [vmem:[%s1997_s0 + $0x10] sm:$0xff] }
   0xe   :  { %1407 = vmatprep.subr.bf16.mxu0 %v1511_v20  ;;  %v1526_v38 = vld [vmem:[%s1996_s1 + $0xa8] sm:$0xff]   ;;  %v1531_v41 = vld [vmem:[%s1996_s1 + $0x100] sm:$0xff]   ;;  %v1238_v44 = vcombine.low %v17_v43, %v17_v43  ;;  %v1239_v45 = vcombine.high %v17_v43, %v17_v43  ;;  %v1535_v46 = vld [vmem:[%s1996_s1 + $0x278] sm:$0xff]  }
   0xf   :  { %1364 = vmatpush3.bf16.msra.mxu1 %v1497_v8  ;;  %v1530_v42 = vld [vmem:[%s1996_s1 + $0xa0] sm:$0xff]   ;;  %v1532_v47 = vld [vmem:[%s1996_s1 + $0xd8] sm:$0xff]   ;;  %v1539_v50 = vld [vmem:[%s1996_s1 + $0x270] sm:$0xff]  }
  0x10   :  { %1365 = vmatprep.subr.bf16.mxu1 %v1498_v10  ;;  %1057 = vmatprep.mubr.bf16.mxu0 %v1239_v45  ;;  %v1537_v48 = vld [vmem:[%s1996_s1 + $0x238] sm:$0xff]   ;;  %v1538_v51 = vld [vmem:[%s1996_s1 + $0xd0] sm:$0xff]   ;;  %v1543_v54 = vld [vmem:[%s1996_s1 + $0x268] sm:$0xff]  }
  0x11   :  { %1408 = vmatpush3.bf16.msra.mxu0 %v1513_v22  ;;  %v1536_v49 = vld [vmem:[%s1996_s1 + $0x98] sm:$0xff]   ;;  %v1541_v52 = vld [vmem:[%s1996_s1 + $0x230] sm:$0xff]   ;;  %v1542_v55 = vld [vmem:[%s1996_s1 + $0xc8] sm:$0xff]  }
  0x12   :  { %1409 = vmatprep.subr.bf16.mxu0 %v1517_v26  ;;  %v1540_v53 = vld [vmem:[%s1996_s1 + $0x90] sm:$0xff]   ;;  %v1545_v56 = vld [vmem:[%s1996_s1 + $0x228] sm:$0xff]   ;;  %v1547_v58 = vld [vmem:[%s1996_s1 + $0x260] sm:$0xff]  }
  0x13   :  { %1366 = vmatpush3.bf16.msra.mxu1 %v1500_v12  ;;  %v1544_v57 = vld [vmem:[%s1996_s1 + $0x88] sm:$0xff]   ;;  %v1546_v59 = vld [vmem:[%s1996_s1 + $0xc0] sm:$0xff]   ;;  %v1553_v0 = vld [vmem:[%s1996_s1 + $0x258] sm:$0xff]  }
  0x14   :  { %1367 = vmatprep.subr.bf16.mxu1 %v1502_v14  ;;  %v1549_v60 = vld [vmem:[%s1996_s1 + $0x220] sm:$0xff]   ;;  %v16_v61 = vld [vmem:[%s1997_s0 + $0x8] sm:$0xff]  ;;  %v1552_v1 = vld [vmem:[%s1996_s1 + $0x1f8] sm:$0xff]  }
  0x15   :  { %1410 = vmatpush3.bf16.msra.mxu0 %v1519_v28  ;;  %v1548_v62 = vld [vmem:[%s1996_s1 + $0x80] sm:$0xff]   ;;  %v1237_v63 = vcombine.high %v16_v61, %v16_v61  ;;  %v1555_v2 = vld [vmem:[%s1996_s1 + $0x218] sm:$0xff]   ;;  %v1236_v4 = vcombine.low %v16_v61, %v16_v61  ;;  %v1557_v5 = vld [vmem:[%s1996_s1 + $0x250] sm:$0xff]  }
  0x16   :  { %1411 = vmatprep.subr.bf16.mxu0 %v1521_v31  ;;  %v1554_v3 = vld [vmem:[%s1996_s1 + $0x1b8] sm:$0xff]   ;;  %v1556_v6 = vld [vmem:[%s1996_s1 + $0x1f0] sm:$0xff]   ;;  %v1561_v9 = vld [vmem:[%s1996_s1 + $0x248] sm:$0xff]  }
  0x17   :  { %1368 = vmatpush3.bf16.msra.mxu1 %v1504_v16  ;;  %v1559_v7 = vld [vmem:[%s1996_s1 + $0x210] sm:$0xff]   ;;  %v1560_v10 = vld [vmem:[%s1996_s1 + $0x1e8] sm:$0xff]   ;;  %v1565_v13 = vld [vmem:[%s1996_s1 + $0x240] sm:$0xff]  }
  0x18   :  { %1369 = vmatprep.subr.bf16.mxu1 %v1506_v18  ;;  %v1558_v8 = vld [vmem:[%s1996_s1 + $0x1b0] sm:$0xff]   ;;  %v1563_v11 = vld [vmem:[%s1996_s1 + $0x208] sm:$0xff]   ;;  %v1564_v14 = vld [vmem:[%s1996_s1 + $0x1e0] sm:$0xff]  }
  0x19   :  { %1412 = vmatpush3.bf16.msra.mxu0 %v1523_v33  ;;  %v1562_v12 = vld [vmem:[%s1996_s1 + $0x1a8] sm:$0xff]   ;;  %v1567_v15 = vld [vmem:[%s1996_s1 + $0x200] sm:$0xff]   ;;  %v1568_v18 = vld [vmem:[%s1996_s1 + $0x1d8] sm:$0xff]  }
  0x1a   :  { %1413 = vmatprep.subr.bf16.mxu0 %v1525_v35  ;;  %v1566_v16 = vld [vmem:[%s1996_s1 + $0x1a0] sm:$0xff]   ;;  %v1572_v22 = vld [vmem:[%s1996_s1 + $0x338] sm:$0xff]   ;;  %v1573_v25 = vld [vmem:[%s1996_s1 + $0x1d0] sm:$0xff]  }
  0x1b   :  { %1370 = vmatpush3.bf16.msra.mxu1 %v1508_v19  ;;  %v19_v17 = vld [vmem:[%s1997_s0 + $0x20] sm:$0xff]  ;;  %v1571_v23 = vld [vmem:[%s1996_s1 + $0x198] sm:$0xff]   ;;  %v1574_v26 = vld [vmem:[%s1996_s1 + $0x190] sm:$0xff]  }
  0x1c   :  { %1371 = vmatprep.subr.bf16.mxu1 %v1510_v21  ;;  %v1242_v19 = vcombine.low %v19_v17, %v19_v17  ;;  %v1243_v20 = vcombine.high %v19_v17, %v19_v17  ;;  %v1612_v21 = vmov 0   ;;  %v1576_v28 = vld [vmem:[%s1996_s1 + $0x1c8] sm:$0xff]   ;;  %v1579_v33 = vld [vmem:[%s1996_s1 + $0x1c0] sm:$0xff]   ;;  %v1586_v35 = vld [vmem:[%s1996_s1 + $0x318] sm:$0xff]  }
  0x1d   :  { %1414 = vmatpush3.bf16.msra.mxu0 %v1527_v37  ;;  %v1590_v43 = vld [vmem:[%s1996_s1 + $0x2e8] sm:$0xff]   ;;  %v1595_v45 = vld [vmem:[%s1996_s1 + $0x300] sm:$0xff]  }
  0x1e   :  { %1415 = vmatprep.subr.bf16.mxu0 %v1529_v39  ;;  %v1589_v39 = vld [vmem:[%s1996_s1 + $0x310] sm:$0xff]   ;;  %v1607_v61 = vld [vmem:[%s1996_s1 + $0x340] sm:$0xff]  }
  0x1f   :  { %1372 = vmatpush3.bf16.msra.mxu1 %v1512_v24  ;;  %v1575_v24 = vld [vmem:[%s1996_s1 + $0x330] sm:$0xff]  }
  0x20   :  { %1379 = vmatprep.subr.bf16.mxu1 %v1516_v27  ;;  %v1578_v27 = vld [vmem:[%s1996_s1 + $0x328] sm:$0xff]  }
  0x21   :  { %1416 = vmatpush3.bf16.msra.mxu0 %v1531_v41  ;;  %v1588_v41 = vld [vmem:[%s1996_s1 + $0x2b0] sm:$0xff]  }
  0x22   :  { %978 = vmatmul.mubr.bf16.vlgmr.msra.gmra.mxu1 %v1234_v30  ;;  %1445 = vmatprep.subr.bf16.mxu0 %v1535_v46  ;;  %v1577_v30 = vld [vmem:[%s1996_s1 + $0x188] sm:$0xff]   ;;  %v1593_v46 = vld [vmem:[%s1996_s1 + $0x2e0] sm:$0xff]  }
  0x23   :  { %1380 = vmatpush3.bf16.msra.mxu1 %v1518_v29  ;;  %1017 = vmatprep.mubr.bf16.mxu1 %v1237_v63  ;;  %v18_v29 = vld [vmem:[%s1997_s0 + $0x18] sm:$0xff] }
  0x24   :  { %1381 = vmatprep.subr.bf16.mxu1 %v1520_v32  ;;  %1058 = vmatmul.mubr.bf16.vlgmr.msra.gmra.mxu0 %v1238_v44  ;;  %v1241_v31 = vcombine.high %v18_v29, %v18_v29  ;;  %v1581_v32 = vld [vmem:[%s1996_s1 + $0x320] sm:$0xff]   ;;  %v1240_v37 = vcombine.low %v18_v29, %v18_v29  ;;  %v1591_v44 = vld [vmem:[%s1996_s1 + $0x2a8] sm:$0xff]  }
  0x25   :  { %1446 = vmatpush3.bf16.msra.mxu0 %v1537_v48  ;;  %1137 = vmatprep.mubr.bf16.mxu0 %v1243_v20  ;;  %v1598_v48 = vld [vmem:[%s1996_s1 + $0x358] sm:$0xff]  }
  0x26   :  { %1447 = vmatprep.subr.bf16.mxu0 %v1539_v50  ;;  %v20_v50 = vld [vmem:[%s1997_s0 + $0x28] sm:$0xff] }
  0x27   :  { %1382 = vmatpush3.bf16.msra.mxu1 %v1522_v34  ;;  %v1580_v34 = vld [vmem:[%s1996_s1 + $0x180] sm:$0xff]  }
  0x28   :  { %1383 = vmatprep.subr.bf16.mxu1 %v1524_v36  ;;  %v1584_v36 = vld [vmem:[%s1996_s1 + $0x2f8] sm:$0xff]  }
  0x29   :  { %1448 = vmatpush3.bf16.msra.mxu0 %v1541_v52  ;;  %v21_v52 = vld [vmem:[%s1997_s0 + $0x30] sm:$0xff] }
  0x2a   :  { %1449 = vmatprep.subr.bf16.mxu0 %v1543_v54  ;;  %v1601_v54 = vld [vmem:[%s1996_s1 + $0x350] sm:$0xff]   ;;  %v1246_v63 = vcombine.low %v21_v52, %v21_v52 }
  0x2b   :  { %1384 = vmatpush3.bf16.msra.mxu1 %v1526_v38  ;;  %v1585_v38 = vld [vmem:[%s1996_s1 + $0x2b8] sm:$0xff]  }
  0x2c   :  { %1385 = vmatprep.subr.bf16.mxu1 %v1528_v40  ;;  %v1587_v40 = vld [vmem:[%s1996_s1 + $0x2f0] sm:$0xff]  }
  0x2d   :  { %1450 = vmatpush3.bf16.msra.mxu0 %v1545_v56  ;;  %v1599_v56 = vld [vmem:[%s1996_s1 + $0x2d0] sm:$0xff]  }
  0x2e   :  { %1451 = vmatprep.subr.bf16.mxu0 %v1547_v58  ;;  %v1604_v58 = vld [vmem:[%s1996_s1 + $0x348] sm:$0xff]  }
  0x2f   :  { %1386 = vmatpush3.bf16.msra.mxu1 %v1530_v42  ;;  %v1592_v42 = vld [vmem:[%s1996_s1 + $0x308] sm:$0xff]  }
  0x30   :  { %1387 = vmatprep.subr.bf16.mxu1 %v1532_v47  ;;  %v1594_v47 = vld [vmem:[%s1996_s1 + $0x2a0] sm:$0xff]  }
  0x31   :  { %1452 = vmatpush3.bf16.msra.mxu0 %v1549_v60  ;;  %v1603_v60 = vld [vmem:[%s1996_s1 + $0x288] sm:$0xff]  }
  0x32   :  { %1453 = vmatprep.subr.bf16.mxu0 %v1553_v0  ;;  %v1606_v0 = vld [vmem:[%s1996_s1 + $0x280] sm:$0xff]  }
  0x33   :  { %1388 = vmatpush3.bf16.msra.mxu1 %v1536_v49  ;;  %v1596_v49 = vld [vmem:[%s1996_s1 + $0x2d8] sm:$0xff]  }
  0x34   :  { %1389 = vmatprep.subr.bf16.mxu1 %v1538_v51  ;;  %v1245_v51 = vcombine.high %v20_v50, %v20_v50 }
  0x35   :  { %1454 = vmatpush3.bf16.msra.mxu0 %v1555_v2 }
  0x36   :  { %1455 = vmatprep.subr.bf16.mxu0 %v1557_v5 }
  0x37   :  { %1390 = vmatpush3.bf16.msra.mxu1 %v1540_v53  ;;  %v1597_v53 = vld [vmem:[%s1996_s1 + $0x298] sm:$0xff]  }
  0x38   :  { %1391 = vmatprep.subr.bf16.mxu1 %v1542_v55  ;;  %v1247_v55 = vcombine.high %v21_v52, %v21_v52 }
  0x39   :  { %1456 = vmatpush3.bf16.msra.mxu0 %v1559_v7 }
  0x3a   :  { %1457 = vmatprep.subr.bf16.mxu0 %v1561_v9 }
  0x3b   :  { %1392 = vmatpush3.bf16.msra.mxu1 %v1544_v57  ;;  %v1600_v57 = vld [vmem:[%s1996_s1 + $0x290] sm:$0xff]  }
  0x3c   :  { %1393 = vmatprep.subr.bf16.mxu1 %v1546_v59  ;;  %v1602_v59 = vld [vmem:[%s1996_s1 + $0x2c8] sm:$0xff]  }
  0x3d   :  { %1458 = vmatpush3.bf16.msra.mxu0 %v1563_v11 }
  0x3e   :  { %1459 = vmatprep.subr.bf16.mxu0 %v1565_v13 }
  0x3f   :  { %1394 = vmatpush3.bf16.msra.mxu1 %v1548_v62  ;;  %v1605_v62 = vld [vmem:[%s1996_s1 + $0x2c0] sm:$0xff]  }
  0x40   :  { %1423 = vmatprep.subr.bf16.mxu1 %v1552_v1  ;;  %v1244_v1 = vcombine.low %v20_v50, %v20_v50 }
  0x41   :  { %1460 = vmatpush3.bf16.msra.mxu0 %v1567_v15 }
  0x42   :  { %1018 = vmatmul.mubr.bf16.vlgmr.msra.gmra.mxu1 %v1236_v4  ;;  %1185 = vmatprep.subr.bf16.mxu0 %v1612_v21 }
  0x43   :  { %1424 = vmatpush3.bf16.msra.mxu1 %v1554_v3  ;;  %1097 = vmatprep.mubr.bf16.mxu1 %v1241_v31 }
  0x44   :  { %1425 = vmatprep.subr.bf16.mxu1 %v1556_v6  ;;  %1138 = vmatmul.mubr.bf16.vlgmr.msra.gmra.mxu0 %v1242_v19 }
  0x45   :  { %1186 = vmatpush1.bf16.msra.mxu0 %v1572_v22  ;;  %1356 = vmatprep.mubr.msk.bf16.mxu0 %vm941_vm0, %v1247_v55 }
  0x46   :  { %1187 = vmatprep.subr.bf16.mxu0 %v1612_v21 }
  0x47   :  { %1426 = vmatpush3.bf16.msra.mxu1 %v1558_v8 }
  0x48   :  { %1427 = vmatprep.subr.bf16.mxu1 %v1560_v10 }
  0x49   :  { %1188 = vmatpush1.bf16.msra.mxu0 %v1575_v24 }
  0x4a   :  { %1189 = vmatprep.subr.bf16.mxu0 %v1612_v21 }
  0x4b   :  { %1428 = vmatpush3.bf16.msra.mxu1 %v1562_v12  ;;  %v1233_v12 = vld [vmem:[%s1998_s2] ss:$0 sm:$0xff] }
  0x4c   :  { %1429 = vmatprep.subr.bf16.mxu1 %v1564_v14 }
  0x4d   :  { %1190 = vmatpush1.bf16.msra.mxu0 %v1578_v27 }
  0x4e   :  { %1191 = vmatprep.subr.bf16.mxu0 %v1612_v21 }
  0x4f   :  { %1430 = vmatpush3.bf16.msra.mxu1 %v1566_v16 }
  0x50   :  { %1431 = vmatprep.subr.bf16.mxu1 %v1568_v18 }
  0x51   :  { %1192 = vmatpush1.bf16.msra.mxu0 %v1581_v32 }
  0x52   :  { %1193 = vmatprep.subr.bf16.mxu0 %v1612_v21 }
  0x53   :  { %1432 = vmatpush3.bf16.msra.mxu1 %v1571_v23 }
  0x54   :  { %1433 = vmatprep.subr.bf16.mxu1 %v1573_v25 }
  0x55   :  { %1194 = vmatpush1.bf16.msra.mxu0 %v1586_v35 }
  0x56   :  { %1195 = vmatprep.subr.bf16.mxu0 %v1612_v21 }
  0x57   :  { %1434 = vmatpush3.bf16.msra.mxu1 %v1574_v26 }
  0x58   :  { %1435 = vmatprep.subr.bf16.mxu1 %v1576_v28 }
  0x59   :  { %1196 = vmatpush1.bf16.msra.mxu0 %v1589_v39 }
  0x5a   :  { %1197 = vmatprep.subr.bf16.mxu0 %v1612_v21 }
  0x5b   :  { %1436 = vmatpush3.bf16.msra.mxu1 %v1577_v30 }
  0x5c   :  { %1437 = vmatprep.subr.bf16.mxu1 %v1579_v33 }
  0x5d   :  { %1198 = vmatpush1.bf16.msra.mxu0 %v1592_v42 }
  0x5e   :  { %1199 = vmatprep.subr.bf16.mxu0 %v1612_v21 }
  0x5f   :  { %1438 = vmatpush3.bf16.msra.mxu1 %v1580_v34 }
  0x60   :  { %1467 = vmatprep.subr.bf16.mxu1 %v1584_v36 }
  0x61   :  { %1200 = vmatpush1.bf16.msra.mxu0 %v1595_v45 }
  0x62   :  { %1098 = vmatmul.mubr.bf16.vlgmr.msra.gmra.mxu1 %v1240_v37  ;;  %1209 = vmatprep.subr.bf16.mxu0 %v1612_v21 }
  0x63   :  { %1468 = vmatpush3.bf16.msra.mxu1 %v1585_v38  ;;  %1177 = vmatprep.mubr.bf16.mxu1 %v1245_v51 }
  0x64   :  { %1469 = vmatprep.subr.bf16.mxu1 %v1587_v40 }
  0x65   :  { %1210 = vmatpush2.bf16.msra.mxu0 %v1598_v48 }
  0x66   :  { %1211 = vmatprep.subr.bf16.mxu0 %v1612_v21 }
  0x67   :  { %1470 = vmatpush3.bf16.msra.mxu1 %v1588_v41 }
  0x68   :  { %1471 = vmatprep.subr.bf16.mxu1 %v1590_v43 }
  0x69   :  { %1212 = vmatpush2.bf16.msra.mxu0 %v1601_v54 }
  0x6a   :  { %1213 = vmatprep.subr.bf16.mxu0 %v1612_v21 }
  0x6b   :  { %1472 = vmatpush3.bf16.msra.mxu1 %v1591_v44 }
  0x6c   :  { %1473 = vmatprep.subr.bf16.mxu1 %v1593_v46 }
  0x6d   :  { %1214 = vmatpush2.bf16.msra.mxu0 %v1604_v58 }
  0x6e   :  { %1215 = vmatprep.subr.bf16.mxu0 %v1612_v21 }
  0x6f   :  { %1474 = vmatpush3.bf16.msra.mxu1 %v1594_v47 }
  0x70   :  { %1475 = vmatprep.subr.bf16.mxu1 %v1596_v49 }
  0x71   :  { %1216 = vmatpush2.bf16.msra.mxu0 %v1607_v61 }
  0x73   :  { %1476 = vmatpush3.bf16.msra.mxu1 %v1597_v53 }
  0x74   :  { %1477 = vmatprep.subr.bf16.mxu1 %v1599_v56  ;;  %1218 = vmatmul.mubr.bf16.vlgmr.msra.gmra.mxu0 %v1246_v63 }
  0x77   :  { %1478 = vmatpush3.bf16.msra.mxu1 %v1600_v57 }
  0x78   :  { %1479 = vmatprep.subr.bf16.mxu1 %v1602_v59 }
  0x7b   :  { %1480 = vmatpush3.bf16.msra.mxu1 %v1603_v60 }
  0x7c   :  { %1481 = vmatprep.subr.bf16.mxu1 %v1605_v62 }
  0x7f   :  { %1482 = vmatpush3.bf16.msra.mxu1 %v1606_v0 }
  0x82   :  { %1178 = vmatmul.mubr.bf16.vlgmr.msra.gmra.mxu1 %v1244_v1 }
  0xe2   :  { %v1373_v2 = vpop.f32.mrf.mxu1 }
  0xe4   :  { %v1374_v3 = vpop.f32.mrf.mxu1  ;;  %v1417_v7 = vpop.f32.mrf.mxu0 }
  0xe5   :  { %v1375_v4 = vadd.f32 %v1374_v3, %v1373_v2 }
  0xe6   :  { %v1376_v5 = vpop.f32.mrf.mxu1  ;;  %v1418_v8 = vpop.f32.mrf.mxu0 }
  0xe7   :  { %v1419_v9 = vadd.f32 %v1418_v8, %v1417_v7  ;;  %v980_v15 = vadd.f32 %v1375_v4, %v1233_v12 }
  0xe8   :  { %v1377_v6 = vpop.f32.mrf.mxu1  ;;  %v1420_v10 = vpop.f32.mrf.mxu0 }
  0xea   :  { %v1421_v11 = vpop.f32.mrf.mxu0 }
 0x102   :  { %v1395_v13 = vpop.f32.mrf.mxu1 }
 0x104   :  { %v1396_v14 = vpop.f32.mrf.mxu1  ;;  %v1461_v21 = vpop.f32.mrf.mxu0 }
 0x105   :  { %v1397_v16 = vadd.f32 %v1396_v14, %v1395_v13 }
 0x106   :  { %v1398_v17 = vpop.f32.mrf.mxu1  ;;  %v1462_v22 = vpop.f32.mrf.mxu0 }
 0x107   :  { %v1020_v18 = vadd.f32 %v1397_v16, %v980_v15  ;;  %v1463_v35 = vadd.f32 %v1462_v22, %v1461_v21 }
 0x108   :  { %v1399_v19 = vpop.f32.mrf.mxu1  ;;  %v1464_v23 = vpop.f32.mrf.mxu0 }
 0x109   :  { %v1060_v20 = vadd.f32 %v1419_v9, %v1020_v18 }
 0x10a   :  { %v1465_v24 = vpop.f32.mrf.mxu0 }
 0x122   :  { %v1439_v25 = vpop.f32.mrf.mxu1 }
 0x124   :  { %v1440_v26 = vpop.f32.mrf.mxu1 }
 0x125   :  { %v1441_v29 = vadd.f32 %v1440_v26, %v1439_v25 }
 0x126   :  { %v1442_v27 = vpop.f32.mrf.mxu1 }
 0x127   :  { %v1100_v32 = vadd.f32 %v1441_v29, %v1060_v20 }
 0x128   :  { %v1443_v28 = vpop.f32.mrf.mxu1 }
 0x129   :  { %v1140_v38 = vadd.f32 %v1463_v35, %v1100_v32 }
 0x134   :  { %v1219_v30 = vpop.f32.mrf.mxu0 }
 0x136   :  { %v1221_v31 = vpop.f32.mrf.mxu0 }
 0x138   :  { %v1222_v34 = vpop.f32.mrf.mxu0 }
 0x13a   :  { %v1223_v37 = vpop.f32.mrf.mxu0 }
 0x142   :  { %v1483_v33 = vpop.f32.mrf.mxu1 }
 0x144   :  { %v1484_v36 = vpop.f32.mrf.mxu1 }
 0x145   :  { %v1485_v39 = vadd.f32 %v1484_v36, %v1483_v33 }
 0x146   :  { %v1486_v40 = vpop.f32.mrf.mxu1 }
 0x147   :  { %v1180_v41 = vadd.f32 %v1485_v39, %v1140_v38 }
 0x148   :  { %v1487_v42 = vpop.f32.mrf.mxu1 }
 0x149   :  { %v1220_v43 = vadd.f32 %v1219_v30, %v1180_v41 }
 0x14b   :  { %v1225_v44 = vmax.f32 %v1220_v43, 0.0 }
 0x14d   :  { %v1226_v45 = vpack.c.bf16 %v1225_v44, %v1225_v44 }
 0x14f   :  { %1228 = vst.msk [vmem:[%s1999_s3] sm:$0xf] %vm1227_vm1, %v1226_v45 }

// kernel: dvanet_forward.108
= control target key start
LH: loop header
LB: loop body
LE: loop exit
PB: predicated region body
PF: predicated region fallthrough
CT: control target
= control target key end

     0   :  { %v1642_v12 = vmov 1966171168   ;;  %v240_v14 = vlaneseq  ;;  %vm993_vm0 = vcmask 523264   ;;  %vm1279_vm1 = vcmask 1040384   ;;  %s2069_s1 = inlined_call_operand.vmem [shape: bf16[1728,128], index: 1, kind: input, shape index: {}]   ;;  %s2070_s0 = inlined_call_operand.vmem [shape: bf16[1,1728], index: 0, kind: input, shape index: {}]   ;;  %s2071_s2 = inlined_call_operand.vmem [shape: f32[1,128], index: 2, kind: input, shape index: {}]   ;;  %s2072_s3 = inlined_call_operand.vmem [shape: bf16[1,128], index: 3, kind: output, shape index: {}]  }
   0x1   :  { %v1532_v0 = vld [vmem:[%s2069_s1 + $0x78] sm:$0xff]   ;;  %v1534_v2 = vld [vmem:[%s2069_s1 + $0x70] sm:$0xff]   ;;  %v1536_v4 = vld [vmem:[%s2069_s1 + $0x68] sm:$0xff]   ;;  %v238_v13 = vunpack.c.l.s4 %v1642_v12  ;;  %vm1280_vm2 = vsmask.f32 256 }
   0x2   :  { %v1533_v1 = vld [vmem:[%s2069_s1 + $0x38] sm:$0xff]   ;;  %1398 = vmatprep.subr.bf16.mxu1 %v1532_v0  ;;  %v1535_v3 = vld [vmem:[%s2069_s1 + $0x30] sm:$0xff]   ;;  %v1537_v5 = vld [vmem:[%s2069_s1 + $0x28] sm:$0xff]   ;;  %v241_v20 = vshrl.u32 %v240_v14, 7 }
   0x3   :  { %1399 = vmatpush3.bf16.msra.mxu1 %v1533_v1  ;;  %v1538_v6 = vld [vmem:[%s2069_s1 + $0x60] sm:$0xff]   ;;  %v1541_v7 = vld [vmem:[%s2069_s1 + $0x178] sm:$0xff]   ;;  %v1545_v11 = vld [vmem:[%s2069_s1 + $0x170] sm:$0xff]   ;;  %v239_v19 = vunpack.c.0.s8 %v238_v13 }
   0x4   :  { %1400 = vmatprep.subr.bf16.mxu1 %v1534_v2  ;;  %v1539_v8 = vld [vmem:[%s2069_s1 + $0x20] sm:$0xff]   ;;  %1442 = vmatprep.subr.bf16.mxu0 %v1541_v7  ;;  %v1543_v9 = vld [vmem:[%s2069_s1 + $0x138] sm:$0xff]   ;;  %v1547_v16 = vld [vmem:[%s2069_s1 + $0x130] sm:$0xff]  }
   0x5   :  { %v1540_v10 = vld [vmem:[%s2069_s1 + $0x58] sm:$0xff]   ;;  %1443 = vmatpush3.bf16.msra.mxu0 %v1543_v9  ;;  %v1544_v17 = vld [vmem:[%s2069_s1 + $0x50] sm:$0xff]   ;;  %v1549_v18 = vld [vmem:[%s2069_s1 + $0x168] sm:$0xff]   ;;  %v1724_v25 = vsub.s32 %v239_v19, %v241_v20 }
   0x6   :  { %v1542_v15 = vld [vmem:[%s2069_s1 + $0x18] sm:$0xff]   ;;  %1444 = vmatprep.subr.bf16.mxu0 %v1545_v11  ;;  %v1546_v21 = vld [vmem:[%s2069_s1 + $0x10] sm:$0xff]   ;;  %v1551_v22 = vld [vmem:[%s2069_s1 + $0x128] sm:$0xff]  }
   0x7   :  { %1401 = vmatpush3.bf16.msra.mxu1 %v1535_v3  ;;  %v1548_v23 = vld [vmem:[%s2069_s1 + $0x48] sm:$0xff]   ;;  %v1553_v24 = vld [vmem:[%s2069_s1 + $0x160] sm:$0xff]   ;;  %v1558_v33 = vld [vmem:[%s2069_s1 + $0x158] sm:$0xff]  }
   0x8   :  { %1402 = vmatprep.subr.bf16.mxu1 %v1536_v4  ;;  %v1550_v26 = vld [vmem:[%s2069_s1 + $0x8] sm:$0xff]   ;;  %v1555_v27 = vld [vmem:[%s2069_s1 + $0x120] sm:$0xff]   ;;  %v1557_v35 = vld [vmem:[%s2069_s1 + $0xf8] sm:$0xff]  }
   0x9   :  { %1445 = vmatpush3.bf16.msra.mxu0 %v1547_v16  ;;  %v1552_v28 = vld [vmem:[%s2069_s1 + $0x40] sm:$0xff]   ;;  %v1560_v37 = vld [vmem:[%s2069_s1 + $0x118] sm:$0xff]   ;;  %v1755_v38 = vld [vmem:[%s2070_s0 + $0x8] sm:$0x3f] }
   0xa   :  { %1446 = vmatprep.subr.bf16.mxu0 %v1549_v18  ;;  %v15_v29 = vld [vmem:[%s2070_s0] sm:$0xff]  ;;  %v1559_v40 = vld [vmem:[%s2069_s1 + $0xb8] sm:$0xff]   ;;  %v1562_v43 = vld [vmem:[%s2069_s1 + $0x150] sm:$0xff]   ;;  %v1786_v50 = vrot.slane %v1755_v38, %v1724_v25 }
   0xb   :  { %1403 = vmatpush3.bf16.msra.mxu1 %v1537_v5  ;;  %v1554_v30 = vld [vmem:[%s2069_s1] sm:$0xff]   ;;  %v243_v31 = vrot.slane %v15_v29, %v1724_v25  ;;  %v236_v32 = vcombine.high %v15_v29, %v15_v29  ;;  %v1561_v45 = vld [vmem:[%s2069_s1 + $0xf0] sm:$0xff]   ;;  %v1566_v49 = vld [vmem:[%s2069_s1 + $0x148] sm:$0xff]  }
   0xc   :  { %1404 = vmatprep.subr.bf16.mxu1 %v1538_v6  ;;  %v1564_v47 = vld [vmem:[%s2069_s1 + $0x110] sm:$0xff]   ;;  %v1565_v51 = vld [vmem:[%s2069_s1 + $0xe8] sm:$0xff]   ;;  %v1570_v54 = vld [vmem:[%s2069_s1 + $0x140] sm:$0xff]   ;;  %v300_v55 = vcombine.high %v1786_v50, %v1786_v50 }
   0xd   :  { %1447 = vmatpush3.bf16.msra.mxu0 %v1551_v22  ;;  %v251_v34 = vcombine.high %v243_v31, %v243_v31  ;;  %v250_v36 = vrot.slane %v236_v32, %v1724_v25  ;;  %v1762_v42 = vrot.slane %v243_v31, %v1724_v25  ;;  %v1563_v48 = vld [vmem:[%s2069_s1 + $0xb0] sm:$0xff]   ;;  %v1568_v52 = vld [vmem:[%s2069_s1 + $0x108] sm:$0xff]   ;;  %v1569_v56 = vld [vmem:[%s2069_s1 + $0xe0] sm:$0xff]  }
   0xe   :  { %1448 = vmatprep.subr.bf16.mxu0 %v1553_v24  ;;  %v1567_v53 = vld [vmem:[%s2069_s1 + $0xa8] sm:$0xff]   ;;  %v1572_v57 = vld [vmem:[%s2069_s1 + $0x100] sm:$0xff]   ;;  %v1575_v60 = vld [vmem:[%s2069_s1 + $0x278] sm:$0xff]   ;;  %v1818_v61 = vrot.slane %v300_v55, %v1724_v25 }
   0xf   :  { %1405 = vmatpush3.bf16.msra.mxu1 %v1539_v8  ;;  %v273_v39 = vrot.slane %v251_v34, %v1724_v25  ;;  %v252_v41 = vcombine.high %v250_v36, %v250_v36  ;;  %v1571_v58 = vld [vmem:[%s2069_s1 + $0xa0] sm:$0xff]   ;;  %v1812_v59 = vrot.slane %v250_v36, %v1724_v25  ;;  %v1573_v62 = vld [vmem:[%s2069_s1 + $0xd8] sm:$0xff]   ;;  %v1579_v1 = vld [vmem:[%s2069_s1 + $0x270] sm:$0xff]   ;;  %v281_v18 = vcombine.high %v1762_v42, %v1762_v42 }
  0x10   :  { %1406 = vmatprep.subr.bf16.mxu1 %v1540_v10  ;;  %v1577_v63 = vld [vmem:[%s2069_s1 + $0x238] sm:$0xff]   ;;  %v1578_v2 = vld [vmem:[%s2069_s1 + $0xd0] sm:$0xff]   ;;  %v1583_v5 = vld [vmem:[%s2069_s1 + $0x268] sm:$0xff]   ;;  %v1925_v34 = vrot.slane %v1786_v50, %v1724_v25 }
  0x11   :  { %1449 = vmatpush3.bf16.msra.mxu0 %v1555_v27  ;;  %v283_v44 = vcombine.high %v273_v39, %v273_v39  ;;  %1029 = vmatprep.mubr.bf16.mxu1 %v273_v39  ;;  %v1771_v46 = vrot.slane %v252_v41, %v1724_v25  ;;  %v1576_v0 = vld [vmem:[%s2069_s1 + $0x98] sm:$0xff]   ;;  %v1581_v3 = vld [vmem:[%s2069_s1 + $0x230] sm:$0xff]   ;;  %v1582_v6 = vld [vmem:[%s2069_s1 + $0xc8] sm:$0xff]  }
  0x12   :  { %1450 = vmatprep.subr.bf16.mxu0 %v1558_v33  ;;  %v1580_v4 = vld [vmem:[%s2069_s1 + $0x90] sm:$0xff]   ;;  %v1585_v7 = vld [vmem:[%s2069_s1 + $0x228] sm:$0xff]   ;;  %v1587_v9 = vld [vmem:[%s2069_s1 + $0x260] sm:$0xff]  }
  0x13   :  { %1407 = vmatpush3.bf16.msra.mxu1 %v1542_v15  ;;  %1109 = vmatprep.mubr.bf16.mxu0 %v1771_v46  ;;  %v1584_v8 = vld [vmem:[%s2069_s1 + $0x88] sm:$0xff]   ;;  %v1586_v10 = vld [vmem:[%s2069_s1 + $0xc0] sm:$0xff]   ;;  %v1591_v13 = vld [vmem:[%s2069_s1 + $0x258] sm:$0xff]   ;;  %v284_v20 = vcombine.high %v1771_v46, %v1771_v46 }
  0x14   :  { %1408 = vmatprep.subr.bf16.mxu1 %v1544_v17  ;;  %v1589_v11 = vld [vmem:[%s2069_s1 + $0x220] sm:$0xff]   ;;  %v1590_v14 = vld [vmem:[%s2069_s1 + $0x1f8] sm:$0xff]   ;;  %v285_v17 = vcombine.high %v1755_v38, %v1755_v38  ;;  %v1595_v19 = vld [vmem:[%s2069_s1 + $0x250] sm:$0xff]  }
  0x15   :  { %1451 = vmatpush3.bf16.msra.mxu0 %v1560_v37  ;;  %v1588_v12 = vld [vmem:[%s2069_s1 + $0x80] sm:$0xff]   ;;  %v1593_v15 = vld [vmem:[%s2069_s1 + $0x218] sm:$0xff]   ;;  %v1597_v22 = vld [vmem:[%s2069_s1 + $0x210] sm:$0xff]   ;;  %v1643_v37 = vmov 0  }
  0x16   :  { %1452 = vmatprep.subr.bf16.mxu0 %v1562_v43  ;;  %v1592_v16 = vld [vmem:[%s2069_s1 + $0x1b8] sm:$0xff]   ;;  %v1599_v24 = vld [vmem:[%s2069_s1 + $0x248] sm:$0xff]   ;;  %v1602_v32 = vld [vmem:[%s2069_s1 + $0x1e0] sm:$0xff]  }
  0x17   :  { %1409 = vmatpush3.bf16.msra.mxu1 %v1546_v21  ;;  %v1594_v21 = vld [vmem:[%s2069_s1 + $0x1f0] sm:$0xff]   ;;  %v1598_v27 = vld [vmem:[%s2069_s1 + $0x1e8] sm:$0xff]   ;;  %v1605_v33 = vld [vmem:[%s2069_s1 + $0x200] sm:$0xff]  }
  0x18   :  { %1410 = vmatprep.subr.bf16.mxu1 %v1548_v23  ;;  %v1596_v23 = vld [vmem:[%s2069_s1 + $0x1b0] sm:$0xff]   ;;  %v1600_v29 = vld [vmem:[%s2069_s1 + $0x1a8] sm:$0xff]   ;;  %v1608_v38 = vld [vmem:[%s2069_s1 + $0x338] sm:$0xff]  }
  0x19   :  { %1453 = vmatpush3.bf16.msra.mxu0 %v1564_v47  ;;  %v1606_v39 = vld [vmem:[%s2069_s1 + $0x1d8] sm:$0xff]   ;;  %v1614_v43 = vld [vmem:[%s2069_s1 + $0x328] sm:$0xff]   ;;  %v1617_v46 = vld [vmem:[%s2069_s1 + $0x320] sm:$0xff]  }
  0x1a   :  { %1454 = vmatprep.subr.bf16.mxu0 %v1566_v49  ;;  %v1607_v41 = vld [vmem:[%s2069_s1 + $0x198] sm:$0xff]   ;;  %v1613_v47 = vld [vmem:[%s2069_s1 + $0x188] sm:$0xff]   ;;  %v1616_v50 = vld [vmem:[%s2069_s1 + $0x180] sm:$0xff]  }
  0x1b   :  { %1411 = vmatpush3.bf16.msra.mxu1 %v1550_v26  ;;  %v1901_v26 = vrot.slane %v285_v17, %v1724_v25  ;;  %v1620_v49 = vld [vmem:[%s2069_s1 + $0x318] sm:$0xff]   ;;  %v1621_v55 = vld [vmem:[%s2069_s1 + $0x2f0] sm:$0xff]   ;;  %vm1281_vm3 = vmand %vm1279_vm1, %vm1280_vm2 }
  0x1c   :  { %1412 = vmatprep.subr.bf16.mxu1 %v1552_v28  ;;  %v1601_v28 = vld [vmem:[%s2069_s1 + $0x208] sm:$0xff]  }
  0x1d   :  { %1455 = vmatpush3.bf16.msra.mxu0 %v1568_v52  ;;  %v301_v31 = vcombine.high %v1901_v26, %v1901_v26  ;;  %v282_v52 = vcombine.high %v1812_v59, %v1812_v59 }
  0x1e   :  { %1456 = vmatprep.subr.bf16.mxu0 %v1570_v54  ;;  %v1619_v54 = vld [vmem:[%s2069_s1 + $0x2b8] sm:$0xff]  }
  0x1f   :  { %1413 = vmatpush3.bf16.msra.mxu1 %v1554_v30  ;;  %v1603_v30 = vld [vmem:[%s2069_s1 + $0x240] sm:$0xff]   ;;  %v329_v36 = vrot.slane %v301_v31, %v1724_v25 }
  0x20   :  { %1420 = vmatprep.subr.bf16.mxu1 %v1557_v35  ;;  %v1604_v35 = vld [vmem:[%s2069_s1 + $0x1a0] sm:$0xff]  }
  0x21   :  { %1457 = vmatpush3.bf16.msra.mxu0 %v1572_v57  ;;  %v1626_v57 = vld [vmem:[%s2069_s1 + $0x308] sm:$0xff]  }
  0x22   :  { %1030 = vmatmul.mubr.bf16.vlgmr.msra.gmra.mxu1 %v1762_v42  ;;  %1486 = vmatprep.subr.bf16.mxu0 %v1575_v60  ;;  %v1609_v42 = vld [vmem:[%s2069_s1 + $0x1d0] sm:$0xff]   ;;  %v1629_v60 = vld [vmem:[%s2069_s1 + $0x300] sm:$0xff]  }
  0x23   :  { %1421 = vmatpush3.bf16.msra.mxu1 %v1559_v40  ;;  %1069 = vmatprep.mubr.bf16.mxu1 %v283_v44  ;;  %v1611_v40 = vld [vmem:[%s2069_s1 + $0x330] sm:$0xff]  }
  0x24   :  { %1422 = vmatprep.subr.bf16.mxu1 %v1561_v45  ;;  %1110 = vmatmul.mubr.bf16.vlgmr.msra.gmra.mxu0 %v1812_v59  ;;  %v1610_v44 = vld [vmem:[%s2069_s1 + $0x190] sm:$0xff]   ;;  %v1612_v45 = vld [vmem:[%s2069_s1 + $0x1c8] sm:$0xff]  }
  0x25   :  { %1487 = vmatpush3.bf16.msra.mxu0 %v1577_v63  ;;  %1189 = vmatprep.mubr.bf16.mxu0 %v1818_v61  ;;  %v1624_v59 = vld [vmem:[%s2069_s1 + $0x2e8] sm:$0xff]   ;;  %v1632_v63 = vld [vmem:[%s2069_s1 + $0x358] sm:$0xff]  }
  0x26   :  { %1488 = vmatprep.subr.bf16.mxu0 %v1579_v1  ;;  %v1630_v1 = vld [vmem:[%s2069_s1 + $0x2d8] sm:$0xff]  }
  0x27   :  { %1423 = vmatpush3.bf16.msra.mxu1 %v1563_v48  ;;  %v1615_v48 = vld [vmem:[%s2069_s1 + $0x1c0] sm:$0xff]  }
  0x28   :  { %1424 = vmatprep.subr.bf16.mxu1 %v1565_v51  ;;  %v1618_v51 = vld [vmem:[%s2069_s1 + $0x2f8] sm:$0xff]  }
  0x29   :  { %1489 = vmatpush3.bf16.msra.mxu0 %v1581_v3  ;;  %v1631_v3 = vld [vmem:[%s2069_s1 + $0x298] sm:$0xff]  }
  0x2a   :  { %1490 = vmatprep.subr.bf16.mxu0 %v1583_v5  ;;  %v1638_v5 = vld [vmem:[%s2069_s1 + $0x348] sm:$0xff]  }
  0x2b   :  { %1425 = vmatpush3.bf16.msra.mxu1 %v1567_v53  ;;  %v1623_v53 = vld [vmem:[%s2069_s1 + $0x310] sm:$0xff]  }
  0x2c   :  { %1426 = vmatprep.subr.bf16.mxu1 %v1569_v56  ;;  %v331_v56 = vcombine.high %v1818_v61, %v1818_v61  ;;  %v1625_v61 = vld [vmem:[%s2069_s1 + $0x2a8] sm:$0xff]  }
  0x2d   :  { %1491 = vmatpush3.bf16.msra.mxu0 %v1585_v7  ;;  %v1636_v7 = vld [vmem:[%s2069_s1 + $0x2c8] sm:$0xff]  }
  0x2e   :  { %1492 = vmatprep.subr.bf16.mxu0 %v1587_v9  ;;  %v1637_v9 = vld [vmem:[%s2069_s1 + $0x288] sm:$0xff]  }
  0x2f   :  { %1427 = vmatpush3.bf16.msra.mxu1 %v1571_v58  ;;  %v1622_v58 = vld [vmem:[%s2069_s1 + $0x2b0] sm:$0xff]  }
  0x30   :  { %1428 = vmatprep.subr.bf16.mxu1 %v1573_v62  ;;  %v1627_v62 = vld [vmem:[%s2069_s1 + $0x2e0] sm:$0xff]  }
  0x31   :  { %1493 = vmatpush3.bf16.msra.mxu0 %v1589_v11  ;;  %v315_v11 = vrot.slane %v1901_v26, %v1724_v25 }
  0x32   :  { %1494 = vmatprep.subr.bf16.mxu0 %v1591_v13  ;;  %v330_v13 = vcombine.high %v1925_v34, %v1925_v34 }
  0x33   :  { %1429 = vmatpush3.bf16.msra.mxu1 %v1576_v0  ;;  %v1628_v0 = vld [vmem:[%s2069_s1 + $0x2a0] sm:$0xff]  }
  0x34   :  { %1430 = vmatprep.subr.bf16.mxu1 %v1578_v2  ;;  %v1635_v2 = vld [vmem:[%s2069_s1 + $0x350] sm:$0xff]  }
  0x35   :  { %1495 = vmatpush3.bf16.msra.mxu0 %v1593_v15 }
  0x36   :  { %1496 = vmatprep.subr.bf16.mxu0 %v1595_v19 }
  0x37   :  { %1431 = vmatpush3.bf16.msra.mxu1 %v1580_v4  ;;  %v1633_v4 = vld [vmem:[%s2069_s1 + $0x2d0] sm:$0xff]  }
  0x38   :  { %1432 = vmatprep.subr.bf16.mxu1 %v1582_v6  ;;  %v1634_v6 = vld [vmem:[%s2069_s1 + $0x290] sm:$0xff]  }
  0x39   :  { %1497 = vmatpush3.bf16.msra.mxu0 %v1597_v22 }
  0x3a   :  { %1498 = vmatprep.subr.bf16.mxu0 %v1599_v24 }
  0x3b   :  { %1433 = vmatpush3.bf16.msra.mxu1 %v1584_v8  ;;  %v1641_v8 = vld [vmem:[%s2069_s1 + $0x340] sm:$0xff]  }
  0x3c   :  { %1434 = vmatprep.subr.bf16.mxu1 %v1586_v10  ;;  %v1639_v10 = vld [vmem:[%s2069_s1 + $0x2c0] sm:$0xff]  }
  0x3d   :  { %1499 = vmatpush3.bf16.msra.mxu0 %v1601_v28 }
  0x3e   :  { %1500 = vmatprep.subr.bf16.mxu0 %v1603_v30 }
  0x3f   :  { %1435 = vmatpush3.bf16.msra.mxu1 %v1588_v12  ;;  %v1640_v12 = vld [vmem:[%s2069_s1 + $0x280] sm:$0xff]  }
  0x40   :  { %1464 = vmatprep.subr.bf16.mxu1 %v1590_v14 }
  0x41   :  { %1501 = vmatpush3.bf16.msra.mxu0 %v1605_v33 }
  0x42   :  { %1070 = vmatmul.mubr.bf16.vlgmr.msra.gmra.mxu1 %v281_v18  ;;  %1237 = vmatprep.subr.bf16.mxu0 %v1643_v37 }
  0x43   :  { %1465 = vmatpush3.bf16.msra.mxu1 %v1592_v16  ;;  %1149 = vmatprep.mubr.bf16.mxu1 %v284_v20 }
  0x44   :  { %1466 = vmatprep.subr.bf16.mxu1 %v1594_v21  ;;  %1190 = vmatmul.mubr.bf16.vlgmr.msra.gmra.mxu0 %v1925_v34 }
  0x45   :  { %1238 = vmatpush1.bf16.msra.mxu0 %v1608_v38  ;;  %1397 = vmatprep.mubr.msk.bf16.mxu0 %vm993_vm0, %v329_v36 }
  0x46   :  { %1239 = vmatprep.subr.bf16.mxu0 %v1643_v37 }
  0x47   :  { %1467 = vmatpush3.bf16.msra.mxu1 %v1596_v23  ;;  %v233_v23 = vld [vmem:[%s2071_s2] sm:$0x1] }
  0x48   :  { %1468 = vmatprep.subr.bf16.mxu1 %v1598_v27 }
  0x49   :  { %1240 = vmatpush1.bf16.msra.mxu0 %v1611_v40 }
  0x4a   :  { %1241 = vmatprep.subr.bf16.mxu0 %v1643_v37 }
  0x4b   :  { %1469 = vmatpush3.bf16.msra.mxu1 %v1600_v29 }
  0x4c   :  { %1470 = vmatprep.subr.bf16.mxu1 %v1602_v32 }
  0x4d   :  { %1242 = vmatpush1.bf16.msra.mxu0 %v1614_v43 }
  0x4e   :  { %1243 = vmatprep.subr.bf16.mxu0 %v1643_v37 }
  0x4f   :  { %1471 = vmatpush3.bf16.msra.mxu1 %v1604_v35 }
  0x50   :  { %1472 = vmatprep.subr.bf16.mxu1 %v1606_v39 }
  0x51   :  { %1244 = vmatpush1.bf16.msra.mxu0 %v1617_v46 }
  0x52   :  { %1245 = vmatprep.subr.bf16.mxu0 %v1643_v37 }
  0x53   :  { %1473 = vmatpush3.bf16.msra.mxu1 %v1607_v41 }
  0x54   :  { %1474 = vmatprep.subr.bf16.mxu1 %v1609_v42 }
  0x55   :  { %1246 = vmatpush1.bf16.msra.mxu0 %v1620_v49 }
  0x56   :  { %1247 = vmatprep.subr.bf16.mxu0 %v1643_v37 }
  0x57   :  { %1475 = vmatpush3.bf16.msra.mxu1 %v1610_v44 }
  0x58   :  { %1476 = vmatprep.subr.bf16.mxu1 %v1612_v45 }
  0x59   :  { %1248 = vmatpush1.bf16.msra.mxu0 %v1623_v53 }
  0x5a   :  { %1249 = vmatprep.subr.bf16.mxu0 %v1643_v37 }
  0x5b   :  { %1477 = vmatpush3.bf16.msra.mxu1 %v1613_v47 }
  0x5c   :  { %1478 = vmatprep.subr.bf16.mxu1 %v1615_v48 }
  0x5d   :  { %1250 = vmatpush1.bf16.msra.mxu0 %v1626_v57  ;;  %v1282_v57 = vld [vmem:[%s2072_s3] sm:$0x1] }
  0x5e   :  { %1251 = vmatprep.subr.bf16.mxu0 %v1643_v37 }
  0x5f   :  { %1479 = vmatpush3.bf16.msra.mxu1 %v1616_v50 }
  0x60   :  { %1508 = vmatprep.subr.bf16.mxu1 %v1618_v51 }
  0x61   :  { %1252 = vmatpush1.bf16.msra.mxu0 %v1629_v60 }
  0x62   :  { %1150 = vmatmul.mubr.bf16.vlgmr.msra.gmra.mxu1 %v282_v52  ;;  %1261 = vmatprep.subr.bf16.mxu0 %v1643_v37 }
  0x63   :  { %1509 = vmatpush3.bf16.msra.mxu1 %v1619_v54  ;;  %1229 = vmatprep.mubr.bf16.mxu1 %v331_v56 }
  0x64   :  { %1510 = vmatprep.subr.bf16.mxu1 %v1621_v55 }
  0x65   :  { %1262 = vmatpush2.bf16.msra.mxu0 %v1632_v63 }
  0x66   :  { %1263 = vmatprep.subr.bf16.mxu0 %v1643_v37 }
  0x67   :  { %1511 = vmatpush3.bf16.msra.mxu1 %v1622_v58 }
  0x68   :  { %1512 = vmatprep.subr.bf16.mxu1 %v1624_v59 }
  0x69   :  { %1264 = vmatpush2.bf16.msra.mxu0 %v1635_v2 }
  0x6a   :  { %1265 = vmatprep.subr.bf16.mxu0 %v1643_v37 }
  0x6b   :  { %1513 = vmatpush3.bf16.msra.mxu1 %v1625_v61 }
  0x6c   :  { %1514 = vmatprep.subr.bf16.mxu1 %v1627_v62 }
  0x6d   :  { %1266 = vmatpush2.bf16.msra.mxu0 %v1638_v5 }
  0x6e   :  { %1267 = vmatprep.subr.bf16.mxu0 %v1643_v37 }
  0x6f   :  { %1515 = vmatpush3.bf16.msra.mxu1 %v1628_v0 }
  0x70   :  { %1516 = vmatprep.subr.bf16.mxu1 %v1630_v1 }
  0x71   :  { %1268 = vmatpush2.bf16.msra.mxu0 %v1641_v8 }
  0x73   :  { %1517 = vmatpush3.bf16.msra.mxu1 %v1631_v3 }
  0x74   :  { %1518 = vmatprep.subr.bf16.mxu1 %v1633_v4  ;;  %1270 = vmatmul.mubr.bf16.vlgmr.msra.gmra.mxu0 %v315_v11 }
  0x77   :  { %1519 = vmatpush3.bf16.msra.mxu1 %v1634_v6 }
  0x78   :  { %1520 = vmatprep.subr.bf16.mxu1 %v1636_v7 }
  0x7b   :  { %1521 = vmatpush3.bf16.msra.mxu1 %v1637_v9 }
  0x7c   :  { %1522 = vmatprep.subr.bf16.mxu1 %v1639_v10 }
  0x7f   :  { %1523 = vmatpush3.bf16.msra.mxu1 %v1640_v12 }
  0x82   :  { %1230 = vmatmul.mubr.bf16.vlgmr.msra.gmra.mxu1 %v330_v13 }
  0xe2   :  { %v1414_v14 = vpop.f32.mrf.mxu1 }
  0xe4   :  { %v1415_v15 = vpop.f32.mrf.mxu1  ;;  %v1458_v19 = vpop.f32.mrf.mxu0 }
  0xe5   :  { %v1416_v16 = vadd.f32 %v1415_v15, %v1414_v14 }
  0xe6   :  { %v1417_v17 = vpop.f32.mrf.mxu1  ;;  %v1459_v25 = vpop.f32.mrf.mxu0 }
  0xe7   :  { %v1460_v20 = vadd.f32 %v1459_v25, %v1458_v19  ;;  %v1032_v27 = vadd.f32 %v1416_v16, %v233_v23 }
  0xe8   :  { %v1418_v18 = vpop.f32.mrf.mxu1  ;;  %v1461_v21 = vpop.f32.mrf.mxu0 }
  0xea   :  { %v1462_v22 = vpop.f32.mrf.mxu0 }
 0x102   :  { %v1436_v24 = vpop.f32.mrf.mxu1 }
 0x104   :  { %v1437_v26 = vpop.f32.mrf.mxu1  ;;  %v1502_v33 = vpop.f32.mrf.mxu0 }
 0x105   :  { %v1438_v28 = vadd.f32 %v1437_v26, %v1436_v24 }
 0x106   :  { %v1439_v29 = vpop.f32.mrf.mxu1  ;;  %v1503_v34 = vpop.f32.mrf.mxu0 }
 0x107   :  { %v1072_v30 = vadd.f32 %v1438_v28, %v1032_v27  ;;  %v1504_v47 = vadd.f32 %v1503_v34, %v1502_v33 }
 0x108   :  { %v1440_v31 = vpop.f32.mrf.mxu1  ;;  %v1505_v35 = vpop.f32.mrf.mxu0 }
 0x109   :  { %v1112_v32 = vadd.f32 %v1460_v20, %v1072_v30 }
 0x10a   :  { %v1506_v36 = vpop.f32.mrf.mxu0 }
 0x122   :  { %v1480_v37 = vpop.f32.mrf.mxu1 }
 0x124   :  { %v1481_v38 = vpop.f32.mrf.mxu1 }
 0x125   :  { %v1482_v41 = vadd.f32 %v1481_v38, %v1480_v37 }
 0x126   :  { %v1483_v39 = vpop.f32.mrf.mxu1 }
 0x127   :  { %v1152_v44 = vadd.f32 %v1482_v41, %v1112_v32 }
 0x128   :  { %v1484_v40 = vpop.f32.mrf.mxu1 }
 0x129   :  { %v1192_v50 = vadd.f32 %v1504_v47, %v1152_v44 }
 0x134   :  { %v1271_v42 = vpop.f32.mrf.mxu0 }
 0x136   :  { %v1273_v43 = vpop.f32.mrf.mxu0 }
 0x138   :  { %v1274_v45 = vpop.f32.mrf.mxu0 }
 0x13a   :  { %v1275_v48 = vpop.f32.mrf.mxu0 }
 0x142   :  { %v1524_v46 = vpop.f32.mrf.mxu1 }
 0x144   :  { %v1525_v49 = vpop.f32.mrf.mxu1 }
 0x145   :  { %v1526_v51 = vadd.f32 %v1525_v49, %v1524_v46 }
 0x146   :  { %v1527_v52 = vpop.f32.mrf.mxu1 }
 0x147   :  { %v1232_v53 = vadd.f32 %v1526_v51, %v1192_v50 }
 0x148   :  { %v1528_v54 = vpop.f32.mrf.mxu1 }
 0x149   :  { %v1272_v55 = vadd.f32 %v1271_v42, %v1232_v53 }
 0x14b   :  { %v1277_v56 = vmax.f32 %v1272_v55, 0.0 }
 0x14d   :  { %v1278_v58 = vpack.c.bf16 %v1277_v56, %v1277_v56 }
 0x14f   :  { %v1283_v59 = vsel %vm1281_vm3, %v1278_v58, %v1282_v57 }
 0x150   :  { %1284 = vst [vmem:[%s2072_s3] sm:$0x1] %v1283_v59 }

// kernel: dvanet_forward.116
= control target key start
LH: loop header
LB: loop body
LE: loop exit
PB: predicated region body
PF: predicated region fallthrough
CT: control target
= control target key end

     0   :  { %v503_v22 = vmov 1966171168   ;;  %v93_v24 = vlaneseq  ;;  %vm383_vm0 = vcmask 516096   ;;  %vm384_vm1 = vsmask.f32 256  ;;  %s632_s1 = inlined_call_operand.vmem [shape: bf16[512,64], index: 1, kind: input, shape index: {}]   ;;  %s633_s0 = inlined_call_operand.vmem [shape: bf16[1,512], index: 0, kind: input, shape index: {}]   ;;  %s634_s2 = inlined_call_operand.vmem [shape: f32[1,64], index: 2, kind: input, shape index: {}]   ;;  %s635_s3 = inlined_call_operand.vmem [shape: bf16[1,64], index: 3, kind: output, shape index: {}]  }
   0x1   :  { %v471_v0 = vld [vmem:[%s632_s1 + $0x78] sm:$0xff]   ;;  %v475_v4 = vld [vmem:[%s632_s1 + $0x70] sm:$0xff]   ;;  %v479_v8 = vld [vmem:[%s632_s1 + $0x68] sm:$0xff]   ;;  %v91_v23 = vunpack.c.l.s4 %v503_v22 }
   0x2   :  { %v472_v1 = vld [vmem:[%s632_s1 + $0xf8] sm:$0xff]   ;;  %426 = vmatprep.subr.bf16.mxu0 %v471_v0  ;;  %v476_v5 = vld [vmem:[%s632_s1 + $0xf0] sm:$0xff]   ;;  %v480_v9 = vld [vmem:[%s632_s1 + $0xe8] sm:$0xff]   ;;  %v94_v30 = vshrl.u32 %v93_v24, 7 }
   0x3   :  { %v473_v2 = vld [vmem:[%s632_s1 + $0x38] sm:$0xff]   ;;  %448 = vmatprep.subr.bf16.mxu1 %v472_v1  ;;  %v477_v6 = vld [vmem:[%s632_s1 + $0x30] sm:$0xff]   ;;  %v481_v10 = vld [vmem:[%s632_s1 + $0x28] sm:$0xff]   ;;  %v92_v29 = vunpack.c.0.s8 %v91_v23 }
   0x4   :  { %v474_v3 = vld [vmem:[%s632_s1 + $0xb8] sm:$0xff]   ;;  %427 = vmatpush3.bf16.msra.mxu0 %v473_v2  ;;  %v478_v7 = vld [vmem:[%s632_s1 + $0xb0] sm:$0xff]   ;;  %v482_v11 = vld [vmem:[%s632_s1 + $0xa8] sm:$0xff]  }
   0x5   :  { %449 = vmatpush3.bf16.msra.mxu1 %v474_v3  ;;  %428 = vmatprep.subr.bf16.mxu0 %v475_v4  ;;  %v483_v12 = vld [vmem:[%s632_s1 + $0x60] sm:$0xff]   ;;  %v487_v16 = vld [vmem:[%s632_s1 + $0x58] sm:$0xff]   ;;  %v491_v20 = vld [vmem:[%s632_s1 + $0x50] sm:$0xff]   ;;  %v95_v35 = vsub.s32 %v92_v29, %v94_v30 }
   0x6   :  { %450 = vmatprep.subr.bf16.mxu1 %v476_v5  ;;  %v484_v13 = vld [vmem:[%s632_s1 + $0xe0] sm:$0xff]   ;;  %v488_v17 = vld [vmem:[%s632_s1 + $0xd8] sm:$0xff]   ;;  %v492_v21 = vld [vmem:[%s632_s1 + $0xd0] sm:$0xff]  }
   0x7   :  { %v485_v14 = vld [vmem:[%s632_s1 + $0x20] sm:$0xff]   ;;  %v489_v18 = vld [vmem:[%s632_s1 + $0x18] sm:$0xff]   ;;  %v493_v25 = vld [vmem:[%s632_s1 + $0x10] sm:$0xff]  }
   0x8   :  { %429 = vmatpush3.bf16.msra.mxu0 %v477_v6  ;;  %v486_v15 = vld [vmem:[%s632_s1 + $0xa0] sm:$0xff]   ;;  %v490_v19 = vld [vmem:[%s632_s1 + $0x98] sm:$0xff]   ;;  %v494_v26 = vld [vmem:[%s632_s1 + $0x90] sm:$0xff]  }
   0x9   :  { %451 = vmatpush3.bf16.msra.mxu1 %v478_v7  ;;  %430 = vmatprep.subr.bf16.mxu0 %v479_v8  ;;  %v495_v27 = vld [vmem:[%s632_s1 + $0x48] sm:$0xff]   ;;  %v499_v33 = vld [vmem:[%s632_s1 + $0x40] sm:$0xff]   ;;  %vm385_vm2 = vmand %vm383_vm0, %vm384_vm1 }
   0xa   :  { %452 = vmatprep.subr.bf16.mxu1 %v480_v9  ;;  %v496_v28 = vld [vmem:[%s632_s1 + $0xc8] sm:$0xff]   ;;  %v500_v34 = vld [vmem:[%s632_s1 + $0xc0] sm:$0xff]  }
   0xb   :  { %v497_v31 = vld [vmem:[%s632_s1 + $0x8] sm:$0xff]   ;;  %v501_v36 = vld [vmem:[%s632_s1] sm:$0xff]  }
   0xc   :  { %431 = vmatpush3.bf16.msra.mxu0 %v481_v10  ;;  %v498_v32 = vld [vmem:[%s632_s1 + $0x88] sm:$0xff]   ;;  %v502_v37 = vld [vmem:[%s632_s1 + $0x80] sm:$0xff]  }
   0xd   :  { %453 = vmatpush3.bf16.msra.mxu1 %v482_v11  ;;  %432 = vmatprep.subr.bf16.mxu0 %v483_v12  ;;  %v393_v38 = vld.sshfl [vmem:[%s633_s0] sm:$0x33 pattern:$0x75316420] }
   0xe   :  { %454 = vmatprep.subr.bf16.mxu1 %v484_v13  ;;  %v89_v39 = vcombine.high %v393_v38, %v393_v38  ;;  %v96_v40 = vrot.slane %v393_v38, %v95_v35  ;;  %v80_v46 = vld [vmem:[%s634_s2] sm:$0x1] }
   0xf   :  { %v386_v56 = vld [vmem:[%s635_s3] sm:$0x1] }
  0x10   :  { %433 = vmatpush3.bf16.msra.mxu0 %v485_v14  ;;  %v103_v41 = vrot.slane %v89_v39, %v95_v35  ;;  %v104_v42 = vcombine.high %v96_v40, %v96_v40 }
  0x11   :  { %455 = vmatpush3.bf16.msra.mxu1 %v486_v15  ;;  %434 = vmatprep.subr.bf16.mxu0 %v487_v16 }
  0x12   :  { %456 = vmatprep.subr.bf16.mxu1 %v488_v17  ;;  %334 = vmatprep.mubr.bf16.mxu0 %v103_v41  ;;  %v105_v43 = vcombine.high %v103_v41, %v103_v41 }
  0x14   :  { %435 = vmatpush3.bf16.msra.mxu0 %v489_v18  ;;  %374 = vmatprep.mubr.bf16.mxu1 %v105_v43 }
  0x15   :  { %457 = vmatpush3.bf16.msra.mxu1 %v490_v19  ;;  %436 = vmatprep.subr.bf16.mxu0 %v491_v20 }
  0x16   :  { %458 = vmatprep.subr.bf16.mxu1 %v492_v21 }
  0x18   :  { %437 = vmatpush3.bf16.msra.mxu0 %v493_v25 }
  0x19   :  { %459 = vmatpush3.bf16.msra.mxu1 %v494_v26  ;;  %438 = vmatprep.subr.bf16.mxu0 %v495_v27 }
  0x1a   :  { %460 = vmatprep.subr.bf16.mxu1 %v496_v28 }
  0x1c   :  { %439 = vmatpush3.bf16.msra.mxu0 %v497_v31 }
  0x1d   :  { %461 = vmatpush3.bf16.msra.mxu1 %v498_v32  ;;  %440 = vmatprep.subr.bf16.mxu0 %v499_v33 }
  0x1e   :  { %462 = vmatprep.subr.bf16.mxu1 %v500_v34 }
  0x20   :  { %441 = vmatpush3.bf16.msra.mxu0 %v501_v36 }
  0x21   :  { %463 = vmatpush3.bf16.msra.mxu1 %v502_v37 }
  0x23   :  { %335 = vmatmul.mubr.bf16.vlgmr.msra.gmra.mxu0 %v96_v40 }
  0x24   :  { %375 = vmatmul.mubr.bf16.vlgmr.msra.gmra.mxu1 %v104_v42 }
  0xe3   :  { %v442_v44 = vpop.f32.mrf.mxu0 }
  0xe4   :  { %v464_v45 = vpop.f32.mrf.mxu1 }
  0xe5   :  { %v443_v47 = vpop.f32.mrf.mxu0 }
  0xe6   :  { %v444_v48 = vadd.f32 %v443_v47, %v442_v44  ;;  %v465_v49 = vpop.f32.mrf.mxu1 }
  0xe7   :  { %v445_v50 = vpop.f32.mrf.mxu0  ;;  %v466_v52 = vadd.f32 %v465_v49, %v464_v45 }
  0xe8   :  { %v337_v51 = vadd.f32 %v444_v48, %v80_v46  ;;  %v467_v53 = vpop.f32.mrf.mxu1 }
  0xe9   :  { %v446_v54 = vpop.f32.mrf.mxu0 }
  0xea   :  { %v377_v55 = vadd.f32 %v466_v52, %v337_v51  ;;  %v468_v57 = vpop.f32.mrf.mxu1 }
  0xec   :  { %v382_v58 = vpack.c.bf16 %v377_v55, %v377_v55 }
  0xee   :  { %v387_v59 = vsel %vm385_vm2, %v382_v58, %v386_v56 }
  0xef   :  { %388 = vst [vmem:[%s635_s3] sm:$0x1] %v387_v59 }

// kernel: dvanet_forward.114
= control target key start
LH: loop header
LB: loop body
LE: loop exit
PB: predicated region body
PF: predicated region fallthrough
CT: control target
= control target key end

     0   :  { %v277_v6 = vmov 1966171168   ;;  %v61_v8 = vlaneseq  ;;  %vm211_vm0 = vcmask 516096   ;;  %vm212_vm1 = vsmask.f32 256  ;;  %s358_s1 = inlined_call_operand.vmem [shape: bf16[256,64], index: 1, kind: input, shape index: {}]   ;;  %s359_s0 = inlined_call_operand.vmem [shape: bf16[1,256], index: 0, kind: input, shape index: {}]   ;;  %s360_s2 = inlined_call_operand.vmem [shape: f32[1,64], index: 2, kind: input, shape index: {}]   ;;  %s361_s3 = inlined_call_operand.vmem [shape: bf16[1,64], index: 3, kind: output, shape index: {}]  }
   0x1   :  { %v261_v0 = vld [vmem:[%s358_s1 + $0x78] sm:$0xff]   ;;  %v263_v2 = vld [vmem:[%s358_s1 + $0x70] sm:$0xff]   ;;  %v265_v4 = vld [vmem:[%s358_s1 + $0x68] sm:$0xff]   ;;  %v59_v7 = vunpack.c.l.s4 %v277_v6 }
   0x2   :  { %v262_v1 = vld [vmem:[%s358_s1 + $0x38] sm:$0xff]   ;;  %238 = vmatprep.subr.bf16.mxu0 %v261_v0  ;;  %v264_v3 = vld [vmem:[%s358_s1 + $0x30] sm:$0xff]   ;;  %v266_v5 = vld [vmem:[%s358_s1 + $0x28] sm:$0xff]   ;;  %v62_v12 = vshrl.u32 %v61_v8, 7 }
   0x3   :  { %239 = vmatpush3.bf16.msra.mxu0 %v262_v1  ;;  %v267_v9 = vld [vmem:[%s358_s1 + $0x60] sm:$0xff]   ;;  %v60_v11 = vunpack.c.0.s8 %v59_v7  ;;  %v269_v13 = vld [vmem:[%s358_s1 + $0x58] sm:$0xff]   ;;  %v271_v16 = vld [vmem:[%s358_s1 + $0x50] sm:$0xff]  }
   0x4   :  { %240 = vmatprep.subr.bf16.mxu0 %v263_v2  ;;  %v268_v10 = vld [vmem:[%s358_s1 + $0x20] sm:$0xff]   ;;  %v270_v14 = vld [vmem:[%s358_s1 + $0x18] sm:$0xff]   ;;  %v272_v19 = vld [vmem:[%s358_s1 + $0x10] sm:$0xff]  }
   0x5   :  { %v63_v15 = vsub.s32 %v60_v11, %v62_v12  ;;  %v221_v17 = vld.sshfl [vmem:[%s359_s0] sm:$0x11 pattern:$0x75316420]  ;;  %v273_v21 = vld [vmem:[%s358_s1 + $0x48] sm:$0xff]   ;;  %vm213_vm2 = vmand %vm211_vm0, %vm212_vm1 }
   0x6   :  { %v57_v18 = vcombine.high %v221_v17, %v221_v17  ;;  %v274_v22 = vld [vmem:[%s358_s1 + $0x8] sm:$0xff]   ;;  %v275_v23 = vld [vmem:[%s358_s1 + $0x40] sm:$0xff]  }
   0x7   :  { %241 = vmatpush3.bf16.msra.mxu0 %v264_v3  ;;  %v276_v24 = vld [vmem:[%s358_s1] sm:$0xff]   ;;  %v64_v25 = vrot.slane %v221_v17, %v63_v15 }
   0x8   :  { %242 = vmatprep.subr.bf16.mxu0 %v265_v4  ;;  %v71_v20 = vrot.slane %v57_v18, %v63_v15  ;;  %v48_v27 = vld [vmem:[%s360_s2] sm:$0x1] }
   0x9   :  { %v214_v32 = vld [vmem:[%s361_s3] sm:$0x1] }
   0xa   :  { %202 = vmatprep.mubr.bf16.mxu0 %v71_v20 }
   0xb   :  { %243 = vmatpush3.bf16.msra.mxu0 %v266_v5 }
   0xc   :  { %244 = vmatprep.subr.bf16.mxu0 %v267_v9 }
   0xf   :  { %245 = vmatpush3.bf16.msra.mxu0 %v268_v10 }
  0x10   :  { %246 = vmatprep.subr.bf16.mxu0 %v269_v13 }
  0x13   :  { %247 = vmatpush3.bf16.msra.mxu0 %v270_v14 }
  0x14   :  { %248 = vmatprep.subr.bf16.mxu0 %v271_v16 }
  0x17   :  { %249 = vmatpush3.bf16.msra.mxu0 %v272_v19 }
  0x18   :  { %250 = vmatprep.subr.bf16.mxu0 %v273_v21 }
  0x1b   :  { %251 = vmatpush3.bf16.msra.mxu0 %v274_v22 }
  0x1c   :  { %252 = vmatprep.subr.bf16.mxu0 %v275_v23 }
  0x1f   :  { %253 = vmatpush3.bf16.msra.mxu0 %v276_v24 }
  0x22   :  { %203 = vmatmul.mubr.bf16.vlgmr.msra.gmra.mxu0 %v64_v25 }
  0xe2   :  { %v254_v26 = vpop.f32.mrf.mxu0 }
  0xe4   :  { %v255_v28 = vpop.f32.mrf.mxu0 }
  0xe5   :  { %v256_v29 = vadd.f32 %v255_v28, %v254_v26 }
  0xe6   :  { %v257_v30 = vpop.f32.mrf.mxu0 }
  0xe7   :  { %v205_v31 = vadd.f32 %v256_v29, %v48_v27 }
  0xe8   :  { %v258_v33 = vpop.f32.mrf.mxu0 }
  0xe9   :  { %v210_v34 = vpack.c.bf16 %v205_v31, %v205_v31 }
  0xeb   :  { %v215_v35 = vsel %vm213_vm2, %v210_v34, %v214_v32 }
  0xec   :  { %216 = vst [vmem:[%s361_s3] sm:$0x1] %v215_v35 }

// kernel: dvanet_forward.117
= control target key start
LH: loop header
LB: loop body
LE: loop exit
PB: predicated region body
PF: predicated region fallthrough
CT: control target
= control target key end

     0   :  { %v976_v22 = vmov 1966171168   ;;  %v150_v24 = vlaneseq  ;;  %vm748_vm0 = vcmask 516096   ;;  %vm749_vm1 = vsmask.f32 256  ;;  %s1214_s1 = inlined_call_operand.vmem [shape: bf16[1024,64], index: 1, kind: input, shape index: {}]   ;;  %s1215_s0 = inlined_call_operand.vmem [shape: bf16[1,1024], index: 0, kind: input, shape index: {}]   ;;  %s1216_s2 = inlined_call_operand.vmem [shape: f32[1,64], index: 2, kind: input, shape index: {}]   ;;  %s1217_s3 = inlined_call_operand.vmem [shape: bf16[1,64], index: 3, kind: output, shape index: {}]  }
   0x1   :  { %v911_v0 = vld [vmem:[%s1214_s1 + $0x78] sm:$0xff]   ;;  %v915_v4 = vld [vmem:[%s1214_s1 + $0x70] sm:$0xff]   ;;  %v919_v8 = vld [vmem:[%s1214_s1 + $0x68] sm:$0xff]   ;;  %v148_v23 = vunpack.c.l.s4 %v976_v22 }
   0x2   :  { %v912_v1 = vld [vmem:[%s1214_s1 + $0xf8] sm:$0xff]   ;;  %822 = vmatprep.subr.bf16.mxu0 %v911_v0  ;;  %v916_v5 = vld [vmem:[%s1214_s1 + $0xf0] sm:$0xff]   ;;  %v920_v9 = vld [vmem:[%s1214_s1 + $0xe8] sm:$0xff]   ;;  %v151_v30 = vshrl.u32 %v150_v24, 7 }
   0x3   :  { %v913_v2 = vld [vmem:[%s1214_s1 + $0x38] sm:$0xff]   ;;  %844 = vmatprep.subr.bf16.mxu1 %v912_v1  ;;  %v917_v6 = vld [vmem:[%s1214_s1 + $0x30] sm:$0xff]   ;;  %v921_v10 = vld [vmem:[%s1214_s1 + $0x28] sm:$0xff]   ;;  %v149_v29 = vunpack.c.0.s8 %v148_v23 }
   0x4   :  { %v914_v3 = vld [vmem:[%s1214_s1 + $0xb8] sm:$0xff]   ;;  %823 = vmatpush3.bf16.msra.mxu0 %v913_v2  ;;  %v918_v7 = vld [vmem:[%s1214_s1 + $0xb0] sm:$0xff]   ;;  %v922_v11 = vld [vmem:[%s1214_s1 + $0xa8] sm:$0xff]  }
   0x5   :  { %845 = vmatpush3.bf16.msra.mxu1 %v914_v3  ;;  %824 = vmatprep.subr.bf16.mxu0 %v915_v4  ;;  %v923_v12 = vld [vmem:[%s1214_s1 + $0x60] sm:$0xff]   ;;  %v927_v16 = vld [vmem:[%s1214_s1 + $0x58] sm:$0xff]   ;;  %v931_v20 = vld [vmem:[%s1214_s1 + $0x50] sm:$0xff]   ;;  %v1087_v35 = vsub.s32 %v149_v29, %v151_v30 }
   0x6   :  { %846 = vmatprep.subr.bf16.mxu1 %v916_v5  ;;  %v924_v13 = vld [vmem:[%s1214_s1 + $0xe0] sm:$0xff]   ;;  %v928_v17 = vld [vmem:[%s1214_s1 + $0xd8] sm:$0xff]   ;;  %v932_v21 = vld [vmem:[%s1214_s1 + $0xd0] sm:$0xff]  }
   0x7   :  { %v925_v14 = vld [vmem:[%s1214_s1 + $0x20] sm:$0xff]   ;;  %v929_v18 = vld [vmem:[%s1214_s1 + $0x18] sm:$0xff]   ;;  %v933_v25 = vld [vmem:[%s1214_s1 + $0x10] sm:$0xff]  }
   0x8   :  { %825 = vmatpush3.bf16.msra.mxu0 %v917_v6  ;;  %v926_v15 = vld [vmem:[%s1214_s1 + $0xa0] sm:$0xff]   ;;  %v930_v19 = vld [vmem:[%s1214_s1 + $0x98] sm:$0xff]   ;;  %v934_v26 = vld [vmem:[%s1214_s1 + $0x90] sm:$0xff]  }
   0x9   :  { %847 = vmatpush3.bf16.msra.mxu1 %v918_v7  ;;  %826 = vmatprep.subr.bf16.mxu0 %v919_v8  ;;  %v935_v27 = vld [vmem:[%s1214_s1 + $0x48] sm:$0xff]   ;;  %v939_v33 = vld [vmem:[%s1214_s1 + $0x40] sm:$0xff]   ;;  %v944_v41 = vld [vmem:[%s1214_s1 + $0x178] sm:$0xff]  }
   0xa   :  { %848 = vmatprep.subr.bf16.mxu1 %v920_v9  ;;  %v936_v28 = vld [vmem:[%s1214_s1 + $0xc8] sm:$0xff]   ;;  %v940_v34 = vld [vmem:[%s1214_s1 + $0xc0] sm:$0xff]   ;;  %v945_v42 = vld [vmem:[%s1214_s1 + $0x1f8] sm:$0xff]  }
   0xb   :  { %v937_v31 = vld [vmem:[%s1214_s1 + $0x8] sm:$0xff]   ;;  %v941_v36 = vld [vmem:[%s1214_s1] sm:$0xff]   ;;  %v946_v47 = vld [vmem:[%s1214_s1 + $0x138] sm:$0xff]  }
   0xc   :  { %827 = vmatpush3.bf16.msra.mxu0 %v921_v10  ;;  %v938_v32 = vld [vmem:[%s1214_s1 + $0x88] sm:$0xff]   ;;  %v942_v37 = vld [vmem:[%s1214_s1 + $0x80] sm:$0xff]   ;;  %v948_v50 = vld [vmem:[%s1214_s1 + $0x170] sm:$0xff]  }
   0xd   :  { %849 = vmatpush3.bf16.msra.mxu1 %v922_v11  ;;  %828 = vmatprep.subr.bf16.mxu0 %v923_v12  ;;  %v15_v38 = vld [vmem:[%s1215_s0] sm:$0xff]  ;;  %v947_v52 = vld [vmem:[%s1214_s1 + $0x1b8] sm:$0xff]   ;;  %v949_v54 = vld [vmem:[%s1214_s1 + $0x1f0] sm:$0xff]  }
   0xe   :  { %850 = vmatprep.subr.bf16.mxu1 %v924_v13  ;;  %v146_v39 = vcombine.high %v15_v38, %v15_v38  ;;  %v153_v40 = vrot.slane %v15_v38, %v1087_v35  ;;  %v950_v55 = vld [vmem:[%s1214_s1 + $0x130] sm:$0xff]   ;;  %v952_v57 = vld [vmem:[%s1214_s1 + $0x168] sm:$0xff]   ;;  %v956_v61 = vld [vmem:[%s1214_s1 + $0x160] sm:$0xff]  }
   0xf   :  { %v951_v58 = vld [vmem:[%s1214_s1 + $0x1b0] sm:$0xff]   ;;  %v953_v59 = vld [vmem:[%s1214_s1 + $0x1e8] sm:$0xff]   ;;  %v957_v63 = vld [vmem:[%s1214_s1 + $0x1e0] sm:$0xff]  }
  0x10   :  { %829 = vmatpush3.bf16.msra.mxu0 %v925_v14  ;;  %v161_v43 = vcombine.high %v153_v40, %v153_v40  ;;  %v169_v44 = vrot.slane %v153_v40, %v1087_v35  ;;  %v1107_v45 = vrot.slane %v146_v39, %v1087_v35  ;;  %v954_v60 = vld [vmem:[%s1214_s1 + $0x128] sm:$0xff]   ;;  %v958_v0 = vld [vmem:[%s1214_s1 + $0x120] sm:$0xff]   ;;  %v960_v1 = vld [vmem:[%s1214_s1 + $0x158] sm:$0xff]  }
  0x11   :  { %851 = vmatpush3.bf16.msra.mxu1 %v926_v15  ;;  %830 = vmatprep.subr.bf16.mxu0 %v927_v16  ;;  %v955_v62 = vld [vmem:[%s1214_s1 + $0x1a8] sm:$0xff]   ;;  %v959_v2 = vld [vmem:[%s1214_s1 + $0x1a0] sm:$0xff]   ;;  %v961_v3 = vld [vmem:[%s1214_s1 + $0x1d8] sm:$0xff]  }
  0x12   :  { %852 = vmatprep.subr.bf16.mxu1 %v928_v17  ;;  %v183_v46 = vrot.slane %v161_v43, %v1087_v35  ;;  %v162_v48 = vcombine.high %v1107_v45, %v1107_v45  ;;  %v191_v49 = vcombine.high %v169_v44, %v169_v44  ;;  %v962_v4 = vld [vmem:[%s1214_s1 + $0x118] sm:$0xff]   ;;  %v964_v5 = vld [vmem:[%s1214_s1 + $0x150] sm:$0xff]   ;;  %v968_v9 = vld [vmem:[%s1214_s1 + $0x148] sm:$0xff]   ;;  %v176_v17 = vrot.slane %v1107_v45, %v1087_v35 }
  0x13   :  { %v963_v6 = vld [vmem:[%s1214_s1 + $0x198] sm:$0xff]   ;;  %v965_v7 = vld [vmem:[%s1214_s1 + $0x1d0] sm:$0xff]   ;;  %v969_v11 = vld [vmem:[%s1214_s1 + $0x1c8] sm:$0xff]  }
  0x14   :  { %831 = vmatpush3.bf16.msra.mxu0 %v929_v18  ;;  %619 = vmatprep.mubr.bf16.mxu0 %v183_v46  ;;  %v193_v51 = vcombine.high %v183_v46, %v183_v46  ;;  %v190_v53 = vrot.slane %v162_v48, %v1087_v35  ;;  %v966_v8 = vld [vmem:[%s1214_s1 + $0x110] sm:$0xff]   ;;  %v970_v12 = vld [vmem:[%s1214_s1 + $0x108] sm:$0xff]   ;;  %v972_v13 = vld [vmem:[%s1214_s1 + $0x140] sm:$0xff]  }
  0x15   :  { %853 = vmatpush3.bf16.msra.mxu1 %v930_v19  ;;  %832 = vmatprep.subr.bf16.mxu0 %v931_v20  ;;  %v967_v10 = vld [vmem:[%s1214_s1 + $0x190] sm:$0xff]   ;;  %v971_v14 = vld [vmem:[%s1214_s1 + $0x188] sm:$0xff]   ;;  %v973_v15 = vld [vmem:[%s1214_s1 + $0x1c0] sm:$0xff]   ;;  %v192_v19 = vcombine.high %v176_v17, %v176_v17 }
  0x16   :  { %854 = vmatprep.subr.bf16.mxu1 %v932_v21  ;;  %659 = vmatprep.mubr.bf16.mxu1 %v193_v51  ;;  %v194_v56 = vcombine.high %v190_v53, %v190_v53  ;;  %v974_v16 = vld [vmem:[%s1214_s1 + $0x100] sm:$0xff]   ;;  %vm750_vm2 = vmand %vm748_vm0, %vm749_vm1 }
  0x17   :  { %v975_v18 = vld [vmem:[%s1214_s1 + $0x180] sm:$0xff]  }
  0x18   :  { %833 = vmatpush3.bf16.msra.mxu0 %v933_v25  ;;  %v144_v29 = vld [vmem:[%s1216_s2] sm:$0x1] }
  0x19   :  { %855 = vmatpush3.bf16.msra.mxu1 %v934_v26  ;;  %834 = vmatprep.subr.bf16.mxu0 %v935_v27 }
  0x1a   :  { %856 = vmatprep.subr.bf16.mxu1 %v936_v28 }
  0x1c   :  { %835 = vmatpush3.bf16.msra.mxu0 %v937_v31 }
  0x1d   :  { %857 = vmatpush3.bf16.msra.mxu1 %v938_v32  ;;  %836 = vmatprep.subr.bf16.mxu0 %v939_v33 }
  0x1e   :  { %858 = vmatprep.subr.bf16.mxu1 %v940_v34 }
  0x20   :  { %837 = vmatpush3.bf16.msra.mxu0 %v941_v36 }
  0x21   :  { %859 = vmatpush3.bf16.msra.mxu1 %v942_v37  ;;  %866 = vmatprep.subr.bf16.mxu0 %v944_v41 }
  0x22   :  { %888 = vmatprep.subr.bf16.mxu1 %v945_v42 }
  0x23   :  { %620 = vmatmul.mubr.bf16.vlgmr.msra.gmra.mxu0 %v169_v44  ;;  %v751_v44 = vld [vmem:[%s1217_s3] sm:$0x1] }
  0x24   :  { %867 = vmatpush3.bf16.msra.mxu0 %v946_v47  ;;  %660 = vmatmul.mubr.bf16.vlgmr.msra.gmra.mxu1 %v191_v49 }
  0x25   :  { %868 = vmatprep.subr.bf16.mxu0 %v948_v50  ;;  %889 = vmatpush3.bf16.msra.mxu1 %v947_v52 }
  0x26   :  { %699 = vmatprep.mubr.bf16.mxu0 %v190_v53  ;;  %890 = vmatprep.subr.bf16.mxu1 %v949_v54 }
  0x27   :  { %739 = vmatprep.mubr.bf16.mxu1 %v194_v56 }
  0x28   :  { %869 = vmatpush3.bf16.msra.mxu0 %v950_v55 }
  0x29   :  { %870 = vmatprep.subr.bf16.mxu0 %v952_v57  ;;  %891 = vmatpush3.bf16.msra.mxu1 %v951_v58 }
  0x2a   :  { %892 = vmatprep.subr.bf16.mxu1 %v953_v59 }
  0x2c   :  { %871 = vmatpush3.bf16.msra.mxu0 %v954_v60 }
  0x2d   :  { %872 = vmatprep.subr.bf16.mxu0 %v956_v61  ;;  %893 = vmatpush3.bf16.msra.mxu1 %v955_v62 }
  0x2e   :  { %894 = vmatprep.subr.bf16.mxu1 %v957_v63 }
  0x30   :  { %873 = vmatpush3.bf16.msra.mxu0 %v958_v0 }
  0x31   :  { %874 = vmatprep.subr.bf16.mxu0 %v960_v1  ;;  %895 = vmatpush3.bf16.msra.mxu1 %v959_v2 }
  0x32   :  { %896 = vmatprep.subr.bf16.mxu1 %v961_v3 }
  0x34   :  { %875 = vmatpush3.bf16.msra.mxu0 %v962_v4 }
  0x35   :  { %876 = vmatprep.subr.bf16.mxu0 %v964_v5  ;;  %897 = vmatpush3.bf16.msra.mxu1 %v963_v6 }
  0x36   :  { %898 = vmatprep.subr.bf16.mxu1 %v965_v7 }
  0x38   :  { %877 = vmatpush3.bf16.msra.mxu0 %v966_v8 }
  0x39   :  { %878 = vmatprep.subr.bf16.mxu0 %v968_v9  ;;  %899 = vmatpush3.bf16.msra.mxu1 %v967_v10 }
  0x3a   :  { %900 = vmatprep.subr.bf16.mxu1 %v969_v11 }
  0x3c   :  { %879 = vmatpush3.bf16.msra.mxu0 %v970_v12 }
  0x3d   :  { %880 = vmatprep.subr.bf16.mxu0 %v972_v13  ;;  %901 = vmatpush3.bf16.msra.mxu1 %v971_v14 }
  0x3e   :  { %902 = vmatprep.subr.bf16.mxu1 %v973_v15 }
  0x40   :  { %881 = vmatpush3.bf16.msra.mxu0 %v974_v16 }
  0x41   :  { %903 = vmatpush3.bf16.msra.mxu1 %v975_v18 }
  0x43   :  { %700 = vmatmul.mubr.bf16.vlgmr.msra.gmra.mxu0 %v176_v17 }
  0x44   :  { %740 = vmatmul.mubr.bf16.vlgmr.msra.gmra.mxu1 %v192_v19 }
  0xe3   :  { %v838_v20 = vpop.f32.mrf.mxu0 }
  0xe4   :  { %v860_v21 = vpop.f32.mrf.mxu1 }
  0xe5   :  { %v839_v22 = vpop.f32.mrf.mxu0 }
  0xe6   :  { %v861_v23 = vpop.f32.mrf.mxu1  ;;  %v840_v28 = vadd.f32 %v839_v22, %v838_v20 }
  0xe7   :  { %v841_v24 = vpop.f32.mrf.mxu0  ;;  %v862_v31 = vadd.f32 %v861_v23, %v860_v21 }
  0xe8   :  { %v863_v25 = vpop.f32.mrf.mxu1  ;;  %v622_v30 = vadd.f32 %v840_v28, %v144_v29 }
  0xe9   :  { %v842_v26 = vpop.f32.mrf.mxu0 }
  0xea   :  { %v864_v27 = vpop.f32.mrf.mxu1  ;;  %v662_v35 = vadd.f32 %v862_v31, %v622_v30 }
 0x103   :  { %v882_v32 = vpop.f32.mrf.mxu0 }
 0x104   :  { %v904_v33 = vpop.f32.mrf.mxu1 }
 0x105   :  { %v883_v34 = vpop.f32.mrf.mxu0 }
 0x106   :  { %v884_v36 = vadd.f32 %v883_v34, %v882_v32  ;;  %v905_v37 = vpop.f32.mrf.mxu1 }
 0x107   :  { %v885_v38 = vpop.f32.mrf.mxu0  ;;  %v906_v40 = vadd.f32 %v905_v37, %v904_v33 }
 0x108   :  { %v702_v39 = vadd.f32 %v884_v36, %v662_v35  ;;  %v907_v41 = vpop.f32.mrf.mxu1 }
 0x109   :  { %v886_v42 = vpop.f32.mrf.mxu0 }
 0x10a   :  { %v742_v43 = vadd.f32 %v906_v40, %v702_v39  ;;  %v908_v45 = vpop.f32.mrf.mxu1 }
 0x10c   :  { %v747_v46 = vpack.c.bf16 %v742_v43, %v742_v43 }
 0x10e   :  { %v752_v47 = vsel %vm750_vm2, %v747_v46, %v751_v44 }
 0x10f   :  { %753 = vst [vmem:[%s1217_s3] sm:$0x1] %v752_v47 }

// kernel: dvanet_forward.110
= control target key start
LH: loop header
LB: loop body
LE: loop exit
PB: predicated region body
PF: predicated region fallthrough
CT: control target
= control target key end

     0   :  { %v179_v0 = vmov 0.0   ;;  %vm180_vm0 = vmmov 0   ;;  %vm122_vm1 = vcmask 516096   ;;  %vm123_vm2 = vsmask.f32 256  ;;  %s237_s1 = inlined_call_operand.vmem [shape: bf16[128,64], index: 1, kind: input, shape index: {}]   ;;  %s238_s0 = inlined_call_operand.vmem [shape: bf16[1,128], index: 0, kind: input, shape index: {}]   ;;  %s239_s2 = inlined_call_operand.vmem [shape: f32[1,64], index: 2, kind: input, shape index: {}]   ;;  %s240_s3 = inlined_call_operand.vmem [shape: bf16[1,64], index: 3, kind: output, shape index: {}]  }
   0x1   :  { %149 = vmatprep.subr.bf16.mxu0 %v179_v0  ;;  %v171_v1 = vld [vmem:[%s237_s1 + $0x38] sm:$0xff]   ;;  %165 = vmatprep.mubr.msk.bf16.mxu0 %vm180_vm0, %v179_v0  ;;  %v172_v2 = vld [vmem:[%s237_s1 + $0x30] sm:$0xff]   ;;  %v173_v3 = vld [vmem:[%s237_s1 + $0x28] sm:$0xff]  }
   0x2   :  { %150 = vmatpush3.bf16.msra.mxu0 %v171_v1  ;;  %v174_v4 = vld [vmem:[%s237_s1 + $0x20] sm:$0xff]   ;;  %v175_v5 = vld [vmem:[%s237_s1 + $0x18] sm:$0xff]   ;;  %v176_v6 = vld [vmem:[%s237_s1 + $0x10] sm:$0xff]  }
   0x3   :  { %151 = vmatprep.subr.bf16.mxu0 %v179_v0  ;;  %v177_v7 = vld [vmem:[%s237_s1 + $0x8] sm:$0xff]   ;;  %v178_v8 = vld [vmem:[%s237_s1] sm:$0xff]   ;;  %vm124_vm3 = vmand %vm122_vm1, %vm123_vm2 }
   0x4   :  { %v15_v9 = vld [vmem:[%s238_s0] sm:$0x1] }
   0x5   :  { %v32_v10 = vld [vmem:[%s239_s2] sm:$0x1] }
   0x6   :  { %152 = vmatpush3.bf16.msra.mxu0 %v172_v2  ;;  %v125_v13 = vld [vmem:[%s240_s3] sm:$0x1] }
   0x7   :  { %153 = vmatprep.subr.bf16.mxu0 %v179_v0 }
   0xa   :  { %154 = vmatpush3.bf16.msra.mxu0 %v173_v3 }
   0xb   :  { %155 = vmatprep.subr.bf16.mxu0 %v179_v0 }
   0xe   :  { %156 = vmatpush3.bf16.msra.mxu0 %v174_v4 }
   0xf   :  { %157 = vmatprep.subr.bf16.mxu0 %v179_v0 }
  0x12   :  { %158 = vmatpush3.bf16.msra.mxu0 %v175_v5 }
  0x13   :  { %159 = vmatprep.subr.bf16.mxu0 %v179_v0 }
  0x16   :  { %160 = vmatpush3.bf16.msra.mxu0 %v176_v6 }
  0x17   :  { %161 = vmatprep.subr.bf16.mxu0 %v179_v0 }
  0x1a   :  { %162 = vmatpush3.bf16.msra.mxu0 %v177_v7 }
  0x1b   :  { %163 = vmatprep.subr.bf16.mxu0 %v179_v0 }
  0x1e   :  { %164 = vmatpush3.bf16.msra.mxu0 %v178_v8 }
  0x21   :  { %166 = vmatmul.mubr.bf16.vlgmr.msra.gmra.mxu0 %v15_v9 }
  0xe1   :  { %v115_v11 = vpop.f32.mrf.mxu0 }
  0xe2   :  { %v116_v12 = vadd.f32 %v115_v11, %v32_v10 }
  0xe3   :  { %v167_v14 = vpop.f32.mrf.mxu0 }
  0xe4   :  { %v121_v15 = vpack.c.bf16 %v116_v12, %v116_v12 }
  0xe5   :  { %v118_v16 = vpop.f32.mrf.mxu0 }
  0xe6   :  { %v126_v17 = vsel %vm124_vm3, %v121_v15, %v125_v13 }
  0xe7   :  { %127 = vst [vmem:[%s240_s3] sm:$0x1] %v126_v17  ;;  %v168_v18 = vpop.f32.mrf.mxu0 }

// kernel: dvanet_forward.125
= control target key start
LH: loop header
LB: loop body
LE: loop exit
PB: predicated region body
PF: predicated region fallthrough
CT: control target
= control target key end

     0   :  { %vm199_vm0 = vcmask 257024   ;;  %s341_s1 = inlined_call_operand.vmem [shape: bf16[256,32], index: 1, kind: input, shape index: {}]   ;;  %s342_s0 = inlined_call_operand.vmem [shape: bf16[8,256], index: 0, kind: input, shape index: {}]   ;;  %s343_s2 = inlined_call_operand.vmem [shape: f32[1,32], index: 2, kind: input, shape index: {}]   ;;  %s344_s3 = inlined_call_operand.vmem [shape: bf16[8,32], index: 3, kind: output, shape index: {}]  }
   0x1   :  { %v246_v0 = vld [vmem:[%s341_s1 + $0x78] sm:$0xff]   ;;  %v248_v2 = vld [vmem:[%s341_s1 + $0x70] sm:$0xff]   ;;  %v250_v4 = vld [vmem:[%s341_s1 + $0x68] sm:$0xff]  }
   0x2   :  { %v247_v1 = vld [vmem:[%s341_s1 + $0x38] sm:$0xff]   ;;  %224 = vmatprep.subr.bf16.mxu0 %v246_v0  ;;  %v249_v3 = vld [vmem:[%s341_s1 + $0x30] sm:$0xff]   ;;  %v251_v5 = vld [vmem:[%s341_s1 + $0x28] sm:$0xff]  }
   0x3   :  { %225 = vmatpush3.bf16.msra.mxu0 %v247_v1  ;;  %v252_v6 = vld [vmem:[%s341_s1 + $0x60] sm:$0xff]   ;;  %v254_v8 = vld [vmem:[%s341_s1 + $0x58] sm:$0xff]   ;;  %v256_v10 = vld [vmem:[%s341_s1 + $0x50] sm:$0xff]  }
   0x4   :  { %226 = vmatprep.subr.bf16.mxu0 %v248_v2  ;;  %v253_v7 = vld [vmem:[%s341_s1 + $0x20] sm:$0xff]   ;;  %v255_v9 = vld [vmem:[%s341_s1 + $0x18] sm:$0xff]   ;;  %v257_v13 = vld [vmem:[%s341_s1 + $0x10] sm:$0xff]  }
   0x5   :  { %v15_v11 = vld [vmem:[%s342_s0] sm:$0xff]  ;;  %v258_v14 = vld [vmem:[%s341_s1 + $0x48] sm:$0xff]  }
   0x6   :  { %v207_v12 = vcombine.high %v15_v11, %v15_v11  ;;  %v259_v15 = vld [vmem:[%s341_s1 + $0x8] sm:$0xff]   ;;  %v260_v16 = vld [vmem:[%s341_s1 + $0x40] sm:$0xff]   ;;  %v206_v18 = vcombine.low %v15_v11, %v15_v11 }
   0x7   :  { %227 = vmatpush3.bf16.msra.mxu0 %v249_v3  ;;  %v261_v17 = vld [vmem:[%s341_s1] sm:$0xff]  }
   0x8   :  { %228 = vmatprep.subr.bf16.mxu0 %v250_v4  ;;  %190 = vmatprep.mubr.bf16.mxu0 %v207_v12  ;;  %v205_v20 = vld [vmem:[%s343_s2] ss:$0 sm:$0xff] }
   0xb   :  { %229 = vmatpush3.bf16.msra.mxu0 %v251_v5 }
   0xc   :  { %230 = vmatprep.subr.bf16.mxu0 %v252_v6 }
   0xf   :  { %231 = vmatpush3.bf16.msra.mxu0 %v253_v7 }
  0x10   :  { %232 = vmatprep.subr.bf16.mxu0 %v254_v8 }
  0x13   :  { %233 = vmatpush3.bf16.msra.mxu0 %v255_v9 }
  0x14   :  { %234 = vmatprep.subr.bf16.mxu0 %v256_v10 }
  0x17   :  { %235 = vmatpush3.bf16.msra.mxu0 %v257_v13 }
  0x18   :  { %236 = vmatprep.subr.bf16.mxu0 %v258_v14 }
  0x1b   :  { %237 = vmatpush3.bf16.msra.mxu0 %v259_v15 }
  0x1c   :  { %238 = vmatprep.subr.bf16.mxu0 %v260_v16 }
  0x1f   :  { %239 = vmatpush3.bf16.msra.mxu0 %v261_v17 }
  0x22   :  { %191 = vmatmul.mubr.bf16.vlgmr.msra.gmra.mxu0 %v206_v18 }
  0xe2   :  { %v240_v19 = vpop.f32.mrf.mxu0 }
  0xe4   :  { %v241_v21 = vpop.f32.mrf.mxu0 }
  0xe5   :  { %v242_v22 = vadd.f32 %v241_v21, %v240_v19 }
  0xe6   :  { %v243_v23 = vpop.f32.mrf.mxu0 }
  0xe7   :  { %v193_v24 = vadd.f32 %v242_v22, %v205_v20 }
  0xe8   :  { %v244_v25 = vpop.f32.mrf.mxu0 }
  0xe9   :  { %v198_v26 = vpack.c.bf16 %v193_v24, %v193_v24 }
  0xeb   :  { %200 = vst.msk [vmem:[%s344_s3] sm:$0xf] %vm199_vm0, %v198_v26 }

// kernel: dvanet_forward.109
= control target key start
LH: loop header
LB: loop body
LE: loop exit
PB: predicated region body
PF: predicated region fallthrough
CT: control target
= control target key end

     0   :  { %v3275_v22 = vmov 1966171168   ;;  %v460_v24 = vlaneseq  ;;  %vm3277_vm0 = vmmov 0   ;;  %vm2511_vm1 = vcmask 1040384   ;;  %s4004_s1 = inlined_call_operand.vmem [shape: bf16[3456,128], index: 1, kind: input, shape index: {}]   ;;  %s4005_s0 = inlined_call_operand.vmem [shape: bf16[1,3456], index: 0, kind: input, shape index: {}]   ;;  %s4006_s2 = inlined_call_operand.vmem [shape: f32[1,128], index: 2, kind: input, shape index: {}]   ;;  %s4007_s3 = inlined_call_operand.vmem [shape: bf16[1,128], index: 3, kind: output, shape index: {}]  }
   0x1   :  { %v3056_v0 = vld [vmem:[%s4004_s1 + $0x78] sm:$0xff]   ;;  %v3060_v4 = vld [vmem:[%s4004_s1 + $0x70] sm:$0xff]   ;;  %v3064_v8 = vld [vmem:[%s4004_s1 + $0x68] sm:$0xff]   ;;  %v458_v23 = vunpack.c.l.s4 %v3275_v22  ;;  %vm2512_vm2 = vsmask.f32 256 }
   0x2   :  { %v3057_v1 = vld [vmem:[%s4004_s1 + $0xf8] sm:$0xff]   ;;  %2738 = vmatprep.subr.bf16.mxu0 %v3056_v0  ;;  %v3061_v5 = vld [vmem:[%s4004_s1 + $0xf0] sm:$0xff]   ;;  %v3065_v9 = vld [vmem:[%s4004_s1 + $0xe8] sm:$0xff]   ;;  %v461_v30 = vshrl.u32 %v460_v24, 7 }
   0x3   :  { %v3058_v2 = vld [vmem:[%s4004_s1 + $0x38] sm:$0xff]   ;;  %2760 = vmatprep.subr.bf16.mxu1 %v3057_v1  ;;  %v3062_v6 = vld [vmem:[%s4004_s1 + $0x30] sm:$0xff]   ;;  %v3066_v10 = vld [vmem:[%s4004_s1 + $0x28] sm:$0xff]   ;;  %v459_v29 = vunpack.c.0.s8 %v458_v23 }
   0x4   :  { %v3059_v3 = vld [vmem:[%s4004_s1 + $0xb8] sm:$0xff]   ;;  %2739 = vmatpush3.bf16.msra.mxu0 %v3058_v2  ;;  %v3063_v7 = vld [vmem:[%s4004_s1 + $0xb0] sm:$0xff]   ;;  %v3067_v11 = vld [vmem:[%s4004_s1 + $0xa8] sm:$0xff]  }
   0x5   :  { %2761 = vmatpush3.bf16.msra.mxu1 %v3059_v3  ;;  %2740 = vmatprep.subr.bf16.mxu0 %v3060_v4  ;;  %v3068_v12 = vld [vmem:[%s4004_s1 + $0x60] sm:$0xff]   ;;  %v3072_v16 = vld [vmem:[%s4004_s1 + $0x58] sm:$0xff]   ;;  %v3076_v20 = vld [vmem:[%s4004_s1 + $0x50] sm:$0xff]   ;;  %v3388_v35 = vsub.s32 %v459_v29, %v461_v30 }
   0x6   :  { %2762 = vmatprep.subr.bf16.mxu1 %v3061_v5  ;;  %v3069_v13 = vld [vmem:[%s4004_s1 + $0xe0] sm:$0xff]   ;;  %v3073_v17 = vld [vmem:[%s4004_s1 + $0xd8] sm:$0xff]   ;;  %v3077_v21 = vld [vmem:[%s4004_s1 + $0xd0] sm:$0xff]  }
   0x7   :  { %v3070_v14 = vld [vmem:[%s4004_s1 + $0x20] sm:$0xff]   ;;  %v3074_v18 = vld [vmem:[%s4004_s1 + $0x18] sm:$0xff]   ;;  %v3078_v25 = vld [vmem:[%s4004_s1 + $0x10] sm:$0xff]  }
   0x8   :  { %2741 = vmatpush3.bf16.msra.mxu0 %v3062_v6  ;;  %v3071_v15 = vld [vmem:[%s4004_s1 + $0xa0] sm:$0xff]   ;;  %v3075_v19 = vld [vmem:[%s4004_s1 + $0x98] sm:$0xff]   ;;  %v3079_v26 = vld [vmem:[%s4004_s1 + $0x90] sm:$0xff]  }
   0x9   :  { %2763 = vmatpush3.bf16.msra.mxu1 %v3063_v7  ;;  %2742 = vmatprep.subr.bf16.mxu0 %v3064_v8  ;;  %v3080_v27 = vld [vmem:[%s4004_s1 + $0x48] sm:$0xff]   ;;  %v3084_v33 = vld [vmem:[%s4004_s1 + $0x40] sm:$0xff]   ;;  %v3089_v41 = vld [vmem:[%s4004_s1 + $0x178] sm:$0xff]  }
   0xa   :  { %2764 = vmatprep.subr.bf16.mxu1 %v3065_v9  ;;  %v3081_v28 = vld [vmem:[%s4004_s1 + $0xc8] sm:$0xff]   ;;  %v3085_v34 = vld [vmem:[%s4004_s1 + $0xc0] sm:$0xff]   ;;  %v3090_v42 = vld [vmem:[%s4004_s1 + $0x1f8] sm:$0xff]  }
   0xb   :  { %v3082_v31 = vld [vmem:[%s4004_s1 + $0x8] sm:$0xff]   ;;  %v3086_v36 = vld [vmem:[%s4004_s1] sm:$0xff]   ;;  %v3091_v47 = vld [vmem:[%s4004_s1 + $0x138] sm:$0xff]  }
   0xc   :  { %2743 = vmatpush3.bf16.msra.mxu0 %v3066_v10  ;;  %v3083_v32 = vld [vmem:[%s4004_s1 + $0x88] sm:$0xff]   ;;  %v3087_v37 = vld [vmem:[%s4004_s1 + $0x80] sm:$0xff]   ;;  %v3093_v50 = vld [vmem:[%s4004_s1 + $0x170] sm:$0xff]  }
   0xd   :  { %2765 = vmatpush3.bf16.msra.mxu1 %v3067_v11  ;;  %2744 = vmatprep.subr.bf16.mxu0 %v3068_v12  ;;  %v15_v38 = vld [vmem:[%s4005_s0] sm:$0xff]  ;;  %v3092_v52 = vld [vmem:[%s4004_s1 + $0x1b8] sm:$0xff]   ;;  %v3094_v54 = vld [vmem:[%s4004_s1 + $0x1f0] sm:$0xff]  }
   0xe   :  { %2766 = vmatprep.subr.bf16.mxu1 %v3069_v13  ;;  %v456_v39 = vcombine.high %v15_v38, %v15_v38  ;;  %v463_v40 = vrot.slane %v15_v38, %v3388_v35  ;;  %v3095_v55 = vld [vmem:[%s4004_s1 + $0x130] sm:$0xff]   ;;  %v3097_v57 = vld [vmem:[%s4004_s1 + $0x168] sm:$0xff]   ;;  %v3101_v61 = vld [vmem:[%s4004_s1 + $0x160] sm:$0xff]  }
   0xf   :  { %v3096_v58 = vld [vmem:[%s4004_s1 + $0x1b0] sm:$0xff]   ;;  %v3098_v59 = vld [vmem:[%s4004_s1 + $0x1e8] sm:$0xff]   ;;  %v3102_v63 = vld [vmem:[%s4004_s1 + $0x1e0] sm:$0xff]  }
  0x10   :  { %2745 = vmatpush3.bf16.msra.mxu0 %v3070_v14  ;;  %v471_v43 = vcombine.high %v463_v40, %v463_v40  ;;  %v479_v44 = vrot.slane %v463_v40, %v3388_v35  ;;  %v3408_v45 = vrot.slane %v456_v39, %v3388_v35  ;;  %v3099_v60 = vld [vmem:[%s4004_s1 + $0x128] sm:$0xff]   ;;  %v3103_v0 = vld [vmem:[%s4004_s1 + $0x120] sm:$0xff]   ;;  %v3105_v1 = vld [vmem:[%s4004_s1 + $0x158] sm:$0xff]  }
  0x11   :  { %2767 = vmatpush3.bf16.msra.mxu1 %v3071_v15  ;;  %2746 = vmatprep.subr.bf16.mxu0 %v3072_v16  ;;  %v3100_v62 = vld [vmem:[%s4004_s1 + $0x1a8] sm:$0xff]   ;;  %v3104_v2 = vld [vmem:[%s4004_s1 + $0x1a0] sm:$0xff]   ;;  %v3106_v3 = vld [vmem:[%s4004_s1 + $0x1d8] sm:$0xff]  }
  0x12   :  { %2768 = vmatprep.subr.bf16.mxu1 %v3073_v17  ;;  %v493_v46 = vrot.slane %v471_v43, %v3388_v35  ;;  %v472_v48 = vcombine.high %v3408_v45, %v3408_v45  ;;  %v501_v49 = vcombine.high %v479_v44, %v479_v44  ;;  %v3107_v4 = vld [vmem:[%s4004_s1 + $0x118] sm:$0xff]   ;;  %v3109_v5 = vld [vmem:[%s4004_s1 + $0x150] sm:$0xff]   ;;  %v3113_v9 = vld [vmem:[%s4004_s1 + $0x148] sm:$0xff]   ;;  %v486_v17 = vrot.slane %v3408_v45, %v3388_v35 }
  0x13   :  { %v3108_v6 = vld [vmem:[%s4004_s1 + $0x198] sm:$0xff]   ;;  %v3110_v7 = vld [vmem:[%s4004_s1 + $0x1d0] sm:$0xff]   ;;  %v3114_v11 = vld [vmem:[%s4004_s1 + $0x1c8] sm:$0xff]  }
  0x14   :  { %2747 = vmatpush3.bf16.msra.mxu0 %v3074_v18  ;;  %1981 = vmatprep.mubr.bf16.mxu0 %v493_v46  ;;  %v503_v51 = vcombine.high %v493_v46, %v493_v46  ;;  %v500_v53 = vrot.slane %v472_v48, %v3388_v35  ;;  %v3111_v8 = vld [vmem:[%s4004_s1 + $0x110] sm:$0xff]   ;;  %v3115_v12 = vld [vmem:[%s4004_s1 + $0x108] sm:$0xff]   ;;  %v3117_v13 = vld [vmem:[%s4004_s1 + $0x140] sm:$0xff]   ;;  %v502_v22 = vcombine.high %v486_v17, %v486_v17 }
  0x15   :  { %2769 = vmatpush3.bf16.msra.mxu1 %v3075_v19  ;;  %2748 = vmatprep.subr.bf16.mxu0 %v3076_v20  ;;  %v3112_v10 = vld [vmem:[%s4004_s1 + $0x190] sm:$0xff]   ;;  %v3116_v14 = vld [vmem:[%s4004_s1 + $0x188] sm:$0xff]   ;;  %v3118_v15 = vld [vmem:[%s4004_s1 + $0x1c0] sm:$0xff]  }
  0x16   :  { %2770 = vmatprep.subr.bf16.mxu1 %v3077_v21  ;;  %2021 = vmatprep.mubr.bf16.mxu1 %v503_v51  ;;  %v504_v56 = vcombine.high %v500_v53, %v500_v53  ;;  %v3119_v16 = vld [vmem:[%s4004_s1 + $0x100] sm:$0xff]   ;;  %v3121_v18 = vld [vmem:[%s4004_s1 + $0x278] sm:$0xff]   ;;  %v3125_v23 = vld [vmem:[%s4004_s1 + $0x270] sm:$0xff]  }
  0x17   :  { %v3120_v19 = vld [vmem:[%s4004_s1 + $0x180] sm:$0xff]   ;;  %v3122_v20 = vld [vmem:[%s4004_s1 + $0x2f8] sm:$0xff]   ;;  %v3130_v29 = vld [vmem:[%s4004_s1 + $0x2e8] sm:$0xff]  }
  0x18   :  { %2749 = vmatpush3.bf16.msra.mxu0 %v3078_v25  ;;  %v3123_v21 = vld [vmem:[%s4004_s1 + $0x238] sm:$0xff]   ;;  %v3126_v25 = vld [vmem:[%s4004_s1 + $0x2f0] sm:$0xff]   ;;  %v3131_v30 = vld [vmem:[%s4004_s1 + $0x228] sm:$0xff]  }
  0x19   :  { %2771 = vmatpush3.bf16.msra.mxu1 %v3079_v26  ;;  %2750 = vmatprep.subr.bf16.mxu0 %v3080_v27  ;;  %v3124_v24 = vld [vmem:[%s4004_s1 + $0x2b8] sm:$0xff]   ;;  %v3127_v26 = vld [vmem:[%s4004_s1 + $0x230] sm:$0xff]   ;;  %v3129_v27 = vld [vmem:[%s4004_s1 + $0x268] sm:$0xff]  }
  0x1a   :  { %2772 = vmatprep.subr.bf16.mxu1 %v3081_v28  ;;  %v3128_v28 = vld [vmem:[%s4004_s1 + $0x2b0] sm:$0xff]   ;;  %v3138_v38 = vld [vmem:[%s4004_s1 + $0x2d8] sm:$0xff]   ;;  %v3146_v46 = vld [vmem:[%s4004_s1 + $0x2c8] sm:$0xff]  }
  0x1b   :  { %v3139_v39 = vld [vmem:[%s4004_s1 + $0x218] sm:$0xff]   ;;  %v3141_v40 = vld [vmem:[%s4004_s1 + $0x250] sm:$0xff]   ;;  %v3149_v48 = vld [vmem:[%s4004_s1 + $0x240] sm:$0xff]  }
  0x1c   :  { %2751 = vmatpush3.bf16.msra.mxu0 %v3082_v31  ;;  %v3133_v31 = vld [vmem:[%s4004_s1 + $0x260] sm:$0xff]   ;;  %v3143_v43 = vld [vmem:[%s4004_s1 + $0x210] sm:$0xff]   ;;  %v16_v51 = vld [vmem:[%s4005_s0 + $0x8] sm:$0xff] }
  0x1d   :  { %2773 = vmatpush3.bf16.msra.mxu1 %v3083_v32  ;;  %2752 = vmatprep.subr.bf16.mxu0 %v3084_v33  ;;  %v3132_v32 = vld [vmem:[%s4004_s1 + $0x2a8] sm:$0xff]   ;;  %v3134_v33 = vld [vmem:[%s4004_s1 + $0x2e0] sm:$0xff]   ;;  %v3144_v45 = vld [vmem:[%s4004_s1 + $0x290] sm:$0xff]  }
  0x1e   :  { %2774 = vmatprep.subr.bf16.mxu1 %v3085_v34  ;;  %v3135_v34 = vld [vmem:[%s4004_s1 + $0x220] sm:$0xff]   ;;  %vm2513_vm3 = vmand %vm2511_vm1, %vm2512_vm2 }
  0x20   :  { %2753 = vmatpush3.bf16.msra.mxu0 %v3086_v36  ;;  %v3137_v36 = vld [vmem:[%s4004_s1 + $0x258] sm:$0xff]  }
  0x21   :  { %2775 = vmatpush3.bf16.msra.mxu1 %v3087_v37  ;;  %2782 = vmatprep.subr.bf16.mxu0 %v3089_v41  ;;  %v3136_v37 = vld [vmem:[%s4004_s1 + $0x2a0] sm:$0xff]   ;;  %v3140_v41 = vld [vmem:[%s4004_s1 + $0x298] sm:$0xff]  }
  0x22   :  { %2804 = vmatprep.subr.bf16.mxu1 %v3090_v42  ;;  %v3142_v42 = vld [vmem:[%s4004_s1 + $0x2d0] sm:$0xff]  }
  0x23   :  { %1982 = vmatmul.mubr.bf16.vlgmr.msra.gmra.mxu0 %v479_v44  ;;  %v3145_v44 = vld [vmem:[%s4004_s1 + $0x248] sm:$0xff]  }
  0x24   :  { %2783 = vmatpush3.bf16.msra.mxu0 %v3091_v47  ;;  %2022 = vmatmul.mubr.bf16.vlgmr.msra.gmra.mxu1 %v501_v49  ;;  %v3147_v47 = vld [vmem:[%s4004_s1 + $0x208] sm:$0xff]  }
  0x25   :  { %2784 = vmatprep.subr.bf16.mxu0 %v3093_v50  ;;  %2805 = vmatpush3.bf16.msra.mxu1 %v3092_v52  ;;  %v3148_v49 = vld [vmem:[%s4004_s1 + $0x288] sm:$0xff]   ;;  %v3150_v50 = vld [vmem:[%s4004_s1 + $0x2c0] sm:$0xff]  }
  0x26   :  { %2061 = vmatprep.mubr.bf16.mxu0 %v500_v53  ;;  %2806 = vmatprep.subr.bf16.mxu1 %v3094_v54  ;;  %v3151_v52 = vld [vmem:[%s4004_s1 + $0x200] sm:$0xff]   ;;  %v512_v53 = vrot.slane %v16_v51, %v3388_v35  ;;  %v505_v54 = vcombine.high %v16_v51, %v16_v51  ;;  %v3202_v51 = vld [vmem:[%s4004_s1 + $0x458] sm:$0xff]  }
  0x27   :  { %2101 = vmatprep.mubr.bf16.mxu1 %v504_v56  ;;  %v3152_v56 = vld [vmem:[%s4004_s1 + $0x280] sm:$0xff]  }
  0x28   :  { %2785 = vmatpush3.bf16.msra.mxu0 %v3095_v55  ;;  %v3153_v55 = vld [vmem:[%s4004_s1 + $0x378] sm:$0xff]  }
  0x29   :  { %2786 = vmatprep.subr.bf16.mxu0 %v3097_v57  ;;  %2807 = vmatpush3.bf16.msra.mxu1 %v3096_v58  ;;  %v520_v57 = vcombine.high %v512_v53, %v512_v53  ;;  %v528_v58 = vrot.slane %v512_v53, %v3388_v35  ;;  %v3203_v53 = vld [vmem:[%s4004_s1 + $0x4d8] sm:$0xff]  }
  0x2a   :  { %2808 = vmatprep.subr.bf16.mxu1 %v3098_v59  ;;  %v3611_v59 = vrot.slane %v505_v54, %v3388_v35  ;;  %v3204_v54 = vld [vmem:[%s4004_s1 + $0x418] sm:$0xff]  }
  0x2c   :  { %2787 = vmatpush3.bf16.msra.mxu0 %v3099_v60  ;;  %v3154_v60 = vld [vmem:[%s4004_s1 + $0x3f8] sm:$0xff]  }
  0x2d   :  { %2788 = vmatprep.subr.bf16.mxu0 %v3101_v61  ;;  %2809 = vmatpush3.bf16.msra.mxu1 %v3100_v62  ;;  %v542_v61 = vrot.slane %v520_v57, %v3388_v35  ;;  %v3155_v62 = vld [vmem:[%s4004_s1 + $0x338] sm:$0xff]   ;;  %v3207_v57 = vld [vmem:[%s4004_s1 + $0x4d0] sm:$0xff]  }
  0x2e   :  { %2810 = vmatprep.subr.bf16.mxu1 %v3102_v63  ;;  %v521_v63 = vcombine.high %v3611_v59, %v3611_v59 }
  0x30   :  { %2789 = vmatpush3.bf16.msra.mxu0 %v3103_v0  ;;  %v550_v0 = vcombine.high %v528_v58, %v528_v58 }
  0x31   :  { %2790 = vmatprep.subr.bf16.mxu0 %v3105_v1  ;;  %2811 = vmatpush3.bf16.msra.mxu1 %v3104_v2  ;;  %v3157_v1 = vld [vmem:[%s4004_s1 + $0x370] sm:$0xff]   ;;  %v552_v2 = vcombine.high %v542_v61, %v542_v61 }
  0x32   :  { %2812 = vmatprep.subr.bf16.mxu1 %v3106_v3  ;;  %v3156_v3 = vld [vmem:[%s4004_s1 + $0x3b8] sm:$0xff]  }
  0x34   :  { %2791 = vmatpush3.bf16.msra.mxu0 %v3107_v4  ;;  %v549_v4 = vrot.slane %v521_v63, %v3388_v35  ;;  %v3214_v63 = vld [vmem:[%s4004_s1 + $0x440] sm:$0xff]  }
  0x35   :  { %2792 = vmatprep.subr.bf16.mxu0 %v3109_v5  ;;  %2813 = vmatpush3.bf16.msra.mxu1 %v3108_v6  ;;  %v3158_v5 = vld [vmem:[%s4004_s1 + $0x3f0] sm:$0xff]  }
  0x36   :  { %2814 = vmatprep.subr.bf16.mxu1 %v3110_v7  ;;  %v3159_v6 = vld [vmem:[%s4004_s1 + $0x330] sm:$0xff]   ;;  %v553_v7 = vcombine.high %v549_v4, %v549_v4 }
  0x38   :  { %2793 = vmatpush3.bf16.msra.mxu0 %v3111_v8  ;;  %v3161_v8 = vld [vmem:[%s4004_s1 + $0x368] sm:$0xff]  }
  0x39   :  { %2794 = vmatprep.subr.bf16.mxu0 %v3113_v9  ;;  %2815 = vmatpush3.bf16.msra.mxu1 %v3112_v10  ;;  %v3160_v9 = vld [vmem:[%s4004_s1 + $0x3b0] sm:$0xff]   ;;  %v3162_v10 = vld [vmem:[%s4004_s1 + $0x3e8] sm:$0xff]  }
  0x3a   :  { %2816 = vmatprep.subr.bf16.mxu1 %v3114_v11  ;;  %v3163_v11 = vld [vmem:[%s4004_s1 + $0x328] sm:$0xff]  }
  0x3c   :  { %2795 = vmatpush3.bf16.msra.mxu0 %v3115_v12  ;;  %v3165_v12 = vld [vmem:[%s4004_s1 + $0x360] sm:$0xff]  }
  0x3d   :  { %2796 = vmatprep.subr.bf16.mxu0 %v3117_v13  ;;  %2817 = vmatpush3.bf16.msra.mxu1 %v3116_v14  ;;  %v3164_v13 = vld [vmem:[%s4004_s1 + $0x3a8] sm:$0xff]   ;;  %v3166_v14 = vld [vmem:[%s4004_s1 + $0x3e0] sm:$0xff]  }
  0x3e   :  { %2818 = vmatprep.subr.bf16.mxu1 %v3118_v15  ;;  %v3167_v15 = vld [vmem:[%s4004_s1 + $0x320] sm:$0xff]  }
  0x40   :  { %2797 = vmatpush3.bf16.msra.mxu0 %v3119_v16  ;;  %v3169_v16 = vld [vmem:[%s4004_s1 + $0x358] sm:$0xff]  }
  0x41   :  { %2826 = vmatprep.subr.bf16.mxu0 %v3121_v18  ;;  %2819 = vmatpush3.bf16.msra.mxu1 %v3120_v19  ;;  %v3170_v18 = vld [vmem:[%s4004_s1 + $0x3d8] sm:$0xff]  }
  0x42   :  { %2848 = vmatprep.subr.bf16.mxu1 %v3122_v20  ;;  %v3171_v19 = vld [vmem:[%s4004_s1 + $0x318] sm:$0xff]   ;;  %v3173_v20 = vld [vmem:[%s4004_s1 + $0x350] sm:$0xff]  }
  0x43   :  { %2062 = vmatmul.mubr.bf16.vlgmr.msra.gmra.mxu0 %v486_v17  ;;  %v3168_v17 = vld [vmem:[%s4004_s1 + $0x3a0] sm:$0xff]  }
  0x44   :  { %2827 = vmatpush3.bf16.msra.mxu0 %v3123_v21  ;;  %2102 = vmatmul.mubr.bf16.vlgmr.msra.gmra.mxu1 %v502_v22  ;;  %v3172_v21 = vld [vmem:[%s4004_s1 + $0x398] sm:$0xff]   ;;  %v3174_v22 = vld [vmem:[%s4004_s1 + $0x3d0] sm:$0xff]  }
  0x45   :  { %2828 = vmatprep.subr.bf16.mxu0 %v3125_v23  ;;  %2849 = vmatpush3.bf16.msra.mxu1 %v3124_v24  ;;  %v3175_v23 = vld [vmem:[%s4004_s1 + $0x310] sm:$0xff]   ;;  %v3177_v24 = vld [vmem:[%s4004_s1 + $0x348] sm:$0xff]  }
  0x46   :  { %2850 = vmatprep.subr.bf16.mxu1 %v3126_v25  ;;  %2141 = vmatprep.mubr.bf16.mxu0 %v542_v61  ;;  %v3176_v25 = vld [vmem:[%s4004_s1 + $0x390] sm:$0xff]   ;;  %v3211_v61 = vld [vmem:[%s4004_s1 + $0x4c8] sm:$0xff]  }
  0x47   :  { %2181 = vmatprep.mubr.bf16.mxu1 %v552_v2  ;;  %v17_v2 = vld [vmem:[%s4005_s0 + $0x10] sm:$0xff] }
  0x48   :  { %2829 = vmatpush3.bf16.msra.mxu0 %v3127_v26  ;;  %v3178_v26 = vld [vmem:[%s4004_s1 + $0x3c8] sm:$0xff]  }
  0x49   :  { %2830 = vmatprep.subr.bf16.mxu0 %v3129_v27  ;;  %2851 = vmatpush3.bf16.msra.mxu1 %v3128_v28  ;;  %v3179_v27 = vld [vmem:[%s4004_s1 + $0x308] sm:$0xff]   ;;  %v3181_v28 = vld [vmem:[%s4004_s1 + $0x340] sm:$0xff]  }
  0x4a   :  { %2852 = vmatprep.subr.bf16.mxu1 %v3130_v29  ;;  %v3180_v29 = vld [vmem:[%s4004_s1 + $0x388] sm:$0xff]  }
  0x4c   :  { %2831 = vmatpush3.bf16.msra.mxu0 %v3131_v30  ;;  %v3182_v30 = vld [vmem:[%s4004_s1 + $0x3c0] sm:$0xff]  }
  0x4d   :  { %2832 = vmatprep.subr.bf16.mxu0 %v3133_v31  ;;  %2853 = vmatpush3.bf16.msra.mxu1 %v3132_v32  ;;  %v3183_v31 = vld [vmem:[%s4004_s1 + $0x300] sm:$0xff]   ;;  %v535_v32 = vrot.slane %v3611_v59, %v3388_v35  ;;  %v3210_v59 = vld [vmem:[%s4004_s1 + $0x448] sm:$0xff]  }
  0x4e   :  { %2854 = vmatprep.subr.bf16.mxu1 %v3134_v33  ;;  %v3186_v33 = vld [vmem:[%s4004_s1 + $0x478] sm:$0xff]  }
  0x50   :  { %2833 = vmatpush3.bf16.msra.mxu0 %v3135_v34  ;;  %v3184_v34 = vld [vmem:[%s4004_s1 + $0x380] sm:$0xff]  }
  0x51   :  { %2834 = vmatprep.subr.bf16.mxu0 %v3137_v36  ;;  %2855 = vmatpush3.bf16.msra.mxu1 %v3136_v37  ;;  %v3187_v36 = vld [vmem:[%s4004_s1 + $0x4f8] sm:$0xff]  }
  0x52   :  { %2856 = vmatprep.subr.bf16.mxu1 %v3138_v38  ;;  %v3188_v37 = vld [vmem:[%s4004_s1 + $0x438] sm:$0xff]   ;;  %v551_v38 = vcombine.high %v535_v32, %v535_v32 }
  0x54   :  { %2835 = vmatpush3.bf16.msra.mxu0 %v3139_v39  ;;  %v3190_v39 = vld [vmem:[%s4004_s1 + $0x470] sm:$0xff]  }
  0x55   :  { %2836 = vmatprep.subr.bf16.mxu0 %v3141_v40  ;;  %2857 = vmatpush3.bf16.msra.mxu1 %v3140_v41  ;;  %v3189_v40 = vld [vmem:[%s4004_s1 + $0x4b8] sm:$0xff]   ;;  %v3191_v41 = vld [vmem:[%s4004_s1 + $0x4f0] sm:$0xff]  }
  0x56   :  { %2858 = vmatprep.subr.bf16.mxu1 %v3142_v42  ;;  %v3192_v42 = vld [vmem:[%s4004_s1 + $0x430] sm:$0xff]  }
  0x58   :  { %2837 = vmatpush3.bf16.msra.mxu0 %v3143_v43  ;;  %v3194_v43 = vld [vmem:[%s4004_s1 + $0x468] sm:$0xff]  }
  0x59   :  { %2838 = vmatprep.subr.bf16.mxu0 %v3145_v44  ;;  %2859 = vmatpush3.bf16.msra.mxu1 %v3144_v45  ;;  %v3193_v44 = vld [vmem:[%s4004_s1 + $0x4b0] sm:$0xff]   ;;  %v3195_v45 = vld [vmem:[%s4004_s1 + $0x4e8] sm:$0xff]  }
  0x5a   :  { %2860 = vmatprep.subr.bf16.mxu1 %v3146_v46  ;;  %v3196_v46 = vld [vmem:[%s4004_s1 + $0x428] sm:$0xff]  }
  0x5c   :  { %2839 = vmatpush3.bf16.msra.mxu0 %v3147_v47  ;;  %v3198_v47 = vld [vmem:[%s4004_s1 + $0x460] sm:$0xff]  }
  0x5d   :  { %2840 = vmatprep.subr.bf16.mxu0 %v3149_v48  ;;  %2861 = vmatpush3.bf16.msra.mxu1 %v3148_v49  ;;  %v3197_v48 = vld [vmem:[%s4004_s1 + $0x4a8] sm:$0xff]   ;;  %v3199_v49 = vld [vmem:[%s4004_s1 + $0x4e0] sm:$0xff]  }
  0x5e   :  { %2862 = vmatprep.subr.bf16.mxu1 %v3150_v50  ;;  %v3200_v50 = vld [vmem:[%s4004_s1 + $0x420] sm:$0xff]  }
  0x60   :  { %2841 = vmatpush3.bf16.msra.mxu0 %v3151_v52  ;;  %v3201_v52 = vld [vmem:[%s4004_s1 + $0x4a0] sm:$0xff]  }
  0x61   :  { %2870 = vmatprep.subr.bf16.mxu0 %v3153_v55  ;;  %2863 = vmatpush3.bf16.msra.mxu1 %v3152_v56  ;;  %v3206_v55 = vld [vmem:[%s4004_s1 + $0x450] sm:$0xff]   ;;  %v3205_v56 = vld [vmem:[%s4004_s1 + $0x498] sm:$0xff]  }
  0x62   :  { %2892 = vmatprep.subr.bf16.mxu1 %v3154_v60  ;;  %v3209_v60 = vld [vmem:[%s4004_s1 + $0x490] sm:$0xff]  }
  0x63   :  { %2142 = vmatmul.mubr.bf16.vlgmr.msra.gmra.mxu0 %v528_v58  ;;  %v3208_v58 = vld [vmem:[%s4004_s1 + $0x410] sm:$0xff]  }
  0x64   :  { %2871 = vmatpush3.bf16.msra.mxu0 %v3155_v62  ;;  %2182 = vmatmul.mubr.bf16.vlgmr.msra.gmra.mxu1 %v550_v0  ;;  %v3212_v62 = vld [vmem:[%s4004_s1 + $0x408] sm:$0xff]  }
  0x65   :  { %2872 = vmatprep.subr.bf16.mxu0 %v3157_v1  ;;  %2893 = vmatpush3.bf16.msra.mxu1 %v3156_v3  ;;  %v3213_v0 = vld [vmem:[%s4004_s1 + $0x488] sm:$0xff]   ;;  %v3215_v1 = vld [vmem:[%s4004_s1 + $0x4c0] sm:$0xff]  }
  0x66   :  { %2221 = vmatprep.mubr.bf16.mxu0 %v549_v4  ;;  %2894 = vmatprep.subr.bf16.mxu1 %v3158_v5  ;;  %v3216_v3 = vld [vmem:[%s4004_s1 + $0x400] sm:$0xff]   ;;  %v561_v4 = vrot.slane %v17_v2, %v3388_v35  ;;  %v554_v5 = vcombine.high %v17_v2, %v17_v2  ;;  %v3266_v2 = vld [vmem:[%s4004_s1 + $0x650] sm:$0xff]  }
  0x67   :  { %2261 = vmatprep.mubr.bf16.mxu1 %v553_v7  ;;  %v3217_v7 = vld [vmem:[%s4004_s1 + $0x480] sm:$0xff]  }
  0x68   :  { %2873 = vmatpush3.bf16.msra.mxu0 %v3159_v6  ;;  %v3218_v6 = vld [vmem:[%s4004_s1 + $0x578] sm:$0xff]  }
  0x69   :  { %2874 = vmatprep.subr.bf16.mxu0 %v3161_v8  ;;  %2895 = vmatpush3.bf16.msra.mxu1 %v3160_v9  ;;  %v569_v8 = vcombine.high %v561_v4, %v561_v4  ;;  %v577_v9 = vrot.slane %v561_v4, %v3388_v35  ;;  %v3267_v4 = vld [vmem:[%s4004_s1 + $0x610] sm:$0xff]  }
  0x6a   :  { %2896 = vmatprep.subr.bf16.mxu1 %v3162_v10  ;;  %v3817_v10 = vrot.slane %v554_v5, %v3388_v35  ;;  %v2521_v5 = vld.sshfl [vmem:[%s4005_s0 + $0x18] sm:$0x13 pattern:$0x75316420] }
  0x6c   :  { %2875 = vmatpush3.bf16.msra.mxu0 %v3163_v11  ;;  %v3219_v11 = vld [vmem:[%s4004_s1 + $0x5f8] sm:$0xff]  }
  0x6d   :  { %2876 = vmatprep.subr.bf16.mxu0 %v3165_v12  ;;  %2897 = vmatpush3.bf16.msra.mxu1 %v3164_v13  ;;  %v591_v12 = vrot.slane %v569_v8, %v3388_v35  ;;  %v3220_v13 = vld [vmem:[%s4004_s1 + $0x538] sm:$0xff]   ;;  %v3268_v8 = vld [vmem:[%s4004_s1 + $0x690] sm:$0xff]  }
  0x6e   :  { %2898 = vmatprep.subr.bf16.mxu1 %v3166_v14  ;;  %v570_v14 = vcombine.high %v3817_v10, %v3817_v10 }
  0x70   :  { %2877 = vmatpush3.bf16.msra.mxu0 %v3167_v15  ;;  %v599_v15 = vcombine.high %v577_v9, %v577_v9 }
  0x71   :  { %2878 = vmatprep.subr.bf16.mxu0 %v3169_v16  ;;  %2899 = vmatpush3.bf16.msra.mxu1 %v3168_v17  ;;  %v3222_v16 = vld [vmem:[%s4004_s1 + $0x570] sm:$0xff]   ;;  %v601_v17 = vcombine.high %v591_v12, %v591_v12 }
  0x72   :  { %2900 = vmatprep.subr.bf16.mxu1 %v3170_v18  ;;  %v3221_v18 = vld [vmem:[%s4004_s1 + $0x5b8] sm:$0xff]  }
  0x74   :  { %2879 = vmatpush3.bf16.msra.mxu0 %v3171_v19  ;;  %v598_v19 = vrot.slane %v570_v14, %v3388_v35  ;;  %v617_v14 = vrot.slane %v2521_v5, %v3388_v35 }
  0x75   :  { %2880 = vmatprep.subr.bf16.mxu0 %v3173_v20  ;;  %2901 = vmatpush3.bf16.msra.mxu1 %v3172_v21  ;;  %v3223_v20 = vld [vmem:[%s4004_s1 + $0x5f0] sm:$0xff]  }
  0x76   :  { %2902 = vmatprep.subr.bf16.mxu1 %v3174_v22  ;;  %v3224_v21 = vld [vmem:[%s4004_s1 + $0x530] sm:$0xff]   ;;  %v602_v22 = vcombine.high %v598_v19, %v598_v19 }
  0x78   :  { %2881 = vmatpush3.bf16.msra.mxu0 %v3175_v23  ;;  %v3226_v23 = vld [vmem:[%s4004_s1 + $0x568] sm:$0xff]  }
  0x79   :  { %2882 = vmatprep.subr.bf16.mxu0 %v3177_v24  ;;  %2903 = vmatpush3.bf16.msra.mxu1 %v3176_v25  ;;  %v3225_v24 = vld [vmem:[%s4004_s1 + $0x5b0] sm:$0xff]   ;;  %v3227_v25 = vld [vmem:[%s4004_s1 + $0x5e8] sm:$0xff]  }
  0x7a   :  { %2904 = vmatprep.subr.bf16.mxu1 %v3178_v26  ;;  %v3228_v26 = vld [vmem:[%s4004_s1 + $0x528] sm:$0xff]  }
  0x7c   :  { %2883 = vmatpush3.bf16.msra.mxu0 %v3179_v27  ;;  %v3230_v27 = vld [vmem:[%s4004_s1 + $0x560] sm:$0xff]  }
  0x7d   :  { %2884 = vmatprep.subr.bf16.mxu0 %v3181_v28  ;;  %2905 = vmatpush3.bf16.msra.mxu1 %v3180_v29  ;;  %v3229_v28 = vld [vmem:[%s4004_s1 + $0x5a8] sm:$0xff]   ;;  %v3231_v29 = vld [vmem:[%s4004_s1 + $0x5e0] sm:$0xff]  }
  0x7e   :  { %2906 = vmatprep.subr.bf16.mxu1 %v3182_v30  ;;  %v3232_v30 = vld [vmem:[%s4004_s1 + $0x520] sm:$0xff]  }
  0x80   :  { %2885 = vmatpush3.bf16.msra.mxu0 %v3183_v31  ;;  %v3234_v31 = vld [vmem:[%s4004_s1 + $0x558] sm:$0xff]  }
  0x81   :  { %2914 = vmatprep.subr.bf16.mxu0 %v3186_v33  ;;  %2907 = vmatpush3.bf16.msra.mxu1 %v3184_v34  ;;  %v3235_v33 = vld [vmem:[%s4004_s1 + $0x5d8] sm:$0xff]  }
  0x82   :  { %2936 = vmatprep.subr.bf16.mxu1 %v3187_v36  ;;  %v3236_v34 = vld [vmem:[%s4004_s1 + $0x518] sm:$0xff]   ;;  %v3238_v36 = vld [vmem:[%s4004_s1 + $0x550] sm:$0xff]  }
  0x83   :  { %2222 = vmatmul.mubr.bf16.vlgmr.msra.gmra.mxu0 %v535_v32  ;;  %v3233_v32 = vld [vmem:[%s4004_s1 + $0x5a0] sm:$0xff]  }
  0x84   :  { %2915 = vmatpush3.bf16.msra.mxu0 %v3188_v37  ;;  %2262 = vmatmul.mubr.bf16.vlgmr.msra.gmra.mxu1 %v551_v38  ;;  %v3237_v37 = vld [vmem:[%s4004_s1 + $0x598] sm:$0xff]   ;;  %v3239_v38 = vld [vmem:[%s4004_s1 + $0x5d0] sm:$0xff]  }
  0x85   :  { %2916 = vmatprep.subr.bf16.mxu0 %v3190_v39  ;;  %2937 = vmatpush3.bf16.msra.mxu1 %v3189_v40  ;;  %v3240_v39 = vld [vmem:[%s4004_s1 + $0x510] sm:$0xff]   ;;  %v3242_v40 = vld [vmem:[%s4004_s1 + $0x548] sm:$0xff]  }
  0x86   :  { %2938 = vmatprep.subr.bf16.mxu1 %v3191_v41  ;;  %2301 = vmatprep.mubr.bf16.mxu0 %v591_v12  ;;  %v3241_v41 = vld [vmem:[%s4004_s1 + $0x590] sm:$0xff]   ;;  %v3271_v12 = vld [vmem:[%s4004_s1 + $0x688] sm:$0xff]  }
  0x87   :  { %2341 = vmatprep.mubr.bf16.mxu1 %v601_v17 }
  0x88   :  { %2917 = vmatpush3.bf16.msra.mxu0 %v3192_v42  ;;  %v3243_v42 = vld [vmem:[%s4004_s1 + $0x5c8] sm:$0xff]  }
  0x89   :  { %2918 = vmatprep.subr.bf16.mxu0 %v3194_v43  ;;  %2939 = vmatpush3.bf16.msra.mxu1 %v3193_v44  ;;  %v3244_v43 = vld [vmem:[%s4004_s1 + $0x508] sm:$0xff]   ;;  %v3246_v44 = vld [vmem:[%s4004_s1 + $0x540] sm:$0xff]  }
  0x8a   :  { %2940 = vmatprep.subr.bf16.mxu1 %v3195_v45  ;;  %v3245_v45 = vld [vmem:[%s4004_s1 + $0x588] sm:$0xff]  }
  0x8c   :  { %2919 = vmatpush3.bf16.msra.mxu0 %v3196_v46  ;;  %v3247_v46 = vld [vmem:[%s4004_s1 + $0x5c0] sm:$0xff]  }
  0x8d   :  { %2920 = vmatprep.subr.bf16.mxu0 %v3198_v47  ;;  %2941 = vmatpush3.bf16.msra.mxu1 %v3197_v48  ;;  %v3248_v47 = vld [vmem:[%s4004_s1 + $0x500] sm:$0xff]   ;;  %v584_v48 = vrot.slane %v3817_v10, %v3388_v35  ;;  %v3270_v10 = vld [vmem:[%s4004_s1 + $0x608] sm:$0xff]  }
  0x8e   :  { %2942 = vmatprep.subr.bf16.mxu1 %v3199_v49  ;;  %v3251_v49 = vld [vmem:[%s4004_s1 + $0x678] sm:$0xff]  }
  0x90   :  { %2921 = vmatpush3.bf16.msra.mxu0 %v3200_v50  ;;  %v3249_v50 = vld [vmem:[%s4004_s1 + $0x580] sm:$0xff]  }
  0x91   :  { %2922 = vmatprep.subr.bf16.mxu0 %v3202_v51  ;;  %2943 = vmatpush3.bf16.msra.mxu1 %v3201_v52  ;;  %v3252_v51 = vld [vmem:[%s4004_s1 + $0x638] sm:$0xff]   ;;  %v600_v52 = vcombine.high %v584_v48, %v584_v48 }
  0x92   :  { %2944 = vmatprep.subr.bf16.mxu1 %v3203_v53  ;;  %v3254_v53 = vld [vmem:[%s4004_s1 + $0x670] sm:$0xff]  }
  0x94   :  { %2923 = vmatpush3.bf16.msra.mxu0 %v3204_v54  ;;  %v3253_v54 = vld [vmem:[%s4004_s1 + $0x6b8] sm:$0xff]  }
  0x95   :  { %2924 = vmatprep.subr.bf16.mxu0 %v3206_v55  ;;  %2945 = vmatpush3.bf16.msra.mxu1 %v3205_v56  ;;  %v3276_v55 = vmov 0.0   ;;  %v3255_v56 = vld [vmem:[%s4004_s1 + $0x630] sm:$0xff]  }
  0x96   :  { %2946 = vmatprep.subr.bf16.mxu1 %v3207_v57  ;;  %v3257_v57 = vld [vmem:[%s4004_s1 + $0x668] sm:$0xff]  }
  0x98   :  { %2925 = vmatpush3.bf16.msra.mxu0 %v3208_v58  ;;  %v3256_v58 = vld [vmem:[%s4004_s1 + $0x6b0] sm:$0xff]  }
  0x99   :  { %2926 = vmatprep.subr.bf16.mxu0 %v3210_v59  ;;  %2947 = vmatpush3.bf16.msra.mxu1 %v3209_v60  ;;  %v3258_v59 = vld [vmem:[%s4004_s1 + $0x628] sm:$0xff]   ;;  %v3260_v60 = vld [vmem:[%s4004_s1 + $0x660] sm:$0xff]  }
  0x9a   :  { %2948 = vmatprep.subr.bf16.mxu1 %v3211_v61  ;;  %v3259_v61 = vld [vmem:[%s4004_s1 + $0x6a8] sm:$0xff]  }
  0x9c   :  { %2927 = vmatpush3.bf16.msra.mxu0 %v3212_v62  ;;  %v3261_v62 = vld [vmem:[%s4004_s1 + $0x620] sm:$0xff]  }
  0x9d   :  { %2928 = vmatprep.subr.bf16.mxu0 %v3214_v63  ;;  %2949 = vmatpush3.bf16.msra.mxu1 %v3213_v0  ;;  %v3263_v63 = vld [vmem:[%s4004_s1 + $0x658] sm:$0xff]   ;;  %v3262_v0 = vld [vmem:[%s4004_s1 + $0x6a0] sm:$0xff]  }
  0x9e   :  { %2950 = vmatprep.subr.bf16.mxu1 %v3215_v1  ;;  %v3264_v1 = vld [vmem:[%s4004_s1 + $0x618] sm:$0xff]  }
  0xa0   :  { %2929 = vmatpush3.bf16.msra.mxu0 %v3216_v3  ;;  %v3265_v3 = vld [vmem:[%s4004_s1 + $0x698] sm:$0xff]  }
  0xa1   :  { %2958 = vmatprep.subr.bf16.mxu0 %v3218_v6  ;;  %2951 = vmatpush3.bf16.msra.mxu1 %v3217_v7  ;;  %v3269_v6 = vld [vmem:[%s4004_s1 + $0x648] sm:$0xff]   ;;  %v610_v7 = vcombine.high %v2521_v5, %v2521_v5 }
  0xa2   :  { %2980 = vmatprep.subr.bf16.mxu1 %v3219_v11  ;;  %v3272_v11 = vld [vmem:[%s4004_s1 + $0x640] sm:$0xff]  }
  0xa3   :  { %2302 = vmatmul.mubr.bf16.vlgmr.msra.gmra.mxu0 %v577_v9  ;;  %v624_v9 = vrot.slane %v610_v7, %v3388_v35 }
  0xa4   :  { %2959 = vmatpush3.bf16.msra.mxu0 %v3220_v13  ;;  %2342 = vmatmul.mubr.bf16.vlgmr.msra.gmra.mxu1 %v599_v15  ;;  %v3273_v13 = vld [vmem:[%s4004_s1 + $0x600] sm:$0xff]  }
  0xa5   :  { %2960 = vmatprep.subr.bf16.mxu0 %v3222_v16  ;;  %2981 = vmatpush3.bf16.msra.mxu1 %v3221_v18  ;;  %v3274_v15 = vld [vmem:[%s4004_s1 + $0x680] sm:$0xff]   ;;  %v625_v16 = vcombine.high %v617_v14, %v617_v14 }
  0xa6   :  { %2381 = vmatprep.mubr.bf16.mxu0 %v598_v19  ;;  %2982 = vmatprep.subr.bf16.mxu1 %v3223_v20  ;;  %v451_v19 = vld [vmem:[%s4006_s2] sm:$0x1] }
  0xa7   :  { %2421 = vmatprep.mubr.bf16.mxu1 %v602_v22 }
  0xa8   :  { %2961 = vmatpush3.bf16.msra.mxu0 %v3224_v21 }
  0xa9   :  { %2962 = vmatprep.subr.bf16.mxu0 %v3226_v23  ;;  %2983 = vmatpush3.bf16.msra.mxu1 %v3225_v24 }
  0xaa   :  { %2984 = vmatprep.subr.bf16.mxu1 %v3227_v25 }
  0xac   :  { %2963 = vmatpush3.bf16.msra.mxu0 %v3228_v26 }
  0xad   :  { %2964 = vmatprep.subr.bf16.mxu0 %v3230_v27  ;;  %2985 = vmatpush3.bf16.msra.mxu1 %v3229_v28 }
  0xae   :  { %2986 = vmatprep.subr.bf16.mxu1 %v3231_v29 }
  0xb0   :  { %2965 = vmatpush3.bf16.msra.mxu0 %v3232_v30 }
  0xb1   :  { %2966 = vmatprep.subr.bf16.mxu0 %v3234_v31  ;;  %2987 = vmatpush3.bf16.msra.mxu1 %v3233_v32 }
  0xb2   :  { %2988 = vmatprep.subr.bf16.mxu1 %v3235_v33 }
  0xb4   :  { %2967 = vmatpush3.bf16.msra.mxu0 %v3236_v34 }
  0xb5   :  { %2968 = vmatprep.subr.bf16.mxu0 %v3238_v36  ;;  %2989 = vmatpush3.bf16.msra.mxu1 %v3237_v37 }
  0xb6   :  { %2990 = vmatprep.subr.bf16.mxu1 %v3239_v38 }
  0xb8   :  { %2969 = vmatpush3.bf16.msra.mxu0 %v3240_v39 }
  0xb9   :  { %2970 = vmatprep.subr.bf16.mxu0 %v3242_v40  ;;  %2991 = vmatpush3.bf16.msra.mxu1 %v3241_v41 }
  0xba   :  { %2992 = vmatprep.subr.bf16.mxu1 %v3243_v42 }
  0xbc   :  { %2971 = vmatpush3.bf16.msra.mxu0 %v3244_v43 }
  0xbd   :  { %2972 = vmatprep.subr.bf16.mxu0 %v3246_v44  ;;  %2993 = vmatpush3.bf16.msra.mxu1 %v3245_v45 }
  0xbe   :  { %2994 = vmatprep.subr.bf16.mxu1 %v3247_v46 }
  0xc0   :  { %2973 = vmatpush3.bf16.msra.mxu0 %v3248_v47 }
  0xc1   :  { %3002 = vmatprep.subr.bf16.mxu0 %v3251_v49  ;;  %2995 = vmatpush3.bf16.msra.mxu1 %v3249_v50 }
  0xc2   :  { %3033 = vmatprep.subr.bf16.mxu1 %v3276_v55 }
  0xc3   :  { %2382 = vmatmul.mubr.bf16.vlgmr.msra.gmra.mxu0 %v584_v48 }
  0xc4   :  { %3003 = vmatpush3.bf16.msra.mxu0 %v3252_v51  ;;  %2422 = vmatmul.mubr.bf16.vlgmr.msra.gmra.mxu1 %v600_v52 }
  0xc5   :  { %3004 = vmatprep.subr.bf16.mxu0 %v3254_v53  ;;  %3034 = vmatpush3.bf16.msra.mxu1 %v3253_v54 }
  0xc6   :  { %3049 = vmatprep.mubr.msk.bf16.mxu1 %vm3277_vm0, %v3276_v55  ;;  %3035 = vmatprep.subr.bf16.mxu1 %v3276_v55 }
  0xc7   :  { %2461 = vmatprep.mubr.bf16.mxu0 %v624_v9 }
  0xc8   :  { %3005 = vmatpush3.bf16.msra.mxu0 %v3255_v56 }
  0xc9   :  { %3006 = vmatprep.subr.bf16.mxu0 %v3257_v57  ;;  %3036 = vmatpush3.bf16.msra.mxu1 %v3256_v58 }
  0xca   :  { %3037 = vmatprep.subr.bf16.mxu1 %v3276_v55 }
  0xcc   :  { %3007 = vmatpush3.bf16.msra.mxu0 %v3258_v59 }
  0xcd   :  { %3008 = vmatprep.subr.bf16.mxu0 %v3260_v60  ;;  %3038 = vmatpush3.bf16.msra.mxu1 %v3259_v61 }
  0xce   :  { %3039 = vmatprep.subr.bf16.mxu1 %v3276_v55 }
  0xd0   :  { %3009 = vmatpush3.bf16.msra.mxu0 %v3261_v62 }
  0xd1   :  { %3010 = vmatprep.subr.bf16.mxu0 %v3263_v63  ;;  %3040 = vmatpush3.bf16.msra.mxu1 %v3262_v0 }
  0xd2   :  { %3041 = vmatprep.subr.bf16.mxu1 %v3276_v55 }
  0xd4   :  { %3011 = vmatpush3.bf16.msra.mxu0 %v3264_v1 }
  0xd5   :  { %3012 = vmatprep.subr.bf16.mxu0 %v3266_v2  ;;  %3042 = vmatpush3.bf16.msra.mxu1 %v3265_v3 }
  0xd6   :  { %3043 = vmatprep.subr.bf16.mxu1 %v3276_v55 }
  0xd8   :  { %3013 = vmatpush3.bf16.msra.mxu0 %v3267_v4 }
  0xd9   :  { %3014 = vmatprep.subr.bf16.mxu0 %v3269_v6  ;;  %3044 = vmatpush3.bf16.msra.mxu1 %v3268_v8 }
  0xda   :  { %3045 = vmatprep.subr.bf16.mxu1 %v3276_v55 }
  0xdc   :  { %3015 = vmatpush3.bf16.msra.mxu0 %v3270_v10 }
  0xdd   :  { %3016 = vmatprep.subr.bf16.mxu0 %v3272_v11  ;;  %3046 = vmatpush3.bf16.msra.mxu1 %v3271_v12 }
  0xde   :  { %3047 = vmatprep.subr.bf16.mxu1 %v3276_v55 }
  0xe0   :  { %3017 = vmatpush3.bf16.msra.mxu0 %v3273_v13 }
  0xe1   :  { %3048 = vmatpush3.bf16.msra.mxu1 %v3274_v15 }
  0xe3   :  { %v2754_v17 = vpop.f32.mrf.mxu0  ;;  %2462 = vmatmul.mubr.bf16.vlgmr.msra.gmra.mxu0 %v617_v14 }
  0xe4   :  { %3050 = vmatmul.mubr.bf16.vlgmr.msra.gmra.mxu1 %v625_v16  ;;  %v2776_v18 = vpop.f32.mrf.mxu1 }
  0xe5   :  { %v2755_v20 = vpop.f32.mrf.mxu0 }
  0xe6   :  { %v2756_v21 = vadd.f32 %v2755_v20, %v2754_v17  ;;  %v2777_v35 = vpop.f32.mrf.mxu1 }
  0xe7   :  { %v2757_v22 = vpop.f32.mrf.mxu0  ;;  %v2778_v24 = vadd.f32 %v2777_v35, %v2776_v18 }
  0xe8   :  { %v1984_v23 = vadd.f32 %v2756_v21, %v451_v19  ;;  %v2779_v25 = vpop.f32.mrf.mxu1 }
  0xe9   :  { %v2758_v26 = vpop.f32.mrf.mxu0 }
  0xea   :  { %v2024_v27 = vadd.f32 %v2778_v24, %v1984_v23  ;;  %v2780_v28 = vpop.f32.mrf.mxu1 }
 0x103   :  { %v2798_v29 = vpop.f32.mrf.mxu0 }
 0x104   :  { %v2820_v30 = vpop.f32.mrf.mxu1 }
 0x105   :  { %v2799_v31 = vpop.f32.mrf.mxu0 }
 0x106   :  { %v2800_v32 = vadd.f32 %v2799_v31, %v2798_v29  ;;  %v2821_v33 = vpop.f32.mrf.mxu1 }
 0x107   :  { %v2801_v34 = vpop.f32.mrf.mxu0  ;;  %v2822_v37 = vadd.f32 %v2821_v33, %v2820_v30 }
 0x108   :  { %v2064_v36 = vadd.f32 %v2800_v32, %v2024_v27  ;;  %v2823_v38 = vpop.f32.mrf.mxu1 }
 0x109   :  { %v2802_v39 = vpop.f32.mrf.mxu0  ;;  %v2514_v38 = vld [vmem:[%s4007_s3] sm:$0x1] }
 0x10a   :  { %v2104_v40 = vadd.f32 %v2822_v37, %v2064_v36  ;;  %v2824_v41 = vpop.f32.mrf.mxu1 }
 0x123   :  { %v2842_v42 = vpop.f32.mrf.mxu0 }
 0x124   :  { %v2864_v43 = vpop.f32.mrf.mxu1 }
 0x125   :  { %v2843_v44 = vpop.f32.mrf.mxu0 }
 0x126   :  { %v2844_v45 = vadd.f32 %v2843_v44, %v2842_v42  ;;  %v2865_v46 = vpop.f32.mrf.mxu1 }
 0x127   :  { %v2845_v47 = vpop.f32.mrf.mxu0  ;;  %v2866_v49 = vadd.f32 %v2865_v46, %v2864_v43 }
 0x128   :  { %v2144_v48 = vadd.f32 %v2844_v45, %v2104_v40  ;;  %v2867_v50 = vpop.f32.mrf.mxu1 }
 0x129   :  { %v2846_v51 = vpop.f32.mrf.mxu0 }
 0x12a   :  { %v2184_v52 = vadd.f32 %v2866_v49, %v2144_v48  ;;  %v2868_v53 = vpop.f32.mrf.mxu1 }
 0x143   :  { %v2886_v54 = vpop.f32.mrf.mxu0 }
 0x144   :  { %v2908_v55 = vpop.f32.mrf.mxu1 }
 0x145   :  { %v2887_v56 = vpop.f32.mrf.mxu0 }
 0x146   :  { %v2888_v57 = vadd.f32 %v2887_v56, %v2886_v54  ;;  %v2909_v58 = vpop.f32.mrf.mxu1 }
 0x147   :  { %v2889_v59 = vpop.f32.mrf.mxu0  ;;  %v2910_v61 = vadd.f32 %v2909_v58, %v2908_v55 }
 0x148   :  { %v2224_v60 = vadd.f32 %v2888_v57, %v2184_v52  ;;  %v2911_v62 = vpop.f32.mrf.mxu1 }
 0x149   :  { %v2890_v63 = vpop.f32.mrf.mxu0 }
 0x14a   :  { %v2264_v0 = vadd.f32 %v2910_v61, %v2224_v60  ;;  %v2912_v1 = vpop.f32.mrf.mxu1 }
 0x163   :  { %v2930_v2 = vpop.f32.mrf.mxu0 }
 0x164   :  { %v2952_v3 = vpop.f32.mrf.mxu1 }
 0x165   :  { %v2931_v4 = vpop.f32.mrf.mxu0 }
 0x166   :  { %v2953_v5 = vpop.f32.mrf.mxu1  ;;  %v2932_v18 = vadd.f32 %v2931_v4, %v2930_v2 }
 0x167   :  { %v2933_v6 = vpop.f32.mrf.mxu0  ;;  %v2954_v20 = vadd.f32 %v2953_v5, %v2952_v3 }
 0x168   :  { %v2955_v7 = vpop.f32.mrf.mxu1  ;;  %v2304_v19 = vadd.f32 %v2932_v18, %v2264_v0 }
 0x169   :  { %v2934_v8 = vpop.f32.mrf.mxu0 }
 0x16a   :  { %v2956_v9 = vpop.f32.mrf.mxu1  ;;  %v2344_v35 = vadd.f32 %v2954_v20, %v2304_v19 }
 0x183   :  { %v2974_v10 = vpop.f32.mrf.mxu0 }
 0x184   :  { %v2996_v11 = vpop.f32.mrf.mxu1 }
 0x185   :  { %v2975_v12 = vpop.f32.mrf.mxu0 }
 0x186   :  { %v2997_v13 = vpop.f32.mrf.mxu1  ;;  %v2976_v21 = vadd.f32 %v2975_v12, %v2974_v10 }
 0x187   :  { %v2977_v14 = vpop.f32.mrf.mxu0  ;;  %v2998_v23 = vadd.f32 %v2997_v13, %v2996_v11 }
 0x188   :  { %v2999_v15 = vpop.f32.mrf.mxu1  ;;  %v2384_v22 = vadd.f32 %v2976_v21, %v2344_v35 }
 0x189   :  { %v2978_v16 = vpop.f32.mrf.mxu0 }
 0x18a   :  { %v3000_v17 = vpop.f32.mrf.mxu1  ;;  %v2424_v27 = vadd.f32 %v2998_v23, %v2384_v22 }
 0x1a3   :  { %v3018_v24 = vpop.f32.mrf.mxu0 }
 0x1a4   :  { %v2503_v25 = vpop.f32.mrf.mxu1 }
 0x1a5   :  { %v3019_v26 = vpop.f32.mrf.mxu0 }
 0x1a6   :  { %v3020_v28 = vadd.f32 %v3019_v26, %v3018_v24  ;;  %v3051_v29 = vpop.f32.mrf.mxu1 }
 0x1a7   :  { %v3021_v30 = vpop.f32.mrf.mxu0 }
 0x1a8   :  { %v2464_v31 = vadd.f32 %v3020_v28, %v2424_v27  ;;  %v2506_v32 = vpop.f32.mrf.mxu1 }
 0x1a9   :  { %v3022_v33 = vpop.f32.mrf.mxu0 }
 0x1aa   :  { %v2504_v34 = vadd.f32 %v2503_v25, %v2464_v31  ;;  %v3052_v36 = vpop.f32.mrf.mxu1 }
 0x1ac   :  { %v2509_v37 = vmax.f32 %v2504_v34, 0.0 }
 0x1ae   :  { %v2510_v39 = vpack.c.bf16 %v2509_v37, %v2509_v37 }
 0x1b0   :  { %v2515_v40 = vsel %vm2513_vm3, %v2510_v39, %v2514_v38 }
 0x1b1   :  { %2516 = vst [vmem:[%s4007_s3] sm:$0x1] %v2515_v40 }

// kernel: dvanet_forward.126
= control target key start
LH: loop header
LB: loop body
LE: loop exit
PB: predicated region body
PF: predicated region fallthrough
CT: control target
= control target key end

     0   :  { %vm375_vm0 = vcmask 257024   ;;  %s626_s1 = inlined_call_operand.vmem [shape: bf16[512,32], index: 1, kind: input, shape index: {}]   ;;  %s627_s0 = inlined_call_operand.vmem [shape: bf16[8,512], index: 0, kind: input, shape index: {}]   ;;  %s628_s2 = inlined_call_operand.vmem [shape: f32[1,32], index: 2, kind: input, shape index: {}]   ;;  %s629_s3 = inlined_call_operand.vmem [shape: bf16[8,32], index: 3, kind: output, shape index: {}]  }
   0x1   :  { %v462_v0 = vld [vmem:[%s626_s1 + $0x78] sm:$0xff]   ;;  %v466_v4 = vld [vmem:[%s626_s1 + $0x70] sm:$0xff]   ;;  %v470_v8 = vld [vmem:[%s626_s1 + $0x68] sm:$0xff]  }
   0x2   :  { %v463_v1 = vld [vmem:[%s626_s1 + $0xf8] sm:$0xff]   ;;  %418 = vmatprep.subr.bf16.mxu0 %v462_v0  ;;  %v467_v5 = vld [vmem:[%s626_s1 + $0xf0] sm:$0xff]   ;;  %v471_v9 = vld [vmem:[%s626_s1 + $0xe8] sm:$0xff]  }
   0x3   :  { %v464_v2 = vld [vmem:[%s626_s1 + $0x38] sm:$0xff]   ;;  %440 = vmatprep.subr.bf16.mxu1 %v463_v1  ;;  %v468_v6 = vld [vmem:[%s626_s1 + $0x30] sm:$0xff]   ;;  %v472_v10 = vld [vmem:[%s626_s1 + $0x28] sm:$0xff]  }
   0x4   :  { %v465_v3 = vld [vmem:[%s626_s1 + $0xb8] sm:$0xff]   ;;  %419 = vmatpush3.bf16.msra.mxu0 %v464_v2  ;;  %v469_v7 = vld [vmem:[%s626_s1 + $0xb0] sm:$0xff]   ;;  %v473_v11 = vld [vmem:[%s626_s1 + $0xa8] sm:$0xff]  }
   0x5   :  { %441 = vmatpush3.bf16.msra.mxu1 %v465_v3  ;;  %420 = vmatprep.subr.bf16.mxu0 %v466_v4  ;;  %v474_v12 = vld [vmem:[%s626_s1 + $0x60] sm:$0xff]   ;;  %v478_v16 = vld [vmem:[%s626_s1 + $0x58] sm:$0xff]   ;;  %v482_v20 = vld [vmem:[%s626_s1 + $0x50] sm:$0xff]  }
   0x6   :  { %442 = vmatprep.subr.bf16.mxu1 %v467_v5  ;;  %v475_v13 = vld [vmem:[%s626_s1 + $0xe0] sm:$0xff]   ;;  %v479_v17 = vld [vmem:[%s626_s1 + $0xd8] sm:$0xff]   ;;  %v483_v21 = vld [vmem:[%s626_s1 + $0xd0] sm:$0xff]  }
   0x7   :  { %v476_v14 = vld [vmem:[%s626_s1 + $0x20] sm:$0xff]   ;;  %v480_v18 = vld [vmem:[%s626_s1 + $0x18] sm:$0xff]   ;;  %v484_v22 = vld [vmem:[%s626_s1 + $0x10] sm:$0xff]  }
   0x8   :  { %421 = vmatpush3.bf16.msra.mxu0 %v468_v6  ;;  %v477_v15 = vld [vmem:[%s626_s1 + $0xa0] sm:$0xff]   ;;  %v481_v19 = vld [vmem:[%s626_s1 + $0x98] sm:$0xff]   ;;  %v485_v23 = vld [vmem:[%s626_s1 + $0x90] sm:$0xff]  }
   0x9   :  { %443 = vmatpush3.bf16.msra.mxu1 %v469_v7  ;;  %422 = vmatprep.subr.bf16.mxu0 %v470_v8  ;;  %v486_v24 = vld [vmem:[%s626_s1 + $0x48] sm:$0xff]   ;;  %v490_v28 = vld [vmem:[%s626_s1 + $0x40] sm:$0xff]  }
   0xa   :  { %444 = vmatprep.subr.bf16.mxu1 %v471_v9  ;;  %v487_v25 = vld [vmem:[%s626_s1 + $0xc8] sm:$0xff]   ;;  %v491_v29 = vld [vmem:[%s626_s1 + $0xc0] sm:$0xff]  }
   0xb   :  { %v488_v26 = vld [vmem:[%s626_s1 + $0x8] sm:$0xff]   ;;  %v492_v30 = vld [vmem:[%s626_s1] sm:$0xff]  }
   0xc   :  { %423 = vmatpush3.bf16.msra.mxu0 %v472_v10  ;;  %v489_v27 = vld [vmem:[%s626_s1 + $0x88] sm:$0xff]   ;;  %v493_v31 = vld [vmem:[%s626_s1 + $0x80] sm:$0xff]  }
   0xd   :  { %445 = vmatpush3.bf16.msra.mxu1 %v473_v11  ;;  %424 = vmatprep.subr.bf16.mxu0 %v474_v12  ;;  %v15_v32 = vld [vmem:[%s627_s0] sm:$0xff]  ;;  %v16_v33 = vld [vmem:[%s627_s0 + $0x8] sm:$0xff] }
   0xe   :  { %446 = vmatprep.subr.bf16.mxu1 %v475_v13  ;;  %v382_v34 = vcombine.low %v15_v32, %v15_v32  ;;  %v383_v35 = vcombine.high %v15_v32, %v15_v32  ;;  %v384_v36 = vcombine.low %v16_v33, %v16_v33  ;;  %v385_v37 = vcombine.high %v16_v33, %v16_v33  ;;  %v381_v40 = vld [vmem:[%s628_s2] ss:$0 sm:$0xff] }
  0x10   :  { %425 = vmatpush3.bf16.msra.mxu0 %v476_v14  ;;  %326 = vmatprep.mubr.bf16.mxu0 %v383_v35 }
  0x11   :  { %447 = vmatpush3.bf16.msra.mxu1 %v477_v15  ;;  %426 = vmatprep.subr.bf16.mxu0 %v478_v16 }
  0x12   :  { %448 = vmatprep.subr.bf16.mxu1 %v479_v17  ;;  %366 = vmatprep.mubr.bf16.mxu1 %v385_v37 }
  0x14   :  { %427 = vmatpush3.bf16.msra.mxu0 %v480_v18 }
  0x15   :  { %449 = vmatpush3.bf16.msra.mxu1 %v481_v19  ;;  %428 = vmatprep.subr.bf16.mxu0 %v482_v20 }
  0x16   :  { %450 = vmatprep.subr.bf16.mxu1 %v483_v21 }
  0x18   :  { %429 = vmatpush3.bf16.msra.mxu0 %v484_v22 }
  0x19   :  { %451 = vmatpush3.bf16.msra.mxu1 %v485_v23  ;;  %430 = vmatprep.subr.bf16.mxu0 %v486_v24 }
  0x1a   :  { %452 = vmatprep.subr.bf16.mxu1 %v487_v25 }
  0x1c   :  { %431 = vmatpush3.bf16.msra.mxu0 %v488_v26 }
  0x1d   :  { %453 = vmatpush3.bf16.msra.mxu1 %v489_v27  ;;  %432 = vmatprep.subr.bf16.mxu0 %v490_v28 }
  0x1e   :  { %454 = vmatprep.subr.bf16.mxu1 %v491_v29 }
  0x20   :  { %433 = vmatpush3.bf16.msra.mxu0 %v492_v30 }
  0x21   :  { %455 = vmatpush3.bf16.msra.mxu1 %v493_v31 }
  0x23   :  { %327 = vmatmul.mubr.bf16.vlgmr.msra.gmra.mxu0 %v382_v34 }
  0x24   :  { %367 = vmatmul.mubr.bf16.vlgmr.msra.gmra.mxu1 %v384_v36 }
  0xe3   :  { %v434_v38 = vpop.f32.mrf.mxu0 }
  0xe4   :  { %v456_v39 = vpop.f32.mrf.mxu1 }
  0xe5   :  { %v435_v41 = vpop.f32.mrf.mxu0 }
  0xe6   :  { %v457_v42 = vpop.f32.mrf.mxu1  ;;  %v436_v43 = vadd.f32 %v435_v41, %v434_v38 }
  0xe7   :  { %v437_v44 = vpop.f32.mrf.mxu0  ;;  %v458_v47 = vadd.f32 %v457_v42, %v456_v39 }
  0xe8   :  { %v459_v45 = vpop.f32.mrf.mxu1  ;;  %v329_v46 = vadd.f32 %v436_v43, %v381_v40 }
  0xe9   :  { %v438_v48 = vpop.f32.mrf.mxu0 }
  0xea   :  { %v460_v49 = vpop.f32.mrf.mxu1  ;;  %v369_v50 = vadd.f32 %v458_v47, %v329_v46 }
  0xec   :  { %v374_v51 = vpack.c.bf16 %v369_v50, %v369_v50 }
  0xee   :  { %376 = vst.msk [vmem:[%s629_s3] sm:$0xf] %vm375_vm0, %v374_v51 }

// kernel: dvanet_forward.123
= control target key start
LH: loop header
LB: loop body
LE: loop exit
PB: predicated region body
PF: predicated region fallthrough
CT: control target
= control target key end

     0   :  { %v182_v0 = vmov 0.0   ;;  %vm183_vm0 = vmmov 0   ;;  %vm128_vm1 = vcmask 257024   ;;  %s237_s1 = inlined_call_operand.vmem [shape: bf16[128,32], index: 1, kind: input, shape index: {}]   ;;  %s238_s0 = inlined_call_operand.vmem [shape: bf16[8,128], index: 0, kind: input, shape index: {}]   ;;  %s239_s2 = inlined_call_operand.vmem [shape: f32[1,32], index: 2, kind: input, shape index: {}]   ;;  %s240_s3 = inlined_call_operand.vmem [shape: bf16[8,32], index: 3, kind: output, shape index: {}]  }
   0x1   :  { %152 = vmatprep.subr.bf16.mxu0 %v182_v0  ;;  %v174_v1 = vld [vmem:[%s237_s1 + $0x38] sm:$0xff]   ;;  %168 = vmatprep.mubr.msk.bf16.mxu0 %vm183_vm0, %v182_v0  ;;  %v175_v2 = vld [vmem:[%s237_s1 + $0x30] sm:$0xff]   ;;  %v176_v3 = vld [vmem:[%s237_s1 + $0x28] sm:$0xff]  }
   0x2   :  { %153 = vmatpush3.bf16.msra.mxu0 %v174_v1  ;;  %v177_v4 = vld [vmem:[%s237_s1 + $0x20] sm:$0xff]   ;;  %v178_v5 = vld [vmem:[%s237_s1 + $0x18] sm:$0xff]   ;;  %v179_v6 = vld [vmem:[%s237_s1 + $0x10] sm:$0xff]  }
   0x3   :  { %154 = vmatprep.subr.bf16.mxu0 %v182_v0  ;;  %v180_v7 = vld [vmem:[%s237_s1 + $0x8] sm:$0xff]   ;;  %v181_v8 = vld [vmem:[%s237_s1] sm:$0xff]  }
   0x4   :  { %v15_v9 = vld [vmem:[%s238_s0] sm:$0xf] }
   0x5   :  { %v134_v10 = vld [vmem:[%s239_s2] ss:$0 sm:$0xff] }
   0x6   :  { %155 = vmatpush3.bf16.msra.mxu0 %v175_v2 }
   0x7   :  { %156 = vmatprep.subr.bf16.mxu0 %v182_v0 }
   0xa   :  { %157 = vmatpush3.bf16.msra.mxu0 %v176_v3 }
   0xb   :  { %158 = vmatprep.subr.bf16.mxu0 %v182_v0 }
   0xe   :  { %159 = vmatpush3.bf16.msra.mxu0 %v177_v4 }
   0xf   :  { %160 = vmatprep.subr.bf16.mxu0 %v182_v0 }
  0x12   :  { %161 = vmatpush3.bf16.msra.mxu0 %v178_v5 }
  0x13   :  { %162 = vmatprep.subr.bf16.mxu0 %v182_v0 }
  0x16   :  { %163 = vmatpush3.bf16.msra.mxu0 %v179_v6 }
  0x17   :  { %164 = vmatprep.subr.bf16.mxu0 %v182_v0 }
  0x1a   :  { %165 = vmatpush3.bf16.msra.mxu0 %v180_v7 }
  0x1b   :  { %166 = vmatprep.subr.bf16.mxu0 %v182_v0 }
  0x1e   :  { %167 = vmatpush3.bf16.msra.mxu0 %v181_v8 }
  0x21   :  { %169 = vmatmul.mubr.bf16.vlgmr.msra.gmra.mxu0 %v15_v9 }
  0xe1   :  { %v121_v11 = vpop.f32.mrf.mxu0 }
  0xe2   :  { %v122_v12 = vadd.f32 %v134_v10, %v121_v11 }
  0xe3   :  { %v170_v13 = vpop.f32.mrf.mxu0 }
  0xe4   :  { %v127_v14 = vpack.c.bf16 %v122_v12, %v122_v12 }
  0xe5   :  { %v124_v15 = vpop.f32.mrf.mxu0 }
  0xe6   :  { %129 = vst.msk [vmem:[%s240_s3] sm:$0xf] %vm128_vm1, %v127_v14 }
  0xe7   :  { %v171_v16 = vpop.f32.mrf.mxu0 }

// kernel: dvanet_forward.119
= control target key start
LH: loop header
LB: loop body
LE: loop exit
PB: predicated region body
PF: predicated region fallthrough
CT: control target
= control target key end

     0   :  { %v135_v0 = vmov 0.0   ;;  %vm136_vm0 = vmmov 0   ;;  %vm55_vm1 = vcmask 523264   ;;  %vm100_vm2 = vcmask 257024   ;;  %s178_s1 = inlined_call_operand.vmem [shape: bf16[64,32], index: 1, kind: input, shape index: {}]   ;;  %s179_s0 = inlined_call_operand.vmem [shape: bf16[8,64], index: 0, kind: input, shape index: {}]   ;;  %s180_s2 = inlined_call_operand.vmem [shape: f32[1,32], index: 2, kind: input, shape index: {}]   ;;  %s181_s3 = inlined_call_operand.vmem [shape: bf16[8,32], index: 3, kind: output, shape index: {}]  }
   0x1   :  { %117 = vmatprep.subr.bf16.mxu0 %v135_v0  ;;  %v131_v1 = vld [vmem:[%s178_s1 + $0x18] sm:$0xff]   ;;  %125 = vmatprep.mubr.msk.bf16.mxu0 %vm136_vm0, %v135_v0  ;;  %v132_v2 = vld [vmem:[%s178_s1 + $0x10] sm:$0xff]   ;;  %v133_v3 = vld [vmem:[%s178_s1 + $0x8] sm:$0xff]  }
   0x2   :  { %118 = vmatpush3.bf16.msra.mxu0 %v131_v1  ;;  %v134_v4 = vld [vmem:[%s178_s1] sm:$0xff]  }
   0x3   :  { %119 = vmatprep.subr.bf16.mxu0 %v135_v0  ;;  %v15_v5 = vld [vmem:[%s179_s0] sm:$0xf] }
   0x4   :  { %v106_v6 = vld [vmem:[%s180_s2] ss:$0 sm:$0xff] }
   0x6   :  { %120 = vmatpush3.bf16.msra.mxu0 %v132_v2 }
   0x7   :  { %121 = vmatprep.subr.bf16.mxu0 %v135_v0 }
   0xa   :  { %122 = vmatpush3.bf16.msra.mxu0 %v133_v3 }
   0xb   :  { %123 = vmatprep.subr.bf16.mxu0 %v135_v0 }
   0xe   :  { %124 = vmatpush3.bf16.msra.mxu0 %v134_v4 }
  0x11   :  { %126 = vmatmul.mubr.msk.bf16.vlgmr.msra.gmra.mxu0 %vm55_vm1, %v15_v5 }
  0xd1   :  { %v93_v7 = vpop.f32.mrf.mxu0 }
  0xd2   :  { %v94_v8 = vadd.f32 %v106_v6, %v93_v7 }
  0xd3   :  { %v127_v9 = vpop.f32.mrf.mxu0 }
  0xd4   :  { %v99_v10 = vpack.c.bf16 %v94_v8, %v94_v8 }
  0xd5   :  { %v96_v11 = vpop.f32.mrf.mxu0 }
  0xd6   :  { %101 = vst.msk [vmem:[%s181_s3] sm:$0xf] %vm100_vm2, %v99_v10 }
  0xd7   :  { %v128_v12 = vpop.f32.mrf.mxu0 }

// kernel: dvanet_forward.127
= control target key start
LH: loop header
LB: loop body
LE: loop exit
PB: predicated region body
PF: predicated region fallthrough
CT: control target
= control target key end

     0   :  { %vm66_vm0 = vcmask 261120   ;;  %vm176_vm1 = vcmask 257024   ;;  %s317_s1 = inlined_call_operand.vmem [shape: bf16[32,32], index: 1, kind: input, shape index: {}]   ;;  %s318_s0 = inlined_call_operand.vmem [shape: bf16[64,32], index: 0, kind: input, shape index: {}]   ;;  %s319_s2 = inlined_call_operand.vmem [shape: f32[1,32], index: 2, kind: input, shape index: {}]   ;;  %s320_s3 = inlined_call_operand.vmem [shape: bf16[64,32], index: 3, kind: output, shape index: {}]  }
   0x1   :  { %v238_v0 = vld [vmem:[%s317_s1 + $0x8] sm:$0xff]   ;;  %v239_v1 = vld [vmem:[%s317_s1] sm:$0xff]   ;;  %v241_v3 = vld [vmem:[%s318_s0 + $0x10] sm:$0xff]  }
   0x2   :  { %222 = vmatprep.subr.bf16.mxu0 %v238_v0  ;;  %234 = vmatprep.subr.bf16.mxu1 %v238_v0  ;;  %v240_v2 = vld [vmem:[%s318_s0] sm:$0xff]   ;;  %v242_v4 = vld [vmem:[%s318_s0 + $0x8] sm:$0xff]   ;;  %v243_v5 = vld [vmem:[%s318_s0 + $0x18] sm:$0xff]  }
   0x3   :  { %223 = vmatpush3.bf16.msra.mxu0 %v238_v0  ;;  %236 = vmatpush3.bf16.msra.mxu1 %v238_v0  ;;  %v189_v6 = vld [vmem:[%s319_s2] ss:$0 sm:$0xff] }
   0x4   :  { %224 = vmatprep.subr.bf16.mxu0 %v239_v1  ;;  %235 = vmatprep.subr.bf16.mxu1 %v239_v1 }
   0x5   :  { %226 = vmatprep.mubr.msk.bf16.mxu0 %vm66_vm0, %v240_v2  ;;  %230 = vmatprep.mubr.msk.bf16.mxu1 %vm66_vm0, %v241_v3 }
   0x7   :  { %225 = vmatpush3.bf16.msra.mxu0 %v239_v1  ;;  %237 = vmatpush3.bf16.msra.mxu1 %v239_v1 }
   0xa   :  { %227 = vmatmul.mubr.msk.bf16.vlgmr.msra.gmra.mxu0 %vm66_vm0, %v242_v4  ;;  %231 = vmatmul.mubr.msk.bf16.vlgmr.msra.gmra.mxu1 %vm66_vm0, %v243_v5 }
  0xca   :  { %v228_v7 = vpop.f32.mrf.mxu0  ;;  %v232_v8 = vpop.f32.mrf.mxu1 }
  0xcb   :  { %v122_v9 = vadd.f32 %v228_v7, %v189_v6  ;;  %v138_v10 = vadd.f32 %v232_v8, %v189_v6 }
  0xcc   :  { %v113_v11 = vpop.f32.mrf.mxu0  ;;  %v129_v12 = vpop.f32.mrf.mxu1 }
  0xcd   :  { %v210_v13 = vpack.c.bf16 %v122_v9, %v122_v9  ;;  %v214_v14 = vpack.c.bf16 %v138_v10, %v138_v10  ;;  %v114_v15 = vadd.f32 %v189_v6, %v113_v11  ;;  %v130_v16 = vadd.f32 %v189_v6, %v129_v12 }
  0xce   :  { %v229_v17 = vpop.f32.mrf.mxu0  ;;  %v233_v18 = vpop.f32.mrf.mxu1 }
  0xcf   :  { %179 = vst.msk [vmem:[%s320_s3 + $0x8] sm:$0xf] %vm176_vm1, %v210_v13  ;;  %183 = vst.msk [vmem:[%s320_s3 + $0x18] sm:$0xf] %vm176_vm1, %v214_v14  ;;  %v208_v19 = vpack.c.bf16 %v114_v15, %v114_v15  ;;  %v212_v20 = vpack.c.bf16 %v130_v16, %v130_v16  ;;  %v125_v21 = vadd.f32 %v229_v17, %v189_v6 }
  0xd0   :  { %v141_v22 = vadd.f32 %v233_v18, %v189_v6  ;;  %v116_v23 = vpop.f32.mrf.mxu0  ;;  %v132_v24 = vpop.f32.mrf.mxu1 }
  0xd1   :  { %177 = vst.msk [vmem:[%s320_s3] sm:$0xf] %vm176_vm1, %v208_v19  ;;  %181 = vst.msk [vmem:[%s320_s3 + $0x10] sm:$0xf] %vm176_vm1, %v212_v20  ;;  %v211_v25 = vpack.c.bf16 %v125_v21, %v125_v21  ;;  %v117_v27 = vadd.f32 %v189_v6, %v116_v23  ;;  %v133_v28 = vadd.f32 %v189_v6, %v132_v24 }
  0xd2   :  { %v215_v26 = vpack.c.bf16 %v141_v22, %v141_v22 }
  0xd3   :  { %180 = vst.msk [vmem:[%s320_s3 + $0xc] sm:$0xf] %vm176_vm1, %v211_v25  ;;  %v209_v29 = vpack.c.bf16 %v117_v27, %v117_v27  ;;  %v213_v30 = vpack.c.bf16 %v133_v28, %v133_v28 }
  0xd4   :  { %184 = vst.msk [vmem:[%s320_s3 + $0x1c] sm:$0xf] %vm176_vm1, %v215_v26 }
  0xd5   :  { %178 = vst.msk [vmem:[%s320_s3 + $0x4] sm:$0xf] %vm176_vm1, %v209_v29  ;;  %182 = vst.msk [vmem:[%s320_s3 + $0x14] sm:$0xf] %vm176_vm1, %v213_v30 }

// kernel: dvanet_forward.131
= control target key start
LH: loop header
LB: loop body
LE: loop exit
PB: predicated region body
PF: predicated region fallthrough
CT: control target
= control target key end

     0   :  { %vm626_vm0 = vcmask 785408   ;;  %vm955_vm2 = vcmask 257024   ;;  %s1663_s1 = inlined_call_operand.vmem [shape: bf16[864,32], index: 1, kind: input, shape index: {}]   ;;  %s1664_s0 = inlined_call_operand.vmem [shape: bf16[64,864], index: 0, kind: input, shape index: {}]   ;;  %s1665_s2 = inlined_call_operand.vmem [shape: f32[1,32], index: 2, kind: input, shape index: {}]   ;;  %s1666_s3 = inlined_call_operand.vmem [shape: bf16[64,32], index: 3, kind: output, shape index: {}]  }
   0x1   :  { %v1221_v0 = vld [vmem:[%s1663_s1 + $0x78] sm:$0xff]   ;;  %v1225_v4 = vld [vmem:[%s1663_s1 + $0x70] sm:$0xff]   ;;  %v1229_v8 = vld [vmem:[%s1663_s1 + $0x68] sm:$0xff]  }
   0x2   :  { %v1222_v1 = vld [vmem:[%s1663_s1 + $0x38] sm:$0xff]   ;;  %1071 = vmatprep.subr.bf16.mxu0 %v1221_v0  ;;  %v1226_v5 = vld [vmem:[%s1663_s1 + $0x30] sm:$0xff]   ;;  %v1230_v9 = vld [vmem:[%s1663_s1 + $0x28] sm:$0xff]  }
   0x3   :  { %v1223_v2 = vld [vmem:[%s1663_s1 + $0xf8] sm:$0xff]   ;;  %1072 = vmatpush3.bf16.msra.mxu0 %v1222_v1  ;;  %v1227_v6 = vld [vmem:[%s1663_s1 + $0xf0] sm:$0xff]   ;;  %v1231_v10 = vld [vmem:[%s1663_s1 + $0xe8] sm:$0xff]  }
   0x4   :  { %v1224_v3 = vld [vmem:[%s1663_s1 + $0xb8] sm:$0xff]   ;;  %1111 = vmatprep.subr.bf16.mxu1 %v1223_v2  ;;  %1073 = vmatprep.subr.bf16.mxu0 %v1225_v4  ;;  %v1228_v7 = vld [vmem:[%s1663_s1 + $0xb0] sm:$0xff]   ;;  %v1232_v11 = vld [vmem:[%s1663_s1 + $0xa8] sm:$0xff]  }
   0x5   :  { %1112 = vmatpush3.bf16.msra.mxu1 %v1224_v3  ;;  %v1233_v12 = vld [vmem:[%s1663_s1 + $0x60] sm:$0xff]   ;;  %v1237_v16 = vld [vmem:[%s1663_s1 + $0x58] sm:$0xff]   ;;  %v1241_v20 = vld [vmem:[%s1663_s1 + $0x50] sm:$0xff]  }
   0x6   :  { %1113 = vmatprep.subr.bf16.mxu1 %v1227_v6  ;;  %v1234_v13 = vld [vmem:[%s1663_s1 + $0x20] sm:$0xff]   ;;  %v1238_v17 = vld [vmem:[%s1663_s1 + $0x18] sm:$0xff]   ;;  %v1242_v21 = vld [vmem:[%s1663_s1 + $0x10] sm:$0xff]  }
   0x7   :  { %1074 = vmatpush3.bf16.msra.mxu0 %v1226_v5  ;;  %v1235_v14 = vld [vmem:[%s1663_s1 + $0xe0] sm:$0xff]   ;;  %v1239_v18 = vld [vmem:[%s1663_s1 + $0xd8] sm:$0xff]   ;;  %v1243_v22 = vld [vmem:[%s1663_s1 + $0xd0] sm:$0xff]  }
   0x8   :  { %1075 = vmatprep.subr.bf16.mxu0 %v1229_v8  ;;  %v1236_v15 = vld [vmem:[%s1663_s1 + $0xa0] sm:$0xff]   ;;  %v1240_v19 = vld [vmem:[%s1663_s1 + $0x98] sm:$0xff]   ;;  %v1244_v23 = vld [vmem:[%s1663_s1 + $0x90] sm:$0xff]  }
   0x9   :  { %1114 = vmatpush3.bf16.msra.mxu1 %v1228_v7  ;;  %v1245_v24 = vld [vmem:[%s1663_s1 + $0x48] sm:$0xff]   ;;  %v1249_v28 = vld [vmem:[%s1663_s1 + $0x40] sm:$0xff]   ;;  %v1256_v34 = vld [vmem:[%s1663_s1 + $0x178] sm:$0xff]  }
   0xa   :  { %1115 = vmatprep.subr.bf16.mxu1 %v1231_v10  ;;  %v1246_v25 = vld [vmem:[%s1663_s1 + $0x8] sm:$0xff]   ;;  %v1250_v29 = vld [vmem:[%s1663_s1] sm:$0xff]   ;;  %v1260_v37 = vld [vmem:[%s1663_s1 + $0x138] sm:$0xff]  }
   0xb   :  { %1076 = vmatpush3.bf16.msra.mxu0 %v1230_v9  ;;  %v1247_v26 = vld [vmem:[%s1663_s1 + $0xc8] sm:$0xff]   ;;  %v1251_v30 = vld [vmem:[%s1663_s1 + $0xc0] sm:$0xff]   ;;  %v1261_v38 = vld [vmem:[%s1663_s1 + $0x170] sm:$0xff]  }
   0xc   :  { %1077 = vmatprep.subr.bf16.mxu0 %v1233_v12  ;;  %v1248_v27 = vld [vmem:[%s1663_s1 + $0x88] sm:$0xff]   ;;  %v1252_v31 = vld [vmem:[%s1664_s0] ss:$28 sps:$4 sm:$0xff]   ;;  %v1262_v39 = vld [vmem:[%s1663_s1 + $0x130] sm:$0xff]  }
   0xd   :  { %1116 = vmatpush3.bf16.msra.mxu1 %v1232_v11  ;;  %v1254_v32 = vld [vmem:[%s1664_s0 + $0x4] ss:$28 sps:$4 sm:$0xff]   ;;  %v1259_v36 = vld [vmem:[%s1664_s0 + $0xc] ss:$28 sps:$4 sm:$0xff]   ;;  %v1263_v40 = vld [vmem:[%s1664_s0 + $0x3c] ss:$28 sps:$4 sm:$0xff]  }
   0xe   :  { %1117 = vmatprep.subr.bf16.mxu1 %v1235_v14  ;;  %v1255_v33 = vld [vmem:[%s1663_s1 + $0x80] sm:$0xff]   ;;  %671 = vmatprep.mubr.bf16.mxu0 %v1254_v32  ;;  %v1265_v41 = vld [vmem:[%s1664_s0 + $0x38] ss:$28 sps:$4 sm:$0xff]   ;;  %v1266_v42 = vld [vmem:[%s1663_s1 + $0x168] sm:$0xff]  }
   0xf   :  { %1078 = vmatpush3.bf16.msra.mxu0 %v1234_v13  ;;  %v1257_v35 = vld [vmem:[%s1664_s0 + $0x8] ss:$28 sps:$4 sm:$0xff]   ;;  %736 = vmatprep.mubr.bf16.mxu1 %v1259_v36  ;;  %v1270_v45 = vld [vmem:[%s1664_s0 + $0x40] ss:$28 sps:$4 sm:$0xff]   ;;  %v1274_v49 = vld [vmem:[%s1664_s0 + $0x74] ss:$28 sps:$4 sm:$0xff]  }
  0x10   :  { %1079 = vmatprep.subr.bf16.mxu0 %v1237_v16  ;;  %v1267_v43 = vld [vmem:[%s1664_s0 + $0x44] ss:$28 sps:$4 sm:$0xff]   ;;  %v1269_v44 = vld [vmem:[%s1663_s1 + $0x128] sm:$0xff]   ;;  %v1277_v51 = vld [vmem:[%s1663_s1 + $0x158] sm:$0xff]  }
  0x11   :  { %1118 = vmatpush3.bf16.msra.mxu1 %v1236_v15  ;;  %v1271_v46 = vld [vmem:[%s1663_s1 + $0x160] sm:$0xff]   ;;  %v1272_v47 = vld [vmem:[%s1663_s1 + $0x1a8] sm:$0xff]   ;;  %v1279_v53 = vld [vmem:[%s1664_s0 + $0x7c] ss:$28 sps:$4 sm:$0xff]  }
  0x12   :  { %1119 = vmatprep.subr.bf16.mxu1 %v1239_v18  ;;  %v1273_v48 = vld [vmem:[%s1663_s1 + $0x120] sm:$0xff]   ;;  %v1276_v50 = vld [vmem:[%s1664_s0 + $0x70] ss:$28 sps:$4 sm:$0xff]   ;;  %v1281_v54 = vld [vmem:[%s1663_s1 + $0x118] sm:$0xff]  }
  0x13   :  { %1080 = vmatpush3.bf16.msra.mxu0 %v1238_v17  ;;  %v1278_v52 = vld [vmem:[%s1663_s1 + $0x1a0] sm:$0xff]   ;;  %v1282_v55 = vld [vmem:[%s1664_s0 + $0x78] ss:$28 sps:$4 sm:$0xff]   ;;  %v1286_v59 = vld [vmem:[%s1664_s0 + $0xac] ss:$28 sps:$4 sm:$0xff]  }
  0x14   :  { %1081 = vmatprep.subr.bf16.mxu0 %v1241_v20  ;;  %v1283_v56 = vld [vmem:[%s1663_s1 + $0x150] sm:$0xff]   ;;  %v1284_v57 = vld [vmem:[%s1663_s1 + $0x198] sm:$0xff]   ;;  %v1288_v60 = vld [vmem:[%s1664_s0 + $0xa8] ss:$28 sps:$4 sm:$0xff]  }
  0x15   :  { %1120 = vmatpush3.bf16.msra.mxu1 %v1240_v19  ;;  %v1285_v58 = vld [vmem:[%s1663_s1 + $0x110] sm:$0xff]   ;;  %v1289_v61 = vld [vmem:[%s1663_s1 + $0x148] sm:$0xff]   ;;  %v1295_v2 = vld [vmem:[%s1663_s1 + $0x140] sm:$0xff]  }
  0x16   :  { %1121 = vmatprep.subr.bf16.mxu1 %v1243_v22  ;;  %v1290_v62 = vld [vmem:[%s1663_s1 + $0x190] sm:$0xff]   ;;  %v1293_v0 = vld [vmem:[%s1663_s1 + $0x108] sm:$0xff]   ;;  %v1297_v4 = vld [vmem:[%s1663_s1 + $0x100] sm:$0xff]  }
  0x17   :  { %1082 = vmatpush3.bf16.msra.mxu0 %v1242_v21  ;;  %v1291_v63 = vld [vmem:[%s1664_s0 + $0xb4] ss:$28 sps:$4 sm:$0xff]   ;;  %v1296_v3 = vld [vmem:[%s1663_s1 + $0x188] sm:$0xff]   ;;  %v1301_v7 = vld [vmem:[%s1663_s1 + $0x180] sm:$0xff]  }
  0x18   :  { %1083 = vmatprep.subr.bf16.mxu0 %v1245_v24  ;;  %v1294_v1 = vld [vmem:[%s1664_s0 + $0xb0] ss:$28 sps:$4 sm:$0xff]   ;;  %v1302_v8 = vld [vmem:[%s1664_s0 + $0x18] ss:$28 sps:$4 sm:$0xff]   ;;  %v1310_v11 = vld [vmem:[%s1664_s0 + $0x88] ss:$28 sps:$4 sm:$0xff]  }
  0x19   :  { %1122 = vmatpush3.bf16.msra.mxu1 %v1244_v23  ;;  %v1298_v5 = vld [vmem:[%s1664_s0 + $0x10] ss:$28 sps:$4 sm:$0xff]   ;;  %v1306_v12 = vld [vmem:[%s1664_s0 + $0x48] ss:$28 sps:$4 sm:$0xff]   ;;  %v1311_v14 = vld [vmem:[%s1664_s0 + $0xc0] ss:$28 sps:$4 sm:$0xff]  }
  0x1a   :  { %1123 = vmatprep.subr.bf16.mxu1 %v1247_v26  ;;  %v1300_v6 = vld [vmem:[%s1664_s0 + $0x14] ss:$28 sps:$4 sm:$0xff]   ;;  %v1304_v10 = vld [vmem:[%s1664_s0 + $0x4c] ss:$28 sps:$4 sm:$0xff]   ;;  %v1307_v13 = vld [vmem:[%s1664_s0 + $0x84] ss:$28 sps:$4 sm:$0xff]  }
  0x1b   :  { %1084 = vmatpush3.bf16.msra.mxu0 %v1246_v25  ;;  %v1303_v9 = vld [vmem:[%s1664_s0 + $0x50] ss:$28 sps:$4 sm:$0xff]   ;;  %v1309_v15 = vld [vmem:[%s1664_s0 + $0x80] ss:$28 sps:$4 sm:$0xff]   ;;  %v1314_v17 = vld [vmem:[%s1664_s0 + $0xb8] ss:$28 sps:$4 sm:$0xff]  }
  0x1c   :  { %1085 = vmatprep.subr.bf16.mxu0 %v1249_v28  ;;  %v1312_v16 = vld [vmem:[%s1664_s0 + $0xbc] ss:$28 sps:$4 sm:$0xff]  }
  0x1d   :  { %1124 = vmatpush3.bf16.msra.mxu1 %v1248_v27 }
  0x1e   :  { %1125 = vmatprep.subr.bf16.mxu1 %v1251_v30 }
  0x1f   :  { %1086 = vmatpush3.bf16.msra.mxu0 %v1250_v29 }
  0x20   :  { %1151 = vmatprep.subr.bf16.mxu0 %v1256_v34 }
  0x21   :  { %1126 = vmatpush3.bf16.msra.mxu1 %v1255_v33 }
  0x22   :  { %672 = vmatmul.mubr.bf16.vlgmr.msra.gmra.mxu0 %v1252_v31  ;;  %1201 = vmatprep.subr.bf16.mxu1 %v1272_v47 }
  0x23   :  { %1152 = vmatpush3.bf16.msra.mxu0 %v1260_v37  ;;  %679 = vmatprep.mubr.bf16.mxu0 %v1263_v40 }
  0x24   :  { %737 = vmatmul.mubr.bf16.vlgmr.msra.gmra.mxu1 %v1257_v35  ;;  %1153 = vmatprep.subr.bf16.mxu0 %v1261_v38 }
  0x25   :  { %744 = vmatprep.mubr.bf16.mxu1 %v1267_v43  ;;  %1202 = vmatpush3.bf16.msra.mxu1 %v1272_v47 }
  0x26   :  { %1203 = vmatprep.subr.bf16.mxu1 %v1278_v52 }
  0x27   :  { %1154 = vmatpush3.bf16.msra.mxu0 %v1262_v39 }
  0x28   :  { %1155 = vmatprep.subr.bf16.mxu0 %v1266_v42 }
  0x29   :  { %1204 = vmatpush3.bf16.msra.mxu1 %v1278_v52 }
  0x2a   :  { %680 = vmatmul.mubr.bf16.gmra.mxu0 %v1265_v41  ;;  %1205 = vmatprep.subr.bf16.mxu1 %v1284_v57 }
  0x2b   :  { %1156 = vmatpush3.bf16.msra.mxu0 %v1269_v44  ;;  %687 = vmatprep.mubr.bf16.mxu0 %v1274_v49 }
  0x2c   :  { %745 = vmatmul.mubr.bf16.gmra.mxu1 %v1270_v45  ;;  %1157 = vmatprep.subr.bf16.mxu0 %v1271_v46 }
  0x2d   :  { %752 = vmatprep.mubr.bf16.mxu1 %v1279_v53  ;;  %1206 = vmatpush3.bf16.msra.mxu1 %v1284_v57 }
  0x2e   :  { %1207 = vmatprep.subr.bf16.mxu1 %v1290_v62 }
  0x2f   :  { %1158 = vmatpush3.bf16.msra.mxu0 %v1273_v48  ;;  %v1602_v48 = vld [vmem:[%s1665_s2] ss:$0 sm:$0xff] }
  0x30   :  { %1159 = vmatprep.subr.bf16.mxu0 %v1277_v51 }
  0x31   :  { %1208 = vmatpush3.bf16.msra.mxu1 %v1290_v62 }
  0x32   :  { %688 = vmatmul.mubr.bf16.gmra.mxu0 %v1276_v50  ;;  %1209 = vmatprep.subr.bf16.mxu1 %v1296_v3 }
  0x33   :  { %1160 = vmatpush3.bf16.msra.mxu0 %v1281_v54  ;;  %695 = vmatprep.mubr.bf16.mxu0 %v1286_v59 }
  0x34   :  { %753 = vmatmul.mubr.bf16.gmra.mxu1 %v1282_v55  ;;  %1161 = vmatprep.subr.bf16.mxu0 %v1283_v56 }
  0x35   :  { %760 = vmatprep.mubr.bf16.mxu1 %v1291_v63  ;;  %1210 = vmatpush3.bf16.msra.mxu1 %v1296_v3 }
  0x36   :  { %1211 = vmatprep.subr.bf16.mxu1 %v1301_v7 }
  0x37   :  { %1162 = vmatpush3.bf16.msra.mxu0 %v1285_v58 }
  0x38   :  { %1163 = vmatprep.subr.bf16.mxu0 %v1289_v61 }
  0x39   :  { %1212 = vmatpush3.bf16.msra.mxu1 %v1301_v7 }
  0x3a   :  { %696 = vmatmul.mubr.bf16.gmra.mxu0 %v1288_v60 }
  0x3b   :  { %1164 = vmatpush3.bf16.msra.mxu0 %v1293_v0  ;;  %801 = vmatprep.mubr.bf16.mxu0 %v1300_v6 }
  0x3c   :  { %761 = vmatmul.mubr.bf16.gmra.mxu1 %v1294_v1  ;;  %1165 = vmatprep.subr.bf16.mxu0 %v1295_v2 }
  0x3d   :  { %1213 = vmatprep.mubr.msk.bf16.mxu1 %vm626_vm0, %v1302_v8 }
  0x3f   :  { %1166 = vmatpush3.bf16.msra.mxu0 %v1297_v4 }
  0x42   :  { %802 = vmatmul.mubr.bf16.vlgmr.msra.gmra.mxu0 %v1298_v5 }
  0x43   :  { %809 = vmatprep.mubr.bf16.mxu0 %v1304_v10 }
  0x44   :  { %1214 = vmatmul.mubr.msk.bf16.vlgmr.msra.gmra.mxu1 %vm626_vm0, %v1303_v9 }
  0x45   :  { %1217 = vmatprep.mubr.msk.bf16.mxu1 %vm626_vm0, %v1310_v11 }
  0x4a   :  { %810 = vmatmul.mubr.bf16.gmra.mxu0 %v1306_v12 }
  0x4b   :  { %817 = vmatprep.mubr.bf16.mxu0 %v1307_v13 }
  0x4c   :  { %1218 = vmatmul.mubr.msk.bf16.gmra.mxu1 %vm626_vm0, %v1311_v14 }
  0x52   :  { %818 = vmatmul.mubr.bf16.gmra.mxu0 %v1309_v15 }
  0x53   :  { %825 = vmatprep.mubr.bf16.mxu0 %v1312_v16 }
  0x5a   :  { %826 = vmatmul.mubr.bf16.gmra.mxu0 %v1314_v17 }
  0xe2   :  { %v1087_v18 = vpop.f32.mrf.mxu0 }
  0xe4   :  { %v1088_v19 = vpop.f32.mrf.mxu0  ;;  %v1127_v20 = vpop.f32.mrf.mxu1 }
  0xe5   :  { %v1089_v46 = vadd.f32 %v1088_v19, %v1087_v18 }
  0xe6   :  { %v1090_v21 = vpop.f32.mrf.mxu0  ;;  %v1128_v22 = vpop.f32.mrf.mxu1 }
  0xe7   :  { %v674_v51 = vadd.f32 %v1089_v46, %v1602_v48  ;;  %v1129_v52 = vadd.f32 %v1128_v22, %v1127_v20 }
  0xe8   :  { %v1091_v23 = vpop.f32.mrf.mxu0  ;;  %v1130_v24 = vpop.f32.mrf.mxu1 }
  0xe9   :  { %v1092_v53 = vadd.f32 %v1091_v23, %v1090_v21  ;;  %v739_v58 = vadd.f32 %v1129_v52, %v674_v51 }
  0xea   :  { %v1093_v25 = vpop.f32.mrf.mxu0  ;;  %v1131_v26 = vpop.f32.mrf.mxu1 }
  0xeb   :  { %v677_v59 = vadd.f32 %v1092_v53, %v1602_v48  ;;  %v1132_v60 = vadd.f32 %v1131_v26, %v1130_v24 }
  0xec   :  { %v1094_v27 = vpop.f32.mrf.mxu0  ;;  %v1133_v28 = vpop.f32.mrf.mxu1 }
  0xed   :  { %v1095_v56 = vadd.f32 %v1094_v27, %v1093_v25  ;;  %v742_v6 = vadd.f32 %v1132_v60, %v677_v59 }
  0xee   :  { %v1096_v29 = vpop.f32.mrf.mxu0  ;;  %v1134_v30 = vpop.f32.mrf.mxu1 }
  0xef   :  { %v682_v2 = vadd.f32 %v1095_v56, %v1602_v48  ;;  %v1135_v3 = vadd.f32 %v1134_v30, %v1133_v28 }
  0xf0   :  { %v1097_v31 = vpop.f32.mrf.mxu0  ;;  %v1136_v32 = vpop.f32.mrf.mxu1 }
  0xf1   :  { %v1098_v4 = vadd.f32 %v1097_v31, %v1096_v29  ;;  %v747_v14 = vadd.f32 %v1135_v3, %v682_v2 }
  0xf2   :  { %v1099_v33 = vpop.f32.mrf.mxu0  ;;  %v1137_v34 = vpop.f32.mrf.mxu1 }
  0xf3   :  { %v685_v15 = vadd.f32 %v1098_v4, %v1602_v48  ;;  %v1138_v18 = vadd.f32 %v1137_v34, %v1136_v32 }
  0xf4   :  { %v1100_v35 = vpop.f32.mrf.mxu0  ;;  %v1139_v36 = vpop.f32.mrf.mxu1 }
  0xf5   :  { %v1101_v16 = vadd.f32 %v1100_v35, %v1099_v33  ;;  %v750_v31 = vadd.f32 %v1138_v18, %v685_v15 }
  0xf6   :  { %v1102_v37 = vpop.f32.mrf.mxu0  ;;  %v1140_v38 = vpop.f32.mrf.mxu1 }
  0xf7   :  { %v690_v27 = vadd.f32 %v1101_v16, %v1602_v48  ;;  %v1141_v28 = vadd.f32 %v1140_v38, %v1139_v36 }
  0xf8   :  { %v1103_v39 = vpop.f32.mrf.mxu0  ;;  %v1585_v40 = vpop.f32.mrf.mxu1 }
  0xf9   :  { %v1104_v29 = vadd.f32 %v1103_v39, %v1102_v37 }
  0xfa   :  { %v1587_v41 = vpop.f32.mrf.mxu0  ;;  %v1589_v42 = vpop.f32.mrf.mxu1 }
  0xfb   :  { %v693_v36 = vadd.f32 %v1104_v29, %v1602_v48  ;;  %v1144_v39 = vadd.f32 %v1589_v42, %v1585_v40 }
  0xfc   :  { %v1591_v43 = vpop.f32.mrf.mxu0  ;;  %v1593_v44 = vpop.f32.mrf.mxu1 }
  0xfd   :  { %v1107_v37 = vadd.f32 %v1591_v43, %v1587_v41  ;;  %v758_v42 = vadd.f32 %v1144_v39, %v693_v36 }
  0xfe   :  { %v1595_v45 = vpop.f32.mrf.mxu0  ;;  %v1597_v47 = vpop.f32.mrf.mxu1 }
  0xff   :  { %v698_v41 = vadd.f32 %v1107_v37, %v1602_v48  ;;  %v1147_v43 = vadd.f32 %v1597_v47, %v1593_v44 }
 0x100   :  { %v1604_v49 = vpop.f32.mrf.mxu0  ;;  %v1606_v50 = vpop.f32.mrf.mxu1 }
 0x101   :  { %v763_v44 = vadd.f32 %v1147_v43, %v698_v41 }
 0x102   :  { %v1167_v54 = vpop.f32.mrf.mxu0  ;;  %v1609_v55 = vpop.f32.mrf.mxu1 }
 0x104   :  { %v1168_v57 = vpop.f32.mrf.mxu0  ;;  %v1215_v62 = vpop.f32.mrf.mxu1 }
 0x105   :  { %v1169_v61 = vadd.f32 %v1168_v57, %v1167_v54  ;;  %v755_v54 = vadd.f32 %v1141_v28, %v690_v27 }
 0x106   :  { %v1170_v63 = vpop.f32.mrf.mxu0  ;;  %v868_v1 = vpop.f32.mrf.mxu1 }
 0x107   :  { %v804_v0 = vadd.f32 %v1169_v61, %v739_v58 }
 0x108   :  { %v1171_v5 = vpop.f32.mrf.mxu0  ;;  %v1216_v9 = vpop.f32.mrf.mxu1 }
 0x109   :  { %v1172_v7 = vadd.f32 %v1171_v5, %v1170_v63  ;;  %v869_v8 = vadd.f32 %v868_v1, %v804_v0  ;;  %v1110_v0 = vadd.f32 %v1604_v49, %v1595_v45  ;;  %v1150_v49 = vadd.f32 %v1609_v55, %v1606_v50 }
 0x10a   :  { %v1173_v10 = vpop.f32.mrf.mxu0  ;;  %v871_v13 = vpop.f32.mrf.mxu1 }
 0x10b   :  { %vm899_vm1 = vcmp.gt.f32.partialorder %v869_v8, 0.0  ;;  %v907_v11 = vmul.f32 0.01, %v869_v8  ;;  %v807_v12 = vadd.f32 %v1172_v7, %v742_v6  ;;  %v701_v47 = vadd.f32 %v1110_v0, %v1602_v48 }
 0x10c   :  { %v1174_v17 = vpop.f32.mrf.mxu0  ;;  %v1614_v24 = vpop.f32.mrf.mxu1 }
 0x10d   :  { %v915_v19 = vsel %vm899_vm1, %v869_v8, %v907_v11  ;;  %v1175_v20 = vadd.f32 %v1174_v17, %v1173_v10  ;;  %v872_v21 = vadd.f32 %v871_v13, %v807_v12  ;;  %v766_v16 = vadd.f32 %v1150_v49, %v701_v47 }
 0x10e   :  { %v1063_v22 = vpack.c.bf16 %v915_v19, %v915_v19  ;;  %v1176_v23 = vpop.f32.mrf.mxu0  ;;  %v884_v51 = vpop.f32.mrf.mxu1 }
 0x10f   :  { %v812_v25 = vadd.f32 %v1175_v20, %v747_v14  ;;  %vm900_vm3 = vcmp.gt.f32.partialorder %v872_v21, 0.0  ;;  %v908_v26 = vmul.f32 0.01, %v872_v21 }
 0x110   :  { %956 = vst.msk [vmem:[%s1666_s3] sm:$0xf] %vm955_vm2, %v1063_v22  ;;  %v1177_v30 = vpop.f32.mrf.mxu0  ;;  %v1220_v61 = vpop.f32.mrf.mxu1 }
 0x111   :  { %v877_v32 = vadd.f32 %v1215_v62, %v812_v25  ;;  %v916_v33 = vsel %vm900_vm3, %v872_v21, %v908_v26  ;;  %v1178_v34 = vadd.f32 %v1177_v30, %v1176_v23 }
 0x112   :  { %v1064_v35 = vpack.c.bf16 %v916_v33, %v916_v33  ;;  %v1179_v46 = vpop.f32.mrf.mxu0  ;;  %v887_v6 = vpop.f32.mrf.mxu1 }
 0x113   :  { %vm901_vm4 = vcmp.gt.f32.partialorder %v877_v32, 0.0  ;;  %v909_v52 = vmul.f32 0.01, %v877_v32  ;;  %v815_v53 = vadd.f32 %v1178_v34, %v750_v31 }
 0x114   :  { %957 = vst.msk [vmem:[%s1666_s3 + $0x4] sm:$0xf] %vm955_vm2, %v1064_v35  ;;  %v1180_v38 = vpop.f32.mrf.mxu0 }
 0x115   :  { %v917_v56 = vsel %vm901_vm4, %v877_v32, %v909_v52  ;;  %v880_v57 = vadd.f32 %v1216_v9, %v815_v53  ;;  %v1181_v58 = vadd.f32 %v1180_v38, %v1179_v46 }
 0x116   :  { %v1065_v59 = vpack.c.bf16 %v917_v56, %v917_v56  ;;  %v1182_v60 = vpop.f32.mrf.mxu0 }
 0x117   :  { %vm902_vm5 = vcmp.gt.f32.partialorder %v880_v57, 0.0  ;;  %v910_v62 = vmul.f32 0.01, %v880_v57  ;;  %v820_v63 = vadd.f32 %v1181_v58, %v755_v54 }
 0x118   :  { %958 = vst.msk [vmem:[%s1666_s3 + $0x8] sm:$0xf] %vm955_vm2, %v1065_v59  ;;  %v1183_v40 = vpop.f32.mrf.mxu0 }
 0x119   :  { %v918_v1 = vsel %vm902_vm5, %v880_v57, %v910_v62  ;;  %v1184_v2 = vadd.f32 %v1183_v40, %v1182_v60  ;;  %v885_v3 = vadd.f32 %v884_v51, %v820_v63 }
 0x11a   :  { %v1066_v4 = vpack.c.bf16 %v918_v1, %v918_v1  ;;  %v1185_v5 = vpop.f32.mrf.mxu0 }
 0x11b   :  { %vm903_vm6 = vcmp.gt.f32.partialorder %v885_v3, 0.0  ;;  %v911_v7 = vmul.f32 0.01, %v885_v3  ;;  %v823_v8 = vadd.f32 %v1184_v2, %v758_v42 }
 0x11c   :  { %959 = vst.msk [vmem:[%s1666_s3 + $0xc] sm:$0xf] %vm955_vm2, %v1066_v4  ;;  %v1186_v45 = vpop.f32.mrf.mxu0 }
 0x11d   :  { %v919_v9 = vsel %vm903_vm6, %v885_v3, %v911_v7  ;;  %v1187_v10 = vadd.f32 %v1186_v45, %v1185_v5  ;;  %v888_v11 = vadd.f32 %v887_v6, %v823_v8 }
 0x11e   :  { %v1067_v12 = vpack.c.bf16 %v919_v9, %v919_v9  ;;  %v1188_v13 = vpop.f32.mrf.mxu0 }
 0x11f   :  { %v828_v14 = vadd.f32 %v1187_v10, %v763_v44  ;;  %vm904_vm7 = vcmp.gt.f32.partialorder %v888_v11, 0.0  ;;  %v912_v15 = vmul.f32 0.01, %v888_v11 }
 0x120   :  { %960 = vst.msk [vmem:[%s1666_s3 + $0x10] sm:$0xf] %vm955_vm2, %v1067_v12  ;;  %v1189_v48 = vpop.f32.mrf.mxu0 }
 0x121   :  { %v893_v17 = vadd.f32 %v1614_v24, %v828_v14  ;;  %v920_v18 = vsel %vm904_vm7, %v888_v11, %v912_v15  ;;  %v1190_v19 = vadd.f32 %v1189_v48, %v1188_v13 }
 0x122   :  { %v1068_v50 = vpack.c.bf16 %v920_v18, %v920_v18 }
 0x123   :  { %vm905_vm8 = vcmp.gt.f32.partialorder %v893_v17, 0.0  ;;  %v913_v55 = vmul.f32 0.01, %v893_v17  ;;  %v831_v20 = vadd.f32 %v1190_v19, %v766_v16 }
 0x124   :  { %961 = vst.msk [vmem:[%s1666_s3 + $0x14] sm:$0xf] %vm955_vm2, %v1068_v50 }
 0x125   :  { %v921_v21 = vsel %vm905_vm8, %v893_v17, %v913_v55  ;;  %v896_v22 = vadd.f32 %v1220_v61, %v831_v20 }
 0x126   :  { %v1069_v23 = vpack.c.bf16 %v921_v21, %v921_v21 }
 0x127   :  { %vm906_vm9 = vcmp.gt.f32.partialorder %v896_v22, 0.0  ;;  %v914_v25 = vmul.f32 0.01, %v896_v22 }
 0x128   :  { %962 = vst.msk [vmem:[%s1666_s3 + $0x18] sm:$0xf] %vm955_vm2, %v1069_v23 }
 0x129   :  { %v922_v24 = vsel %vm906_vm9, %v896_v22, %v914_v25 }
 0x12a   :  { %v1070_v26 = vpack.c.bf16 %v922_v24, %v922_v24 }
 0x12c   :  { %963 = vst.msk [vmem:[%s1666_s3 + $0x1c] sm:$0xf] %vm955_vm2, %v1070_v26 }

// kernel: dvanet_forward.156
= control target key start
LH: loop header
LB: loop body
LE: loop exit
PB: predicated region body
PF: predicated region fallthrough
CT: control target
= control target key end

     0   :  { %vm628_vm0 = vcmask 785408   ;;  %vm901_vm1 = vcmask 7168   ;;  %s1584_s1 = inlined_call_operand.vmem [shape: bf16[864,1], index: 1, kind: input, shape index: {}]   ;;  %s1585_s0 = inlined_call_operand.vmem [shape: bf16[64,864], index: 0, kind: input, shape index: {}]   ;;  %s1586_s2 = inlined_call_operand.<no memory space> [shape: f32[1,1], index: 2, kind: input, shape index: {}]   ;;  %s1587_s3 = inlined_call_operand.vmem [shape: f32[64,1], index: 3, kind: output, shape index: {}]  }
   0x1   :  { %v1151_v0 = vld [vmem:[%s1584_s1 + $0x78] sm:$0xff]   ;;  %v1155_v4 = vld [vmem:[%s1584_s1 + $0x70] sm:$0xff]   ;;  %v1159_v8 = vld [vmem:[%s1584_s1 + $0x68] sm:$0xff]  }
   0x2   :  { %v1152_v1 = vld [vmem:[%s1584_s1 + $0x38] sm:$0xff]   ;;  %1001 = vmatprep.subr.bf16.mxu0 %v1151_v0  ;;  %v1156_v5 = vld [vmem:[%s1584_s1 + $0x30] sm:$0xff]   ;;  %v1160_v9 = vld [vmem:[%s1584_s1 + $0x28] sm:$0xff]  }
   0x3   :  { %v1153_v2 = vld [vmem:[%s1584_s1 + $0xf8] sm:$0xff]   ;;  %1002 = vmatpush3.bf16.msra.mxu0 %v1152_v1  ;;  %v1157_v6 = vld [vmem:[%s1584_s1 + $0xf0] sm:$0xff]   ;;  %v1161_v10 = vld [vmem:[%s1584_s1 + $0xe8] sm:$0xff]  }
   0x4   :  { %v1154_v3 = vld [vmem:[%s1584_s1 + $0xb8] sm:$0xff]   ;;  %1041 = vmatprep.subr.bf16.mxu1 %v1153_v2  ;;  %1003 = vmatprep.subr.bf16.mxu0 %v1155_v4  ;;  %v1158_v7 = vld [vmem:[%s1584_s1 + $0xb0] sm:$0xff]   ;;  %v1162_v11 = vld [vmem:[%s1584_s1 + $0xa8] sm:$0xff]  }
   0x5   :  { %1042 = vmatpush3.bf16.msra.mxu1 %v1154_v3  ;;  %v1163_v12 = vld [vmem:[%s1584_s1 + $0x60] sm:$0xff]   ;;  %v1167_v16 = vld [vmem:[%s1584_s1 + $0x58] sm:$0xff]   ;;  %v1171_v20 = vld [vmem:[%s1584_s1 + $0x50] sm:$0xff]  }
   0x6   :  { %1043 = vmatprep.subr.bf16.mxu1 %v1157_v6  ;;  %v1164_v13 = vld [vmem:[%s1584_s1 + $0x20] sm:$0xff]   ;;  %v1168_v17 = vld [vmem:[%s1584_s1 + $0x18] sm:$0xff]   ;;  %v1172_v21 = vld [vmem:[%s1584_s1 + $0x10] sm:$0xff]  }
   0x7   :  { %1004 = vmatpush3.bf16.msra.mxu0 %v1156_v5  ;;  %v1165_v14 = vld [vmem:[%s1584_s1 + $0xe0] sm:$0xff]   ;;  %v1169_v18 = vld [vmem:[%s1584_s1 + $0xd8] sm:$0xff]   ;;  %v1173_v22 = vld [vmem:[%s1584_s1 + $0xd0] sm:$0xff]  }
   0x8   :  { %1005 = vmatprep.subr.bf16.mxu0 %v1159_v8  ;;  %v1166_v15 = vld [vmem:[%s1584_s1 + $0xa0] sm:$0xff]   ;;  %v1170_v19 = vld [vmem:[%s1584_s1 + $0x98] sm:$0xff]   ;;  %v1174_v23 = vld [vmem:[%s1584_s1 + $0x90] sm:$0xff]  }
   0x9   :  { %1044 = vmatpush3.bf16.msra.mxu1 %v1158_v7  ;;  %v1175_v24 = vld [vmem:[%s1584_s1 + $0x48] sm:$0xff]   ;;  %v1179_v28 = vld [vmem:[%s1584_s1 + $0x40] sm:$0xff]   ;;  %v1186_v34 = vld [vmem:[%s1584_s1 + $0x178] sm:$0xff]  }
   0xa   :  { %1045 = vmatprep.subr.bf16.mxu1 %v1161_v10  ;;  %v1176_v25 = vld [vmem:[%s1584_s1 + $0x8] sm:$0xff]   ;;  %v1180_v29 = vld [vmem:[%s1584_s1] sm:$0xff]   ;;  %v1190_v37 = vld [vmem:[%s1584_s1 + $0x138] sm:$0xff]  }
   0xb   :  { %1006 = vmatpush3.bf16.msra.mxu0 %v1160_v9  ;;  %v1177_v26 = vld [vmem:[%s1584_s1 + $0xc8] sm:$0xff]   ;;  %v1181_v30 = vld [vmem:[%s1584_s1 + $0xc0] sm:$0xff]   ;;  %v1191_v38 = vld [vmem:[%s1584_s1 + $0x170] sm:$0xff]  }
   0xc   :  { %1007 = vmatprep.subr.bf16.mxu0 %v1163_v12  ;;  %v1178_v27 = vld [vmem:[%s1584_s1 + $0x88] sm:$0xff]   ;;  %v1182_v31 = vld [vmem:[%s1585_s0] ss:$28 sps:$4 sm:$0xff]   ;;  %v1192_v39 = vld [vmem:[%s1584_s1 + $0x130] sm:$0xff]  }
   0xd   :  { %1046 = vmatpush3.bf16.msra.mxu1 %v1162_v11  ;;  %v1184_v32 = vld [vmem:[%s1585_s0 + $0x4] ss:$28 sps:$4 sm:$0xff]   ;;  %v1189_v36 = vld [vmem:[%s1585_s0 + $0xc] ss:$28 sps:$4 sm:$0xff]   ;;  %v1193_v40 = vld [vmem:[%s1585_s0 + $0x3c] ss:$28 sps:$4 sm:$0xff]  }
   0xe   :  { %1047 = vmatprep.subr.bf16.mxu1 %v1165_v14  ;;  %v1185_v33 = vld [vmem:[%s1584_s1 + $0x80] sm:$0xff]   ;;  %673 = vmatprep.mubr.bf16.mxu0 %v1184_v32  ;;  %v1195_v41 = vld [vmem:[%s1585_s0 + $0x38] ss:$28 sps:$4 sm:$0xff]   ;;  %v1196_v42 = vld [vmem:[%s1584_s1 + $0x168] sm:$0xff]  }
   0xf   :  { %1008 = vmatpush3.bf16.msra.mxu0 %v1164_v13  ;;  %v1187_v35 = vld [vmem:[%s1585_s0 + $0x8] ss:$28 sps:$4 sm:$0xff]   ;;  %738 = vmatprep.mubr.bf16.mxu1 %v1189_v36  ;;  %v1200_v45 = vld [vmem:[%s1585_s0 + $0x40] ss:$28 sps:$4 sm:$0xff]   ;;  %v1204_v49 = vld [vmem:[%s1585_s0 + $0x74] ss:$28 sps:$4 sm:$0xff]  }
  0x10   :  { %1009 = vmatprep.subr.bf16.mxu0 %v1167_v16  ;;  %v1197_v43 = vld [vmem:[%s1585_s0 + $0x44] ss:$28 sps:$4 sm:$0xff]   ;;  %v1199_v44 = vld [vmem:[%s1584_s1 + $0x128] sm:$0xff]   ;;  %v1207_v51 = vld [vmem:[%s1584_s1 + $0x158] sm:$0xff]  }
  0x11   :  { %1048 = vmatpush3.bf16.msra.mxu1 %v1166_v15  ;;  %v1201_v46 = vld [vmem:[%s1584_s1 + $0x160] sm:$0xff]   ;;  %v1202_v47 = vld [vmem:[%s1584_s1 + $0x1a8] sm:$0xff]   ;;  %v1209_v53 = vld [vmem:[%s1585_s0 + $0x7c] ss:$28 sps:$4 sm:$0xff]  }
  0x12   :  { %1049 = vmatprep.subr.bf16.mxu1 %v1169_v18  ;;  %v1203_v48 = vld [vmem:[%s1584_s1 + $0x120] sm:$0xff]   ;;  %v1206_v50 = vld [vmem:[%s1585_s0 + $0x70] ss:$28 sps:$4 sm:$0xff]   ;;  %v1211_v54 = vld [vmem:[%s1584_s1 + $0x118] sm:$0xff]   ;;  %v8_v18 = vstv %s1586_s2 }
  0x13   :  { %1010 = vmatpush3.bf16.msra.mxu0 %v1168_v17  ;;  %v1208_v52 = vld [vmem:[%s1584_s1 + $0x1a0] sm:$0xff]   ;;  %v1212_v55 = vld [vmem:[%s1585_s0 + $0x78] ss:$28 sps:$4 sm:$0xff]   ;;  %v1216_v59 = vld [vmem:[%s1585_s0 + $0xac] ss:$28 sps:$4 sm:$0xff]  }
  0x14   :  { %1011 = vmatprep.subr.bf16.mxu0 %v1171_v20  ;;  %v1213_v56 = vld [vmem:[%s1584_s1 + $0x150] sm:$0xff]   ;;  %v1214_v57 = vld [vmem:[%s1584_s1 + $0x198] sm:$0xff]   ;;  %v1218_v60 = vld [vmem:[%s1585_s0 + $0xa8] ss:$28 sps:$4 sm:$0xff]   ;;  %9 = vst [vmem:[#allocation2] sm:$0x1] %v8_v18 }
  0x15   :  { %1050 = vmatpush3.bf16.msra.mxu1 %v1170_v19  ;;  %v1215_v58 = vld [vmem:[%s1584_s1 + $0x110] sm:$0xff]   ;;  %v1219_v61 = vld [vmem:[%s1584_s1 + $0x148] sm:$0xff]   ;;  %v1225_v2 = vld [vmem:[%s1584_s1 + $0x140] sm:$0xff]  }
  0x16   :  { %1051 = vmatprep.subr.bf16.mxu1 %v1173_v22  ;;  %v1220_v62 = vld [vmem:[%s1584_s1 + $0x190] sm:$0xff]   ;;  %v1223_v0 = vld [vmem:[%s1584_s1 + $0x108] sm:$0xff]   ;;  %v1227_v4 = vld [vmem:[%s1584_s1 + $0x100] sm:$0xff]  }
  0x17   :  { %1012 = vmatpush3.bf16.msra.mxu0 %v1172_v21  ;;  %v1221_v63 = vld [vmem:[%s1585_s0 + $0xb4] ss:$28 sps:$4 sm:$0xff]   ;;  %v1226_v3 = vld [vmem:[%s1584_s1 + $0x188] sm:$0xff]   ;;  %v1231_v7 = vld [vmem:[%s1584_s1 + $0x180] sm:$0xff]  }
  0x18   :  { %1013 = vmatprep.subr.bf16.mxu0 %v1175_v24  ;;  %v1224_v1 = vld [vmem:[%s1585_s0 + $0xb0] ss:$28 sps:$4 sm:$0xff]   ;;  %v1232_v8 = vld [vmem:[%s1585_s0 + $0x18] ss:$28 sps:$4 sm:$0xff]   ;;  %v1240_v11 = vld [vmem:[%s1585_s0 + $0x88] ss:$28 sps:$4 sm:$0xff]  }
  0x19   :  { %1052 = vmatpush3.bf16.msra.mxu1 %v1174_v23  ;;  %v1228_v5 = vld [vmem:[%s1585_s0 + $0x10] ss:$28 sps:$4 sm:$0xff]   ;;  %v1236_v12 = vld [vmem:[%s1585_s0 + $0x48] ss:$28 sps:$4 sm:$0xff]   ;;  %v1241_v14 = vld [vmem:[%s1585_s0 + $0xc0] ss:$28 sps:$4 sm:$0xff]  }
  0x1a   :  { %1053 = vmatprep.subr.bf16.mxu1 %v1177_v26  ;;  %v1230_v6 = vld [vmem:[%s1585_s0 + $0x14] ss:$28 sps:$4 sm:$0xff]   ;;  %v1234_v10 = vld [vmem:[%s1585_s0 + $0x4c] ss:$28 sps:$4 sm:$0xff]   ;;  %v1237_v13 = vld [vmem:[%s1585_s0 + $0x84] ss:$28 sps:$4 sm:$0xff]  }
  0x1b   :  { %1014 = vmatpush3.bf16.msra.mxu0 %v1176_v25  ;;  %v1233_v9 = vld [vmem:[%s1585_s0 + $0x50] ss:$28 sps:$4 sm:$0xff]   ;;  %v1239_v15 = vld [vmem:[%s1585_s0 + $0x80] ss:$28 sps:$4 sm:$0xff]   ;;  %v1244_v17 = vld [vmem:[%s1585_s0 + $0xb8] ss:$28 sps:$4 sm:$0xff]  }
  0x1c   :  { %1015 = vmatprep.subr.bf16.mxu0 %v1179_v28  ;;  %v1242_v16 = vld [vmem:[%s1585_s0 + $0xbc] ss:$28 sps:$4 sm:$0xff]  }
  0x1d   :  { %1054 = vmatpush3.bf16.msra.mxu1 %v1178_v27 }
  0x1e   :  { %1055 = vmatprep.subr.bf16.mxu1 %v1181_v30 }
  0x1f   :  { %1016 = vmatpush3.bf16.msra.mxu0 %v1180_v29 }
  0x20   :  { %1081 = vmatprep.subr.bf16.mxu0 %v1186_v34 }
  0x21   :  { %1056 = vmatpush3.bf16.msra.mxu1 %v1185_v33 }
  0x22   :  { %674 = vmatmul.mubr.bf16.vlgmr.msra.gmra.mxu0 %v1182_v31  ;;  %1131 = vmatprep.subr.bf16.mxu1 %v1202_v47 }
  0x23   :  { %1082 = vmatpush3.bf16.msra.mxu0 %v1190_v37  ;;  %681 = vmatprep.mubr.bf16.mxu0 %v1193_v40 }
  0x24   :  { %739 = vmatmul.mubr.bf16.vlgmr.msra.gmra.mxu1 %v1187_v35  ;;  %1083 = vmatprep.subr.bf16.mxu0 %v1191_v38 }
  0x25   :  { %746 = vmatprep.mubr.bf16.mxu1 %v1197_v43  ;;  %1132 = vmatpush3.bf16.msra.mxu1 %v1202_v47 }
  0x26   :  { %1133 = vmatprep.subr.bf16.mxu1 %v1208_v52 }
  0x27   :  { %1084 = vmatpush3.bf16.msra.mxu0 %v1192_v39 }
  0x28   :  { %1085 = vmatprep.subr.bf16.mxu0 %v1196_v42 }
  0x29   :  { %1134 = vmatpush3.bf16.msra.mxu1 %v1208_v52 }
  0x2a   :  { %682 = vmatmul.mubr.bf16.gmra.mxu0 %v1195_v41  ;;  %1135 = vmatprep.subr.bf16.mxu1 %v1214_v57 }
  0x2b   :  { %1086 = vmatpush3.bf16.msra.mxu0 %v1199_v44  ;;  %689 = vmatprep.mubr.bf16.mxu0 %v1204_v49  ;;  %v1528_v49 = vld [vmem:[#allocation2] ss:$0 sm:$0xff] }
  0x2c   :  { %747 = vmatmul.mubr.bf16.gmra.mxu1 %v1200_v45  ;;  %1087 = vmatprep.subr.bf16.mxu0 %v1201_v46 }
  0x2d   :  { %754 = vmatprep.mubr.bf16.mxu1 %v1209_v53  ;;  %1136 = vmatpush3.bf16.msra.mxu1 %v1214_v57 }
  0x2e   :  { %1137 = vmatprep.subr.bf16.mxu1 %v1220_v62 }
  0x2f   :  { %1088 = vmatpush3.bf16.msra.mxu0 %v1203_v48 }
  0x30   :  { %1089 = vmatprep.subr.bf16.mxu0 %v1207_v51 }
  0x31   :  { %1138 = vmatpush3.bf16.msra.mxu1 %v1220_v62 }
  0x32   :  { %690 = vmatmul.mubr.bf16.gmra.mxu0 %v1206_v50  ;;  %1139 = vmatprep.subr.bf16.mxu1 %v1226_v3 }
  0x33   :  { %1090 = vmatpush3.bf16.msra.mxu0 %v1211_v54  ;;  %697 = vmatprep.mubr.bf16.mxu0 %v1216_v59 }
  0x34   :  { %755 = vmatmul.mubr.bf16.gmra.mxu1 %v1212_v55  ;;  %1091 = vmatprep.subr.bf16.mxu0 %v1213_v56 }
  0x35   :  { %762 = vmatprep.mubr.bf16.mxu1 %v1221_v63  ;;  %1140 = vmatpush3.bf16.msra.mxu1 %v1226_v3 }
  0x36   :  { %1141 = vmatprep.subr.bf16.mxu1 %v1231_v7 }
  0x37   :  { %1092 = vmatpush3.bf16.msra.mxu0 %v1215_v58 }
  0x38   :  { %1093 = vmatprep.subr.bf16.mxu0 %v1219_v61 }
  0x39   :  { %1142 = vmatpush3.bf16.msra.mxu1 %v1231_v7 }
  0x3a   :  { %698 = vmatmul.mubr.bf16.gmra.mxu0 %v1218_v60 }
  0x3b   :  { %1094 = vmatpush3.bf16.msra.mxu0 %v1223_v0  ;;  %803 = vmatprep.mubr.bf16.mxu0 %v1230_v6 }
  0x3c   :  { %763 = vmatmul.mubr.bf16.gmra.mxu1 %v1224_v1  ;;  %1095 = vmatprep.subr.bf16.mxu0 %v1225_v2 }
  0x3d   :  { %1143 = vmatprep.mubr.msk.bf16.mxu1 %vm628_vm0, %v1232_v8 }
  0x3f   :  { %1096 = vmatpush3.bf16.msra.mxu0 %v1227_v4 }
  0x42   :  { %804 = vmatmul.mubr.bf16.vlgmr.msra.gmra.mxu0 %v1228_v5 }
  0x43   :  { %811 = vmatprep.mubr.bf16.mxu0 %v1234_v10 }
  0x44   :  { %1144 = vmatmul.mubr.msk.bf16.vlgmr.msra.gmra.mxu1 %vm628_vm0, %v1233_v9 }
  0x45   :  { %1147 = vmatprep.mubr.msk.bf16.mxu1 %vm628_vm0, %v1240_v11 }
  0x4a   :  { %812 = vmatmul.mubr.bf16.gmra.mxu0 %v1236_v12 }
  0x4b   :  { %819 = vmatprep.mubr.bf16.mxu0 %v1237_v13 }
  0x4c   :  { %1148 = vmatmul.mubr.msk.bf16.gmra.mxu1 %vm628_vm0, %v1241_v14 }
  0x52   :  { %820 = vmatmul.mubr.bf16.gmra.mxu0 %v1239_v15 }
  0x53   :  { %827 = vmatprep.mubr.bf16.mxu0 %v1242_v16 }
  0x5a   :  { %828 = vmatmul.mubr.bf16.gmra.mxu0 %v1244_v17 }
  0xe2   :  { %v1017_v19 = vpop.f32.mrf.mxu0 }
  0xe4   :  { %v1018_v20 = vpop.f32.mrf.mxu0  ;;  %v1057_v21 = vpop.f32.mrf.mxu1 }
  0xe5   :  { %v1019_v47 = vadd.f32 %v1018_v20, %v1017_v19 }
  0xe6   :  { %v1020_v22 = vpop.f32.mrf.mxu0  ;;  %v1058_v23 = vpop.f32.mrf.mxu1 }
  0xe7   :  { %v676_v52 = vadd.f32 %v1019_v47, %v1528_v49  ;;  %v1059_v53 = vadd.f32 %v1058_v23, %v1057_v21 }
  0xe8   :  { %v1021_v24 = vpop.f32.mrf.mxu0  ;;  %v1060_v25 = vpop.f32.mrf.mxu1 }
  0xe9   :  { %v1022_v54 = vadd.f32 %v1021_v24, %v1020_v22  ;;  %v741_v59 = vadd.f32 %v1059_v53, %v676_v52 }
  0xea   :  { %v1023_v26 = vpop.f32.mrf.mxu0  ;;  %v1061_v27 = vpop.f32.mrf.mxu1 }
  0xeb   :  { %v679_v60 = vadd.f32 %v1022_v54, %v1528_v49  ;;  %v1062_v61 = vadd.f32 %v1061_v27, %v1060_v25 }
  0xec   :  { %v1024_v28 = vpop.f32.mrf.mxu0  ;;  %v1063_v29 = vpop.f32.mrf.mxu1 }
  0xed   :  { %v1025_v57 = vadd.f32 %v1024_v28, %v1023_v26  ;;  %v744_v6 = vadd.f32 %v1062_v61, %v679_v60 }
  0xee   :  { %v1026_v30 = vpop.f32.mrf.mxu0  ;;  %v1064_v31 = vpop.f32.mrf.mxu1 }
  0xef   :  { %v684_v3 = vadd.f32 %v1025_v57, %v1528_v49  ;;  %v1065_v4 = vadd.f32 %v1064_v31, %v1063_v29 }
  0xf0   :  { %v1027_v32 = vpop.f32.mrf.mxu0  ;;  %v1066_v33 = vpop.f32.mrf.mxu1 }
  0xf1   :  { %v1028_v7 = vadd.f32 %v1027_v32, %v1026_v30  ;;  %v749_v14 = vadd.f32 %v1065_v4, %v684_v3 }
  0xf2   :  { %v1029_v34 = vpop.f32.mrf.mxu0  ;;  %v1067_v35 = vpop.f32.mrf.mxu1 }
  0xf3   :  { %v687_v17 = vadd.f32 %v1028_v7, %v1528_v49  ;;  %v1068_v18 = vadd.f32 %v1067_v35, %v1066_v33 }
  0xf4   :  { %v1030_v36 = vpop.f32.mrf.mxu0  ;;  %v1069_v37 = vpop.f32.mrf.mxu1 }
  0xf5   :  { %v1031_v15 = vadd.f32 %v1030_v36, %v1029_v34  ;;  %v752_v27 = vadd.f32 %v1068_v18, %v687_v17 }
  0xf6   :  { %v1032_v38 = vpop.f32.mrf.mxu0  ;;  %v1070_v39 = vpop.f32.mrf.mxu1 }
  0xf7   :  { %v692_v24 = vadd.f32 %v1031_v15, %v1528_v49  ;;  %v1071_v25 = vadd.f32 %v1070_v39, %v1069_v37 }
  0xf8   :  { %v1033_v40 = vpop.f32.mrf.mxu0  ;;  %v1518_v41 = vpop.f32.mrf.mxu1 }
  0xf9   :  { %v1034_v28 = vadd.f32 %v1033_v40, %v1032_v38  ;;  %v757_v34 = vadd.f32 %v1071_v25, %v692_v24 }
  0xfa   :  { %v1035_v42 = vpop.f32.mrf.mxu0  ;;  %v1520_v43 = vpop.f32.mrf.mxu1 }
  0xfb   :  { %v695_v47 = vadd.f32 %v1034_v28, %v1528_v49  ;;  %v1074_v37 = vadd.f32 %v1520_v43, %v1518_v41 }
  0xfc   :  { %v1036_v44 = vpop.f32.mrf.mxu0  ;;  %v1522_v45 = vpop.f32.mrf.mxu1 }
  0xfd   :  { %v1037_v35 = vadd.f32 %v1036_v44, %v1035_v42 }
  0xfe   :  { %v1524_v46 = vpop.f32.mrf.mxu0  ;;  %v1526_v48 = vpop.f32.mrf.mxu1 }
  0xff   :  { %v700_v54 = vadd.f32 %v1037_v35, %v1528_v49  ;;  %v1077_v42 = vadd.f32 %v1526_v48, %v1522_v45 }
 0x100   :  { %v1530_v50 = vpop.f32.mrf.mxu0  ;;  %v1532_v51 = vpop.f32.mrf.mxu1 }
 0x101   :  { %v1040_v41 = vadd.f32 %v1530_v50, %v1524_v46  ;;  %v765_v61 = vadd.f32 %v1077_v42, %v700_v54 }
 0x102   :  { %v1097_v55 = vpop.f32.mrf.mxu0  ;;  %v1535_v56 = vpop.f32.mrf.mxu1 }
 0x103   :  { %v1080_v45 = vadd.f32 %v1535_v56, %v1532_v51 }
 0x104   :  { %v1098_v58 = vpop.f32.mrf.mxu0  ;;  %v1145_v63 = vpop.f32.mrf.mxu1 }
 0x105   :  { %v1099_v62 = vadd.f32 %v1098_v58, %v1097_v55  ;;  %v760_v55 = vadd.f32 %v1074_v37, %v695_v47 }
 0x106   :  { %v1100_v0 = vpop.f32.mrf.mxu0  ;;  %v870_v2 = vpop.f32.mrf.mxu1 }
 0x107   :  { %v806_v1 = vadd.f32 %v1099_v62, %v741_v59 }
 0x108   :  { %v1101_v5 = vpop.f32.mrf.mxu0  ;;  %v1146_v10 = vpop.f32.mrf.mxu1 }
 0x109   :  { %v1102_v8 = vadd.f32 %v1101_v5, %v1100_v0  ;;  %v871_v9 = vadd.f32 %v870_v2, %v806_v1 }
 0x10a   :  { %v1103_v11 = vpop.f32.mrf.mxu0  ;;  %v873_v13 = vpop.f32.mrf.mxu1 }
 0x10b   :  { %902 = vst.msk [vmem:[%s1587_s3] sm:$0xff] %vm901_vm1, %v871_v9  ;;  %v809_v12 = vadd.f32 %v1102_v8, %v744_v6 }
 0x10c   :  { %v1104_v16 = vpop.f32.mrf.mxu0  ;;  %v1149_v22 = vpop.f32.mrf.mxu1 }
 0x10d   :  { %v1105_v19 = vadd.f32 %v1104_v16, %v1103_v11  ;;  %v874_v20 = vadd.f32 %v873_v13, %v809_v12 }
 0x10e   :  { %v1106_v21 = vpop.f32.mrf.mxu0  ;;  %v886_v32 = vpop.f32.mrf.mxu1 }
 0x10f   :  { %v814_v23 = vadd.f32 %v1105_v19, %v749_v14  ;;  %903 = vst.msk [vmem:[%s1587_s3 + $0x8] sm:$0xff] %vm901_vm1, %v874_v20 }
 0x110   :  { %v1107_v26 = vpop.f32.mrf.mxu0  ;;  %v1150_v52 = vpop.f32.mrf.mxu1 }
 0x111   :  { %v879_v29 = vadd.f32 %v1145_v63, %v814_v23  ;;  %v1108_v30 = vadd.f32 %v1107_v26, %v1106_v21  ;;  %v703_v63 = vadd.f32 %v1040_v41, %v1528_v49 }
 0x112   :  { %v1109_v31 = vpop.f32.mrf.mxu0  ;;  %v889_v59 = vpop.f32.mrf.mxu1 }
 0x113   :  { %904 = vst.msk [vmem:[%s1587_s3 + $0x10] sm:$0xff] %vm901_vm1, %v879_v29  ;;  %v817_v33 = vadd.f32 %v1108_v30, %v752_v27  ;;  %v768_v2 = vadd.f32 %v1080_v45, %v703_v63 }
 0x114   :  { %v1110_v36 = vpop.f32.mrf.mxu0 }
 0x115   :  { %v882_v39 = vadd.f32 %v1146_v10, %v817_v33  ;;  %v1111_v38 = vadd.f32 %v1110_v36, %v1109_v31 }
 0x116   :  { %v1112_v40 = vpop.f32.mrf.mxu0 }
 0x117   :  { %905 = vst.msk [vmem:[%s1587_s3 + $0x18] sm:$0xff] %vm901_vm1, %v882_v39  ;;  %v822_v53 = vadd.f32 %v1111_v38, %v757_v34 }
 0x118   :  { %v1113_v44 = vpop.f32.mrf.mxu0 }
 0x119   :  { %v1114_v43 = vadd.f32 %v1113_v44, %v1112_v40  ;;  %v887_v57 = vadd.f32 %v886_v32, %v822_v53 }
 0x11a   :  { %v1115_v58 = vpop.f32.mrf.mxu0 }
 0x11b   :  { %906 = vst.msk [vmem:[%s1587_s3 + $0x20] sm:$0xff] %vm901_vm1, %v887_v57  ;;  %v825_v60 = vadd.f32 %v1114_v43, %v760_v55 }
 0x11c   :  { %v1116_v62 = vpop.f32.mrf.mxu0 }
 0x11d   :  { %v1117_v48 = vadd.f32 %v1116_v62, %v1115_v58  ;;  %v890_v0 = vadd.f32 %v889_v59, %v825_v60 }
 0x11e   :  { %v1118_v46 = vpop.f32.mrf.mxu0 }
 0x11f   :  { %v830_v50 = vadd.f32 %v1117_v48, %v765_v61  ;;  %907 = vst.msk [vmem:[%s1587_s3 + $0x28] sm:$0xff] %vm901_vm1, %v890_v0 }
 0x120   :  { %v1119_v1 = vpop.f32.mrf.mxu0 }
 0x121   :  { %v895_v3 = vadd.f32 %v1149_v22, %v830_v50  ;;  %v1120_v4 = vadd.f32 %v1119_v1, %v1118_v46 }
 0x123   :  { %908 = vst.msk [vmem:[%s1587_s3 + $0x30] sm:$0xff] %vm901_vm1, %v895_v3  ;;  %v833_v49 = vadd.f32 %v1120_v4, %v768_v2 }
 0x125   :  { %v898_v51 = vadd.f32 %v1150_v52, %v833_v49 }
 0x127   :  { %909 = vst.msk [vmem:[%s1587_s3 + $0x38] sm:$0xff] %vm901_vm1, %v898_v51 }

// kernel: dvanet_forward.157
= control target key start
LH: loop header
LB: loop body
LE: loop exit
PB: predicated region body
PF: predicated region fallthrough
CT: control target
= control target key end

     0   :  { %vm9_vm0 = vcmask 125952   ;;  %s58_s0 = inlined_call_operand.vmem [shape: f32[1,4,16], index: 0, kind: input, shape index: {}]   ;;  %s59_s1 = inlined_call_operand.vmem [shape: f32[1,4,16], index: 1, kind: output, shape index: {}]  }
   0x1   :  { %v8_v0 = vld [vmem:[%s58_s0] sm:$0xf] }
   0x2   :  { %v10_v1 = vsel %vm9_vm0, %v8_v0, -inf }
   0x3   :  { %v11_v2 = vrot.slane %v10_v1, 4 }
   0x5   :  { %v12_v3 = vmax.f32 %v10_v1, %v11_v2 }
   0x7   :  { %v13_v4 = vrot.slane %v12_v3, 2 }
   0x9   :  { %v14_v5 = vmax.f32 %v12_v3, %v13_v4 }
   0xb   :  { %v15_v6 = vrot.slane %v14_v5, 1 }
   0xd   :  { %v16_v7 = vmax.f32 %v14_v5, %v15_v6 }
   0xf   :  { %v17_v8 = vsub.f32 %v8_v0, %v16_v7 }
  0x11   :  { %v18_v9 = vmul.f32 1.442695, %v17_v8 }
  0x13   :  { %35 = vpow2.f32 %v18_v9 }
  0x20   :  { %v36_v10 = vpop.eup %35 }
  0x21   :  { %v20_v11 = vsel %vm9_vm0, %v36_v10, 0.0 }
  0x22   :  { %v21_v12 = vrot.slane %v20_v11, 4 }
  0x24   :  { %v22_v13 = vadd.f32 %v21_v12, %v20_v11 }
  0x26   :  { %v23_v14 = vrot.slane %v22_v13, 2 }
  0x28   :  { %v24_v15 = vadd.f32 %v23_v14, %v22_v13 }
  0x2a   :  { %v25_v16 = vrot.slane %v24_v15, 1 }
  0x2c   :  { %v26_v17 = vadd.f32 %v25_v16, %v24_v15 }
  0x2e   :  { %37 = vrcp.f32 %v26_v17 }
  0x3b   :  { %v38_v18 = vpop.eup %37 }
  0x3c   :  { %v29_v19 = vmul.f32 %v38_v18, %v36_v10 }
  0x3e   :  { %30 = vst.msk [vmem:[%s59_s1] sm:$0xf] %vm9_vm0, %v29_v19 }

// kernel: dvanet_forward.130
= control target key start
LH: loop header
LB: loop body
LE: loop exit
PB: predicated region body
PF: predicated region fallthrough
CT: control target
= control target key end

     0   :  { %vm626_vm0 = vcmask 785408   ;;  %vm931_vm1 = vcmask 257024   ;;  %s1636_s1 = inlined_call_operand.vmem [shape: bf16[864,32], index: 1, kind: input, shape index: {}]   ;;  %s1637_s0 = inlined_call_operand.vmem [shape: bf16[64,864], index: 0, kind: input, shape index: {}]   ;;  %s1638_s2 = inlined_call_operand.vmem [shape: f32[1,32], index: 2, kind: input, shape index: {}]   ;;  %s1639_s3 = inlined_call_operand.vmem [shape: bf16[64,32], index: 3, kind: output, shape index: {}]  }
   0x1   :  { %v1197_v0 = vld [vmem:[%s1636_s1 + $0x78] sm:$0xff]   ;;  %v1201_v4 = vld [vmem:[%s1636_s1 + $0x70] sm:$0xff]   ;;  %v1205_v8 = vld [vmem:[%s1636_s1 + $0x68] sm:$0xff]  }
   0x2   :  { %v1198_v1 = vld [vmem:[%s1636_s1 + $0x38] sm:$0xff]   ;;  %1047 = vmatprep.subr.bf16.mxu0 %v1197_v0  ;;  %v1202_v5 = vld [vmem:[%s1636_s1 + $0x30] sm:$0xff]   ;;  %v1206_v9 = vld [vmem:[%s1636_s1 + $0x28] sm:$0xff]  }
   0x3   :  { %v1199_v2 = vld [vmem:[%s1636_s1 + $0xf8] sm:$0xff]   ;;  %1048 = vmatpush3.bf16.msra.mxu0 %v1198_v1  ;;  %v1203_v6 = vld [vmem:[%s1636_s1 + $0xf0] sm:$0xff]   ;;  %v1207_v10 = vld [vmem:[%s1636_s1 + $0xe8] sm:$0xff]  }
   0x4   :  { %v1200_v3 = vld [vmem:[%s1636_s1 + $0xb8] sm:$0xff]   ;;  %1087 = vmatprep.subr.bf16.mxu1 %v1199_v2  ;;  %1049 = vmatprep.subr.bf16.mxu0 %v1201_v4  ;;  %v1204_v7 = vld [vmem:[%s1636_s1 + $0xb0] sm:$0xff]   ;;  %v1208_v11 = vld [vmem:[%s1636_s1 + $0xa8] sm:$0xff]  }
   0x5   :  { %1088 = vmatpush3.bf16.msra.mxu1 %v1200_v3  ;;  %v1209_v12 = vld [vmem:[%s1636_s1 + $0x60] sm:$0xff]   ;;  %v1213_v16 = vld [vmem:[%s1636_s1 + $0x58] sm:$0xff]   ;;  %v1217_v20 = vld [vmem:[%s1636_s1 + $0x50] sm:$0xff]  }
   0x6   :  { %1089 = vmatprep.subr.bf16.mxu1 %v1203_v6  ;;  %v1210_v13 = vld [vmem:[%s1636_s1 + $0x20] sm:$0xff]   ;;  %v1214_v17 = vld [vmem:[%s1636_s1 + $0x18] sm:$0xff]   ;;  %v1218_v21 = vld [vmem:[%s1636_s1 + $0x10] sm:$0xff]  }
   0x7   :  { %1050 = vmatpush3.bf16.msra.mxu0 %v1202_v5  ;;  %v1211_v14 = vld [vmem:[%s1636_s1 + $0xe0] sm:$0xff]   ;;  %v1215_v18 = vld [vmem:[%s1636_s1 + $0xd8] sm:$0xff]   ;;  %v1219_v22 = vld [vmem:[%s1636_s1 + $0xd0] sm:$0xff]  }
   0x8   :  { %1051 = vmatprep.subr.bf16.mxu0 %v1205_v8  ;;  %v1212_v15 = vld [vmem:[%s1636_s1 + $0xa0] sm:$0xff]   ;;  %v1216_v19 = vld [vmem:[%s1636_s1 + $0x98] sm:$0xff]   ;;  %v1220_v23 = vld [vmem:[%s1636_s1 + $0x90] sm:$0xff]  }
   0x9   :  { %1090 = vmatpush3.bf16.msra.mxu1 %v1204_v7  ;;  %v1221_v24 = vld [vmem:[%s1636_s1 + $0x48] sm:$0xff]   ;;  %v1225_v28 = vld [vmem:[%s1636_s1 + $0x40] sm:$0xff]   ;;  %v1232_v34 = vld [vmem:[%s1636_s1 + $0x178] sm:$0xff]  }
   0xa   :  { %1091 = vmatprep.subr.bf16.mxu1 %v1207_v10  ;;  %v1222_v25 = vld [vmem:[%s1636_s1 + $0x8] sm:$0xff]   ;;  %v1226_v29 = vld [vmem:[%s1636_s1] sm:$0xff]   ;;  %v1236_v37 = vld [vmem:[%s1636_s1 + $0x138] sm:$0xff]  }
   0xb   :  { %1052 = vmatpush3.bf16.msra.mxu0 %v1206_v9  ;;  %v1223_v26 = vld [vmem:[%s1636_s1 + $0xc8] sm:$0xff]   ;;  %v1227_v30 = vld [vmem:[%s1636_s1 + $0xc0] sm:$0xff]   ;;  %v1237_v38 = vld [vmem:[%s1636_s1 + $0x170] sm:$0xff]  }
   0xc   :  { %1053 = vmatprep.subr.bf16.mxu0 %v1209_v12  ;;  %v1224_v27 = vld [vmem:[%s1636_s1 + $0x88] sm:$0xff]   ;;  %v1228_v31 = vld [vmem:[%s1637_s0] ss:$28 sps:$4 sm:$0xff]   ;;  %v1238_v39 = vld [vmem:[%s1636_s1 + $0x130] sm:$0xff]  }
   0xd   :  { %1092 = vmatpush3.bf16.msra.mxu1 %v1208_v11  ;;  %v1230_v32 = vld [vmem:[%s1637_s0 + $0x4] ss:$28 sps:$4 sm:$0xff]   ;;  %v1235_v36 = vld [vmem:[%s1637_s0 + $0xc] ss:$28 sps:$4 sm:$0xff]   ;;  %v1239_v40 = vld [vmem:[%s1637_s0 + $0x3c] ss:$28 sps:$4 sm:$0xff]  }
   0xe   :  { %1093 = vmatprep.subr.bf16.mxu1 %v1211_v14  ;;  %v1231_v33 = vld [vmem:[%s1636_s1 + $0x80] sm:$0xff]   ;;  %671 = vmatprep.mubr.bf16.mxu0 %v1230_v32  ;;  %v1241_v41 = vld [vmem:[%s1637_s0 + $0x38] ss:$28 sps:$4 sm:$0xff]   ;;  %v1242_v42 = vld [vmem:[%s1636_s1 + $0x168] sm:$0xff]  }
   0xf   :  { %1054 = vmatpush3.bf16.msra.mxu0 %v1210_v13  ;;  %v1233_v35 = vld [vmem:[%s1637_s0 + $0x8] ss:$28 sps:$4 sm:$0xff]   ;;  %736 = vmatprep.mubr.bf16.mxu1 %v1235_v36  ;;  %v1246_v45 = vld [vmem:[%s1637_s0 + $0x40] ss:$28 sps:$4 sm:$0xff]   ;;  %v1250_v49 = vld [vmem:[%s1637_s0 + $0x74] ss:$28 sps:$4 sm:$0xff]  }
  0x10   :  { %1055 = vmatprep.subr.bf16.mxu0 %v1213_v16  ;;  %v1243_v43 = vld [vmem:[%s1637_s0 + $0x44] ss:$28 sps:$4 sm:$0xff]   ;;  %v1245_v44 = vld [vmem:[%s1636_s1 + $0x128] sm:$0xff]   ;;  %v1253_v51 = vld [vmem:[%s1636_s1 + $0x158] sm:$0xff]  }
  0x11   :  { %1094 = vmatpush3.bf16.msra.mxu1 %v1212_v15  ;;  %v1247_v46 = vld [vmem:[%s1636_s1 + $0x160] sm:$0xff]   ;;  %v1248_v47 = vld [vmem:[%s1636_s1 + $0x1a8] sm:$0xff]   ;;  %v1255_v53 = vld [vmem:[%s1637_s0 + $0x7c] ss:$28 sps:$4 sm:$0xff]  }
  0x12   :  { %1095 = vmatprep.subr.bf16.mxu1 %v1215_v18  ;;  %v1249_v48 = vld [vmem:[%s1636_s1 + $0x120] sm:$0xff]   ;;  %v1252_v50 = vld [vmem:[%s1637_s0 + $0x70] ss:$28 sps:$4 sm:$0xff]   ;;  %v1257_v54 = vld [vmem:[%s1636_s1 + $0x118] sm:$0xff]  }
  0x13   :  { %1056 = vmatpush3.bf16.msra.mxu0 %v1214_v17  ;;  %v1254_v52 = vld [vmem:[%s1636_s1 + $0x1a0] sm:$0xff]   ;;  %v1258_v55 = vld [vmem:[%s1637_s0 + $0x78] ss:$28 sps:$4 sm:$0xff]   ;;  %v1262_v59 = vld [vmem:[%s1637_s0 + $0xac] ss:$28 sps:$4 sm:$0xff]  }
  0x14   :  { %1057 = vmatprep.subr.bf16.mxu0 %v1217_v20  ;;  %v1259_v56 = vld [vmem:[%s1636_s1 + $0x150] sm:$0xff]   ;;  %v1260_v57 = vld [vmem:[%s1636_s1 + $0x198] sm:$0xff]   ;;  %v1264_v60 = vld [vmem:[%s1637_s0 + $0xa8] ss:$28 sps:$4 sm:$0xff]  }
  0x15   :  { %1096 = vmatpush3.bf16.msra.mxu1 %v1216_v19  ;;  %v1261_v58 = vld [vmem:[%s1636_s1 + $0x110] sm:$0xff]   ;;  %v1265_v61 = vld [vmem:[%s1636_s1 + $0x148] sm:$0xff]   ;;  %v1271_v2 = vld [vmem:[%s1636_s1 + $0x140] sm:$0xff]  }
  0x16   :  { %1097 = vmatprep.subr.bf16.mxu1 %v1219_v22  ;;  %v1266_v62 = vld [vmem:[%s1636_s1 + $0x190] sm:$0xff]   ;;  %v1269_v0 = vld [vmem:[%s1636_s1 + $0x108] sm:$0xff]   ;;  %v1273_v4 = vld [vmem:[%s1636_s1 + $0x100] sm:$0xff]  }
  0x17   :  { %1058 = vmatpush3.bf16.msra.mxu0 %v1218_v21  ;;  %v1267_v63 = vld [vmem:[%s1637_s0 + $0xb4] ss:$28 sps:$4 sm:$0xff]   ;;  %v1272_v3 = vld [vmem:[%s1636_s1 + $0x188] sm:$0xff]   ;;  %v1277_v7 = vld [vmem:[%s1636_s1 + $0x180] sm:$0xff]  }
  0x18   :  { %1059 = vmatprep.subr.bf16.mxu0 %v1221_v24  ;;  %v1270_v1 = vld [vmem:[%s1637_s0 + $0xb0] ss:$28 sps:$4 sm:$0xff]   ;;  %v1278_v8 = vld [vmem:[%s1637_s0 + $0x18] ss:$28 sps:$4 sm:$0xff]   ;;  %v1286_v11 = vld [vmem:[%s1637_s0 + $0x88] ss:$28 sps:$4 sm:$0xff]  }
  0x19   :  { %1098 = vmatpush3.bf16.msra.mxu1 %v1220_v23  ;;  %v1274_v5 = vld [vmem:[%s1637_s0 + $0x10] ss:$28 sps:$4 sm:$0xff]   ;;  %v1282_v12 = vld [vmem:[%s1637_s0 + $0x48] ss:$28 sps:$4 sm:$0xff]   ;;  %v1287_v14 = vld [vmem:[%s1637_s0 + $0xc0] ss:$28 sps:$4 sm:$0xff]  }
  0x1a   :  { %1099 = vmatprep.subr.bf16.mxu1 %v1223_v26  ;;  %v1276_v6 = vld [vmem:[%s1637_s0 + $0x14] ss:$28 sps:$4 sm:$0xff]   ;;  %v1280_v10 = vld [vmem:[%s1637_s0 + $0x4c] ss:$28 sps:$4 sm:$0xff]   ;;  %v1283_v13 = vld [vmem:[%s1637_s0 + $0x84] ss:$28 sps:$4 sm:$0xff]  }
  0x1b   :  { %1060 = vmatpush3.bf16.msra.mxu0 %v1222_v25  ;;  %v1279_v9 = vld [vmem:[%s1637_s0 + $0x50] ss:$28 sps:$4 sm:$0xff]   ;;  %v1285_v15 = vld [vmem:[%s1637_s0 + $0x80] ss:$28 sps:$4 sm:$0xff]   ;;  %v1290_v17 = vld [vmem:[%s1637_s0 + $0xb8] ss:$28 sps:$4 sm:$0xff]  }
  0x1c   :  { %1061 = vmatprep.subr.bf16.mxu0 %v1225_v28  ;;  %v1288_v16 = vld [vmem:[%s1637_s0 + $0xbc] ss:$28 sps:$4 sm:$0xff]  }
  0x1d   :  { %1100 = vmatpush3.bf16.msra.mxu1 %v1224_v27 }
  0x1e   :  { %1101 = vmatprep.subr.bf16.mxu1 %v1227_v30 }
  0x1f   :  { %1062 = vmatpush3.bf16.msra.mxu0 %v1226_v29 }
  0x20   :  { %1127 = vmatprep.subr.bf16.mxu0 %v1232_v34 }
  0x21   :  { %1102 = vmatpush3.bf16.msra.mxu1 %v1231_v33 }
  0x22   :  { %672 = vmatmul.mubr.bf16.vlgmr.msra.gmra.mxu0 %v1228_v31  ;;  %1177 = vmatprep.subr.bf16.mxu1 %v1248_v47 }
  0x23   :  { %1128 = vmatpush3.bf16.msra.mxu0 %v1236_v37  ;;  %679 = vmatprep.mubr.bf16.mxu0 %v1239_v40 }
  0x24   :  { %737 = vmatmul.mubr.bf16.vlgmr.msra.gmra.mxu1 %v1233_v35  ;;  %1129 = vmatprep.subr.bf16.mxu0 %v1237_v38 }
  0x25   :  { %744 = vmatprep.mubr.bf16.mxu1 %v1243_v43  ;;  %1178 = vmatpush3.bf16.msra.mxu1 %v1248_v47 }
  0x26   :  { %1179 = vmatprep.subr.bf16.mxu1 %v1254_v52 }
  0x27   :  { %1130 = vmatpush3.bf16.msra.mxu0 %v1238_v39 }
  0x28   :  { %1131 = vmatprep.subr.bf16.mxu0 %v1242_v42 }
  0x29   :  { %1180 = vmatpush3.bf16.msra.mxu1 %v1254_v52 }
  0x2a   :  { %680 = vmatmul.mubr.bf16.gmra.mxu0 %v1241_v41  ;;  %1181 = vmatprep.subr.bf16.mxu1 %v1260_v57 }
  0x2b   :  { %1132 = vmatpush3.bf16.msra.mxu0 %v1245_v44  ;;  %687 = vmatprep.mubr.bf16.mxu0 %v1250_v49 }
  0x2c   :  { %745 = vmatmul.mubr.bf16.gmra.mxu1 %v1246_v45  ;;  %1133 = vmatprep.subr.bf16.mxu0 %v1247_v46 }
  0x2d   :  { %752 = vmatprep.mubr.bf16.mxu1 %v1255_v53  ;;  %1182 = vmatpush3.bf16.msra.mxu1 %v1260_v57 }
  0x2e   :  { %1183 = vmatprep.subr.bf16.mxu1 %v1266_v62 }
  0x2f   :  { %1134 = vmatpush3.bf16.msra.mxu0 %v1249_v48  ;;  %v1578_v48 = vld [vmem:[%s1638_s2] ss:$0 sm:$0xff] }
  0x30   :  { %1135 = vmatprep.subr.bf16.mxu0 %v1253_v51 }
  0x31   :  { %1184 = vmatpush3.bf16.msra.mxu1 %v1266_v62 }
  0x32   :  { %688 = vmatmul.mubr.bf16.gmra.mxu0 %v1252_v50  ;;  %1185 = vmatprep.subr.bf16.mxu1 %v1272_v3 }
  0x33   :  { %1136 = vmatpush3.bf16.msra.mxu0 %v1257_v54  ;;  %695 = vmatprep.mubr.bf16.mxu0 %v1262_v59 }
  0x34   :  { %753 = vmatmul.mubr.bf16.gmra.mxu1 %v1258_v55  ;;  %1137 = vmatprep.subr.bf16.mxu0 %v1259_v56 }
  0x35   :  { %760 = vmatprep.mubr.bf16.mxu1 %v1267_v63  ;;  %1186 = vmatpush3.bf16.msra.mxu1 %v1272_v3 }
  0x36   :  { %1187 = vmatprep.subr.bf16.mxu1 %v1277_v7 }
  0x37   :  { %1138 = vmatpush3.bf16.msra.mxu0 %v1261_v58 }
  0x38   :  { %1139 = vmatprep.subr.bf16.mxu0 %v1265_v61 }
  0x39   :  { %1188 = vmatpush3.bf16.msra.mxu1 %v1277_v7 }
  0x3a   :  { %696 = vmatmul.mubr.bf16.gmra.mxu0 %v1264_v60 }
  0x3b   :  { %1140 = vmatpush3.bf16.msra.mxu0 %v1269_v0  ;;  %801 = vmatprep.mubr.bf16.mxu0 %v1276_v6 }
  0x3c   :  { %761 = vmatmul.mubr.bf16.gmra.mxu1 %v1270_v1  ;;  %1141 = vmatprep.subr.bf16.mxu0 %v1271_v2 }
  0x3d   :  { %1189 = vmatprep.mubr.msk.bf16.mxu1 %vm626_vm0, %v1278_v8 }
  0x3f   :  { %1142 = vmatpush3.bf16.msra.mxu0 %v1273_v4 }
  0x42   :  { %802 = vmatmul.mubr.bf16.vlgmr.msra.gmra.mxu0 %v1274_v5 }
  0x43   :  { %809 = vmatprep.mubr.bf16.mxu0 %v1280_v10 }
  0x44   :  { %1190 = vmatmul.mubr.msk.bf16.vlgmr.msra.gmra.mxu1 %vm626_vm0, %v1279_v9 }
  0x45   :  { %1193 = vmatprep.mubr.msk.bf16.mxu1 %vm626_vm0, %v1286_v11 }
  0x4a   :  { %810 = vmatmul.mubr.bf16.gmra.mxu0 %v1282_v12 }
  0x4b   :  { %817 = vmatprep.mubr.bf16.mxu0 %v1283_v13 }
  0x4c   :  { %1194 = vmatmul.mubr.msk.bf16.gmra.mxu1 %vm626_vm0, %v1287_v14 }
  0x52   :  { %818 = vmatmul.mubr.bf16.gmra.mxu0 %v1285_v15 }
  0x53   :  { %825 = vmatprep.mubr.bf16.mxu0 %v1288_v16 }
  0x5a   :  { %826 = vmatmul.mubr.bf16.gmra.mxu0 %v1290_v17 }
  0xe2   :  { %v1063_v18 = vpop.f32.mrf.mxu0 }
  0xe4   :  { %v1064_v19 = vpop.f32.mrf.mxu0  ;;  %v1103_v20 = vpop.f32.mrf.mxu1 }
  0xe5   :  { %v1065_v46 = vadd.f32 %v1064_v19, %v1063_v18 }
  0xe6   :  { %v1066_v21 = vpop.f32.mrf.mxu0  ;;  %v1104_v22 = vpop.f32.mrf.mxu1 }
  0xe7   :  { %v674_v51 = vadd.f32 %v1065_v46, %v1578_v48  ;;  %v1105_v52 = vadd.f32 %v1104_v22, %v1103_v20 }
  0xe8   :  { %v1067_v23 = vpop.f32.mrf.mxu0  ;;  %v1106_v24 = vpop.f32.mrf.mxu1 }
  0xe9   :  { %v1068_v53 = vadd.f32 %v1067_v23, %v1066_v21  ;;  %v739_v58 = vadd.f32 %v1105_v52, %v674_v51 }
  0xea   :  { %v1069_v25 = vpop.f32.mrf.mxu0  ;;  %v1107_v26 = vpop.f32.mrf.mxu1 }
  0xeb   :  { %v677_v59 = vadd.f32 %v1068_v53, %v1578_v48  ;;  %v1108_v60 = vadd.f32 %v1107_v26, %v1106_v24 }
  0xec   :  { %v1070_v27 = vpop.f32.mrf.mxu0  ;;  %v1109_v28 = vpop.f32.mrf.mxu1 }
  0xed   :  { %v1071_v56 = vadd.f32 %v1070_v27, %v1069_v25  ;;  %v742_v5 = vadd.f32 %v1108_v60, %v677_v59 }
  0xee   :  { %v1072_v29 = vpop.f32.mrf.mxu0  ;;  %v1110_v30 = vpop.f32.mrf.mxu1 }
  0xef   :  { %v682_v2 = vadd.f32 %v1071_v56, %v1578_v48  ;;  %v1111_v3 = vadd.f32 %v1110_v30, %v1109_v28 }
  0xf0   :  { %v1073_v31 = vpop.f32.mrf.mxu0  ;;  %v1112_v32 = vpop.f32.mrf.mxu1 }
  0xf1   :  { %v1074_v6 = vadd.f32 %v1073_v31, %v1072_v29  ;;  %v747_v14 = vadd.f32 %v1111_v3, %v682_v2 }
  0xf2   :  { %v1075_v33 = vpop.f32.mrf.mxu0  ;;  %v1113_v34 = vpop.f32.mrf.mxu1 }
  0xf3   :  { %v685_v17 = vadd.f32 %v1074_v6, %v1578_v48  ;;  %v1114_v18 = vadd.f32 %v1113_v34, %v1112_v32 }
  0xf4   :  { %v1076_v35 = vpop.f32.mrf.mxu0  ;;  %v1115_v36 = vpop.f32.mrf.mxu1 }
  0xf5   :  { %v1077_v15 = vadd.f32 %v1076_v35, %v1075_v33  ;;  %v750_v28 = vadd.f32 %v1114_v18, %v685_v17 }
  0xf6   :  { %v1078_v37 = vpop.f32.mrf.mxu0  ;;  %v1116_v38 = vpop.f32.mrf.mxu1 }
  0xf7   :  { %v690_v25 = vadd.f32 %v1077_v15, %v1578_v48  ;;  %v1117_v26 = vadd.f32 %v1116_v38, %v1115_v36 }
  0xf8   :  { %v1079_v39 = vpop.f32.mrf.mxu0  ;;  %v1561_v40 = vpop.f32.mrf.mxu1 }
  0xf9   :  { %v1080_v29 = vadd.f32 %v1079_v39, %v1078_v37  ;;  %v755_v46 = vadd.f32 %v1117_v26, %v690_v25 }
  0xfa   :  { %v1563_v41 = vpop.f32.mrf.mxu0  ;;  %v1565_v42 = vpop.f32.mrf.mxu1 }
  0xfb   :  { %v693_v36 = vadd.f32 %v1080_v29, %v1578_v48  ;;  %v1120_v37 = vadd.f32 %v1565_v42, %v1561_v40 }
  0xfc   :  { %v1567_v43 = vpop.f32.mrf.mxu0  ;;  %v1569_v44 = vpop.f32.mrf.mxu1 }
  0xfd   :  { %v1083_v51 = vadd.f32 %v1567_v43, %v1563_v41  ;;  %v758_v59 = vadd.f32 %v1120_v37, %v693_v36 }
  0xfe   :  { %v1571_v45 = vpop.f32.mrf.mxu0  ;;  %v1573_v47 = vpop.f32.mrf.mxu1 }
  0xff   :  { %v1123_v41 = vadd.f32 %v1573_v47, %v1569_v44 }
 0x100   :  { %v1580_v49 = vpop.f32.mrf.mxu0  ;;  %v1582_v50 = vpop.f32.mrf.mxu1 }
 0x101   :  { %v1086_v40 = vadd.f32 %v1580_v49, %v1571_v45 }
 0x102   :  { %v1143_v54 = vpop.f32.mrf.mxu0  ;;  %v1585_v55 = vpop.f32.mrf.mxu1 }
 0x103   :  { %v701_v44 = vadd.f32 %v1086_v40, %v1578_v48  ;;  %v1126_v47 = vadd.f32 %v1585_v55, %v1582_v50 }
 0x104   :  { %v1144_v57 = vpop.f32.mrf.mxu0  ;;  %v1191_v62 = vpop.f32.mrf.mxu1 }
 0x105   :  { %v1145_v61 = vadd.f32 %v1144_v57, %v1143_v54 }
 0x106   :  { %v1146_v63 = vpop.f32.mrf.mxu0  ;;  %v868_v1 = vpop.f32.mrf.mxu1 }
 0x107   :  { %v804_v0 = vadd.f32 %v1145_v61, %v739_v58  ;;  %v698_v58 = vadd.f32 %v1083_v51, %v1578_v48 }
 0x108   :  { %v1147_v4 = vpop.f32.mrf.mxu0  ;;  %v1192_v9 = vpop.f32.mrf.mxu1 }
 0x109   :  { %v1148_v7 = vadd.f32 %v1147_v4, %v1146_v63  ;;  %v869_v8 = vadd.f32 %v868_v1, %v804_v0  ;;  %v763_v1 = vadd.f32 %v1123_v41, %v698_v58 }
 0x10a   :  { %v1149_v10 = vpop.f32.mrf.mxu0  ;;  %v871_v13 = vpop.f32.mrf.mxu1 }
 0x10b   :  { %v1039_v11 = vpack.c.bf16 %v869_v8, %v869_v8  ;;  %v807_v12 = vadd.f32 %v1148_v7, %v742_v5  ;;  %v766_v7 = vadd.f32 %v1126_v47, %v701_v44 }
 0x10c   :  { %v1150_v16 = vpop.f32.mrf.mxu0  ;;  %v1195_v22 = vpop.f32.mrf.mxu1 }
 0x10d   :  { %932 = vst.msk [vmem:[%s1639_s3] sm:$0xf] %vm931_vm1, %v1039_v11  ;;  %v1151_v19 = vadd.f32 %v1150_v16, %v1149_v10  ;;  %v872_v20 = vadd.f32 %v871_v13, %v807_v12 }
 0x10e   :  { %v1152_v21 = vpop.f32.mrf.mxu0  ;;  %v884_v33 = vpop.f32.mrf.mxu1 }
 0x10f   :  { %v812_v23 = vadd.f32 %v1151_v19, %v747_v14  ;;  %v1040_v24 = vpack.c.bf16 %v872_v20, %v872_v20 }
 0x110   :  { %v1153_v27 = vpop.f32.mrf.mxu0  ;;  %v1196_v54 = vpop.f32.mrf.mxu1 }
 0x111   :  { %v877_v30 = vadd.f32 %v1191_v62, %v812_v23  ;;  %933 = vst.msk [vmem:[%s1639_s3 + $0x4] sm:$0xf] %vm931_vm1, %v1040_v24  ;;  %v1154_v31 = vadd.f32 %v1153_v27, %v1152_v21 }
 0x112   :  { %v1155_v32 = vpop.f32.mrf.mxu0  ;;  %v887_v62 = vpop.f32.mrf.mxu1 }
 0x113   :  { %v1041_v34 = vpack.c.bf16 %v877_v30, %v877_v30  ;;  %v815_v35 = vadd.f32 %v1154_v31, %v750_v28 }
 0x114   :  { %v1156_v52 = vpop.f32.mrf.mxu0 }
 0x115   :  { %934 = vst.msk [vmem:[%s1639_s3 + $0x8] sm:$0xf] %vm931_vm1, %v1041_v34  ;;  %v880_v38 = vadd.f32 %v1192_v9, %v815_v35  ;;  %v1157_v39 = vadd.f32 %v1156_v52, %v1155_v32 }
 0x116   :  { %v1158_v53 = vpop.f32.mrf.mxu0 }
 0x117   :  { %v1042_v56 = vpack.c.bf16 %v880_v38, %v880_v38  ;;  %v820_v57 = vadd.f32 %v1157_v39, %v755_v46 }
 0x118   :  { %v1159_v43 = vpop.f32.mrf.mxu0 }
 0x119   :  { %935 = vst.msk [vmem:[%s1639_s3 + $0xc] sm:$0xf] %vm931_vm1, %v1042_v56  ;;  %v1160_v42 = vadd.f32 %v1159_v43, %v1158_v53  ;;  %v885_v60 = vadd.f32 %v884_v33, %v820_v57 }
 0x11a   :  { %v1161_v61 = vpop.f32.mrf.mxu0 }
 0x11b   :  { %v1043_v63 = vpack.c.bf16 %v885_v60, %v885_v60  ;;  %v823_v0 = vadd.f32 %v1160_v42, %v758_v59 }
 0x11c   :  { %v1162_v2 = vpop.f32.mrf.mxu0 }
 0x11d   :  { %936 = vst.msk [vmem:[%s1639_s3 + $0x10] sm:$0xf] %vm931_vm1, %v1043_v63  ;;  %v1163_v45 = vadd.f32 %v1162_v2, %v1161_v61  ;;  %v888_v49 = vadd.f32 %v887_v62, %v823_v0 }
 0x11e   :  { %v1164_v3 = vpop.f32.mrf.mxu0 }
 0x11f   :  { %v828_v4 = vadd.f32 %v1163_v45, %v763_v1  ;;  %v1044_v5 = vpack.c.bf16 %v888_v49, %v888_v49 }
 0x120   :  { %v1165_v6 = vpop.f32.mrf.mxu0 }
 0x121   :  { %v893_v8 = vadd.f32 %v1195_v22, %v828_v4  ;;  %937 = vst.msk [vmem:[%s1639_s3 + $0x14] sm:$0xf] %vm931_vm1, %v1044_v5  ;;  %v1166_v48 = vadd.f32 %v1165_v6, %v1164_v3 }
 0x123   :  { %v1045_v50 = vpack.c.bf16 %v893_v8, %v893_v8  ;;  %v831_v55 = vadd.f32 %v1166_v48, %v766_v7 }
 0x125   :  { %938 = vst.msk [vmem:[%s1639_s3 + $0x18] sm:$0xf] %vm931_vm1, %v1045_v50  ;;  %v896_v9 = vadd.f32 %v1196_v54, %v831_v55 }
 0x127   :  { %v1046_v10 = vpack.c.bf16 %v896_v9, %v896_v9 }
 0x129   :  { %939 = vst.msk [vmem:[%s1639_s3 + $0x1c] sm:$0xf] %vm931_vm1, %v1046_v10 }

// kernel: dvanet_forward.187
= control target key start
LH: loop header
LB: loop body
LE: loop exit
PB: predicated region body
PF: predicated region fallthrough
CT: control target
= control target key end

     0   :  { %s110_s0 = inlined_call_operand.vmem [shape: bf16[1,16,256], index: 0, kind: input, shape index: {}]   ;;  %s111_s1 = inlined_call_operand.vmem [shape: f32[1,16,256], index: 1, kind: output, shape index: {}]  }
   0x1   :  { %v8_v0 = vld [vmem:[%s110_s0] sm:$0xff]  ;;  %v9_v1 = vld [vmem:[%s110_s0 + $0x8] sm:$0xff] }
   0x2   :  { %v10_v2 = vunpack.c.l.bf16 %v8_v0  ;;  %v12_v3 = vunpack.c.l.bf16 %v9_v1  ;;  %v11_v4 = vunpack.c.h.bf16 %v8_v0  ;;  %v13_v5 = vunpack.c.h.bf16 %v9_v1 }
   0x4   :  { %v14_v6 = vmax.f32 %v10_v2, %v12_v3  ;;  %v21_v7 = vmax.f32 %v11_v4, %v13_v5 }
   0x6   :  { %v15_v8 = vrot.slane %v14_v6, 4  ;;  %v22_v9 = vrot.slane %v21_v7, 4 }
   0x8   :  { %v16_v10 = vmax.f32 %v14_v6, %v15_v8  ;;  %v23_v11 = vmax.f32 %v21_v7, %v22_v9 }
   0xa   :  { %v17_v12 = vrot.slane %v16_v10, 2  ;;  %v24_v13 = vrot.slane %v23_v11, 2 }
   0xc   :  { %v18_v14 = vmax.f32 %v16_v10, %v17_v12  ;;  %v25_v15 = vmax.f32 %v23_v11, %v24_v13 }
   0xe   :  { %v19_v16 = vrot.slane %v18_v14, 1  ;;  %v26_v17 = vrot.slane %v25_v15, 1 }
  0x10   :  { %v20_v18 = vmax.f32 %v18_v14, %v19_v16  ;;  %v27_v19 = vmax.f32 %v25_v15, %v26_v17 }
  0x12   :  { %v28_v20 = vsub.f32 %v10_v2, %v20_v18  ;;  %v30_v21 = vsub.f32 %v12_v3, %v20_v18  ;;  %v29_v22 = vsub.f32 %v11_v4, %v27_v19  ;;  %v31_v23 = vsub.f32 %v13_v5, %v27_v19 }
  0x14   :  { %v32_v24 = vmul.f32 1.442695, %v28_v20  ;;  %v36_v25 = vmul.f32 1.442695, %v30_v21  ;;  %v34_v26 = vmul.f32 1.442695, %v29_v22 }
  0x15   :  { %v38_v27 = vmul.f32 1.442695, %v31_v23 }
  0x16   :  { %70 = vpow2.f32 %v32_v24 }
  0x17   :  { %72 = vpow2.f32 %v36_v25 }
  0x18   :  { %74 = vpow2.f32 %v34_v26 }
  0x19   :  { %76 = vpow2.f32 %v38_v27 }
  0x23   :  { %v71_v28 = vpop.eup %70 }
  0x24   :  { %v73_v29 = vpop.eup %72 }
  0x25   :  { %v75_v30 = vpop.eup %74  ;;  %v40_v31 = vadd.f32 %v73_v29, %v71_v28 }
  0x26   :  { %v77_v32 = vpop.eup %76 }
  0x27   :  { %v41_v33 = vrot.slane %v40_v31, 4  ;;  %v47_v34 = vadd.f32 %v77_v32, %v75_v30 }
  0x29   :  { %v42_v35 = vadd.f32 %v41_v33, %v40_v31  ;;  %v48_v36 = vrot.slane %v47_v34, 4 }
  0x2b   :  { %v43_v37 = vrot.slane %v42_v35, 2  ;;  %v49_v38 = vadd.f32 %v48_v36, %v47_v34 }
  0x2d   :  { %v44_v39 = vadd.f32 %v43_v37, %v42_v35  ;;  %v50_v40 = vrot.slane %v49_v38, 2 }
  0x2f   :  { %v45_v41 = vrot.slane %v44_v39, 1  ;;  %v51_v42 = vadd.f32 %v50_v40, %v49_v38 }
  0x31   :  { %v46_v43 = vadd.f32 %v45_v41, %v44_v39  ;;  %v52_v44 = vrot.slane %v51_v42, 1 }
  0x33   :  { %78 = vrcp.f32 %v46_v43  ;;  %v53_v45 = vadd.f32 %v52_v44, %v51_v42 }
  0x35   :  { %80 = vrcp.f32 %v53_v45 }
  0x40   :  { %v79_v46 = vpop.eup %78 }
  0x41   :  { %v58_v47 = vmul.f32 %v79_v46, %v71_v28  ;;  %v60_v48 = vmul.f32 %v79_v46, %v73_v29 }
  0x42   :  { %v81_v49 = vpop.eup %80 }
  0x43   :  { %62 = vst [vmem:[%s111_s1] sm:$0xff] %v58_v47  ;;  %v59_v50 = vmul.f32 %v81_v49, %v75_v30  ;;  %64 = vst [vmem:[%s111_s1 + $0x10] sm:$0xff] %v60_v48  ;;  %v61_v51 = vmul.f32 %v81_v49, %v77_v32 }
  0x45   :  { %63 = vst [vmem:[%s111_s1 + $0x8] sm:$0xff] %v59_v50  ;;  %65 = vst [vmem:[%s111_s1 + $0x18] sm:$0xff] %v61_v51 }

</bundles_post_ra>
